<compile_context>
chip_gen: v6e
topology: v6e:2x2x1
jax: 0.10.0
libtpu: 0.0.40
codegen_flags: <defaults>
</compile_context>

<pallas_src>
import jax
import jax.numpy as jnp
from jax.experimental import pallas as pl
from jax.experimental.pallas import tpu as pltpu

DET_OFFSET = 1e-6
SQRT_DET_OFFSET = DET_OFFSET ** 0.5


def _make_kernel(H, W, Ft):
    def kernel(x_ref, logdet_ref, valid_ref):
        x = x_ref[0]                                            # (H, W, Ft): maps in lanes

        # per-map min / max over the whole H x W map
        mn = jnp.min(jnp.min(x, axis=1, keepdims=True), axis=0, keepdims=True)   # (1,1,Ft)
        mx = jnp.max(jnp.max(x, axis=1, keepdims=True), axis=0, keepdims=True)   # (1,1,Ft)
        valid = (mx != mn).astype(jnp.float32)                                   # (1,1,Ft)

        # delete_0_row: rows that are all-zero in the RAW map are dropped
        mask = (jnp.max(jnp.abs(x), axis=1, keepdims=True) > 0.0)
        mask = mask.astype(jnp.float32)                                          # (H,1,Ft)

        # normalization with hoisted reciprocal (invalid lanes filtered later)
        denom = mx - mn
        denom_safe = jnp.where(denom > 0.0, denom, 1.0)
        inv_denom = pl.reciprocal(denom_safe)                                    # (1,1,Ft)
        p1 = mask * (x - mn) * inv_denom                                         # (H,W,Ft)
        # extra column so that P~ P~^T == P P^T + det_offset (kept x kept)
        p2 = SQRT_DET_OFFSET * mask                                              # (H,1,Ft)

        # logdet of all Ft maps at once via modified Gram-Schmidt on the rows
        # of [p1 | p2]: d_k are the Cholesky/LDL pivots of the Gram matrix.
        # Deleted rows (mask==0) are zero rows -> forced pivot 1 (identity row),
        # so the product of pivots equals det of the kept k x k matrix.
        logdet = jnp.zeros((1, 1, Ft), jnp.float32)
        for k in range(H):                       # H is small & static -> unrolled
            r1 = p1[k:k + 1, :, :]                                               # (1,W,Ft)
            r2 = p2[k:k + 1, :, :]                                               # (1,1,Ft)
            c = jnp.sum(p1 * r1, axis=1, keepdims=True) + p2 * r2                # (H,1,Ft)
            mk = mask[k:k + 1, :, :]                                             # (1,1,Ft)
            d = mk * c[k:k + 1, :, :] + (1.0 - mk)                               # pivot
            logdet = logdet + jnp.log(d)
            s = c * pl.reciprocal(d)             # exact reciprocal for accuracy
            p1 = p1 - s * r1
            p2 = p2 - s * r2

        logdet_ref[...] = logdet                                                 # (1,1,Ft)
        valid_ref[...] = valid                                                   # (1,1,Ft)

    return kernel


def _pick_ft(F):
    # keep the lane batch at <=128 (vreg/VMEM budget of the per-block working
    # set); fall back to the full F when it has no such divisor (small F).
    for cand in (128, 64):
        if F % cand == 0:
            return cand
    return F


def geometric_loss(x):
    """x: (B, F, H, W) float32 -> scalar average |logdet| (PyTorch semantics)."""
    B, F, H, W = x.shape
    Ft = _pick_ft(F)
    # layout plumbing: put the map index in the lane dimension
    x_t = jnp.transpose(x.astype(jnp.float32), (0, 2, 3, 1))     # (B, H, W, F)

    kernel = _make_kernel(H, W, Ft)
    logdets, valids = pl.pallas_call(
        kernel,
        out_shape=(
            jax.ShapeDtypeStruct((B, 1, F), jnp.float32),
            jax.ShapeDtypeStruct((B, 1, F), jnp.float32),
        ),
        grid_spec=pltpu.PrefetchScalarGridSpec(
            num_scalar_prefetch=0,
            grid=(B, F // Ft),
            in_specs=[pl.BlockSpec((1, H, W, Ft), lambda b, fb: (b, 0, 0, fb))],
            out_specs=[
                pl.BlockSpec((1, 1, Ft), lambda b, fb: (b, 0, fb)),
                pl.BlockSpec((1, 1, Ft), lambda b, fb: (b, 0, fb)),
            ],
        ),
        compiler_params=pltpu.CompilerParams(
            dimension_semantics=("parallel", "parallel")),
    )(x_t)

    vals = logdets.reshape(B * F)
    ok = (valids.reshape(B * F) > 0.5) & jnp.isfinite(vals)
    # mirrors: skip min==max maps, skip nan/inf logdets, abs(), then mean over
    # the surviving entries (torch.mean(torch.stack(list))).  If nothing
    # survives this yields NaN (torch.stack([]) would raise instead).
    contrib = jnp.where(ok, jnp.abs(vals), 0.0)
    count = jnp.sum(ok.astype(jnp.float32))
    return jnp.sum(contrib) / count


if __name__ == "__main__":
    B, F, H, W = 2, 4, 16, 16
    key = jax.random.PRNGKey(0)
    x = jax.random.normal(key, (B, F, H, W), dtype=jnp.float32)
    # exercise delete_0_row: force some all-zero rows
    x = x.at[:, :, 3, :].set(0.0)
    x = x.at[0, 1, 7, :].set(0.0)
    # exercise the min==max skip path: one constant feature map
    x = x.at[1, 2].set(0.5)

    out = geometric_loss(x)
    jax.block_until_ready(out)
    print("KERNEL_OK")
</pallas_src>

<mosaic_0001>
module attributes {stable_mosaic.version = 11 : i64} {
  func.func @kernel(%arg0: i32, %arg1: i32, %arg2: memref<1x16x16x4xf32, #tpu.memory_space<vmem>>, %arg3: memref<1x1x4xf32, #tpu.memory_space<vmem>>, %arg4: memref<1x1x4xf32, #tpu.memory_space<vmem>>) attributes {dimension_semantics = [#tpu.dimension_semantics<parallel>, #tpu.dimension_semantics<parallel>], iteration_bounds = array<i64: 2, 1>, scalar_prefetch = 0 : i64, scratch_operands = 0 : i64, tpu.core_type = #tpu.core_type<tc>, window_params = [{transform_indices = @transform_0, window_bounds = array<i64: 1, 16, 16, 4>}, {transform_indices = @transform_1, window_bounds = array<i64: 1, 1, 4>}, {transform_indices = @transform_2, window_bounds = array<i64: 1, 1, 4>}]} {
    %c0 = arith.constant 0 : index
    %c0_0 = arith.constant 0 : index
    %c0_1 = arith.constant 0 : index
    %c0_2 = arith.constant 0 : index
    %0 = vector.load %arg2[%c0, %c0_0, %c0_1, %c0_2] : memref<1x16x16x4xf32, #tpu.memory_space<vmem>>, vector<1x16x16x4xf32>
    %1 = vector.shape_cast %0 : vector<1x16x16x4xf32> to vector<16x16x4xf32>
    %cst = arith.constant dense<0x7F800000> : vector<16x4xf32>
    %2 = vector.multi_reduction <minimumf>, %1, %cst [1] : vector<16x16x4xf32> to vector<16x4xf32>
    %3 = vector.shape_cast %2 : vector<16x4xf32> to vector<16x1x4xf32>
    %cst_3 = arith.constant dense<0x7F800000> : vector<1x4xf32>
    %4 = vector.multi_reduction <minimumf>, %3, %cst_3 [0] : vector<16x1x4xf32> to vector<1x4xf32>
    %5 = vector.shape_cast %4 : vector<1x4xf32> to vector<1x1x4xf32>
    %cst_4 = arith.constant dense<0xFF800000> : vector<16x4xf32>
    %6 = vector.multi_reduction <maximumf>, %1, %cst_4 [1] : vector<16x16x4xf32> to vector<16x4xf32>
    %7 = vector.shape_cast %6 : vector<16x4xf32> to vector<16x1x4xf32>
    %cst_5 = arith.constant dense<0xFF800000> : vector<1x4xf32>
    %8 = vector.multi_reduction <maximumf>, %7, %cst_5 [0] : vector<16x1x4xf32> to vector<1x4xf32>
    %9 = vector.shape_cast %8 : vector<1x4xf32> to vector<1x1x4xf32>
    %10 = arith.cmpf one, %9, %5 : vector<1x1x4xf32>
    %11 = arith.extui %10 : vector<1x1x4xi1> to vector<1x1x4xi32>
    %12 = arith.sitofp %11 : vector<1x1x4xi32> to vector<1x1x4xf32>
    %13 = math.absf %1 : vector<16x16x4xf32>
    %cst_6 = arith.constant dense<0xFF800000> : vector<16x4xf32>
    %14 = vector.multi_reduction <maximumf>, %13, %cst_6 [1] : vector<16x16x4xf32> to vector<16x4xf32>
    %15 = vector.shape_cast %14 : vector<16x4xf32> to vector<16x1x4xf32>
    %cst_7 = arith.constant 0.000000e+00 : f32
    %16 = vector.broadcast %cst_7 : f32 to vector<16x1x4xf32>
    %17 = arith.cmpf ogt, %15, %16 : vector<16x1x4xf32>
    %18 = arith.extui %17 : vector<16x1x4xi1> to vector<16x1x4xi32>
    %19 = arith.sitofp %18 : vector<16x1x4xi32> to vector<16x1x4xf32>
    %20 = arith.subf %9, %5 : vector<1x1x4xf32>
    %cst_8 = arith.constant 0.000000e+00 : f32
    %21 = vector.broadcast %cst_8 : f32 to vector<1x1x4xf32>
    %22 = arith.cmpf ogt, %20, %21 : vector<1x1x4xf32>
    %cst_9 = arith.constant 1.000000e+00 : f32
    %23 = vector.broadcast %cst_9 : f32 to vector<1x1x4xf32>
    %24 = arith.select %22, %20, %23 : vector<1x1x4xi1>, vector<1x1x4xf32>
    %25 = tpu.reciprocal %24 : vector<1x1x4xf32> -> vector<1x1x4xf32>
    %26 = vector.broadcast %5 : vector<1x1x4xf32> to vector<16x16x4xf32>
    %27 = arith.subf %1, %26 : vector<16x16x4xf32>
    %28 = vector.broadcast %19 : vector<16x1x4xf32> to vector<16x16x4xf32>
    %29 = arith.mulf %28, %27 : vector<16x16x4xf32>
    %30 = vector.broadcast %25 : vector<1x1x4xf32> to vector<16x16x4xf32>
    %31 = arith.mulf %29, %30 : vector<16x16x4xf32>
    %cst_10 = arith.constant 1.000000e-03 : f32
    %32 = vector.broadcast %cst_10 : f32 to vector<16x1x4xf32>
    %33 = arith.mulf %32, %19 : vector<16x1x4xf32>
    %cst_11 = arith.constant 0.000000e+00 : f32
    %34 = vector.broadcast %cst_11 : f32 to vector<1x1x4xf32>
    %35 = vector.extract_strided_slice %31 {offsets = [0, 0, 0], sizes = [1, 16, 4], strides = [1, 1, 1]} : vector<16x16x4xf32> to vector<1x16x4xf32>
    %36 = vector.extract_strided_slice %33 {offsets = [0, 0, 0], sizes = [1, 1, 4], strides = [1, 1, 1]} : vector<16x1x4xf32> to vector<1x1x4xf32>
    %37 = vector.broadcast %35 : vector<1x16x4xf32> to vector<16x16x4xf32>
    %38 = arith.mulf %31, %37 : vector<16x16x4xf32>
    %cst_12 = arith.constant dense<0.000000e+00> : vector<16x4xf32>
    %39 = vector.multi_reduction <add>, %38, %cst_12 [1] : vector<16x16x4xf32> to vector<16x4xf32>
    %40 = vector.shape_cast %39 : vector<16x4xf32> to vector<16x1x4xf32>
    %41 = vector.broadcast %36 : vector<1x1x4xf32> to vector<16x1x4xf32>
    %42 = arith.mulf %33, %41 : vector<16x1x4xf32>
    %43 = arith.addf %40, %42 : vector<16x1x4xf32>
    %44 = vector.extract_strided_slice %19 {offsets = [0, 0, 0], sizes = [1, 1, 4], strides = [1, 1, 1]} : vector<16x1x4xf32> to vector<1x1x4xf32>
    %45 = vector.extract_strided_slice %43 {offsets = [0, 0, 0], sizes = [1, 1, 4], strides = [1, 1, 1]} : vector<16x1x4xf32> to vector<1x1x4xf32>
    %46 = arith.mulf %44, %45 : vector<1x1x4xf32>
    %cst_13 = arith.constant 1.000000e+00 : f32
    %47 = vector.broadcast %cst_13 : f32 to vector<1x1x4xf32>
    %48 = arith.subf %47, %44 : vector<1x1x4xf32>
    %49 = arith.addf %46, %48 : vector<1x1x4xf32>
    %50 = math.log %49 : vector<1x1x4xf32>
    %51 = arith.addf %34, %50 : vector<1x1x4xf32>
    %52 = tpu.reciprocal %49 : vector<1x1x4xf32> -> vector<1x1x4xf32>
    %53 = vector.broadcast %52 : vector<1x1x4xf32> to vector<16x1x4xf32>
    %54 = arith.mulf %43, %53 : vector<16x1x4xf32>
    %55 = vector.broadcast %54 : vector<16x1x4xf32> to vector<16x16x4xf32>
    %56 = vector.broadcast %35 : vector<1x16x4xf32> to vector<16x16x4xf32>
    %57 = arith.mulf %55, %56 : vector<16x16x4xf32>
    %58 = arith.subf %31, %57 : vector<16x16x4xf32>
    %59 = vector.broadcast %36 : vector<1x1x4xf32> to vector<16x1x4xf32>
    %60 = arith.mulf %54, %59 : vector<16x1x4xf32>
    %61 = arith.subf %33, %60 : vector<16x1x4xf32>
    %62 = vector.extract_strided_slice %58 {offsets = [1, 0, 0], sizes = [1, 16, 4], strides = [1, 1, 1]} : vector<16x16x4xf32> to vector<1x16x4xf32>
    %63 = vector.extract_strided_slice %61 {offsets = [1, 0, 0], sizes = [1, 1, 4], strides = [1, 1, 1]} : vector<16x1x4xf32> to vector<1x1x4xf32>
    %64 = vector.broadcast %62 : vector<1x16x4xf32> to vector<16x16x4xf32>
    %65 = arith.mulf %58, %64 : vector<16x16x4xf32>
    %cst_14 = arith.constant dense<0.000000e+00> : vector<16x4xf32>
    %66 = vector.multi_reduction <add>, %65, %cst_14 [1] : vector<16x16x4xf32> to vector<16x4xf32>
    %67 = vector.shape_cast %66 : vector<16x4xf32> to vector<16x1x4xf32>
    %68 = vector.broadcast %63 : vector<1x1x4xf32> to vector<16x1x4xf32>
    %69 = arith.mulf %61, %68 : vector<16x1x4xf32>
    %70 = arith.addf %67, %69 : vector<16x1x4xf32>
    %71 = vector.extract_strided_slice %19 {offsets = [1, 0, 0], sizes = [1, 1, 4], strides = [1, 1, 1]} : vector<16x1x4xf32> to vector<1x1x4xf32>
    %72 = vector.extract_strided_slice %70 {offsets = [1, 0, 0], sizes = [1, 1, 4], strides = [1, 1, 1]} : vector<16x1x4xf32> to vector<1x1x4xf32>
    %73 = arith.mulf %71, %72 : vector<1x1x4xf32>
    %cst_15 = arith.constant 1.000000e+00 : f32
    %74 = vector.broadcast %cst_15 : f32 to vector<1x1x4xf32>
    %75 = arith.subf %74, %71 : vector<1x1x4xf32>
    %76 = arith.addf %73, %75 : vector<1x1x4xf32>
    %77 = math.log %76 : vector<1x1x4xf32>
    %78 = arith.addf %51, %77 : vector<1x1x4xf32>
    %79 = tpu.reciprocal %76 : vector<1x1x4xf32> -> vector<1x1x4xf32>
    %80 = vector.broadcast %79 : vector<1x1x4xf32> to vector<16x1x4xf32>
    %81 = arith.mulf %70, %80 : vector<16x1x4xf32>
    %82 = vector.broadcast %81 : vector<16x1x4xf32> to vector<16x16x4xf32>
    %83 = vector.broadcast %62 : vector<1x16x4xf32> to vector<16x16x4xf32>
    %84 = arith.mulf %82, %83 : vector<16x16x4xf32>
    %85 = arith.subf %58, %84 : vector<16x16x4xf32>
    %86 = vector.broadcast %63 : vector<1x1x4xf32> to vector<16x1x4xf32>
    %87 = arith.mulf %81, %86 : vector<16x1x4xf32>
    %88 = arith.subf %61, %87 : vector<16x1x4xf32>
    %89 = vector.extract_strided_slice %85 {offsets = [2, 0, 0], sizes = [1, 16, 4], strides = [1, 1, 1]} : vector<16x16x4xf32> to vector<1x16x4xf32>
    %90 = vector.extract_strided_slice %88 {offsets = [2, 0, 0], sizes = [1, 1, 4], strides = [1, 1, 1]} : vector<16x1x4xf32> to vector<1x1x4xf32>
    %91 = vector.broadcast %89 : vector<1x16x4xf32> to vector<16x16x4xf32>
    %92 = arith.mulf %85, %91 : vector<16x16x4xf32>
    %cst_16 = arith.constant dense<0.000000e+00> : vector<16x4xf32>
    %93 = vector.multi_reduction <add>, %92, %cst_16 [1] : vector<16x16x4xf32> to vector<16x4xf32>
    %94 = vector.shape_cast %93 : vector<16x4xf32> to vector<16x1x4xf32>
    %95 = vector.broadcast %90 : vector<1x1x4xf32> to vector<16x1x4xf32>
    %96 = arith.mulf %88, %95 : vector<16x1x4xf32>
    %97 = arith.addf %94, %96 : vector<16x1x4xf32>
    %98 = vector.extract_strided_slice %19 {offsets = [2, 0, 0], sizes = [1, 1, 4], strides = [1, 1, 1]} : vector<16x1x4xf32> to vector<1x1x4xf32>
    %99 = vector.extract_strided_slice %97 {offsets = [2, 0, 0], sizes = [1, 1, 4], strides = [1, 1, 1]} : vector<16x1x4xf32> to vector<1x1x4xf32>
    %100 = arith.mulf %98, %99 : vector<1x1x4xf32>
    %cst_17 = arith.constant 1.000000e+00 : f32
    %101 = vector.broadcast %cst_17 : f32 to vector<1x1x4xf32>
    %102 = arith.subf %101, %98 : vector<1x1x4xf32>
    %103 = arith.addf %100, %102 : vector<1x1x4xf32>
    %104 = math.log %103 : vector<1x1x4xf32>
    %105 = arith.addf %78, %104 : vector<1x1x4xf32>
    %106 = tpu.reciprocal %103 : vector<1x1x4xf32> -> vector<1x1x4xf32>
    %107 = vector.broadcast %106 : vector<1x1x4xf32> to vector<16x1x4xf32>
    %108 = arith.mulf %97, %107 : vector<16x1x4xf32>
    %109 = vector.broadcast %108 : vector<16x1x4xf32> to vector<16x16x4xf32>
    %110 = vector.broadcast %89 : vector<1x16x4xf32> to vector<16x16x4xf32>
    %111 = arith.mulf %109, %110 : vector<16x16x4xf32>
    %112 = arith.subf %85, %111 : vector<16x16x4xf32>
    %113 = vector.broadcast %90 : vector<1x1x4xf32> to vector<16x1x4xf32>
    %114 = arith.mulf %108, %113 : vector<16x1x4xf32>
    %115 = arith.subf %88, %114 : vector<16x1x4xf32>
    %116 = vector.extract_strided_slice %112 {offsets = [3, 0, 0], sizes = [1, 16, 4], strides = [1, 1, 1]} : vector<16x16x4xf32> to vector<1x16x4xf32>
    %117 = vector.extract_strided_slice %115 {offsets = [3, 0, 0], sizes = [1, 1, 4], strides = [1, 1, 1]} : vector<16x1x4xf32> to vector<1x1x4xf32>
    %118 = vector.broadcast %116 : vector<1x16x4xf32> to vector<16x16x4xf32>
    %119 = arith.mulf %112, %118 : vector<16x16x4xf32>
    %cst_18 = arith.constant dense<0.000000e+00> : vector<16x4xf32>
    %120 = vector.multi_reduction <add>, %119, %cst_18 [1] : vector<16x16x4xf32> to vector<16x4xf32>
    %121 = vector.shape_cast %120 : vector<16x4xf32> to vector<16x1x4xf32>
    %122 = vector.broadcast %117 : vector<1x1x4xf32> to vector<16x1x4xf32>
    %123 = arith.mulf %115, %122 : vector<16x1x4xf32>
    %124 = arith.addf %121, %123 : vector<16x1x4xf32>
    %125 = vector.extract_strided_slice %19 {offsets = [3, 0, 0], sizes = [1, 1, 4], strides = [1, 1, 1]} : vector<16x1x4xf32> to vector<1x1x4xf32>
    %126 = vector.extract_strided_slice %124 {offsets = [3, 0, 0], sizes = [1, 1, 4], strides = [1, 1, 1]} : vector<16x1x4xf32> to vector<1x1x4xf32>
    %127 = arith.mulf %125, %126 : vector<1x1x4xf32>
    %cst_19 = arith.constant 1.000000e+00 : f32
    %128 = vector.broadcast %cst_19 : f32 to vector<1x1x4xf32>
    %129 = arith.subf %128, %125 : vector<1x1x4xf32>
    %130 = arith.addf %127, %129 : vector<1x1x4xf32>
    %131 = math.log %130 : vector<1x1x4xf32>
    %132 = arith.addf %105, %131 : vector<1x1x4xf32>
    %133 = tpu.reciprocal %130 : vector<1x1x4xf32> -> vector<1x1x4xf32>
    %134 = vector.broadcast %133 : vector<1x1x4xf32> to vector<16x1x4xf32>
    %135 = arith.mulf %124, %134 : vector<16x1x4xf32>
    %136 = vector.broadcast %135 : vector<16x1x4xf32> to vector<16x16x4xf32>
    %137 = vector.broadcast %116 : vector<1x16x4xf32> to vector<16x16x4xf32>
    %138 = arith.mulf %136, %137 : vector<16x16x4xf32>
    %139 = arith.subf %112, %138 : vector<16x16x4xf32>
    %140 = vector.broadcast %117 : vector<1x1x4xf32> to vector<16x1x4xf32>
    %141 = arith.mulf %135, %140 : vector<16x1x4xf32>
    %142 = arith.subf %115, %141 : vector<16x1x4xf32>
    %143 = vector.extract_strided_slice %139 {offsets = [4, 0, 0], sizes = [1, 16, 4], strides = [1, 1, 1]} : vector<16x16x4xf32> to vector<1x16x4xf32>
    %144 = vector.extract_strided_slice %142 {offsets = [4, 0, 0], sizes = [1, 1, 4], strides = [1, 1, 1]} : vector<16x1x4xf32> to vector<1x1x4xf32>
    %145 = vector.broadcast %143 : vector<1x16x4xf32> to vector<16x16x4xf32>
    %146 = arith.mulf %139, %145 : vector<16x16x4xf32>
    %cst_20 = arith.constant dense<0.000000e+00> : vector<16x4xf32>
    %147 = vector.multi_reduction <add>, %146, %cst_20 [1] : vector<16x16x4xf32> to vector<16x4xf32>
    %148 = vector.shape_cast %147 : vector<16x4xf32> to vector<16x1x4xf32>
    %149 = vector.broadcast %144 : vector<1x1x4xf32> to vector<16x1x4xf32>
    %150 = arith.mulf %142, %149 : vector<16x1x4xf32>
    %151 = arith.addf %148, %150 : vector<16x1x4xf32>
    %152 = vector.extract_strided_slice %19 {offsets = [4, 0, 0], sizes = [1, 1, 4], strides = [1, 1, 1]} : vector<16x1x4xf32> to vector<1x1x4xf32>
    %153 = vector.extract_strided_slice %151 {offsets = [4, 0, 0], sizes = [1, 1, 4], strides = [1, 1, 1]} : vector<16x1x4xf32> to vector<1x1x4xf32>
    %154 = arith.mulf %152, %153 : vector<1x1x4xf32>
    %cst_21 = arith.constant 1.000000e+00 : f32
    %155 = vector.broadcast %cst_21 : f32 to vector<1x1x4xf32>
    %156 = arith.subf %155, %152 : vector<1x1x4xf32>
    %157 = arith.addf %154, %156 : vector<1x1x4xf32>
    %158 = math.log %157 : vector<1x1x4xf32>
    %159 = arith.addf %132, %158 : vector<1x1x4xf32>
    %160 = tpu.reciprocal %157 : vector<1x1x4xf32> -> vector<1x1x4xf32>
    %161 = vector.broadcast %160 : vector<1x1x4xf32> to vector<16x1x4xf32>
    %162 = arith.mulf %151, %161 : vector<16x1x4xf32>
    %163 = vector.broadcast %162 : vector<16x1x4xf32> to vector<16x16x4xf32>
    %164 = vector.broadcast %143 : vector<1x16x4xf32> to vector<16x16x4xf32>
    %165 = arith.mulf %163, %164 : vector<16x16x4xf32>
    %166 = arith.subf %139, %165 : vector<16x16x4xf32>
    %167 = vector.broadcast %144 : vector<1x1x4xf32> to vector<16x1x4xf32>
    %168 = arith.mulf %162, %167 : vector<16x1x4xf32>
    %169 = arith.subf %142, %168 : vector<16x1x4xf32>
    %170 = vector.extract_strided_slice %166 {offsets = [5, 0, 0], sizes = [1, 16, 4], strides = [1, 1, 1]} : vector<16x16x4xf32> to vector<1x16x4xf32>
    %171 = vector.extract_strided_slice %169 {offsets = [5, 0, 0], sizes = [1, 1, 4], strides = [1, 1, 1]} : vector<16x1x4xf32> to vector<1x1x4xf32>
    %172 = vector.broadcast %170 : vector<1x16x4xf32> to vector<16x16x4xf32>
    %173 = arith.mulf %166, %172 : vector<16x16x4xf32>
    %cst_22 = arith.constant dense<0.000000e+00> : vector<16x4xf32>
    %174 = vector.multi_reduction <add>, %173, %cst_22 [1] : vector<16x16x4xf32> to vector<16x4xf32>
    %175 = vector.shape_cast %174 : vector<16x4xf32> to vector<16x1x4xf32>
    %176 = vector.broadcast %171 : vector<1x1x4xf32> to vector<16x1x4xf32>
    %177 = arith.mulf %169, %176 : vector<16x1x4xf32>
    %178 = arith.addf %175, %177 : vector<16x1x4xf32>
    %179 = vector.extract_strided_slice %19 {offsets = [5, 0, 0], sizes = [1, 1, 4], strides = [1, 1, 1]} : vector<16x1x4xf32> to vector<1x1x4xf32>
    %180 = vector.extract_strided_slice %178 {offsets = [5, 0, 0], sizes = [1, 1, 4], strides = [1, 1, 1]} : vector<16x1x4xf32> to vector<1x1x4xf32>
    %181 = arith.mulf %179, %180 : vector<1x1x4xf32>
    %cst_23 = arith.constant 1.000000e+00 : f32
    %182 = vector.broadcast %cst_23 : f32 to vector<1x1x4xf32>
    %183 = arith.subf %182, %179 : vector<1x1x4xf32>
    %184 = arith.addf %181, %183 : vector<1x1x4xf32>
    %185 = math.log %184 : vector<1x1x4xf32>
    %186 = arith.addf %159, %185 : vector<1x1x4xf32>
    %187 = tpu.reciprocal %184 : vector<1x1x4xf32> -> vector<1x1x4xf32>
    %188 = vector.broadcast %187 : vector<1x1x4xf32> to vector<16x1x4xf32>
    %189 = arith.mulf %178, %188 : vector<16x1x4xf32>
    %190 = vector.broadcast %189 : vector<16x1x4xf32> to vector<16x16x4xf32>
    %191 = vector.broadcast %170 : vector<1x16x4xf32> to vector<16x16x4xf32>
    %192 = arith.mulf %190, %191 : vector<16x16x4xf32>
    %193 = arith.subf %166, %192 : vector<16x16x4xf32>
    %194 = vector.broadcast %171 : vector<1x1x4xf32> to vector<16x1x4xf32>
    %195 = arith.mulf %189, %194 : vector<16x1x4xf32>
    %196 = arith.subf %169, %195 : vector<16x1x4xf32>
    %197 = vector.extract_strided_slice %193 {offsets = [6, 0, 0], sizes = [1, 16, 4], strides = [1, 1, 1]} : vector<16x16x4xf32> to vector<1x16x4xf32>
    %198 = vector.extract_strided_slice %196 {offsets = [6, 0, 0], sizes = [1, 1, 4], strides = [1, 1, 1]} : vector<16x1x4xf32> to vector<1x1x4xf32>
    %199 = vector.broadcast %197 : vector<1x16x4xf32> to vector<16x16x4xf32>
    %200 = arith.mulf %193, %199 : vector<16x16x4xf32>
    %cst_24 = arith.constant dense<0.000000e+00> : vector<16x4xf32>
    %201 = vector.multi_reduction <add>, %200, %cst_24 [1] : vector<16x16x4xf32> to vector<16x4xf32>
    %202 = vector.shape_cast %201 : vector<16x4xf32> to vector<16x1x4xf32>
    %203 = vector.broadcast %198 : vector<1x1x4xf32> to vector<16x1x4xf32>
    %204 = arith.mulf %196, %203 : vector<16x1x4xf32>
    %205 = arith.addf %202, %204 : vector<16x1x4xf32>
    %206 = vector.extract_strided_slice %19 {offsets = [6, 0, 0], sizes = [1, 1, 4], strides = [1, 1, 1]} : vector<16x1x4xf32> to vector<1x1x4xf32>
    %207 = vector.extract_strided_slice %205 {offsets = [6, 0, 0], sizes = [1, 1, 4], strides = [1, 1, 1]} : vector<16x1x4xf32> to vector<1x1x4xf32>
    %208 = arith.mulf %206, %207 : vector<1x1x4xf32>
    %cst_25 = arith.constant 1.000000e+00 : f32
    %209 = vector.broadcast %cst_25 : f32 to vector<1x1x4xf32>
    %210 = arith.subf %209, %206 : vector<1x1x4xf32>
    %211 = arith.addf %208, %210 : vector<1x1x4xf32>
    %212 = math.log %211 : vector<1x1x4xf32>
    %213 = arith.addf %186, %212 : vector<1x1x4xf32>
    %214 = tpu.reciprocal %211 : vector<1x1x4xf32> -> vector<1x1x4xf32>
    %215 = vector.broadcast %214 : vector<1x1x4xf32> to vector<16x1x4xf32>
    %216 = arith.mulf %205, %215 : vector<16x1x4xf32>
    %217 = vector.broadcast %216 : vector<16x1x4xf32> to vector<16x16x4xf32>
    %218 = vector.broadcast %197 : vector<1x16x4xf32> to vector<16x16x4xf32>
    %219 = arith.mulf %217, %218 : vector<16x16x4xf32>
    %220 = arith.subf %193, %219 : vector<16x16x4xf32>
    %221 = vector.broadcast %198 : vector<1x1x4xf32> to vector<16x1x4xf32>
    %222 = arith.mulf %216, %221 : vector<16x1x4xf32>
    %223 = arith.subf %196, %222 : vector<16x1x4xf32>
    %224 = vector.extract_strided_slice %220 {offsets = [7, 0, 0], sizes = [1, 16, 4], strides = [1, 1, 1]} : vector<16x16x4xf32> to vector<1x16x4xf32>
    %225 = vector.extract_strided_slice %223 {offsets = [7, 0, 0], sizes = [1, 1, 4], strides = [1, 1, 1]} : vector<16x1x4xf32> to vector<1x1x4xf32>
    %226 = vector.broadcast %224 : vector<1x16x4xf32> to vector<16x16x4xf32>
    %227 = arith.mulf %220, %226 : vector<16x16x4xf32>
    %cst_26 = arith.constant dense<0.000000e+00> : vector<16x4xf32>
    %228 = vector.multi_reduction <add>, %227, %cst_26 [1] : vector<16x16x4xf32> to vector<16x4xf32>
    %229 = vector.shape_cast %228 : vector<16x4xf32> to vector<16x1x4xf32>
    %230 = vector.broadcast %225 : vector<1x1x4xf32> to vector<16x1x4xf32>
    %231 = arith.mulf %223, %230 : vector<16x1x4xf32>
    %232 = arith.addf %229, %231 : vector<16x1x4xf32>
    %233 = vector.extract_strided_slice %19 {offsets = [7, 0, 0], sizes = [1, 1, 4], strides = [1, 1, 1]} : vector<16x1x4xf32> to vector<1x1x4xf32>
    %234 = vector.extract_strided_slice %232 {offsets = [7, 0, 0], sizes = [1, 1, 4], strides = [1, 1, 1]} : vector<16x1x4xf32> to vector<1x1x4xf32>
    %235 = arith.mulf %233, %234 : vector<1x1x4xf32>
    %cst_27 = arith.constant 1.000000e+00 : f32
    %236 = vector.broadcast %cst_27 : f32 to vector<1x1x4xf32>
    %237 = arith.subf %236, %233 : vector<1x1x4xf32>
    %238 = arith.addf %235, %237 : vector<1x1x4xf32>
    %239 = math.log %238 : vector<1x1x4xf32>
    %240 = arith.addf %213, %239 : vector<1x1x4xf32>
    %241 = tpu.reciprocal %238 : vector<1x1x4xf32> -> vector<1x1x4xf32>
    %242 = vector.broadcast %241 : vector<1x1x4xf32> to vector<16x1x4xf32>
    %243 = arith.mulf %232, %242 : vector<16x1x4xf32>
    %244 = vector.broadcast %243 : vector<16x1x4xf32> to vector<16x16x4xf32>
    %245 = vector.broadcast %224 : vector<1x16x4xf32> to vector<16x16x4xf32>
    %246 = arith.mulf %244, %245 : vector<16x16x4xf32>
    %247 = arith.subf %220, %246 : vector<16x16x4xf32>
    %248 = vector.broadcast %225 : vector<1x1x4xf32> to vector<16x1x4xf32>
    %249 = arith.mulf %243, %248 : vector<16x1x4xf32>
    %250 = arith.subf %223, %249 : vector<16x1x4xf32>
    %251 = vector.extract_strided_slice %247 {offsets = [8, 0, 0], sizes = [1, 16, 4], strides = [1, 1, 1]} : vector<16x16x4xf32> to vector<1x16x4xf32>
    %252 = vector.extract_strided_slice %250 {offsets = [8, 0, 0], sizes = [1, 1, 4], strides = [1, 1, 1]} : vector<16x1x4xf32> to vector<1x1x4xf32>
    %253 = vector.broadcast %251 : vector<1x16x4xf32> to vector<16x16x4xf32>
    %254 = arith.mulf %247, %253 : vector<16x16x4xf32>
    %cst_28 = arith.constant dense<0.000000e+00> : vector<16x4xf32>
    %255 = vector.multi_reduction <add>, %254, %cst_28 [1] : vector<16x16x4xf32> to vector<16x4xf32>
    %256 = vector.shape_cast %255 : vector<16x4xf32> to vector<16x1x4xf32>
    %257 = vector.broadcast %252 : vector<1x1x4xf32> to vector<16x1x4xf32>
    %258 = arith.mulf %250, %257 : vector<16x1x4xf32>
    %259 = arith.addf %256, %258 : vector<16x1x4xf32>
    %260 = vector.extract_strided_slice %19 {offsets = [8, 0, 0], sizes = [1, 1, 4], strides = [1, 1, 1]} : vector<16x1x4xf32> to vector<1x1x4xf32>
    %261 = vector.extract_strided_slice %259 {offsets = [8, 0, 0], sizes = [1, 1, 4], strides = [1, 1, 1]} : vector<16x1x4xf32> to vector<1x1x4xf32>
    %262 = arith.mulf %260, %261 : vector<1x1x4xf32>
    %cst_29 = arith.constant 1.000000e+00 : f32
    %263 = vector.broadcast %cst_29 : f32 to vector<1x1x4xf32>
    %264 = arith.subf %263, %260 : vector<1x1x4xf32>
    %265 = arith.addf %262, %264 : vector<1x1x4xf32>
    %266 = math.log %265 : vector<1x1x4xf32>
    %267 = arith.addf %240, %266 : vector<1x1x4xf32>
    %268 = tpu.reciprocal %265 : vector<1x1x4xf32> -> vector<1x1x4xf32>
    %269 = vector.broadcast %268 : vector<1x1x4xf32> to vector<16x1x4xf32>
    %270 = arith.mulf %259, %269 : vector<16x1x4xf32>
    %271 = vector.broadcast %270 : vector<16x1x4xf32> to vector<16x16x4xf32>
    %272 = vector.broadcast %251 : vector<1x16x4xf32> to vector<16x16x4xf32>
    %273 = arith.mulf %271, %272 : vector<16x16x4xf32>
    %274 = arith.subf %247, %273 : vector<16x16x4xf32>
    %275 = vector.broadcast %252 : vector<1x1x4xf32> to vector<16x1x4xf32>
    %276 = arith.mulf %270, %275 : vector<16x1x4xf32>
    %277 = arith.subf %250, %276 : vector<16x1x4xf32>
    %278 = vector.extract_strided_slice %274 {offsets = [9, 0, 0], sizes = [1, 16, 4], strides = [1, 1, 1]} : vector<16x16x4xf32> to vector<1x16x4xf32>
    %279 = vector.extract_strided_slice %277 {offsets = [9, 0, 0], sizes = [1, 1, 4], strides = [1, 1, 1]} : vector<16x1x4xf32> to vector<1x1x4xf32>
    %280 = vector.broadcast %278 : vector<1x16x4xf32> to vector<16x16x4xf32>
    %281 = arith.mulf %274, %280 : vector<16x16x4xf32>
    %cst_30 = arith.constant dense<0.000000e+00> : vector<16x4xf32>
    %282 = vector.multi_reduction <add>, %281, %cst_30 [1] : vector<16x16x4xf32> to vector<16x4xf32>
    %283 = vector.shape_cast %282 : vector<16x4xf32> to vector<16x1x4xf32>
    %284 = vector.broadcast %279 : vector<1x1x4xf32> to vector<16x1x4xf32>
    %285 = arith.mulf %277, %284 : vector<16x1x4xf32>
    %286 = arith.addf %283, %285 : vector<16x1x4xf32>
    %287 = vector.extract_strided_slice %19 {offsets = [9, 0, 0], sizes = [1, 1, 4], strides = [1, 1, 1]} : vector<16x1x4xf32> to vector<1x1x4xf32>
    %288 = vector.extract_strided_slice %286 {offsets = [9, 0, 0], sizes = [1, 1, 4], strides = [1, 1, 1]} : vector<16x1x4xf32> to vector<1x1x4xf32>
    %289 = arith.mulf %287, %288 : vector<1x1x4xf32>
    %cst_31 = arith.constant 1.000000e+00 : f32
    %290 = vector.broadcast %cst_31 : f32 to vector<1x1x4xf32>
    %291 = arith.subf %290, %287 : vector<1x1x4xf32>
    %292 = arith.addf %289, %291 : vector<1x1x4xf32>
    %293 = math.log %292 : vector<1x1x4xf32>
    %294 = arith.addf %267, %293 : vector<1x1x4xf32>
    %295 = tpu.reciprocal %292 : vector<1x1x4xf32> -> vector<1x1x4xf32>
    %296 = vector.broadcast %295 : vector<1x1x4xf32> to vector<16x1x4xf32>
    %297 = arith.mulf %286, %296 : vector<16x1x4xf32>
    %298 = vector.broadcast %297 : vector<16x1x4xf32> to vector<16x16x4xf32>
    %299 = vector.broadcast %278 : vector<1x16x4xf32> to vector<16x16x4xf32>
    %300 = arith.mulf %298, %299 : vector<16x16x4xf32>
    %301 = arith.subf %274, %300 : vector<16x16x4xf32>
    %302 = vector.broadcast %279 : vector<1x1x4xf32> to vector<16x1x4xf32>
    %303 = arith.mulf %297, %302 : vector<16x1x4xf32>
    %304 = arith.subf %277, %303 : vector<16x1x4xf32>
    %305 = vector.extract_strided_slice %301 {offsets = [10, 0, 0], sizes = [1, 16, 4], strides = [1, 1, 1]} : vector<16x16x4xf32> to vector<1x16x4xf32>
    %306 = vector.extract_strided_slice %304 {offsets = [10, 0, 0], sizes = [1, 1, 4], strides = [1, 1, 1]} : vector<16x1x4xf32> to vector<1x1x4xf32>
    %307 = vector.broadcast %305 : vector<1x16x4xf32> to vector<16x16x4xf32>
    %308 = arith.mulf %301, %307 : vector<16x16x4xf32>
    %cst_32 = arith.constant dense<0.000000e+00> : vector<16x4xf32>
    %309 = vector.multi_reduction <add>, %308, %cst_32 [1] : vector<16x16x4xf32> to vector<16x4xf32>
    %310 = vector.shape_cast %309 : vector<16x4xf32> to vector<16x1x4xf32>
    %311 = vector.broadcast %306 : vector<1x1x4xf32> to vector<16x1x4xf32>
    %312 = arith.mulf %304, %311 : vector<16x1x4xf32>
    %313 = arith.addf %310, %312 : vector<16x1x4xf32>
    %314 = vector.extract_strided_slice %19 {offsets = [10, 0, 0], sizes = [1, 1, 4], strides = [1, 1, 1]} : vector<16x1x4xf32> to vector<1x1x4xf32>
    %315 = vector.extract_strided_slice %313 {offsets = [10, 0, 0], sizes = [1, 1, 4], strides = [1, 1, 1]} : vector<16x1x4xf32> to vector<1x1x4xf32>
    %316 = arith.mulf %314, %315 : vector<1x1x4xf32>
    %cst_33 = arith.constant 1.000000e+00 : f32
    %317 = vector.broadcast %cst_33 : f32 to vector<1x1x4xf32>
    %318 = arith.subf %317, %314 : vector<1x1x4xf32>
    %319 = arith.addf %316, %318 : vector<1x1x4xf32>
    %320 = math.log %319 : vector<1x1x4xf32>
    %321 = arith.addf %294, %320 : vector<1x1x4xf32>
    %322 = tpu.reciprocal %319 : vector<1x1x4xf32> -> vector<1x1x4xf32>
    %323 = vector.broadcast %322 : vector<1x1x4xf32> to vector<16x1x4xf32>
    %324 = arith.mulf %313, %323 : vector<16x1x4xf32>
    %325 = vector.broadcast %324 : vector<16x1x4xf32> to vector<16x16x4xf32>
    %326 = vector.broadcast %305 : vector<1x16x4xf32> to vector<16x16x4xf32>
    %327 = arith.mulf %325, %326 : vector<16x16x4xf32>
    %328 = arith.subf %301, %327 : vector<16x16x4xf32>
    %329 = vector.broadcast %306 : vector<1x1x4xf32> to vector<16x1x4xf32>
    %330 = arith.mulf %324, %329 : vector<16x1x4xf32>
    %331 = arith.subf %304, %330 : vector<16x1x4xf32>
    %332 = vector.extract_strided_slice %328 {offsets = [11, 0, 0], sizes = [1, 16, 4], strides = [1, 1, 1]} : vector<16x16x4xf32> to vector<1x16x4xf32>
    %333 = vector.extract_strided_slice %331 {offsets = [11, 0, 0], sizes = [1, 1, 4], strides = [1, 1, 1]} : vector<16x1x4xf32> to vector<1x1x4xf32>
    %334 = vector.broadcast %332 : vector<1x16x4xf32> to vector<16x16x4xf32>
    %335 = arith.mulf %328, %334 : vector<16x16x4xf32>
    %cst_34 = arith.constant dense<0.000000e+00> : vector<16x4xf32>
    %336 = vector.multi_reduction <add>, %335, %cst_34 [1] : vector<16x16x4xf32> to vector<16x4xf32>
    %337 = vector.shape_cast %336 : vector<16x4xf32> to vector<16x1x4xf32>
    %338 = vector.broadcast %333 : vector<1x1x4xf32> to vector<16x1x4xf32>
    %339 = arith.mulf %331, %338 : vector<16x1x4xf32>
    %340 = arith.addf %337, %339 : vector<16x1x4xf32>
    %341 = vector.extract_strided_slice %19 {offsets = [11, 0, 0], sizes = [1, 1, 4], strides = [1, 1, 1]} : vector<16x1x4xf32> to vector<1x1x4xf32>
    %342 = vector.extract_strided_slice %340 {offsets = [11, 0, 0], sizes = [1, 1, 4], strides = [1, 1, 1]} : vector<16x1x4xf32> to vector<1x1x4xf32>
    %343 = arith.mulf %341, %342 : vector<1x1x4xf32>
    %cst_35 = arith.constant 1.000000e+00 : f32
    %344 = vector.broadcast %cst_35 : f32 to vector<1x1x4xf32>
    %345 = arith.subf %344, %341 : vector<1x1x4xf32>
    %346 = arith.addf %343, %345 : vector<1x1x4xf32>
    %347 = math.log %346 : vector<1x1x4xf32>
    %348 = arith.addf %321, %347 : vector<1x1x4xf32>
    %349 = tpu.reciprocal %346 : vector<1x1x4xf32> -> vector<1x1x4xf32>
    %350 = vector.broadcast %349 : vector<1x1x4xf32> to vector<16x1x4xf32>
    %351 = arith.mulf %340, %350 : vector<16x1x4xf32>
    %352 = vector.broadcast %351 : vector<16x1x4xf32> to vector<16x16x4xf32>
    %353 = vector.broadcast %332 : vector<1x16x4xf32> to vector<16x16x4xf32>
    %354 = arith.mulf %352, %353 : vector<16x16x4xf32>
    %355 = arith.subf %328, %354 : vector<16x16x4xf32>
    %356 = vector.broadcast %333 : vector<1x1x4xf32> to vector<16x1x4xf32>
    %357 = arith.mulf %351, %356 : vector<16x1x4xf32>
    %358 = arith.subf %331, %357 : vector<16x1x4xf32>
    %359 = vector.extract_strided_slice %355 {offsets = [12, 0, 0], sizes = [1, 16, 4], strides = [1, 1, 1]} : vector<16x16x4xf32> to vector<1x16x4xf32>
    %360 = vector.extract_strided_slice %358 {offsets = [12, 0, 0], sizes = [1, 1, 4], strides = [1, 1, 1]} : vector<16x1x4xf32> to vector<1x1x4xf32>
    %361 = vector.broadcast %359 : vector<1x16x4xf32> to vector<16x16x4xf32>
    %362 = arith.mulf %355, %361 : vector<16x16x4xf32>
    %cst_36 = arith.constant dense<0.000000e+00> : vector<16x4xf32>
    %363 = vector.multi_reduction <add>, %362, %cst_36 [1] : vector<16x16x4xf32> to vector<16x4xf32>
    %364 = vector.shape_cast %363 : vector<16x4xf32> to vector<16x1x4xf32>
    %365 = vector.broadcast %360 : vector<1x1x4xf32> to vector<16x1x4xf32>
    %366 = arith.mulf %358, %365 : vector<16x1x4xf32>
    %367 = arith.addf %364, %366 : vector<16x1x4xf32>
    %368 = vector.extract_strided_slice %19 {offsets = [12, 0, 0], sizes = [1, 1, 4], strides = [1, 1, 1]} : vector<16x1x4xf32> to vector<1x1x4xf32>
    %369 = vector.extract_strided_slice %367 {offsets = [12, 0, 0], sizes = [1, 1, 4], strides = [1, 1, 1]} : vector<16x1x4xf32> to vector<1x1x4xf32>
    %370 = arith.mulf %368, %369 : vector<1x1x4xf32>
    %cst_37 = arith.constant 1.000000e+00 : f32
    %371 = vector.broadcast %cst_37 : f32 to vector<1x1x4xf32>
    %372 = arith.subf %371, %368 : vector<1x1x4xf32>
    %373 = arith.addf %370, %372 : vector<1x1x4xf32>
    %374 = math.log %373 : vector<1x1x4xf32>
    %375 = arith.addf %348, %374 : vector<1x1x4xf32>
    %376 = tpu.reciprocal %373 : vector<1x1x4xf32> -> vector<1x1x4xf32>
    %377 = vector.broadcast %376 : vector<1x1x4xf32> to vector<16x1x4xf32>
    %378 = arith.mulf %367, %377 : vector<16x1x4xf32>
    %379 = vector.broadcast %378 : vector<16x1x4xf32> to vector<16x16x4xf32>
    %380 = vector.broadcast %359 : vector<1x16x4xf32> to vector<16x16x4xf32>
    %381 = arith.mulf %379, %380 : vector<16x16x4xf32>
    %382 = arith.subf %355, %381 : vector<16x16x4xf32>
    %383 = vector.broadcast %360 : vector<1x1x4xf32> to vector<16x1x4xf32>
    %384 = arith.mulf %378, %383 : vector<16x1x4xf32>
    %385 = arith.subf %358, %384 : vector<16x1x4xf32>
    %386 = vector.extract_strided_slice %382 {offsets = [13, 0, 0], sizes = [1, 16, 4], strides = [1, 1, 1]} : vector<16x16x4xf32> to vector<1x16x4xf32>
    %387 = vector.extract_strided_slice %385 {offsets = [13, 0, 0], sizes = [1, 1, 4], strides = [1, 1, 1]} : vector<16x1x4xf32> to vector<1x1x4xf32>
    %388 = vector.broadcast %386 : vector<1x16x4xf32> to vector<16x16x4xf32>
    %389 = arith.mulf %382, %388 : vector<16x16x4xf32>
    %cst_38 = arith.constant dense<0.000000e+00> : vector<16x4xf32>
    %390 = vector.multi_reduction <add>, %389, %cst_38 [1] : vector<16x16x4xf32> to vector<16x4xf32>
    %391 = vector.shape_cast %390 : vector<16x4xf32> to vector<16x1x4xf32>
    %392 = vector.broadcast %387 : vector<1x1x4xf32> to vector<16x1x4xf32>
    %393 = arith.mulf %385, %392 : vector<16x1x4xf32>
    %394 = arith.addf %391, %393 : vector<16x1x4xf32>
    %395 = vector.extract_strided_slice %19 {offsets = [13, 0, 0], sizes = [1, 1, 4], strides = [1, 1, 1]} : vector<16x1x4xf32> to vector<1x1x4xf32>
    %396 = vector.extract_strided_slice %394 {offsets = [13, 0, 0], sizes = [1, 1, 4], strides = [1, 1, 1]} : vector<16x1x4xf32> to vector<1x1x4xf32>
    %397 = arith.mulf %395, %396 : vector<1x1x4xf32>
    %cst_39 = arith.constant 1.000000e+00 : f32
    %398 = vector.broadcast %cst_39 : f32 to vector<1x1x4xf32>
    %399 = arith.subf %398, %395 : vector<1x1x4xf32>
    %400 = arith.addf %397, %399 : vector<1x1x4xf32>
    %401 = math.log %400 : vector<1x1x4xf32>
    %402 = arith.addf %375, %401 : vector<1x1x4xf32>
    %403 = tpu.reciprocal %400 : vector<1x1x4xf32> -> vector<1x1x4xf32>
    %404 = vector.broadcast %403 : vector<1x1x4xf32> to vector<16x1x4xf32>
    %405 = arith.mulf %394, %404 : vector<16x1x4xf32>
    %406 = vector.broadcast %405 : vector<16x1x4xf32> to vector<16x16x4xf32>
    %407 = vector.broadcast %386 : vector<1x16x4xf32> to vector<16x16x4xf32>
    %408 = arith.mulf %406, %407 : vector<16x16x4xf32>
    %409 = arith.subf %382, %408 : vector<16x16x4xf32>
    %410 = vector.broadcast %387 : vector<1x1x4xf32> to vector<16x1x4xf32>
    %411 = arith.mulf %405, %410 : vector<16x1x4xf32>
    %412 = arith.subf %385, %411 : vector<16x1x4xf32>
    %413 = vector.extract_strided_slice %409 {offsets = [14, 0, 0], sizes = [1, 16, 4], strides = [1, 1, 1]} : vector<16x16x4xf32> to vector<1x16x4xf32>
    %414 = vector.extract_strided_slice %412 {offsets = [14, 0, 0], sizes = [1, 1, 4], strides = [1, 1, 1]} : vector<16x1x4xf32> to vector<1x1x4xf32>
    %415 = vector.broadcast %413 : vector<1x16x4xf32> to vector<16x16x4xf32>
    %416 = arith.mulf %409, %415 : vector<16x16x4xf32>
    %cst_40 = arith.constant dense<0.000000e+00> : vector<16x4xf32>
    %417 = vector.multi_reduction <add>, %416, %cst_40 [1] : vector<16x16x4xf32> to vector<16x4xf32>
    %418 = vector.shape_cast %417 : vector<16x4xf32> to vector<16x1x4xf32>
    %419 = vector.broadcast %414 : vector<1x1x4xf32> to vector<16x1x4xf32>
    %420 = arith.mulf %412, %419 : vector<16x1x4xf32>
    %421 = arith.addf %418, %420 : vector<16x1x4xf32>
    %422 = vector.extract_strided_slice %19 {offsets = [14, 0, 0], sizes = [1, 1, 4], strides = [1, 1, 1]} : vector<16x1x4xf32> to vector<1x1x4xf32>
    %423 = vector.extract_strided_slice %421 {offsets = [14, 0, 0], sizes = [1, 1, 4], strides = [1, 1, 1]} : vector<16x1x4xf32> to vector<1x1x4xf32>
    %424 = arith.mulf %422, %423 : vector<1x1x4xf32>
    %cst_41 = arith.constant 1.000000e+00 : f32
    %425 = vector.broadcast %cst_41 : f32 to vector<1x1x4xf32>
    %426 = arith.subf %425, %422 : vector<1x1x4xf32>
    %427 = arith.addf %424, %426 : vector<1x1x4xf32>
    %428 = math.log %427 : vector<1x1x4xf32>
    %429 = arith.addf %402, %428 : vector<1x1x4xf32>
    %430 = tpu.reciprocal %427 : vector<1x1x4xf32> -> vector<1x1x4xf32>
    %431 = vector.broadcast %430 : vector<1x1x4xf32> to vector<16x1x4xf32>
    %432 = arith.mulf %421, %431 : vector<16x1x4xf32>
    %433 = vector.broadcast %432 : vector<16x1x4xf32> to vector<16x16x4xf32>
    %434 = vector.broadcast %413 : vector<1x16x4xf32> to vector<16x16x4xf32>
    %435 = arith.mulf %433, %434 : vector<16x16x4xf32>
    %436 = arith.subf %409, %435 : vector<16x16x4xf32>
    %437 = vector.broadcast %414 : vector<1x1x4xf32> to vector<16x1x4xf32>
    %438 = arith.mulf %432, %437 : vector<16x1x4xf32>
    %439 = arith.subf %412, %438 : vector<16x1x4xf32>
    %440 = vector.extract_strided_slice %436 {offsets = [15, 0, 0], sizes = [1, 16, 4], strides = [1, 1, 1]} : vector<16x16x4xf32> to vector<1x16x4xf32>
    %441 = vector.extract_strided_slice %439 {offsets = [15, 0, 0], sizes = [1, 1, 4], strides = [1, 1, 1]} : vector<16x1x4xf32> to vector<1x1x4xf32>
    %442 = vector.broadcast %440 : vector<1x16x4xf32> to vector<16x16x4xf32>
    %443 = arith.mulf %436, %442 : vector<16x16x4xf32>
    %cst_42 = arith.constant dense<0.000000e+00> : vector<16x4xf32>
    %444 = vector.multi_reduction <add>, %443, %cst_42 [1] : vector<16x16x4xf32> to vector<16x4xf32>
    %445 = vector.shape_cast %444 : vector<16x4xf32> to vector<16x1x4xf32>
    %446 = vector.broadcast %441 : vector<1x1x4xf32> to vector<16x1x4xf32>
    %447 = arith.mulf %439, %446 : vector<16x1x4xf32>
    %448 = arith.addf %445, %447 : vector<16x1x4xf32>
    %449 = vector.extract_strided_slice %19 {offsets = [15, 0, 0], sizes = [1, 1, 4], strides = [1, 1, 1]} : vector<16x1x4xf32> to vector<1x1x4xf32>
    %450 = vector.extract_strided_slice %448 {offsets = [15, 0, 0], sizes = [1, 1, 4], strides = [1, 1, 1]} : vector<16x1x4xf32> to vector<1x1x4xf32>
    %451 = arith.mulf %449, %450 : vector<1x1x4xf32>
    %cst_43 = arith.constant 1.000000e+00 : f32
    %452 = vector.broadcast %cst_43 : f32 to vector<1x1x4xf32>
    %453 = arith.subf %452, %449 : vector<1x1x4xf32>
    %454 = arith.addf %451, %453 : vector<1x1x4xf32>
    %455 = math.log %454 : vector<1x1x4xf32>
    %456 = arith.addf %429, %455 : vector<1x1x4xf32>
    %c0_44 = arith.constant 0 : index
    %c0_45 = arith.constant 0 : index
    %c0_46 = arith.constant 0 : index
    %457 = vector.load %arg3[%c0_44, %c0_45, %c0_46] : memref<1x1x4xf32, #tpu.memory_space<vmem>>, vector<1x1x4xf32>
    tpu.vector_store %arg3[%c0_44, %c0_45, %c0_46], %456 {strides = array<i32>} : memref<1x1x4xf32, #tpu.memory_space<vmem>>, vector<1x1x4xf32>,
    %c0_47 = arith.constant 0 : index
    %c0_48 = arith.constant 0 : index
    %c0_49 = arith.constant 0 : index
    %458 = vector.load %arg4[%c0_47, %c0_48, %c0_49] : memref<1x1x4xf32, #tpu.memory_space<vmem>>, vector<1x1x4xf32>
    tpu.vector_store %arg4[%c0_47, %c0_48, %c0_49], %12 {strides = array<i32>} : memref<1x1x4xf32, #tpu.memory_space<vmem>>, vector<1x1x4xf32>,
    return
  }
  func.func @transform_0(%arg0: i32, %arg1: i32) -> (i32, i32, i32, i32) {
    %c0_i32 = arith.constant 0 : i32
    %c0_i32_0 = arith.constant 0 : i32
    %c0_i32_1 = arith.constant 0 : i32
    return %arg0, %c0_i32, %c0_i32_0, %arg1 : i32, i32, i32, i32
  }
  func.func @transform_1(%arg0: i32, %arg1: i32) -> (i32, i32, i32) {
    %c0_i32 = arith.constant 0 : i32
    %c0_i32_0 = arith.constant 0 : i32
    return %arg0, %c0_i32, %arg1 : i32, i32, i32
  }
  func.func @transform_2(%arg0: i32, %arg1: i32) -> (i32, i32, i32) {
    %c0_i32 = arith.constant 0 : i32
    %c0_i32_0 = arith.constant 0 : i32
    return %arg0, %c0_i32, %arg1 : i32, i32, i32
  }
}

</mosaic_0001>

<bundles_post_ra>
// kernel: tpu_custom_call.1
= control target key start
LH: loop header
LB: loop body
LE: loop exit
PB: predicated region body
PF: predicated region fallthrough
CT: control target
= control target key end

     0   :  { %8 = vsyncpa [#allocation3], 0  ;;  %s7970_s0 = inlined_call_operand.vmem [shape: f32[2,16,16,4], index: 0, kind: input, shape index: {}]   ;;  %s7971_s1 = inlined_call_operand.hbm [shape: f32[2,1,4], index: 1, kind: output, shape index: {0}]   ;;  %s7972_s2 = inlined_call_operand.hbm [shape: f32[2,1,4], index: 2, kind: output, shape index: {1}]  }
   0x1   :  { %10 = vsyncpa [#allocation3 + $0x1], 0 }
   0x2   :  { %11 = vsyncpa [#allocation5], 0 }
   0x3   :  { %13 = vsyncpa [#allocation5 + $0x1], 0  ;;  %s4062_s9 = smov 0   ;;  %s4064_s10 = smov 0  }
   0x4   :  { %s4066_s11 = smov 0   ;;  %s4068_s12 = smov 0  }
   0x5   :  { %s4070_s13 = smov 0   ;;  %s4072_s14 = smov 0  }
   0x6 LB: > { %s3757_s15 = sadd.s32 4294967295, %s4042_s14   ;;  %s3758_s16 = sadd.s32 4294967294, %s4042_s14   ;;  %s4042_s14 = sphi %s4072_s14, %s19_s14   ;;  %s4038_s13 = sphi %s4070_s13, %s8598_s13   ;;  %s4034_s12 = sphi %s4068_s12, %s8597_s12   ;;  %s4030_s11 = sphi %s4066_s11, %s8596_s11   ;;  %s4026_s10 = sphi %s4064_s10, %s8595_s10   ;;  %s4022_s9 = sphi %s4062_s9, %s8594_s9  }
   0x7   : > { %s31_s17 = sadd.s32 1, %s4038_s13  ;;  %s68_s18 = sadd.s32 1, %s4030_s11 }
   0x8   : > { %p33_p0 = scmp.ge.s32.totalorder %s31_s17, 2  ;;  %p78_p1 = scmp.ne.s32.totalorder %s4030_s11, %s4026_s10 }
   0x9   : > { %p79_p2 = scmp.eq.s32.totalorder %s3757_s15, 1  ;;  %p84_p3 = scmp.ne.s32.totalorder %s4026_s10, %s4022_s9 }
   0xa   : > { %s8600_s17 = smov (%p33_p0, %s31_s17), 0  ;;  %p85_p5 = scmp.eq.s32.totalorder %s3758_s16, 1 }
   0xb   : > { %p4102_p4 = por %p79_p2, %p78_p1  ;;  %s63_s20 = ssub.s32 %s4038_s13, %s8600_s17 }
   0xc   : > { %p3761_p6 = scmp.ge.s32.totalorder %s4042_s14, 1  ;;  %p66_p7 = scmp.eq.s32.totalorder %s63_s20, 0 }
   0xd   : > { %p4109_p8 = por %p85_p5, %p84_p3  ;;  %p142_p9 = scmp.lt.s32.totalorder %s4042_s14, 3 }
   0xe   : > { %s4115_s22 = scalar_select %p66_p7, %s4030_s11, %s68_s18  }
   0xf   : > { %p143_p10 = pnand %p3761_p6, %p142_p9 }
  0x11   : > { %146 = sbr.rel (%p143_p10) target bundleno = 1236 (0x4d4), region = 24 }
  0x16   : > { %p170_p11 = scmp.lt.s32.totalorder %s4034_s12, 1  ;;  %vm210_vm0 = vcmask 31744   ;;  %s7811_s28 = sand.u32 1, %s4026_s10  }
  0x17   : > { %s3781_s29 = sshll.u32 %s4034_s12, 4  ;;  %s169_s30 = scalar_lea.vmem [#allocation4], %s7811_s28 }
  0x18   : > { %s171_s23 = scalar_select %p170_p11, %s4034_s12, 1 }
  0x19   : > { %s3658_s3 = sshll.u32 %s169_s30, 4  ;;  %s7874_s6 = scalar_lea.hbm %s7972_s2, %s3781_s29  ;;  %s7876_s3 = int_to_ptr.vmem [resolvable:$true] %s3658_s3 }
  0x1a   : > { %s3785_s24 = sshll.u32 %s171_s23, 8  ;;  %s3631_s7 = scalar_lea.sflag [#allocation5], %s7811_s28 }
  0x1b   : > { %s4122_s27 = scalar_lea.vmem %s7970_s0, %s3785_s24  ;;  %s3936_s8 = scalar_lea.vmem %s7876_s3, 16 }
  0x1c   : > { %v4125_v0 = vld [vmem:[%s4122_s27] sm:$0xff]  ;;  %v4128_v1 = vld [vmem:[%s4122_s27 + $0x8] sm:$0xff]  ;;  %v4131_v2 = vld [vmem:[%s4122_s27 + $0x10] sm:$0xff]  ;;  %p3937_p12 = scmp.ne.s32.totalorder %s7876_s3, %s3936_s8  ;;  %s4045_s15 = smov [#allocation4]  }
  0x1d   : > { %v4134_v3 = vld [vmem:[%s4122_s27 + $0x18] sm:$0xff]  ;;  %v4137_v4 = vld [vmem:[%s4122_s27 + $0x20] sm:$0xff]  ;;  %v4140_v5 = vld [vmem:[%s4122_s27 + $0x28] sm:$0xff]  ;;  %v211_v6 = vsel %vm210_vm0, %v4125_v0, inf  ;;  %v212_v7 = vsel %vm210_vm0, %v4128_v1, inf  ;;  %v220_v8 = vsel %vm210_vm0, %v4131_v2, inf }
  0x1e   : > { %v4149_v9 = vld [vmem:[%s4122_s27 + $0x30] sm:$0xff]  ;;  %v4152_v10 = vld [vmem:[%s4122_s27 + $0x38] sm:$0xff]  ;;  %v4155_v11 = vld [vmem:[%s4122_s27 + $0x40] sm:$0xff]  ;;  %v213_v12 = vmin.f32 %v211_v6, %v212_v7  ;;  %v221_v13 = vsel %vm210_vm0, %v4134_v3, inf  ;;  %v229_v14 = vsel %vm210_vm0, %v4137_v4, inf  ;;  %v230_v15 = vsel %vm210_vm0, %v4140_v5, inf  ;;  %p3938_p13 = pnand %p3937_p12, %p4102_p4 }
  0x1f   : > { %v4164_v16 = vld [vmem:[%s4122_s27 + $0x48] sm:$0xff]  ;;  %v4167_v17 = vld [vmem:[%s4122_s27 + $0x50] sm:$0xff]  ;;  %v4170_v18 = vld [vmem:[%s4122_s27 + $0x58] sm:$0xff]  ;;  %v222_v19 = vmin.f32 %v220_v8, %v221_v13  ;;  %v231_v20 = vmin.f32 %v229_v14, %v230_v15  ;;  %v238_v21 = vsel %vm210_vm0, %v4149_v9, inf  ;;  %v239_v22 = vsel %vm210_vm0, %v4152_v10, inf  ;;  %s3940_s16 = sshll.u32 %s4045_s15, 4  ;;  %s3941_s16 = int_to_ptr.vmem [resolvable:$false] %s3940_s16 }
  0x20   : > { %v4177_v23 = vld [vmem:[%s4122_s27 + $0x60] sm:$0xff]  ;;  %v214_v24 = vrot.slane %v213_v12, 4  ;;  %v240_v25 = vmin.f32 %v238_v21, %v239_v22  ;;  %v247_v26 = vsel %vm210_vm0, %v4155_v11, inf  ;;  %v248_v27 = vsel %vm210_vm0, %v4164_v16, inf  ;;  %v4184_v28 = vld [vmem:[%s4122_s27 + $0x68] sm:$0xff]  ;;  %v4187_v29 = vld [vmem:[%s4122_s27 + $0x70] sm:$0xff]  ;;  %p3939_p0 = pneg %p3938_p13  ;;  %p3943_p1 = scmp.lt.s32.totalorder %s7876_s3, %s3941_s16 }
  0x21   : > { %v223_v30 = vrot.slane %v222_v19, 4  ;;  %v232_v31 = vrot.slane %v231_v20, 4  ;;  %v249_v32 = vmin.f32 %v247_v26, %v248_v27  ;;  %v256_v33 = vsel %vm210_vm0, %v4167_v17, inf  ;;  %v4196_v38 = vld [vmem:[%s4122_s27 + $0x78] sm:$0xff]  ;;  %v4205_v63 = vld [vmem:[%s4122_s27 + $0x80] sm:$0xff]  ;;  %v4208_v13 = vld [vmem:[%s4122_s27 + $0x88] sm:$0xff] }
  0x22   : > { %v215_v34 = vmin.f32 %v213_v12, %v214_v24  ;;  %v241_v35 = vrot.slane %v240_v25, 4  ;;  %v257_v36 = vsel %vm210_vm0, %v4170_v18, inf  ;;  %v265_v37 = vsel %vm210_vm0, %v4177_v23, inf  ;;  %v4211_v14 = vld [vmem:[%s4122_s27 + $0x90] sm:$0xff]  ;;  %v4214_v21 = vld [vmem:[%s4122_s27 + $0x98] sm:$0xff]  ;;  %v4221_v27 = vld [vmem:[%s4122_s27 + $0xa0] sm:$0xff] }
  0x23   : > { %v224_v39 = vmin.f32 %v222_v19, %v223_v30  ;;  %v233_v40 = vmin.f32 %v231_v20, %v232_v31  ;;  %v250_v41 = vrot.slane %v249_v32, 4  ;;  %v258_v42 = vmin.f32 %v256_v33, %v257_v36  ;;  %8188 = vst [vmem:[#allocation8_spill] sm:$0xff] %v4221_v27  ;;  %v4224_v30 = vld [vmem:[%s4122_s27 + $0xa8] sm:$0xff]  ;;  %s3942_s18 = scalar_lea.vmem %s3941_s16, 32 }
  0x24   : > { %v216_v43 = vrot.slane %v215_v34, 2  ;;  %v242_v44 = vmin.f32 %v240_v25, %v241_v35  ;;  %v266_v45 = vsel %vm210_vm0, %v4184_v28, inf  ;;  %v274_v46 = vsel %vm210_vm0, %v4187_v29, inf  ;;  %8189 = vst [vmem:[#allocation9_spill] sm:$0xff] %v4224_v30  ;;  %p3944_p2 = scmp.lt.s32.totalorder %s3942_s18, %s3936_s8 }
  0x25   : > { %v225_v47 = vrot.slane %v224_v39, 2  ;;  %v234_v48 = vrot.slane %v233_v40, 2  ;;  %v251_v49 = vmin.f32 %v249_v32, %v250_v41  ;;  %v259_v50 = vrot.slane %v258_v42, 4  ;;  %v4240_v41 = vld [vmem:[%s4122_s27 + $0xb8] sm:$0xff] }
  0x26   : > { %v217_v51 = vmin.f32 %v215_v34, %v216_v43  ;;  %v243_v52 = vrot.slane %v242_v44, 2  ;;  %v267_v53 = vmin.f32 %v265_v37, %v266_v45  ;;  %v275_v54 = vsel %vm210_vm0, %v4196_v38, inf  ;;  %8191 = vst [vmem:[#allocation11_spill] sm:$0xff] %v4240_v41  ;;  %p3945_p3 = por %p3944_p2, %p3943_p1 }
  0x27   : > { %v226_v55 = vmin.f32 %v224_v39, %v225_v47  ;;  %v235_v56 = vmin.f32 %v233_v40, %v234_v48  ;;  %v252_v57 = vrot.slane %v251_v49, 2  ;;  %v260_v58 = vmin.f32 %v258_v42, %v259_v50  ;;  %v4237_v40 = vld [vmem:[%s4122_s27 + $0xb0] sm:$0xff]  ;;  %v4243_v42 = vld [vmem:[%s4122_s27 + $0xc0] sm:$0xff] }
  0x28   : > { %v218_v59 = vrot.slane %v217_v51, 1  ;;  %v244_v60 = vmin.f32 %v242_v44, %v243_v52  ;;  %v268_v61 = vrot.slane %v267_v53, 4  ;;  %v276_v62 = vmin.f32 %v274_v46, %v275_v54  ;;  %8190 = vst [vmem:[#allocation10_spill] sm:$0xff] %v4237_v40  ;;  %8192 = vst [vmem:[#allocation12_spill] sm:$0xff] %v4243_v42  ;;  %v4257_v52 = vld [vmem:[%s4122_s27 + $0xd0] sm:$0xff]  ;;  %p3946_p5 = pnand %p3945_p3, %p3939_p0 }
  0x29   : > { %v227_v6 = vrot.slane %v226_v55, 1  ;;  %v236_v7 = vrot.slane %v235_v56, 1  ;;  %v253_v8 = vmin.f32 %v251_v49, %v252_v57  ;;  %v261_v12 = vrot.slane %v260_v58, 2  ;;  %8194 = vst [vmem:[#allocation14_spill] sm:$0xff] %v4257_v52 }
  0x2a   : > { %v245_v15 = vrot.slane %v244_v60, 1  ;;  %v269_v19 = vmin.f32 %v267_v53, %v268_v61  ;;  %v277_v20 = vrot.slane %v276_v62, 4  ;;  %v4216_v22 = vmin.f32 %v217_v51, %v218_v59  ;;  %v4254_v51 = vld [vmem:[%s4122_s27 + $0xc8] sm:$0xff]  ;;  %v4266_v61 = vld [vmem:[%s4122_s27 + $0xd8] sm:$0xff] }
  0x2b   : > { %v4218_v24 = vmin.f32 %v226_v55, %v227_v6  ;;  %v254_v25 = vrot.slane %v253_v8, 1  ;;  %v262_v26 = vmin.f32 %v260_v58, %v261_v12  ;;  %v4226_v31 = vmin.f32 %v235_v56, %v236_v7  ;;  %8193 = vst [vmem:[#allocation13_spill] sm:$0xff] %v4254_v51  ;;  %8195 = vst [vmem:[#allocation15_spill] sm:$0xff] %v4266_v61 }
  0x2c   : > { %v270_v32 = vrot.slane %v269_v19, 2  ;;  %v278_v33 = vmin.f32 %v276_v62, %v277_v20  ;;  %v283_v34 = vsel %vm210_vm0, %v4205_v63, inf  ;;  %v4230_v35 = vmin.f32 %v244_v60, %v245_v15  ;;  %v4269_v62 = vld [vmem:[%s4122_s27 + $0xe0] sm:$0xff] }
  0x2d   : > { %v263_v36 = vrot.slane %v262_v26, 1  ;;  %v284_v37 = vsel %vm210_vm0, %v4208_v13, inf  ;;  %v292_v39 = vsel %vm210_vm0, %v4211_v14, inf  ;;  %v293_v46 = vsel %vm210_vm0, %v4214_v21, inf  ;;  %8196 = vst [vmem:[#allocation16_spill] sm:$0xff] %v4269_v62 }
  0x2e   : > { %v271_v43 = vmin.f32 %v269_v19, %v270_v32  ;;  %v279_v44 = vrot.slane %v278_v33, 2  ;;  %v285_v45 = vmin.f32 %v283_v34, %v284_v37  ;;  %v4247_v47 = vmin.f32 %v253_v8, %v254_v25  ;;  %v4278_v32 = vld [vmem:[%s4122_s27 + $0xe8] sm:$0xff] }
  0x2f   : > { %v294_v48 = vmin.f32 %v292_v39, %v293_v46  ;;  %v301_v49 = vsel %vm210_vm0, %v4221_v27, inf  ;;  %v302_v50 = vsel %vm210_vm0, %v4224_v30, inf  ;;  %v310_v58 = vsel %vm210_vm0, %v4237_v40, inf  ;;  %8197 = vst [vmem:[#allocation17_spill] sm:$0xff] %v4278_v32  ;;  %v4288_v46 = vld [vmem:[%s4122_s27 + $0xf8] sm:$0xff] }
  0x30   : > { %v272_v53 = vrot.slane %v271_v43, 1  ;;  %v280_v54 = vmin.f32 %v278_v33, %v279_v44  ;;  %v286_v55 = vrot.slane %v285_v45, 4  ;;  %v303_v56 = vmin.f32 %v301_v49, %v302_v50  ;;  %v4281_v33 = vld [vmem:[%s4122_s27 + $0xf0] sm:$0xff]  ;;  %8199 = vst [vmem:[#allocation19_spill] sm:$0xff] %v4288_v46 }
  0x31   : > { %v295_v57 = vrot.slane %v294_v48, 4  ;;  %v311_v59 = vsel %vm210_vm0, %v4240_v41, inf  ;;  %v319_v60 = vsel %vm210_vm0, %v4243_v42, inf  ;;  %v264_v6 = vmin.f32 %v262_v26, %v263_v36  ;;  %8198 = vst [vmem:[#allocation18_spill] sm:$0xff] %v4281_v33 }
  0x32   : > { %v4271_v7 = vmin.f32 %v271_v43, %v272_v53  ;;  %v287_v8 = vmin.f32 %v285_v45, %v286_v55  ;;  %v304_v12 = vrot.slane %v303_v56, 4  ;;  %v312_v19 = vmin.f32 %v310_v58, %v311_v59 }
  0x33   : > { %v296_v15 = vmin.f32 %v294_v48, %v295_v57  ;;  %v320_v20 = vsel %vm210_vm0, %v4254_v51, inf  ;;  %v328_v25 = vsel %vm210_vm0, %v4257_v52, inf  ;;  %v281_v34 = vrot.slane %v280_v54, 1 }
  0x34   : > { %v288_v37 = vrot.slane %v287_v8, 2  ;;  %v305_v26 = vmin.f32 %v303_v56, %v304_v12  ;;  %v321_v36 = vmin.f32 %v319_v60, %v320_v20  ;;  %v313_v43 = vrot.slane %v312_v19, 4 }
  0x35   : > { %v297_v39 = vrot.slane %v296_v15, 2  ;;  %v329_v44 = vsel %vm210_vm0, %v4266_v61, inf  ;;  %v337_v45 = vsel %vm210_vm0, %v4269_v62, inf  ;;  %v338_v56 = vsel %vm210_vm0, %v4278_v32, inf }
  0x36   : > { %v289_v48 = vmin.f32 %v287_v8, %v288_v37  ;;  %v306_v49 = vrot.slane %v305_v26, 2  ;;  %v322_v50 = vrot.slane %v321_v36, 4  ;;  %v330_v53 = vmin.f32 %v328_v25, %v329_v44 }
  0x37   : > { %v298_v55 = vmin.f32 %v296_v15, %v297_v39  ;;  %v314_v57 = vmin.f32 %v312_v19, %v313_v43  ;;  %v346_v58 = vsel %vm210_vm0, %v4281_v33, inf  ;;  %v339_v52 = vmin.f32 %v337_v45, %v338_v56 }
  0x38   : > { %v290_v59 = vrot.slane %v289_v48, 1  ;;  %v307_v60 = vmin.f32 %v305_v26, %v306_v49  ;;  %v323_v12 = vmin.f32 %v321_v36, %v322_v50  ;;  %v331_v20 = vrot.slane %v330_v53, 4 }
  0x39   : > { %v299_v61 = vrot.slane %v298_v55, 1  ;;  %v315_v62 = vrot.slane %v314_v57, 2  ;;  %v347_v8 = vsel %vm210_vm0, %v4288_v46, inf  ;;  %v282_v37 = vmin.f32 %v280_v54, %v281_v34 }
  0x3a   : > { %v308_v25 = vrot.slane %v307_v60, 1  ;;  %v324_v15 = vrot.slane %v323_v12, 2  ;;  %v332_v19 = vmin.f32 %v330_v53, %v331_v20  ;;  %v291_v39 = vmin.f32 %v289_v48, %v290_v59 }
  0x3b   : > { %v316_v43 = vmin.f32 %v314_v57, %v315_v62  ;;  %v340_v44 = vrot.slane %v339_v52, 4  ;;  %v348_v32 = vmin.f32 %v346_v58, %v347_v8  ;;  %v300_v51 = vmin.f32 %v298_v55, %v299_v61 }
  0x3c   : > { %v309_v33 = vmin.f32 %v307_v60, %v308_v25  ;;  %v325_v42 = vmin.f32 %v323_v12, %v324_v15  ;;  %v333_v26 = vrot.slane %v332_v19, 2  ;;  %v355_v45 = vsel %vm210_vm0, %v4216_v22, inf }
  0x3d   : > { %v317_v36 = vrot.slane %v316_v43, 1  ;;  %v341_v49 = vmin.f32 %v339_v52, %v340_v44  ;;  %v349_v50 = vrot.slane %v348_v32, 4  ;;  %v356_v54 = vsel %vm210_vm0, %v4218_v24, inf }
  0x3e   : > { %v326_v56 = vrot.slane %v325_v42, 1  ;;  %v334_v46 = vmin.f32 %v332_v19, %v333_v26  ;;  %v357_v62 = vsel %vm210_vm0, %v4226_v31, inf  ;;  %v358_v61 = vsel %vm210_vm0, %v4230_v35, inf }
  0x3f   : > { %v342_v34 = vrot.slane %v341_v49, 2  ;;  %v350_v48 = vmin.f32 %v348_v32, %v349_v50  ;;  %v359_v52 = vsel %vm210_vm0, %v4247_v47, inf  ;;  %v318_v53 = vmin.f32 %v316_v43, %v317_v36 }
  0x40   : > { %v335_v55 = vrot.slane %v334_v46, 1  ;;  %v360_v57 = vmin.f32 %v355_v45, %v359_v52  ;;  %v361_v22 = vsel %vm210_vm0, %v264_v6, inf  ;;  %v327_v58 = vmin.f32 %v325_v42, %v326_v56 }
  0x41   : > { %v343_v59 = vmin.f32 %v341_v49, %v342_v34  ;;  %v351_v60 = vrot.slane %v350_v48, 2  ;;  %v363_v24 = vsel %vm210_vm0, %v4271_v7, inf  ;;  %v362_v12 = vmin.f32 %v356_v54, %v361_v22 }
  0x42   : > { %v336_v31 = vmin.f32 %v334_v46, %v335_v55  ;;  %v365_v32 = vsel %vm210_vm0, %v282_v37, inf  ;;  %v367_v35 = vsel %vm210_vm0, %v291_v39, inf  ;;  %v364_v47 = vmin.f32 %v357_v62, %v363_v24 }
  0x43   : > { %v344_v20 = vrot.slane %v343_v59, 1  ;;  %v352_v8 = vmin.f32 %v350_v48, %v351_v60  ;;  %v366_v25 = vmin.f32 %v358_v61, %v365_v32  ;;  %v4311_v15 = vmin.f32 %v360_v57, %v367_v35  ;;  %v8202_v48 = vld [vmem:[#allocation14_spill] sm:$0xff] }
  0x44   : > { %v369_v6 = vsel %vm210_vm0, %v300_v51, inf  ;;  %v371_v42 = vsel %vm210_vm0, %v309_v33, inf  ;;  %v373_v19 = vsel %vm210_vm0, %v318_v53, inf  ;;  %v4317_v46 = vsel %vm210_vm0, %v327_v58, inf }
  0x45   : > { %v345_v43 = vmin.f32 %v343_v59, %v344_v20  ;;  %v353_v7 = vrot.slane %v352_v8, 1  ;;  %v4319_v37 = vmin.f32 %v362_v12, %v369_v6  ;;  %v386_v39 = vsel %vm210_vm0, %v4125_v0, -inf }
  0x46   : > { %v4323_v44 = vmin.f32 %v364_v47, %v371_v42  ;;  %v4325_v26 = vmin.f32 %v366_v25, %v373_v19  ;;  %v4328_v51 = vsel %vm210_vm0, %v336_v31, inf  ;;  %v387_v33 = vsel %vm210_vm0, %v4128_v1, -inf }
  0x47   : > { %v388_v49 = vmax.f32 %v386_v39, %v387_v33  ;;  %v395_v50 = vsel %vm210_vm0, %v4131_v2, -inf  ;;  %v396_v45 = vsel %vm210_vm0, %v4134_v3, -inf  ;;  %v354_v56 = vmin.f32 %v352_v8, %v353_v7 }
  0x48   : > { %v4339_v54 = vsel %vm210_vm0, %v345_v43, inf  ;;  %v397_v62 = vmax.f32 %v395_v50, %v396_v45  ;;  %v404_v34 = vsel %vm210_vm0, %v4137_v4, -inf  ;;  %v405_v52 = vsel %vm210_vm0, %v4140_v5, -inf }
  0x49   : > { %v389_v61 = vrot.slane %v388_v49, 4  ;;  %v413_v53 = vsel %vm210_vm0, %v4149_v9, -inf  ;;  %v406_v57 = vmax.f32 %v404_v34, %v405_v52  ;;  %v414_v22 = vsel %vm210_vm0, %v4152_v10, -inf }
  0x4a   : > { %v398_v55 = vrot.slane %v397_v62, 4  ;;  %v422_v58 = vsel %vm210_vm0, %v4155_v11, -inf  ;;  %v415_v24 = vmax.f32 %v413_v53, %v414_v22  ;;  %v423_v31 = vsel %vm210_vm0, %v4164_v16, -inf }
  0x4b   : > { %v390_v60 = vmax.f32 %v388_v49, %v389_v61  ;;  %v407_v32 = vrot.slane %v406_v57, 4  ;;  %v424_v35 = vmax.f32 %v422_v58, %v423_v31  ;;  %v431_v20 = vsel %vm210_vm0, %v4167_v17, -inf }
  0x4c   : > { %v399_v12 = vmax.f32 %v397_v62, %v398_v55  ;;  %v4360_v8 = vsel %vm210_vm0, %v354_v56, inf  ;;  %v416_v25 = vrot.slane %v415_v24, 4  ;;  %v432_v6 = vsel %vm210_vm0, %v4170_v18, -inf }
  0x4d   : > { %v391_v47 = vrot.slane %v390_v60, 2  ;;  %v408_v19 = vmax.f32 %v406_v57, %v407_v32  ;;  %v425_v43 = vrot.slane %v424_v35, 4  ;;  %v433_v7 = vmax.f32 %v431_v20, %v432_v6 }
  0x4e   : > { %v400_v42 = vrot.slane %v399_v12, 2  ;;  %v417_v33 = vmax.f32 %v415_v24, %v416_v25  ;;  %v440_v49 = vsel %vm210_vm0, %v4177_v23, -inf  ;;  %v441_v50 = vsel %vm210_vm0, %v4184_v28, -inf }
  0x4f   : > { %v392_v39 = vmax.f32 %v390_v60, %v391_v47  ;;  %v409_v56 = vrot.slane %v408_v19, 2  ;;  %v426_v62 = vmax.f32 %v424_v35, %v425_v43  ;;  %v434_v34 = vrot.slane %v433_v7, 4 }
  0x50   : > { %v401_v45 = vmax.f32 %v399_v12, %v400_v42  ;;  %v418_v52 = vrot.slane %v417_v33, 2  ;;  %v442_v53 = vmax.f32 %v440_v49, %v441_v50  ;;  %v449_v55 = vsel %vm210_vm0, %v4187_v29, -inf }
  0x51   : > { %v393_v61 = vrot.slane %v392_v39, 1  ;;  %v410_v22 = vmax.f32 %v408_v19, %v409_v56  ;;  %v427_v58 = vrot.slane %v426_v62, 2  ;;  %v435_v60 = vmax.f32 %v433_v7, %v434_v34 }
  0x52   : > { %v402_v57 = vrot.slane %v401_v45, 1  ;;  %v419_v31 = vmax.f32 %v417_v33, %v418_v52  ;;  %v443_v32 = vrot.slane %v442_v53, 4  ;;  %v450_v12 = vsel %vm210_vm0, %v4196_v38, -inf }
  0x53   : > { %v4370_v24 = vmax.f32 %v392_v39, %v393_v61  ;;  %v411_v35 = vrot.slane %v410_v22, 1  ;;  %v428_v47 = vmax.f32 %v426_v62, %v427_v58  ;;  %v436_v25 = vrot.slane %v435_v60, 2 }
  0x54   : > { %v4374_v20 = vmax.f32 %v401_v45, %v402_v57  ;;  %v420_v6 = vrot.slane %v419_v31, 1  ;;  %v444_v42 = vmax.f32 %v442_v53, %v443_v32  ;;  %v451_v43 = vmax.f32 %v449_v55, %v450_v12 }
  0x55   : > { %v458_v19 = vsel %vm210_vm0, %v4205_v63, -inf  ;;  %v4378_v49 = vmax.f32 %v410_v22, %v411_v35  ;;  %v429_v7 = vrot.slane %v428_v47, 1  ;;  %v437_v39 = vmax.f32 %v435_v60, %v436_v25 }
  0x56   : > { %v459_v33 = vsel %vm210_vm0, %v4208_v13, -inf  ;;  %v4382_v50 = vmax.f32 %v419_v31, %v420_v6  ;;  %v445_v45 = vrot.slane %v444_v42, 2  ;;  %v452_v56 = vrot.slane %v451_v43, 4 }
  0x57   : > { %v460_v34 = vmax.f32 %v458_v19, %v459_v33  ;;  %v4384_v62 = vmax.f32 %v428_v47, %v429_v7  ;;  %v438_v61 = vrot.slane %v437_v39, 1  ;;  %v467_v52 = vsel %vm210_vm0, %v4211_v14, -inf }
  0x58   : > { %v468_v53 = vsel %vm210_vm0, %v4214_v21, -inf  ;;  %v446_v55 = vmax.f32 %v444_v42, %v445_v45  ;;  %v453_v57 = vmax.f32 %v451_v43, %v452_v56  ;;  %v476_v31 = vsel %vm210_vm0, %v4221_v27, -inf  ;;  %v8200_v43 = vld [vmem:[#allocation12_spill] sm:$0xff] }
  0x59   : > { %v461_v22 = vrot.slane %v460_v34, 4  ;;  %v469_v58 = vmax.f32 %v467_v52, %v468_v53  ;;  %v4390_v60 = vmax.f32 %v437_v39, %v438_v61  ;;  %v477_v32 = vsel %vm210_vm0, %v4224_v30, -inf  ;;  %v8201_v39 = vld [vmem:[#allocation13_spill] sm:$0xff] }
  0x5a   : > { %v485_v12 = vsel %vm210_vm0, %v4237_v40, -inf  ;;  %v447_v35 = vrot.slane %v446_v55, 1  ;;  %v454_v47 = vrot.slane %v453_v57, 2  ;;  %v478_v19 = vmax.f32 %v476_v31, %v477_v32 }
  0x5b   : > { %v462_v25 = vmax.f32 %v460_v34, %v461_v22  ;;  %v470_v6 = vrot.slane %v469_v58, 4  ;;  %v486_v42 = vsel %vm210_vm0, %v4240_v41, -inf  ;;  %v494_v7 = vsel %vm210_vm0, %v8200_v43, -inf  ;;  %v8203_v41 = vld [vmem:[#allocation15_spill] sm:$0xff] }
  0x5c   : > { %v495_v33 = vsel %vm210_vm0, %v8201_v39, -inf  ;;  %v448_v45 = vmax.f32 %v446_v55, %v447_v35  ;;  %v455_v56 = vmax.f32 %v453_v57, %v454_v47  ;;  %v479_v53 = vrot.slane %v478_v19, 4 }
  0x5d   : > { %v463_v61 = vrot.slane %v462_v25, 2  ;;  %v471_v52 = vmax.f32 %v469_v58, %v470_v6  ;;  %v487_v59 = vmax.f32 %v485_v12, %v486_v42  ;;  %v496_v36 = vmax.f32 %v494_v7, %v495_v33  ;;  %v8204_v58 = vld [vmem:[#allocation16_spill] sm:$0xff] }
  0x5e   : > { %v503_v34 = vsel %vm210_vm0, %v8202_v48, -inf  ;;  %v456_v22 = vrot.slane %v455_v56, 1  ;;  %v504_v40 = vsel %vm210_vm0, %v8203_v41, -inf  ;;  %v480_v43 = vmax.f32 %v478_v19, %v479_v53  ;;  %v8206_v41 = vld [vmem:[#allocation18_spill] sm:$0xff] }
  0x5f   : > { %v464_v31 = vmax.f32 %v462_v25, %v463_v61  ;;  %v472_v32 = vrot.slane %v471_v52, 2  ;;  %v488_v30 = vrot.slane %v487_v59, 4  ;;  %v497_v27 = vrot.slane %v496_v36, 4  ;;  %v8205_v61 = vld [vmem:[#allocation17_spill] sm:$0xff] }
  0x60   : > { %v505_v39 = vmax.f32 %v503_v34, %v504_v40  ;;  %v457_v55 = vmax.f32 %v455_v56, %v456_v22  ;;  %v512_v12 = vsel %vm210_vm0, %v8204_v58, -inf  ;;  %v481_v47 = vrot.slane %v480_v43, 2 }
  0x61   : > { %v465_v57 = vrot.slane %v464_v31, 1  ;;  %v473_v35 = vmax.f32 %v471_v52, %v472_v32  ;;  %v489_v6 = vmax.f32 %v487_v59, %v488_v30  ;;  %v498_v42 = vmax.f32 %v496_v36, %v497_v27  ;;  %v8207_v32 = vld [vmem:[#allocation19_spill] sm:$0xff] }
  0x62   : > { %v506_v7 = vrot.slane %v505_v39, 4  ;;  %v513_v48 = vsel %vm210_vm0, %v8205_v61, -inf  ;;  %v521_v19 = vsel %vm210_vm0, %v8206_v41, -inf  ;;  %v482_v53 = vmax.f32 %v480_v43, %v481_v47 }
  0x63   : > { %v466_v33 = vmax.f32 %v464_v31, %v465_v57  ;;  %v474_v25 = vrot.slane %v473_v35, 1  ;;  %v490_v40 = vrot.slane %v489_v6, 2  ;;  %v499_v56 = vrot.slane %v498_v42, 2 }
  0x64   : > { %v507_v34 = vmax.f32 %v505_v39, %v506_v7  ;;  %v514_v22 = vmax.f32 %v512_v12, %v513_v48  ;;  %v522_v58 = vsel %vm210_vm0, %v8207_v32, -inf  ;;  %v530_v27 = vsel %vm210_vm0, %v4370_v24, -inf }
  0x65   : > { %v475_v52 = vmax.f32 %v473_v35, %v474_v25  ;;  %v483_v30 = vrot.slane %v482_v53, 1  ;;  %v491_v36 = vmax.f32 %v489_v6, %v490_v40  ;;  %v500_v59 = vmax.f32 %v498_v42, %v499_v56 }
  0x66   : > { %v508_v31 = vrot.slane %v507_v34, 2  ;;  %v515_v57 = vrot.slane %v514_v22, 4  ;;  %v523_v61 = vmax.f32 %v521_v19, %v522_v58  ;;  %v531_v43 = vsel %vm210_vm0, %v4374_v20, -inf }
  0x67   : > { %v532_v39 = vsel %vm210_vm0, %v4378_v49, -inf  ;;  %v484_v35 = vmax.f32 %v482_v53, %v483_v30  ;;  %v492_v48 = vrot.slane %v491_v36, 1  ;;  %v501_v12 = vrot.slane %v500_v59, 1 }
  0x68   : > { %v509_v47 = vmax.f32 %v507_v34, %v508_v31  ;;  %v516_v7 = vmax.f32 %v514_v22, %v515_v57  ;;  %v524_v25 = vrot.slane %v523_v61, 4  ;;  %v533_v24 = vsel %vm210_vm0, %v4382_v50, -inf }
  0x69   : > { %v534_v6 = vsel %vm210_vm0, %v4384_v62, -inf  ;;  %v493_v42 = vmax.f32 %v491_v36, %v492_v48  ;;  %v502_v58 = vmax.f32 %v500_v59, %v501_v12  ;;  %v536_v49 = vsel %vm210_vm0, %v4390_v60, -inf }
  0x6a   : > { %v510_v19 = vrot.slane %v509_v47, 1  ;;  %v535_v40 = vmax.f32 %v530_v27, %v534_v6  ;;  %v517_v20 = vrot.slane %v516_v7, 2  ;;  %v525_v56 = vmax.f32 %v523_v61, %v524_v25 }
  0x6b   : > { %v538_v53 = vsel %vm210_vm0, %v448_v45, -inf  ;;  %v537_v22 = vmax.f32 %v531_v43, %v536_v49  ;;  %v540_v31 = vsel %vm210_vm0, %v457_v55, -inf  ;;  %v382_v50 = vmin.f32 %v4325_v26, %v4360_v8 }
  0x6c   : > { %v511_v34 = vmax.f32 %v509_v47, %v510_v19  ;;  %v539_v30 = vmax.f32 %v532_v39, %v538_v53  ;;  %v518_v62 = vmax.f32 %v516_v7, %v517_v20  ;;  %v526_v36 = vrot.slane %v525_v56, 2 }
  0x6d   : > { %v542_v59 = vsel %vm210_vm0, %v466_v33, -inf  ;;  %v541_v27 = vmax.f32 %v533_v24, %v540_v31  ;;  %v544_v61 = vsel %vm210_vm0, %v475_v52, -inf  ;;  %v546_v60 = vsel %vm210_vm0, %v484_v35, -inf }
  0x6e   : > { %v543_v57 = vmax.f32 %v535_v40, %v542_v59  ;;  %v519_v48 = vrot.slane %v518_v62, 1  ;;  %v527_v45 = vmax.f32 %v525_v56, %v526_v36  ;;  %v545_v12 = vmax.f32 %v537_v22, %v544_v61 }
  0x6f   : > { %v548_v43 = vsel %vm210_vm0, %v493_v42, -inf  ;;  %v547_v39 = vmax.f32 %v539_v30, %v546_v60  ;;  %v550_v55 = vsel %vm210_vm0, %v502_v58, -inf  ;;  %v552_v26 = vsel %vm210_vm0, %v511_v34, -inf }
  0x70   : > { %v520_v8 = vmax.f32 %v518_v62, %v519_v48  ;;  %v528_v47 = vrot.slane %v527_v45, 1  ;;  %v551_v7 = vmax.f32 %v543_v57, %v550_v55  ;;  %v553_v33 = vmax.f32 %v545_v12, %v552_v26  ;;  %v8213_v48 = vld [vmem:[#allocation10_spill] sm:$0xff] }
  0x71   : > { %v549_v25 = vmax.f32 %v541_v27, %v548_v43  ;;  %v8208_v52 = vmin.f32 %v4319_v37, %v4328_v51  ;;  %v8209_v35 = vmin.f32 %v4311_v15, %v4317_v46  ;;  %v8210_v6 = vmin.f32 %v4323_v44, %v4339_v54 }
  0x72   : > { %v529_v19 = vmax.f32 %v527_v45, %v528_v47  ;;  %v554_v58 = vsel %vm210_vm0, %v520_v8, -inf  ;;  %v564_v20 = vand.u32 2147483647, %v4125_v0  ;;  %v565_v56 = vand.u32 2147483647, %v4128_v1 }
  0x73   : > { %v383_v24 = vmin.f32 %v8209_v35, %v8208_v52  ;;  %v384_v42 = vmin.f32 %v8210_v6, %v382_v50  ;;  %v555_v40 = vmax.f32 %v547_v39, %v554_v58  ;;  %v558_v53 = vmax.f32 %v551_v7, %v553_v33  ;;  %v8215_v39 = vld [vmem:[#allocation11_spill] sm:$0xff] }
  0x74   : > { %v556_v49 = vsel %vm210_vm0, %v529_v19, -inf  ;;  %v566_v37 = vand.u32 2147483647, %v4131_v2  ;;  %v567_v15 = vand.u32 2147483647, %v4134_v3  ;;  %v596_v59 = vsel %vm210_vm0, %v564_v20, -inf }
  0x75   : > { %v557_v46 = vmax.f32 %v549_v25, %v556_v49  ;;  %v568_v51 = vand.u32 2147483647, %v4137_v4  ;;  %v569_v44 = vand.u32 2147483647, %v4140_v5  ;;  %v570_v54 = vand.u32 2147483647, %v4149_v9 }
  0x76   : > { %v4456_v34 = vmin.f32 %v383_v24, %v384_v42  ;;  %v571_v22 = vand.u32 2147483647, %v4152_v10  ;;  %v572_v30 = vand.u32 2147483647, %v4155_v11  ;;  %v573_v31 = vand.u32 2147483647, %v4164_v16 }
  0x77   : > { %v559_v50 = vmax.f32 %v555_v40, %v557_v46  ;;  %v574_v62 = vand.u32 2147483647, %v4167_v17  ;;  %v575_v36 = vand.u32 2147483647, %v4170_v18  ;;  %v576_v4 = vand.u32 2147483647, %v4177_v23 }
  0x78   : > { %v577_v5 = vand.u32 2147483647, %v4184_v28  ;;  %v578_v9 = vand.u32 2147483647, %v4187_v29  ;;  %v792_v10 = vsub.f32 %v4125_v0, %v4456_v34  ;;  %v579_v11 = vand.u32 2147483647, %v4196_v38 }
  0x79   : > { %v4469_v27 = vmax.f32 %v558_v53, %v559_v50  ;;  %v580_v16 = vand.u32 2147483647, %v4205_v63  ;;  %v581_v17 = vand.u32 2147483647, %v4208_v13  ;;  %v582_v18 = vand.u32 2147483647, %v4211_v14 }
  0x7a   : > { %v583_v57 = vand.u32 2147483647, %v4214_v21  ;;  %v8211_v23 = vld [vmem:[#allocation8_spill] sm:$0xff]  ;;  %v793_v28 = vsub.f32 %v4128_v1, %v4456_v34  ;;  %v8212_v29 = vld [vmem:[#allocation9_spill] sm:$0xff]  ;;  %v586_v38 = vand.u32 2147483647, %v8213_v48  ;;  %v794_v45 = vsub.f32 %v4131_v2, %v4456_v34 }
  0x7b   : > { %v584_v61 = vand.u32 2147483647, %v8211_v23  ;;  %vm561_vm1 = vcmp.ne.f32.partialorder %v4469_v27, %v4456_v34  ;;  %v585_v60 = vand.u32 2147483647, %v8212_v29  ;;  %v4044_v12 = vmov 0.0  }
  0x7c   : > { %v4486_v43 = vsel %vm561_vm1, 1.0, %v4044_v12  ;;  %v587_v55 = vand.u32 2147483647, %v8215_v39  ;;  %v597_v26 = vsel %vm210_vm0, %v565_v56, -inf  ;;  %v605_v8 = vsel %vm210_vm0, %v566_v37, -inf }
  0x7d   : > { %8214 = vst [vmem:[#allocation18_spill] sm:$0xff] %v4486_v43  ;;  %v598_v47 = vmax.f32 %v596_v59, %v597_v26  ;;  %v606_v7 = vsel %vm210_vm0, %v567_v15, -inf  ;;  %v614_v33 = vsel %vm210_vm0, %v568_v51, -inf  ;;  %v615_v25 = vsel %vm210_vm0, %v569_v44, -inf }
  0x7e   : > { %v607_v52 = vmax.f32 %v605_v8, %v606_v7  ;;  %v616_v35 = vmax.f32 %v614_v33, %v615_v25  ;;  %v623_v24 = vsel %vm210_vm0, %v570_v54, -inf  ;;  %v624_v6 = vsel %vm210_vm0, %v571_v22, -inf }
  0x7f   : > { %v599_v42 = vrot.slane %v598_v47, 4  ;;  %v625_v19 = vmax.f32 %v623_v24, %v624_v6  ;;  %v632_v58 = vsel %vm210_vm0, %v572_v30, -inf  ;;  %v633_v40 = vsel %vm210_vm0, %v573_v31, -inf }
  0x80   : > { %v608_v20 = vrot.slane %v607_v52, 4  ;;  %v617_v56 = vrot.slane %v616_v35, 4  ;;  %v634_v49 = vmax.f32 %v632_v58, %v633_v40  ;;  %v641_v53 = vsel %vm210_vm0, %v574_v62, -inf }
  0x81   : > { %v600_v37 = vmax.f32 %v598_v47, %v599_v42  ;;  %v626_v15 = vrot.slane %v625_v19, 4  ;;  %v642_v46 = vsel %vm210_vm0, %v575_v36, -inf  ;;  %v650_v51 = vsel %vm210_vm0, %v576_v4, -inf  ;;  %v8216_v4 = vld [vmem:[#allocation12_spill] sm:$0xff] }
  0x82   : > { %v609_v44 = vmax.f32 %v607_v52, %v608_v20  ;;  %v618_v54 = vmax.f32 %v616_v35, %v617_v56  ;;  %v635_v22 = vrot.slane %v634_v49, 4  ;;  %v643_v50 = vmax.f32 %v641_v53, %v642_v46  ;;  %v8217_v35 = vld [vmem:[#allocation13_spill] sm:$0xff]  ;;  %v8219_v56 = vld [vmem:[#allocation15_spill] sm:$0xff] }
  0x83   : > { %v601_v59 = vrot.slane %v600_v37, 2  ;;  %v627_v26 = vmax.f32 %v625_v19, %v626_v15  ;;  %v651_v30 = vsel %vm210_vm0, %v577_v5, -inf  ;;  %v659_v31 = vsel %vm210_vm0, %v578_v9, -inf  ;;  %v8218_v19 = vld [vmem:[#allocation14_spill] sm:$0xff] }
  0x84   : > { %v610_v8 = vrot.slane %v609_v44, 2  ;;  %v619_v7 = vrot.slane %v618_v54, 2  ;;  %v636_v33 = vmax.f32 %v634_v49, %v635_v22  ;;  %v644_v62 = vrot.slane %v643_v50, 4  ;;  %v8220_v49 = vld [vmem:[#allocation16_spill] sm:$0xff] }
  0x85   : > { %v602_v47 = vmax.f32 %v600_v37, %v601_v59  ;;  %v628_v25 = vrot.slane %v627_v26, 2  ;;  %v652_v24 = vmax.f32 %v650_v51, %v651_v30  ;;  %v660_v36 = vsel %vm210_vm0, %v579_v11, -inf  ;;  %v8221_v51 = vld [vmem:[#allocation17_spill] sm:$0xff] }
  0x86   : > { %v588_v52 = vand.u32 2147483647, %v8216_v4  ;;  %v589_v6 = vand.u32 2147483647, %v8217_v35  ;;  %v611_v42 = vmax.f32 %v609_v44, %v610_v8  ;;  %v620_v58 = vmax.f32 %v618_v54, %v619_v7 }
  0x87   : > { %v590_v40 = vand.u32 2147483647, %v8218_v19  ;;  %v637_v5 = vrot.slane %v636_v33, 2  ;;  %v653_v20 = vrot.slane %v652_v24, 4  ;;  %v661_v9 = vmax.f32 %v659_v31, %v660_v36 }
  0x88   : > { %v591_v53 = vand.u32 2147483647, %v8219_v56  ;;  %v592_v15 = vand.u32 2147483647, %v8220_v49  ;;  %v603_v37 = vrot.slane %v602_v47, 1  ;;  %v645_v46 = vmax.f32 %v643_v50, %v644_v62 }
  0x89   : > { %v593_v22 = vand.u32 2147483647, %v8221_v51  ;;  %v612_v11 = vrot.slane %v611_v42, 1  ;;  %v4510_v59 = vmax.f32 %v627_v26, %v628_v25  ;;  %v662_v30 = vrot.slane %v661_v9, 4 }
  0x8a   : > { %v594_v44 = vand.u32 2147483647, %v8206_v41  ;;  %v595_v54 = vand.u32 2147483647, %v8207_v32  ;;  %v621_v8 = vrot.slane %v620_v58, 1  ;;  %v795_v31 = vsub.f32 %v4134_v3, %v4456_v34 }
  0x8b   : > { %v4516_v7 = vmax.f32 %v636_v33, %v637_v5  ;;  %v654_v36 = vmax.f32 %v652_v24, %v653_v20  ;;  %v663_v4 = vmax.f32 %v661_v9, %v662_v30  ;;  %v668_v50 = vsel %vm210_vm0, %v580_v16, -inf }
  0x8c   : > { %v4521_v62 = vmax.f32 %v602_v47, %v603_v37  ;;  %v646_v26 = vrot.slane %v645_v46, 2  ;;  %v669_v25 = vsel %vm210_vm0, %v581_v17, -inf  ;;  %v677_v35 = vsel %vm210_vm0, %v582_v18, -inf }
  0x8d   : > { %v4529_v19 = vmax.f32 %v611_v42, %v612_v11  ;;  %v630_v33 = vrot.slane %v4510_v59, 1  ;;  %v670_v24 = vmax.f32 %v668_v50, %v669_v25  ;;  %v678_v63 = vsel %vm210_vm0, %v583_v57, -inf }
  0x8e   : > { %v4535_v16 = vmax.f32 %v620_v58, %v621_v8  ;;  %v679_v47 = vmax.f32 %v677_v35, %v678_v63  ;;  %v686_v13 = vsel %vm210_vm0, %v584_v61, -inf  ;;  %v687_v14 = vsel %vm210_vm0, %v585_v60, -inf }
  0x8f   : > { %v655_v17 = vrot.slane %v654_v36, 2  ;;  %v664_v18 = vrot.slane %v663_v4, 2  ;;  %v671_v42 = vrot.slane %v670_v24, 4  ;;  %v688_v5 = vmax.f32 %v686_v13, %v687_v14 }
  0x90   : > { %v680_v20 = vrot.slane %v679_v47, 4  ;;  %v695_v21 = vsel %vm210_vm0, %v586_v38, -inf  ;;  %v696_v57 = vsel %vm210_vm0, %v587_v55, -inf  ;;  %v704_v23 = vsel %vm210_vm0, %v588_v52, -inf }
  0x91   : > { %v639_v61 = vrot.slane %v4516_v7, 1  ;;  %v647_v29 = vmax.f32 %v645_v46, %v646_v26  ;;  %v672_v58 = vmax.f32 %v670_v24, %v671_v42  ;;  %v689_v60 = vrot.slane %v688_v5, 4 }
  0x92   : > { %v681_v9 = vmax.f32 %v679_v47, %v680_v20  ;;  %v697_v56 = vmax.f32 %v695_v21, %v696_v57  ;;  %v705_v49 = vsel %vm210_vm0, %v589_v6, -inf  ;;  %v713_v37 = vsel %vm210_vm0, %v590_v40, -inf }
  0x93   : > { %v656_v48 = vmax.f32 %v654_v36, %v655_v17  ;;  %v673_v11 = vrot.slane %v672_v58, 2  ;;  %v690_v38 = vmax.f32 %v688_v5, %v689_v60  ;;  %v706_v30 = vmax.f32 %v704_v23, %v705_v49 }
  0x94   : > { %v665_v39 = vmax.f32 %v663_v4, %v664_v18  ;;  %v682_v8 = vrot.slane %v681_v9, 2  ;;  %v698_v55 = vrot.slane %v697_v56, 4  ;;  %v714_v52 = vsel %vm210_vm0, %v591_v53, -inf }
  0x95   : > { %v691_v50 = vrot.slane %v690_v38, 2  ;;  %v707_v25 = vrot.slane %v706_v30, 4  ;;  %v715_v46 = vmax.f32 %v713_v37, %v714_v52  ;;  %v722_v26 = vsel %vm210_vm0, %v592_v15, -inf }
  0x96   : > { %v674_v35 = vmax.f32 %v672_v58, %v673_v11  ;;  %v683_v24 = vmax.f32 %v681_v9, %v682_v8  ;;  %v699_v63 = vmax.f32 %v697_v56, %v698_v55  ;;  %v723_v6 = vsel %vm210_vm0, %v593_v22, -inf }
  0x97   : > { %v692_v40 = vmax.f32 %v690_v38, %v691_v50  ;;  %v708_v36 = vmax.f32 %v706_v30, %v707_v25  ;;  %v716_v47 = vrot.slane %v715_v46, 4  ;;  %v731_v13 = vsel %vm210_vm0, %v594_v44, -inf }
  0x98   : > { %v648_v4 = vrot.slane %v647_v29, 1  ;;  %v700_v14 = vrot.slane %v699_v63, 2  ;;  %v724_v17 = vmax.f32 %v722_v26, %v723_v6  ;;  %v732_v53 = vsel %vm210_vm0, %v595_v54, -inf }
  0x99   : > { %v657_v18 = vrot.slane %v656_v48, 1  ;;  %v666_v42 = vrot.slane %v665_v39, 1  ;;  %v709_v5 = vrot.slane %v708_v36, 2  ;;  %v717_v20 = vmax.f32 %v715_v46, %v716_v47 }
  0x9a   : > { %v675_v15 = vrot.slane %v674_v35, 1  ;;  %v701_v21 = vmax.f32 %v699_v63, %v700_v14  ;;  %v725_v57 = vrot.slane %v724_v17, 4  ;;  %v733_v23 = vmax.f32 %v731_v13, %v732_v53 }
  0x9b   : > { %v684_v58 = vrot.slane %v683_v24, 1  ;;  %v693_v22 = vrot.slane %v692_v40, 1  ;;  %v710_v60 = vmax.f32 %v708_v36, %v709_v5  ;;  %v718_v9 = vrot.slane %v717_v20, 2 }
  0x9c   : > { %v631_v56 = vmax.f32 %v4510_v59, %v630_v33  ;;  %v640_v44 = vmax.f32 %v4516_v7, %v639_v61  ;;  %v726_v49 = vmax.f32 %v724_v17, %v725_v57  ;;  %v734_v37 = vrot.slane %v733_v23, 4  ;;  %v3911_v57 = vld [vmem:[%s4122_s27 + $0x20] sm:$0xff] }
  0x9d   : > { %v649_v11 = vmax.f32 %v647_v29, %v648_v4  ;;  %v702_v54 = vrot.slane %v701_v21, 1  ;;  %v711_v38 = vrot.slane %v710_v60, 1  ;;  %v719_v30 = vmax.f32 %v717_v20, %v718_v9 }
  0x9e   : > { %v658_v8 = vmax.f32 %v656_v48, %v657_v18  ;;  %v667_v55 = vmax.f32 %v665_v39, %v666_v42  ;;  %v727_v52 = vrot.slane %v726_v49, 2  ;;  %v735_v50 = vmax.f32 %v733_v23, %v734_v37  ;;  %v3916_v37 = vld [vmem:[%s4122_s27 + $0x48] sm:$0xff] }
  0x9f   : > { %v676_v25 = vmax.f32 %v674_v35, %v675_v15  ;;  %v685_v46 = vmax.f32 %v683_v24, %v684_v58  ;;  %v694_v26 = vmax.f32 %v692_v40, %v693_v22  ;;  %v720_v63 = vrot.slane %v719_v30, 1  ;;  %v3912_v58 = vld [vmem:[%s4122_s27 + $0x28] sm:$0xff] }
  0xa0   : > { %v728_v6 = vmax.f32 %v726_v49, %v727_v52  ;;  %v736_v36 = vrot.slane %v735_v50, 2  ;;  %vm740_vm2 = vcmp.gt.f32.partialorder %v4521_v62, 0.0  ;;  %vm741_vm3 = vcmp.gt.f32.partialorder %v4529_v19, 0.0 }
  0xa1   : > { %v703_v59 = vmax.f32 %v701_v21, %v702_v54  ;;  %v712_v7 = vmax.f32 %v710_v60, %v711_v38  ;;  %v721_v33 = vmax.f32 %v719_v30, %v720_v63  ;;  %vm742_vm4 = vcmp.gt.f32.partialorder %v4535_v16, 0.0  ;;  %v3913_v60 = vld [vmem:[%s4122_s27 + $0x30] sm:$0xff]  ;;  %v3918_v30 = vld [vmem:[%s4122_s27 + $0x58] sm:$0xff] }
  0xa2   : > { %v729_v61 = vrot.slane %v728_v6, 1  ;;  %v737_v29 = vmax.f32 %v735_v50, %v736_v36  ;;  %vm743_vm5 = vcmp.gt.f32.partialorder %v631_v56, 0.0  ;;  %vm744_vm6 = vcmp.gt.f32.partialorder %v640_v44, 0.0  ;;  %v3914_v56 = vld [vmem:[%s4122_s27 + $0x38] sm:$0xff]  ;;  %v3917_v54 = vld [vmem:[%s4122_s27 + $0x50] sm:$0xff]  ;;  %v3920_v50 = vld [vmem:[%s4122_s27 + $0x68] sm:$0xff] }
  0xa3   : > { %vm745_vm7 = vcmp.gt.f32.partialorder %v649_v11, 0.0  ;;  %vm746_vm8 = vcmp.gt.f32.partialorder %v658_v8, 0.0  ;;  %vm747_vm9 = vcmp.gt.f32.partialorder %v667_v55, 0.0  ;;  %vm748_vm10 = vcmp.gt.f32.partialorder %v676_v25, 0.0  ;;  %v3919_v55 = vld [vmem:[%s4122_s27 + $0x60] sm:$0xff]  ;;  %v3922_v63 = vld [vmem:[%s4122_s27 + $0x78] sm:$0xff] }
  0xa4   : > { %v730_v48 = vmax.f32 %v728_v6, %v729_v61  ;;  %v738_v39 = vrot.slane %v737_v29, 1  ;;  %vm749_vm11 = vcmp.gt.f32.partialorder %v685_v46, 0.0  ;;  %vm750_vm12 = vcmp.gt.f32.partialorder %v694_v26, 0.0  ;;  %v3921_v46 = vld [vmem:[%s4122_s27 + $0x70] sm:$0xff]  ;;  %v3923_v36 = vld [vmem:[%s4122_s27 + $0x80] sm:$0xff] }
  0xa5   : > { %vm751_vm13 = vcmp.gt.f32.partialorder %v703_v59, 0.0  ;;  %vm752_vm14 = vcmp.gt.f32.partialorder %v712_v7, 0.0  ;;  %vm753_vm15 = vcmp.gt.f32.partialorder %v721_v33, 0.0  ;;  %v4566_v35 = vsel %vm740_vm2, 1.0, %v4044_v12  ;;  %v3924_v7 = vld [vmem:[%s4122_s27 + $0x88] sm:$0xff]  ;;  %v3925_v61 = vld [vmem:[%s4122_s27 + $0x90] sm:$0xff] }
  0xa6   : > { %v739_v24 = vmax.f32 %v737_v29, %v738_v39  ;;  %v4571_v40 = vsel %vm741_vm3, 1.0, %v4044_v12  ;;  %v4576_v47 = vsel %vm742_vm4, 1.0, %v4044_v12  ;;  %v4580_v13 = vsel %vm743_vm5, 1.0, %v4044_v12 }
  0xa7   : > { %8222 = vst [vmem:[#allocation19_spill] sm:$0xff] %v4576_v47  ;;  %8223 = vst [vmem:[#allocation8_spill] sm:$0xff] %v4580_v13  ;;  %vm754_vm1 = vcmp.gt.f32.partialorder %v730_v48, 0.0  ;;  %v4584_v62 = vsel %vm744_vm6, 1.0, %v4044_v12  ;;  %v4588_v19 = vsel %vm745_vm7, 1.0, %v4044_v12  ;;  %v788_v4 = vsub.f32 %v4469_v27, %v4456_v34  ;;  %v3926_v48 = vld [vmem:[%s4122_s27 + $0x98] sm:$0xff] }
  0xa8   : > { %8224 = vst [vmem:[#allocation9_spill] sm:$0xff] %v4584_v62  ;;  %8225 = vst [vmem:[#allocation10_spill] sm:$0xff] %v4588_v19  ;;  %vm755_vm2 = vcmp.gt.f32.partialorder %v739_v24, 0.0  ;;  %v4594_v16 = vsel %vm746_vm8, 1.0, %v4044_v12  ;;  %v4598_v14 = vsel %vm747_vm9, 1.0, %v4044_v12  ;;  %v4602_v17 = vsel %vm748_vm10, 1.0, %v4044_v12 }
  0xa9   : > { %8226 = vst [vmem:[#allocation11_spill] sm:$0xff] %v4594_v16  ;;  %8227 = vst [vmem:[#allocation12_spill] sm:$0xff] %v4598_v14  ;;  %v4606_v53 = vsel %vm749_vm11, 1.0, %v4044_v12  ;;  %v4610_v27 = vsel %vm750_vm12, 1.0, %v4044_v12  ;;  %v4614_v18 = vsel %vm751_vm13, 1.0, %v4044_v12  ;;  %vm789_vm3 = vcmp.gt.f32.partialorder %v788_v4, 0.0 }
  0xaa   : > { %8228 = vst [vmem:[#allocation13_spill] sm:$0xff] %v4602_v17  ;;  %8229 = vst [vmem:[#allocation14_spill] sm:$0xff] %v4606_v53  ;;  %v4618_v42 = vsel %vm752_vm14, 1.0, %v4044_v12  ;;  %v4622_v5 = vsel %vm753_vm15, 1.0, %v4044_v12  ;;  %v4625_v20 = vsel %vm754_vm1, 1.0, %v4044_v12  ;;  %v790_v15 = vsel %vm789_vm3, %v788_v4, 1.0 }
  0xab   : > { %8230 = vst [vmem:[#allocation15_spill] sm:$0xff] %v4610_v27  ;;  %8231 = vst [vmem:[#allocation16_spill] sm:$0xff] %v4614_v18  ;;  %v4628_v21 = vsel %vm755_vm2, 1.0, %v4044_v12  ;;  %v796_v23 = vsub.f32 %v3911_v57, %v4456_v34  ;;  %v797_v22 = vsub.f32 %v3912_v58, %v4456_v34  ;;  %v798_v9 = vsub.f32 %v3913_v60, %v4456_v34  ;;  %v3915_v12 = vld [vmem:[%s4122_s27 + $0x40] sm:$0xff]  ;;  %v3929_v58 = vld [vmem:[%s4122_s27 + $0xb0] sm:$0xff] }
  0xac   : > { %8232 = vst [vmem:[#allocation17_spill] sm:$0xff] %v4618_v42  ;;  %8233 = vst [vmem:[#allocation20_spill] sm:$0xff] %v4622_v5  ;;  %3847 = vrcp.f32 %v790_v15  ;;  %v799_v44 = vsub.f32 %v3914_v56, %v4456_v34  ;;  %v800_v49 = vsub.f32 %v3915_v12, %v4456_v34  ;;  %v801_v11 = vsub.f32 %v3916_v37, %v4456_v34  ;;  %v3927_v24 = vld [vmem:[%s4122_s27 + $0xa0] sm:$0xff]  ;;  %v3928_v15 = vld [vmem:[%s4122_s27 + $0xa8] sm:$0xff] }
  0xad   : > { %8234 = vst [vmem:[#allocation21_spill] sm:$0xff] %v4625_v20  ;;  %8235 = vst [vmem:[#allocation22_spill] sm:$0xff] %v4628_v21  ;;  %v802_v38 = vsub.f32 %v3917_v54, %v4456_v34  ;;  %v803_v8 = vsub.f32 %v3918_v30, %v4456_v34  ;;  %v804_v52 = vsub.f32 %v3919_v55, %v4456_v34  ;;  %v3930_v56 = vld [vmem:[%s4122_s27 + $0xb8] sm:$0xff]  ;;  %v3931_v37 = vld [vmem:[%s4122_s27 + $0xc0] sm:$0xff]  ;;  %v4837_v43 = vmul.f32 0.001, %v4628_v21 }
  0xae   : > { %v805_v25 = vsub.f32 %v3920_v50, %v4456_v34  ;;  %v806_v26 = vsub.f32 %v3921_v46, %v4456_v34  ;;  %v807_v6 = vsub.f32 %v3922_v63, %v4456_v34  ;;  %v808_v59 = vsub.f32 %v3923_v36, %v4456_v34  ;;  %v3932_v30 = vld [vmem:[%s4122_s27 + $0xc8] sm:$0xff]  ;;  %v3933_v50 = vld [vmem:[%s4122_s27 + $0xd0] sm:$0xff]  ;;  %v3934_v63 = vld [vmem:[%s4122_s27 + $0xd8] sm:$0xff] }
  0xaf   : > { %v809_v33 = vsub.f32 %v3924_v7, %v4456_v34  ;;  %v810_v29 = vsub.f32 %v3925_v61, %v4456_v34  ;;  %v811_v39 = vsub.f32 %v3926_v48, %v4456_v34  ;;  %v812_v4 = vsub.f32 %v3927_v24, %v4456_v34  ;;  %v3935_v7 = vld [vmem:[%s4122_s27 + $0xe0] sm:$0xff]  ;;  %8277 = vst [vmem:[#allocation64_spill] sm:$0xff] %v4837_v43 }
  0xb0   : > { %v813_v57 = vsub.f32 %v3928_v15, %v4456_v34  ;;  %v814_v60 = vsub.f32 %v3929_v58, %v4456_v34  ;;  %v815_v12 = vsub.f32 %v3930_v56, %v4456_v34  ;;  %v816_v54 = vsub.f32 %v3931_v37, %v4456_v34 }
  0xb1   : > { %v817_v55 = vsub.f32 %v3932_v30, %v4456_v34  ;;  %v818_v46 = vsub.f32 %v3933_v50, %v4456_v34  ;;  %v819_v36 = vsub.f32 %v3934_v63, %v4456_v34  ;;  %v820_v61 = vsub.f32 %v3935_v7, %v4456_v34 }
  0xb2   : > { %v821_v48 = vsub.f32 %v8221_v51, %v4456_v34  ;;  %v822_v24 = vsub.f32 %v8206_v41, %v4456_v34  ;;  %v823_v15 = vsub.f32 %v8207_v32, %v4456_v34  ;;  %v824_v58 = vmul.f32 %v4566_v35, %v792_v10 }
  0xb3   : > { %v825_v56 = vmul.f32 %v4566_v35, %v793_v28  ;;  %v826_v51 = vmul.f32 %v4571_v40, %v794_v45  ;;  %v827_v41 = vmul.f32 %v4571_v40, %v795_v31  ;;  %v828_v32 = vmul.f32 %v4576_v47, %v796_v23 }
  0xb4   : > { %v829_v0 = vmul.f32 %v4576_v47, %v797_v22  ;;  %v830_v10 = vmul.f32 %v4580_v13, %v798_v9  ;;  %v831_v1 = vmul.f32 %v4580_v13, %v799_v44  ;;  %v832_v28 = vmul.f32 %v4584_v62, %v800_v49 }
  0xb5   : > { %v833_v37 = vmul.f32 %v4584_v62, %v801_v11  ;;  %v834_v2 = vmul.f32 %v4588_v19, %v802_v38  ;;  %v835_v45 = vmul.f32 %v4588_v19, %v803_v8  ;;  %v836_v3 = vmul.f32 %v4594_v16, %v804_v52 }
  0xb6   : > { %v837_v34 = vmul.f32 %v4594_v16, %v805_v25  ;;  %v838_v31 = vmul.f32 %v4598_v14, %v806_v26  ;;  %v839_v23 = vmul.f32 %v4598_v14, %v807_v6  ;;  %v840_v22 = vmul.f32 %v4602_v17, %v808_v59 }
  0xb7   : > { %v841_v9 = vmul.f32 %v4602_v17, %v809_v33  ;;  %v842_v44 = vmul.f32 %v4606_v53, %v810_v29  ;;  %v843_v49 = vmul.f32 %v4606_v53, %v811_v39  ;;  %v844_v11 = vmul.f32 %v4610_v27, %v812_v4 }
  0xb8   : > { %v845_v38 = vmul.f32 %v4610_v27, %v813_v57  ;;  %v846_v8 = vmul.f32 %v4614_v18, %v814_v60  ;;  %v847_v52 = vmul.f32 %v4614_v18, %v815_v12  ;;  %v848_v25 = vmul.f32 %v4618_v42, %v816_v54 }
  0xb9   : > { %v849_v26 = vmul.f32 %v4618_v42, %v817_v55  ;;  %v3848_v6 = vpop.eup %3847  ;;  %v850_v59 = vmul.f32 %v4622_v5, %v818_v46  ;;  %v851_v33 = vmul.f32 %v4622_v5, %v819_v36  ;;  %v852_v29 = vmul.f32 %v4625_v20, %v820_v61 }
  0xba   : > { %v853_v39 = vmul.f32 %v4625_v20, %v821_v48  ;;  %v854_v4 = vmul.f32 %v4628_v21, %v822_v24  ;;  %v855_v57 = vmul.f32 %v4628_v21, %v823_v15  ;;  %v4730_v60 = vmul.f32 %v3848_v6, %v830_v10 }
  0xbb   : > { %v4732_v12 = vmul.f32 %v3848_v6, %v831_v1  ;;  %v4734_v54 = vmul.f32 %v3848_v6, %v832_v28  ;;  %v4736_v30 = vmul.f32 %v3848_v6, %v833_v37  ;;  %v4738_v55 = vmul.f32 %v3848_v6, %v834_v2 }
  0xbc   : > { %8236 = vst [vmem:[#allocation23_spill] sm:$0xff] %v4730_v60  ;;  %v4740_v50 = vmul.f32 %v3848_v6, %v835_v45  ;;  %v4742_v46 = vmul.f32 %v3848_v6, %v836_v3  ;;  %v4744_v63 = vmul.f32 %v3848_v6, %v837_v34  ;;  %v4746_v36 = vmul.f32 %v3848_v6, %v838_v31 }
  0xbd   : > { %8237 = vst [vmem:[#allocation24_spill] sm:$0xff] %v4732_v12  ;;  %8238 = vst [vmem:[#allocation25_spill] sm:$0xff] %v4734_v54  ;;  %v4748_v7 = vmul.f32 %v3848_v6, %v839_v23  ;;  %v4750_v61 = vmul.f32 %v3848_v6, %v840_v22  ;;  %v4752_v48 = vmul.f32 %v3848_v6, %v841_v9  ;;  %vm3623_vm4 = vcmask 24576  }
  0xbe   : > { %8239 = vst [vmem:[#allocation26_spill] sm:$0xff] %v4736_v30  ;;  %8240 = vst [vmem:[#allocation27_spill] sm:$0xff] %v4738_v55  ;;  %v4754_v24 = vmul.f32 %v3848_v6, %v842_v44  ;;  %v4756_v15 = vmul.f32 %v3848_v6, %v843_v49  ;;  %v4758_v10 = vmul.f32 %v3848_v6, %v844_v11 }
  0xbf   : > { %8241 = vst [vmem:[#allocation28_spill] sm:$0xff] %v4740_v50  ;;  %8242 = vst [vmem:[#allocation29_spill] sm:$0xff] %v4742_v46  ;;  %v4760_v1 = vmul.f32 %v3848_v6, %v845_v38  ;;  %v4762_v28 = vmul.f32 %v3848_v6, %v846_v8  ;;  %v4764_v37 = vmul.f32 %v3848_v6, %v847_v52 }
  0xc0   : > { %8243 = vst [vmem:[#allocation30_spill] sm:$0xff] %v4744_v63  ;;  %8244 = vst [vmem:[#allocation31_spill] sm:$0xff] %v4746_v36  ;;  %v4766_v2 = vmul.f32 %v3848_v6, %v848_v25  ;;  %v4768_v45 = vmul.f32 %v3848_v6, %v849_v26  ;;  %v4770_v3 = vmul.f32 %v3848_v6, %v850_v59  ;;  %v4795_v25 = vmul.f32 0.001, %v4566_v35 }
  0xc1   : > { %8245 = vst [vmem:[#allocation32_spill] sm:$0xff] %v4748_v7  ;;  %8246 = vst [vmem:[#allocation33_spill] sm:$0xff] %v4750_v61  ;;  %v4772_v34 = vmul.f32 %v3848_v6, %v851_v33  ;;  %v4774_v31 = vmul.f32 %v3848_v6, %v852_v29  ;;  %v4776_v23 = vmul.f32 %v3848_v6, %v853_v39  ;;  %v4798_v26 = vmul.f32 0.001, %v4584_v62 }
  0xc2   : > { %8247 = vst [vmem:[#allocation34_spill] sm:$0xff] %v4752_v48  ;;  %8248 = vst [vmem:[#allocation35_spill] sm:$0xff] %v4754_v24  ;;  %v4778_v22 = vmul.f32 %v3848_v6, %v854_v4  ;;  %v4780_v9 = vmul.f32 %v3848_v6, %v855_v57  ;;  %v4782_v44 = vmul.f32 %v3848_v6, %v824_v58  ;;  %v4801_v59 = vmul.f32 0.001, %v4588_v19 }
  0xc3   : > { %8249 = vst [vmem:[#allocation36_spill] sm:$0xff] %v4756_v15  ;;  %8250 = vst [vmem:[#allocation37_spill] sm:$0xff] %v4758_v10  ;;  %v4784_v49 = vmul.f32 %v3848_v6, %v825_v56  ;;  %v4786_v11 = vmul.f32 %v3848_v6, %v826_v51  ;;  %v4788_v38 = vmul.f32 %v3848_v6, %v827_v41  ;;  %v4804_v58 = vmul.f32 0.001, %v4594_v16 }
  0xc4   : > { %8251 = vst [vmem:[#allocation38_spill] sm:$0xff] %v4760_v1  ;;  %8252 = vst [vmem:[#allocation39_spill] sm:$0xff] %v4762_v28  ;;  %v4790_v8 = vmul.f32 %v3848_v6, %v828_v32  ;;  %v4792_v52 = vmul.f32 %v3848_v6, %v829_v0  ;;  %v904_v56 = vmul.f32 %v4782_v44, %v4782_v44  ;;  %v4809_v51 = vmul.f32 0.001, %v4598_v14 }
  0xc5   : > { %8253 = vst [vmem:[#allocation40_spill] sm:$0xff] %v4764_v37  ;;  %8254 = vst [vmem:[#allocation41_spill] sm:$0xff] %v4766_v2  ;;  %v4812_v41 = vmul.f32 0.001, %v4602_v17  ;;  %v4815_v32 = vmul.f32 0.001, %v4606_v53  ;;  %v905_v0 = vmul.f32 %v4784_v49, %v4784_v49  ;;  %v906_v39 = vmul.f32 %v4786_v11, %v4782_v44 }
  0xc6   : > { %8255 = vst [vmem:[#allocation42_spill] sm:$0xff] %v4768_v45  ;;  %8256 = vst [vmem:[#allocation43_spill] sm:$0xff] %v4770_v3  ;;  %v4820_v6 = vmul.f32 0.001, %v4610_v27  ;;  %v4823_v33 = vmul.f32 0.001, %v4614_v18  ;;  %v907_v27 = vmul.f32 %v4788_v38, %v4784_v49  ;;  %v908_v18 = vmul.f32 %v4790_v8, %v4782_v44 }
  0xc7   : > { %8257 = vst [vmem:[#allocation44_spill] sm:$0xff] %v4772_v34  ;;  %8258 = vst [vmem:[#allocation45_spill] sm:$0xff] %v4774_v31  ;;  %v4826_v29 = vmul.f32 0.001, %v4618_v42  ;;  %v4831_v4 = vmul.f32 0.001, %v4622_v5  ;;  %v909_v42 = vmul.f32 %v4792_v52, %v4784_v49  ;;  %v910_v53 = vmul.f32 %v4730_v60, %v4782_v44 }
  0xc8   : > { %8259 = vst [vmem:[#allocation46_spill] sm:$0xff] %v4776_v23  ;;  %8260 = vst [vmem:[#allocation47_spill] sm:$0xff] %v4778_v22  ;;  %v4834_v57 = vmul.f32 0.001, %v4625_v20  ;;  %v911_v5 = vmul.f32 %v4732_v12, %v4784_v49  ;;  %v912_v20 = vmul.f32 %v4734_v54, %v4782_v44  ;;  %v913_v21 = vmul.f32 %v4736_v30, %v4784_v49 }
  0xc9   : > { %8261 = vst [vmem:[#allocation48_spill] sm:$0xff] %v4780_v9  ;;  %8262 = vst [vmem:[#allocation49_spill] sm:$0xff] %v4786_v11  ;;  %v914_v17 = vmul.f32 %v4738_v55, %v4782_v44  ;;  %v915_v14 = vmul.f32 %v4740_v50, %v4784_v49  ;;  %v916_v16 = vmul.f32 %v4742_v46, %v4782_v44  ;;  %v937_v11 = vsel %vm210_vm0, %v905_v0, 0.0 }
  0xca   : > { %8263 = vst [vmem:[#allocation50_spill] sm:$0xff] %v4788_v38  ;;  %8264 = vst [vmem:[#allocation51_spill] sm:$0xff] %v4790_v8  ;;  %v917_v19 = vmul.f32 %v4744_v63, %v4784_v49  ;;  %v918_v62 = vmul.f32 %v4746_v36, %v4782_v44  ;;  %v4867_v8 = vmul.f32 %v4750_v61, %v4782_v44  ;;  %v936_v38 = vsel %vm210_vm0, %v904_v56, 0.0 }
  0xcb   : > { %8265 = vst [vmem:[#allocation52_spill] sm:$0xff] %v4792_v52  ;;  %8266 = vst [vmem:[#allocation53_spill] sm:$0xff] %v4798_v26  ;;  %v919_v52 = vmul.f32 %v4748_v7, %v4784_v49  ;;  %v945_v50 = vsel %vm210_vm0, %v906_v39, 0.0  ;;  %v938_v46 = vadd.f32 %v937_v11, %v936_v38  ;;  %v946_v55 = vsel %vm210_vm0, %v907_v27, 0.0 }
  0xcc   : > { %8267 = vst [vmem:[#allocation54_spill] sm:$0xff] %v4801_v59  ;;  %8268 = vst [vmem:[#allocation55_spill] sm:$0xff] %v4804_v58  ;;  %v954_v63 = vsel %vm210_vm0, %v908_v18, 0.0  ;;  %v955_v36 = vsel %vm210_vm0, %v909_v42, 0.0  ;;  %v947_v30 = vadd.f32 %v946_v55, %v945_v50  ;;  %v963_v7 = vsel %vm210_vm0, %v910_v53, 0.0 }
  0xcd   : > { %8269 = vst [vmem:[#allocation56_spill] sm:$0xff] %v4809_v51  ;;  %8270 = vst [vmem:[#allocation57_spill] sm:$0xff] %v4812_v41  ;;  %v956_v54 = vadd.f32 %v955_v36, %v954_v63  ;;  %v964_v61 = vsel %vm210_vm0, %v911_v5, 0.0  ;;  %v939_v12 = vrot.slane %v938_v46, 4  ;;  %v972_v56 = vsel %vm210_vm0, %v912_v20, 0.0 }
  0xce   : > { %8271 = vst [vmem:[#allocation58_spill] sm:$0xff] %v4815_v32  ;;  %8272 = vst [vmem:[#allocation59_spill] sm:$0xff] %v4820_v6  ;;  %v965_v60 = vadd.f32 %v964_v61, %v963_v7  ;;  %v973_v0 = vsel %vm210_vm0, %v913_v21, 0.0  ;;  %v921_v11 = vmul.f32 %v4752_v48, %v4784_v49  ;;  %v922_v27 = vmul.f32 %v4754_v24, %v4782_v44 }
  0xcf   : > { %8273 = vst [vmem:[#allocation60_spill] sm:$0xff] %v4823_v33  ;;  %8274 = vst [vmem:[#allocation61_spill] sm:$0xff] %v4826_v29  ;;  %v974_v18 = vadd.f32 %v973_v0, %v972_v56  ;;  %v981_v42 = vsel %vm210_vm0, %v914_v17, 0.0  ;;  %v923_v53 = vmul.f32 %v4756_v15, %v4784_v49  ;;  %v924_v5 = vmul.f32 %v4758_v10, %v4782_v44 }
  0xd0   : > { %8275 = vst [vmem:[#allocation62_spill] sm:$0xff] %v4831_v4  ;;  %8276 = vst [vmem:[#allocation63_spill] sm:$0xff] %v4834_v57  ;;  %v940_v55 = vadd.f32 %v939_v12, %v938_v46  ;;  %v982_v20 = vsel %vm210_vm0, %v915_v14, 0.0  ;;  %v925_v21 = vmul.f32 %v4760_v1, %v4784_v49  ;;  %v990_v36 = vsel %vm210_vm0, %v916_v16, 0.0 }
  0xd1   : > { %v975_v50 = vrot.slane %v974_v18, 4  ;;  %v983_v63 = vadd.f32 %v982_v20, %v981_v42  ;;  %v948_v61 = vrot.slane %v947_v30, 4  ;;  %v957_v38 = vrot.slane %v956_v54, 4 }
  0xd2   : > { %v941_v7 = vrot.slane %v940_v55, 2  ;;  %v991_v17 = vsel %vm210_vm0, %v917_v19, 0.0  ;;  %v966_v39 = vrot.slane %v965_v60, 4  ;;  %v999_v10 = vsel %vm210_vm0, %v918_v62, 0.0 }
  0xd3   : > { %v976_v56 = vadd.f32 %v975_v50, %v974_v18  ;;  %v984_v0 = vrot.slane %v983_v63, 4  ;;  %v926_v14 = vmul.f32 %v4762_v28, %v4782_v44  ;;  %v927_v12 = vmul.f32 %v4764_v37, %v4784_v49 }
  0xd4   : > { %v992_v46 = vadd.f32 %v991_v17, %v990_v36  ;;  %v1000_v42 = vsel %vm210_vm0, %v919_v52, 0.0  ;;  %v928_v16 = vmul.f32 %v4766_v2, %v4782_v44  ;;  %v929_v19 = vmul.f32 %v4768_v45, %v4784_v49 }
  0xd5   : > { %v942_v20 = vadd.f32 %v941_v7, %v940_v55  ;;  %v985_v18 = vadd.f32 %v984_v0, %v983_v63  ;;  %v4903_v50 = vadd.f32 %v948_v61, %v947_v30  ;;  %v977_v62 = vrot.slane %v976_v56, 2 }
  0xd6   : > { %v993_v1 = vrot.slane %v992_v46, 4  ;;  %v1001_v15 = vadd.f32 %v1000_v42, %v999_v10  ;;  %v930_v28 = vmul.f32 %v4770_v3, %v4782_v44  ;;  %v931_v36 = vmul.f32 %v4772_v34, %v4784_v49 }
  0xd7   : > { %v4909_v52 = vadd.f32 %v957_v38, %v956_v54  ;;  %v4911_v17 = vadd.f32 %v966_v39, %v965_v60  ;;  %v932_v45 = vmul.f32 %v4774_v31, %v4782_v44  ;;  %v986_v55 = vrot.slane %v985_v18, 2 }
  0xd8   : > { %v994_v63 = vadd.f32 %v993_v1, %v992_v46  ;;  %v1002_v30 = vrot.slane %v1001_v15, 4  ;;  %v933_v7 = vmul.f32 %v4776_v23, %v4784_v49  ;;  %v934_v10 = vmul.f32 %v4778_v22, %v4782_v44 }
  0xd9   : > { %v935_v61 = vmul.f32 %v4780_v9, %v4784_v49  ;;  %v943_v0 = vrot.slane %v942_v20, 1  ;;  %v4922_v60 = vadd.f32 %v977_v62, %v976_v56  ;;  %v1008_v39 = vsel %vm210_vm0, %v4867_v8, 0.0 }
  0xda   : > { %v1003_v38 = vadd.f32 %v1002_v30, %v1001_v15  ;;  %v1009_v42 = vsel %vm210_vm0, %v921_v11, 0.0  ;;  %v1017_v22 = vsel %vm210_vm0, %v922_v27, 0.0  ;;  %v987_v23 = vadd.f32 %v986_v55, %v985_v18 }
  0xdb   : > { %v995_v31 = vrot.slane %v994_v63, 2  ;;  %v1010_v9 = vadd.f32 %v1009_v42, %v1008_v39  ;;  %v1018_v34 = vsel %vm210_vm0, %v923_v53, 0.0  ;;  %v4931_v54 = vadd.f32 %v943_v0, %v942_v20 }
  0xdc   : > { %v1019_v56 = vadd.f32 %v1018_v34, %v1017_v22  ;;  %v1026_v15 = vsel %vm210_vm0, %v924_v5, 0.0  ;;  %v1027_v8 = vsel %vm210_vm0, %v925_v21, 0.0  ;;  %v979_v62 = vrot.slane %v4922_v60, 1 }
  0xdd   : > { %v1004_v30 = vrot.slane %v1003_v38, 2  ;;  %v1011_v46 = vrot.slane %v1010_v9, 4  ;;  %v1028_v1 = vadd.f32 %v1027_v8, %v1026_v15  ;;  %v1035_v27 = vsel %vm210_vm0, %v926_v14, 0.0 }
  0xde   : > { %v1020_v11 = vrot.slane %v1019_v56, 4  ;;  %v1036_v18 = vsel %vm210_vm0, %v927_v12, 0.0  ;;  %v1044_v55 = vsel %vm210_vm0, %v928_v16, 0.0  ;;  %v988_v53 = vrot.slane %v987_v23, 1 }
  0xdf   : > { %v996_v20 = vadd.f32 %v995_v31, %v994_v63  ;;  %v1012_v0 = vadd.f32 %v1011_v46, %v1010_v9  ;;  %v1029_v34 = vrot.slane %v1028_v1, 4  ;;  %v1037_v5 = vadd.f32 %v1036_v18, %v1035_v27 }
  0xe0   : > { %v1021_v22 = vadd.f32 %v1020_v11, %v1019_v56  ;;  %v1045_v21 = vsel %vm210_vm0, %v929_v19, 0.0  ;;  %v1053_v39 = vsel %vm210_vm0, %v930_v28, 0.0  ;;  %v1005_v42 = vadd.f32 %v1004_v30, %v1003_v38 }
  0xe1   : > { %v1013_v3 = vrot.slane %v1012_v0, 2  ;;  %v1030_v15 = vadd.f32 %v1029_v34, %v1028_v1  ;;  %v1046_v8 = vadd.f32 %v1045_v21, %v1044_v55  ;;  %v1038_v14 = vrot.slane %v1037_v5, 4 }
  0xe2   : > { %v1022_v2 = vrot.slane %v1021_v22, 2  ;;  %v1054_v12 = vsel %vm210_vm0, %v931_v36, 0.0  ;;  %v1062_v16 = vsel %vm210_vm0, %v932_v45, 0.0  ;;  %v997_v46 = vrot.slane %v996_v20, 1 }
  0xe3   : > { %v1014_v37 = vadd.f32 %v1013_v3, %v1012_v0  ;;  %v1031_v31 = vrot.slane %v1030_v15, 2  ;;  %v1047_v9 = vrot.slane %v1046_v8, 4  ;;  %v1055_v63 = vadd.f32 %v1054_v12, %v1053_v39 }
  0xe4   : > { %v1023_v56 = vadd.f32 %v1022_v2, %v1021_v22  ;;  %v1039_v11 = vadd.f32 %v1038_v14, %v1037_v5  ;;  %v1063_v19 = vsel %vm210_vm0, %v933_v7, 0.0  ;;  %v1071_v1 = vsel %vm210_vm0, %v934_v10, 0.0 }
  0xe5   : > { %v1032_v28 = vadd.f32 %v1031_v31, %v1030_v15  ;;  %v1048_v38 = vadd.f32 %v1047_v9, %v1046_v8  ;;  %v1056_v30 = vrot.slane %v1055_v63, 4  ;;  %v1006_v27 = vrot.slane %v1005_v42, 1 }
  0xe6   : > { %v1040_v18 = vrot.slane %v1039_v11, 2  ;;  %v1064_v55 = vadd.f32 %v1063_v19, %v1062_v16  ;;  %v1072_v36 = vsel %vm210_vm0, %v935_v61, 0.0  ;;  %v1015_v45 = vrot.slane %v1014_v37, 1 }
  0xe7   : > { %v1024_v3 = vrot.slane %v1023_v56, 1  ;;  %v1049_v0 = vrot.slane %v1048_v38, 2  ;;  %v1057_v34 = vadd.f32 %v1056_v30, %v1055_v63  ;;  %v1033_v21 = vrot.slane %v1032_v28, 1 }
  0xe8   : > { %v1041_v39 = vadd.f32 %v1040_v18, %v1039_v11  ;;  %v1065_v2 = vrot.slane %v1064_v55, 4  ;;  %v1073_v22 = vadd.f32 %v1072_v36, %v1071_v1  ;;  %v980_v7 = vadd.f32 %v979_v62, %v4922_v60 }
  0xe9   : > { %v989_v5 = vadd.f32 %v988_v53, %v987_v23  ;;  %v1050_v15 = vadd.f32 %v1049_v0, %v1048_v38  ;;  %v1058_v8 = vrot.slane %v1057_v34, 2  ;;  %v998_v14 = vadd.f32 %v997_v46, %v996_v20 }
  0xea   : > { %v1042_v10 = vrot.slane %v1041_v39, 1  ;;  %v1066_v12 = vadd.f32 %v1065_v2, %v1064_v55  ;;  %v1074_v31 = vrot.slane %v1073_v22, 4  ;;  %v1007_v16 = vadd.f32 %v1006_v27, %v1005_v42 }
  0xeb   : > { %v1016_v9 = vadd.f32 %v1015_v45, %v1014_v37  ;;  %v1051_v61 = vrot.slane %v1050_v15, 1  ;;  %v1059_v19 = vadd.f32 %v1058_v8, %v1057_v34  ;;  %v1025_v24 = vadd.f32 %v1024_v3, %v1023_v56 }
  0xec   : > { %v1034_v48 = vadd.f32 %v1033_v21, %v1032_v28  ;;  %v1067_v63 = vrot.slane %v1066_v12, 2  ;;  %v1075_v30 = vadd.f32 %v1074_v31, %v1073_v22  ;;  %v1043_v11 = vadd.f32 %v1042_v10, %v1041_v39 }
  0xed   : > { %v1060_v18 = vrot.slane %v1059_v19, 1  ;;  %v1080_v60 = vmul.f32 %v4795_v25, %v4795_v25  ;;  %v1084_v23 = vmul.f32 %v4798_v26, %v4795_v25  ;;  %v1052_v62 = vadd.f32 %v1051_v61, %v1050_v15 }
  0xee   : > { %v1068_v53 = vadd.f32 %v1067_v63, %v1066_v12  ;;  %v1076_v20 = vrot.slane %v1075_v30, 2  ;;  %v1085_v37 = vmul.f32 %v4801_v59, %v4795_v25  ;;  %v1086_v46 = vmul.f32 %v4804_v58, %v4795_v25  ;;  %v8292_v58 = vld [vmem:[#allocation28_spill] sm:$0xff]  ;;  %v8294_v59 = vld [vmem:[#allocation29_spill] sm:$0xff] }
  0xef   : > { %v1061_v42 = vadd.f32 %v1060_v18, %v1059_v19  ;;  %v1087_v56 = vmul.f32 %v4809_v51, %v4795_v25  ;;  %v1088_v28 = vmul.f32 %v4812_v41, %v4795_v25  ;;  %v1089_v27 = vmul.f32 %v4815_v32, %v4795_v25  ;;  %v8290_v41 = vld [vmem:[#allocation27_spill] sm:$0xff] }
  0xf0   : > { %v1069_v38 = vrot.slane %v1068_v53, 1  ;;  %v1077_v1 = vadd.f32 %v1076_v20, %v1075_v30  ;;  %v1090_v55 = vmul.f32 %v4820_v6, %v4795_v25  ;;  %v1091_v36 = vmul.f32 %v4823_v33, %v4795_v25  ;;  %v8288_v6 = vld [vmem:[#allocation26_spill] sm:$0xff] }
  0xf1   : > { %v1092_v45 = vmul.f32 %v4826_v29, %v4795_v25  ;;  %v1093_v3 = vmul.f32 %v4831_v4, %v4795_v25  ;;  %v1094_v0 = vmul.f32 %v4834_v57, %v4795_v25  ;;  %v1095_v39 = vmul.f32 %v4837_v43, %v4795_v25  ;;  %v8284_v43 = vld [vmem:[#allocation24_spill] sm:$0xff]  ;;  %v8286_v29 = vld [vmem:[#allocation25_spill] sm:$0xff] }
  0xf2   : > { %v1070_v34 = vadd.f32 %v1069_v38, %v1068_v53  ;;  %v1078_v21 = vrot.slane %v1077_v1, 1  ;;  %v1096_v2 = vadd.f32 %v1080_v60, %v4931_v54  ;;  %v1100_v22 = vadd.f32 %v1084_v23, %v980_v7 }
  0xf3   : > { %v1101_v15 = vadd.f32 %v1085_v37, %v989_v5  ;;  %v1102_v8 = vadd.f32 %v1086_v46, %v998_v14  ;;  %v1103_v10 = vadd.f32 %v1087_v56, %v1007_v16  ;;  %v1104_v31 = vadd.f32 %v1088_v28, %v1016_v9 }
  0xf4   : > { %v1079_v12 = vadd.f32 %v1078_v21, %v1077_v1  ;;  %v1105_v61 = vadd.f32 %v1089_v27, %v1025_v24  ;;  %v1106_v19 = vadd.f32 %v1090_v55, %v1034_v48  ;;  %v1107_v63 = vadd.f32 %v1091_v36, %v1043_v11 }
  0xf5   : > { %v1108_v30 = vadd.f32 %v1092_v45, %v1052_v62  ;;  %v1109_v18 = vadd.f32 %v1093_v3, %v1061_v42  ;;  %v1110_v20 = vadd.f32 %v1094_v0, %v1070_v34  ;;  %v1112_v53 = vmul.f32 %v4566_v35, %v1096_v2 }
  0xf6   : > { %v1111_v57 = vadd.f32 %v1095_v39, %v1079_v12  ;;  %v1113_v38 = vsub.f32 1.0, %v4566_v35  ;;  %v8278_v54 = vrot.slane %v4903_v50, 2  ;;  %v8279_v5 = vrot.slane %v4909_v52, 2 }
  0xf7   : > { %v8280_v48 = vrot.slane %v4911_v17, 2  ;;  %v4989_v9 = vmul.f32 0.001, %v4571_v40  ;;  %v4992_v60 = vmul.f32 0.001, %v4576_v47  ;;  %v8282_v47 = vld [vmem:[#allocation23_spill] sm:$0xff] }
  0xf8   : > { %v951_v7 = vadd.f32 %v8278_v54, %v4903_v50  ;;  %v960_v14 = vadd.f32 %v8279_v5, %v4909_v52  ;;  %v4982_v16 = vadd.f32 %v1113_v38, %v1112_v53  ;;  %v4995_v50 = vmul.f32 0.001, %v4580_v13 }
  0xf9   : > { %v969_v24 = vadd.f32 %v8280_v48, %v4911_v17  ;;  %8281 = vst [vmem:[#allocation65_spill] sm:$0xff] %v4992_v60  ;;  %v1081_v17 = vmul.f32 %v4989_v9, %v4795_v25  ;;  %v1082_v42 = vmul.f32 %v4992_v60, %v4795_v25 }
  0xfa   : > { %3849 = vrcp.f32 %v4982_v16  ;;  %v952_v35 = vrot.slane %v951_v7, 1  ;;  %v961_v11 = vrot.slane %v960_v14, 1  ;;  %v1083_v46 = vmul.f32 %v4995_v50, %v4795_v25 }
  0xfb   : > { %v970_v52 = vrot.slane %v969_v24, 1  ;;  %3851 = vlog2.f32 %v4982_v16  ;;  %v8336_v16 = vld [vmem:[#allocation52_spill] sm:$0xff] }
  0xfc   : > { %v953_v23 = vadd.f32 %v952_v35, %v951_v7  ;;  %v962_v62 = vadd.f32 %v961_v11, %v960_v14 }
  0xfd   : > { %v971_v37 = vadd.f32 %v970_v52, %v969_v24 }
  0xfe   : > { %v1097_v56 = vadd.f32 %v1081_v17, %v953_v23  ;;  %v1098_v28 = vadd.f32 %v1082_v42, %v962_v62 }
  0xff   : > { %v1099_v1 = vadd.f32 %v1083_v46, %v971_v37 }
 0x107   : > { %v3850_v27 = vpop.eup %3849 }
 0x108   : > { %v5003_v55 = vmul.f32 %v3850_v27, %v1097_v56  ;;  %v5005_v36 = vmul.f32 %v3850_v27, %v1098_v28  ;;  %v5007_v45 = vmul.f32 %v3850_v27, %v1099_v1  ;;  %v5009_v3 = vmul.f32 %v3850_v27, %v1100_v22 }
 0x109   : > { %v5011_v0 = vmul.f32 %v3850_v27, %v1101_v15  ;;  %v5013_v34 = vmul.f32 %v3850_v27, %v1102_v8  ;;  %v5015_v21 = vmul.f32 %v3850_v27, %v1103_v10  ;;  %v5017_v39 = vmul.f32 %v3850_v27, %v1104_v31 }
 0x10a   : > { %v5019_v2 = vmul.f32 %v3850_v27, %v1105_v61  ;;  %v5021_v12 = vmul.f32 %v3850_v27, %v1106_v19  ;;  %v5023_v53 = vmul.f32 %v3850_v27, %v1107_v63  ;;  %v5025_v38 = vmul.f32 %v3850_v27, %v1108_v30 }
 0x10b   : > { %v5027_v54 = vmul.f32 %v3850_v27, %v1109_v18  ;;  %v5029_v22 = vmul.f32 %v3850_v27, %v1110_v20  ;;  %v5031_v15 = vmul.f32 %v3850_v27, %v1111_v57  ;;  %v5035_v8 = vmul.f32 %v5003_v55, %v4782_v44 }
 0x10c   : > { %v5039_v10 = vmul.f32 %v5003_v55, %v4784_v49  ;;  %v5043_v31 = vmul.f32 %v5005_v36, %v4782_v44  ;;  %v1138_v61 = vmul.f32 %v5007_v45, %v4782_v44  ;;  %v1139_v19 = vmul.f32 %v5007_v45, %v4784_v49 }
 0x10d   : > { %v1140_v57 = vmul.f32 %v5009_v3, %v4782_v44  ;;  %v1141_v63 = vmul.f32 %v5009_v3, %v4784_v49  ;;  %v1142_v30 = vmul.f32 %v5011_v0, %v4782_v44  ;;  %v1143_v18 = vmul.f32 %v5011_v0, %v4784_v49 }
 0x10e   : > { %v1144_v20 = vmul.f32 %v5013_v34, %v4782_v44  ;;  %v1145_v7 = vmul.f32 %v5013_v34, %v4784_v49  ;;  %v1146_v5 = vmul.f32 %v5015_v21, %v4782_v44  ;;  %v1147_v14 = vmul.f32 %v5015_v21, %v4784_v49 }
 0x10f   : > { %v1148_v48 = vmul.f32 %v5017_v39, %v4782_v44  ;;  %v1149_v24 = vmul.f32 %v5017_v39, %v4784_v49  ;;  %v1150_v35 = vmul.f32 %v5019_v2, %v4782_v44  ;;  %v1151_v11 = vmul.f32 %v5019_v2, %v4784_v49 }
 0x110   : > { %v1152_v52 = vmul.f32 %v5021_v12, %v4782_v44  ;;  %v1153_v23 = vmul.f32 %v5021_v12, %v4784_v49  ;;  %v1154_v62 = vmul.f32 %v5023_v53, %v4782_v44  ;;  %v1155_v37 = vmul.f32 %v5023_v53, %v4784_v49 }
 0x111   : > { %v1156_v17 = vmul.f32 %v5025_v38, %v4782_v44  ;;  %v1157_v42 = vmul.f32 %v5025_v38, %v4784_v49  ;;  %v1158_v46 = vmul.f32 %v5027_v54, %v4782_v44  ;;  %v1159_v56 = vmul.f32 %v5027_v54, %v4784_v49 }
 0x112   : > { %v1160_v28 = vmul.f32 %v5029_v22, %v4782_v44  ;;  %v1161_v1 = vmul.f32 %v5029_v22, %v4784_v49  ;;  %v1162_v27 = vmul.f32 %v5031_v15, %v4782_v44  ;;  %v1163_v13 = vmul.f32 %v5031_v15, %v4784_v49 }
 0x113   : > { %v5098_v60 = vsub.f32 %v8282_v47, %v1138_v61  ;;  %v5101_v4 = vsub.f32 %v8284_v43, %v1139_v19  ;;  %v5104_v33 = vsub.f32 %v8286_v29, %v1140_v57  ;;  %v5107_v32 = vsub.f32 %v8288_v6, %v1141_v63  ;;  %v8296_v47 = vld [vmem:[#allocation30_spill] sm:$0xff]  ;;  %v8298_v43 = vld [vmem:[#allocation31_spill] sm:$0xff]  ;;  %v8300_v29 = vld [vmem:[#allocation32_spill] sm:$0xff] }
 0x114   : > { %v5110_v51 = vsub.f32 %v8290_v41, %v1142_v30  ;;  %v5113_v44 = vsub.f32 %v8292_v58, %v1143_v18  ;;  %v5116_v26 = vsub.f32 %v8294_v59, %v1144_v20  ;;  %v5119_v61 = vsub.f32 %v8296_v47, %v1145_v7  ;;  %v8302_v6 = vld [vmem:[#allocation33_spill] sm:$0xff]  ;;  %v8304_v41 = vld [vmem:[#allocation34_spill] sm:$0xff]  ;;  %v8306_v58 = vld [vmem:[#allocation35_spill] sm:$0xff] }
 0x115   : > { %8283 = vst [vmem:[#allocation23_spill] sm:$0xff] %v5098_v60  ;;  %8285 = vst [vmem:[#allocation24_spill] sm:$0xff] %v5101_v4  ;;  %v5122_v19 = vsub.f32 %v8298_v43, %v1146_v5  ;;  %v5125_v57 = vsub.f32 %v8300_v29, %v1147_v14  ;;  %v5128_v63 = vsub.f32 %v8302_v6, %v1148_v48  ;;  %v8308_v59 = vld [vmem:[#allocation36_spill] sm:$0xff]  ;;  %v8310_v7 = vld [vmem:[#allocation37_spill] sm:$0xff] }
 0x116   : > { %8287 = vst [vmem:[#allocation25_spill] sm:$0xff] %v5104_v33  ;;  %8289 = vst [vmem:[#allocation26_spill] sm:$0xff] %v5107_v32  ;;  %v5131_v30 = vsub.f32 %v8304_v41, %v1149_v24  ;;  %v5134_v18 = vsub.f32 %v8306_v58, %v1150_v35  ;;  %v5137_v20 = vsub.f32 %v8308_v59, %v1151_v11  ;;  %v8312_v5 = vld [vmem:[#allocation38_spill] sm:$0xff]  ;;  %v8314_v14 = vld [vmem:[#allocation39_spill] sm:$0xff] }
 0x117   : > { %8291 = vst [vmem:[#allocation27_spill] sm:$0xff] %v5110_v51  ;;  %8293 = vst [vmem:[#allocation28_spill] sm:$0xff] %v5113_v44  ;;  %v5140_v47 = vsub.f32 %v8310_v7, %v1152_v52  ;;  %v5143_v43 = vsub.f32 %v8312_v5, %v1153_v23  ;;  %v5146_v29 = vsub.f32 %v8314_v14, %v1154_v62  ;;  %v8316_v48 = vld [vmem:[#allocation40_spill] sm:$0xff]  ;;  %v8318_v24 = vld [vmem:[#allocation41_spill] sm:$0xff] }
 0x118   : > { %8295 = vst [vmem:[#allocation29_spill] sm:$0xff] %v5116_v26  ;;  %8297 = vst [vmem:[#allocation30_spill] sm:$0xff] %v5119_v61  ;;  %v5149_v6 = vsub.f32 %v8316_v48, %v1155_v37  ;;  %v5152_v41 = vsub.f32 %v8318_v24, %v1156_v17  ;;  %v8320_v35 = vld [vmem:[#allocation42_spill] sm:$0xff]  ;;  %v8322_v11 = vld [vmem:[#allocation43_spill] sm:$0xff]  ;;  %v1137_v62 = vmul.f32 %v5005_v36, %v4784_v49 }
 0x119   : > { %8299 = vst [vmem:[#allocation31_spill] sm:$0xff] %v5122_v19  ;;  %8301 = vst [vmem:[#allocation32_spill] sm:$0xff] %v5125_v57  ;;  %v5155_v58 = vsub.f32 %v8320_v35, %v1157_v42  ;;  %v5158_v59 = vsub.f32 %v8322_v11, %v1158_v46  ;;  %v8324_v52 = vld [vmem:[#allocation44_spill] sm:$0xff]  ;;  %v8326_v23 = vld [vmem:[#allocation45_spill] sm:$0xff]  ;;  %v1194_v46 = vmul.f32 %v5003_v55, %v4795_v25 }
 0x11a   : > { %8303 = vst [vmem:[#allocation33_spill] sm:$0xff] %v5128_v63  ;;  %8305 = vst [vmem:[#allocation34_spill] sm:$0xff] %v5131_v30  ;;  %v5161_v7 = vsub.f32 %v8324_v52, %v1159_v56  ;;  %v5164_v5 = vsub.f32 %v8326_v23, %v1160_v28  ;;  %v8328_v37 = vld [vmem:[#allocation46_spill] sm:$0xff]  ;;  %v8330_v17 = vld [vmem:[#allocation47_spill] sm:$0xff]  ;;  %v1196_v56 = vmul.f32 %v5007_v45, %v4795_v25 }
 0x11b   : > { %8307 = vst [vmem:[#allocation35_spill] sm:$0xff] %v5134_v18  ;;  %8309 = vst [vmem:[#allocation36_spill] sm:$0xff] %v5137_v20  ;;  %v5169_v14 = vsub.f32 %v8328_v37, %v1161_v1  ;;  %v5172_v48 = vsub.f32 %v8330_v17, %v1162_v27  ;;  %v8331_v42 = vld [vmem:[#allocation48_spill] sm:$0xff]  ;;  %v1197_v28 = vmul.f32 %v5009_v3, %v4795_v25  ;;  %v8338_v23 = vld [vmem:[#allocation53_spill] sm:$0xff] }
 0x11c   : > { %8311 = vst [vmem:[#allocation37_spill] sm:$0xff] %v5140_v47  ;;  %8313 = vst [vmem:[#allocation38_spill] sm:$0xff] %v5143_v43  ;;  %v5175_v24 = vsub.f32 %v8331_v42, %v1163_v13  ;;  %v1198_v49 = vmul.f32 %v5011_v0, %v4795_v25  ;;  %v1199_v1 = vmul.f32 %v5013_v34, %v4795_v25  ;;  %v8339_v37 = vld [vmem:[#allocation54_spill] sm:$0xff] }
 0x11d   : > { %8315 = vst [vmem:[#allocation39_spill] sm:$0xff] %v5146_v29  ;;  %8317 = vst [vmem:[#allocation40_spill] sm:$0xff] %v5149_v6  ;;  %v1200_v27 = vmul.f32 %v5015_v21, %v4795_v25  ;;  %v1201_v13 = vmul.f32 %v5017_v39, %v4795_v25  ;;  %v1202_v55 = vmul.f32 %v5019_v2, %v4795_v25 }
 0x11e   : > { %8319 = vst [vmem:[#allocation41_spill] sm:$0xff] %v5152_v41  ;;  %8321 = vst [vmem:[#allocation42_spill] sm:$0xff] %v5155_v58  ;;  %v1203_v45 = vmul.f32 %v5021_v12, %v4795_v25  ;;  %v1204_v3 = vmul.f32 %v5023_v53, %v4795_v25  ;;  %v1205_v0 = vmul.f32 %v5025_v38, %v4795_v25  ;;  %v8332_v12 = vld [vmem:[#allocation49_spill] sm:$0xff]  ;;  %v8333_v53 = vld [vmem:[#allocation50_spill] sm:$0xff] }
 0x11f   : > { %8323 = vst [vmem:[#allocation43_spill] sm:$0xff] %v5158_v59  ;;  %8325 = vst [vmem:[#allocation44_spill] sm:$0xff] %v5161_v7  ;;  %v1206_v34 = vmul.f32 %v5027_v54, %v4795_v25  ;;  %v1207_v21 = vmul.f32 %v5029_v22, %v4795_v25  ;;  %v1208_v39 = vmul.f32 %v5031_v15, %v4795_v25  ;;  %v8334_v54 = vld [vmem:[#allocation51_spill] sm:$0xff] }
 0x120   : > { %8327 = vst [vmem:[#allocation45_spill] sm:$0xff] %v5164_v5  ;;  %8329 = vst [vmem:[#allocation46_spill] sm:$0xff] %v5169_v14  ;;  %v5209_v35 = vsub.f32 %v8332_v12, %v5035_v8  ;;  %v5213_v38 = vsub.f32 %v8333_v53, %v5039_v10  ;;  %v5217_v11 = vsub.f32 %v8334_v54, %v5043_v31  ;;  %v8340_v10 = vld [vmem:[#allocation55_spill] sm:$0xff]  ;;  %v8341_v31 = vld [vmem:[#allocation56_spill] sm:$0xff] }
 0x121   : > { %v5220_v52 = vsub.f32 %v8336_v16, %v1137_v62  ;;  %v5223_v22 = vsub.f32 %v4989_v9, %v1194_v46  ;;  %v5226_v15 = vsub.f32 %v4995_v50, %v1196_v56  ;;  %v5229_v8 = vsub.f32 %v8338_v23, %v1197_v28  ;;  %v8343_v62 = vld [vmem:[#allocation57_spill] sm:$0xff]  ;;  %v8345_v9 = vld [vmem:[#allocation58_spill] sm:$0xff]  ;;  %v8347_v50 = vld [vmem:[#allocation59_spill] sm:$0xff] }
 0x122   : > { %8335 = vst [vmem:[#allocation47_spill] sm:$0xff] %v5217_v11  ;;  %v5232_v17 = vsub.f32 %v8339_v37, %v1198_v49  ;;  %v5235_v42 = vsub.f32 %v8340_v10, %v1199_v1  ;;  %v5238_v12 = vsub.f32 %v8341_v31, %v1200_v27  ;;  %v5241_v53 = vsub.f32 %v8343_v62, %v1201_v13  ;;  %v8349_v28 = vld [vmem:[#allocation60_spill] sm:$0xff]  ;;  %v8351_v49 = vld [vmem:[#allocation61_spill] sm:$0xff]  ;;  %v8353_v1 = vld [vmem:[#allocation62_spill] sm:$0xff] }
 0x123   : > { %8337 = vst [vmem:[#allocation48_spill] sm:$0xff] %v5220_v52  ;;  %v5244_v46 = vsub.f32 %v8345_v9, %v1202_v55  ;;  %v5247_v56 = vsub.f32 %v8347_v50, %v1203_v45  ;;  %v5250_v54 = vsub.f32 %v8349_v28, %v1204_v3  ;;  %v5253_v16 = vsub.f32 %v8351_v49, %v1205_v0  ;;  %v8355_v27 = vld [vmem:[#allocation63_spill] sm:$0xff]  ;;  %v8357_v13 = vld [vmem:[#allocation64_spill] sm:$0xff] }
 0x124   : > { %8342 = vst [vmem:[#allocation49_spill] sm:$0xff] %v5238_v12  ;;  %8344 = vst [vmem:[#allocation50_spill] sm:$0xff] %v5241_v53  ;;  %v5256_v23 = vsub.f32 %v8353_v1, %v1206_v34  ;;  %v5259_v37 = vsub.f32 %v8355_v27, %v1207_v21  ;;  %v5262_v10 = vsub.f32 %v8357_v13, %v1208_v39 }
 0x125   : > { %8346 = vst [vmem:[#allocation51_spill] sm:$0xff] %v5244_v46  ;;  %8348 = vst [vmem:[#allocation52_spill] sm:$0xff] %v5247_v56  ;;  %v1224_v55 = vmul.f32 %v5209_v35, %v5209_v35  ;;  %v1225_v45 = vmul.f32 %v5213_v38, %v5213_v38  ;;  %v1226_v3 = vmul.f32 %v5217_v11, %v5209_v35 }
 0x126   : > { %8350 = vst [vmem:[#allocation53_spill] sm:$0xff] %v5250_v54  ;;  %8352 = vst [vmem:[#allocation54_spill] sm:$0xff] %v5253_v16  ;;  %v1227_v0 = vmul.f32 %v5220_v52, %v5213_v38  ;;  %v1228_v34 = vmul.f32 %v5098_v60, %v5209_v35  ;;  %v1229_v21 = vmul.f32 %v5101_v4, %v5213_v38 }
 0x127   : > { %8354 = vst [vmem:[#allocation55_spill] sm:$0xff] %v5256_v23  ;;  %8356 = vst [vmem:[#allocation56_spill] sm:$0xff] %v5259_v37  ;;  %v1230_v39 = vmul.f32 %v5104_v33, %v5209_v35  ;;  %v1231_v31 = vmul.f32 %v5107_v32, %v5213_v38  ;;  %v1232_v62 = vmul.f32 %v5110_v51, %v5209_v35 }
 0x128   : > { %8358 = vst [vmem:[#allocation57_spill] sm:$0xff] %v5262_v10  ;;  %v1233_v9 = vmul.f32 %v5113_v44, %v5213_v38  ;;  %v1234_v50 = vmul.f32 %v5116_v26, %v5209_v35  ;;  %v1235_v28 = vmul.f32 %v5119_v61, %v5213_v38  ;;  %v1236_v49 = vmul.f32 %v5122_v19, %v5209_v35  ;;  %v5340_v44 = vpop.eup %3851 }
 0x129   : > { %v1237_v1 = vmul.f32 %v5125_v57, %v5213_v38  ;;  %v1238_v27 = vmul.f32 %v5128_v63, %v5209_v35  ;;  %v1239_v13 = vmul.f32 %v5131_v30, %v5213_v38  ;;  %v5298_v2 = vmul.f32 %v5134_v18, %v5209_v35  ;;  %8359 = vst [vmem:[#allocation58_spill] sm:$0xff] %v5340_v44 }
 0x12a   : > { %v5302_v26 = vmul.f32 %v5137_v20, %v5213_v38  ;;  %v5306_v19 = vmul.f32 %v5140_v47, %v5209_v35  ;;  %v5310_v57 = vmul.f32 %v5143_v43, %v5213_v38  ;;  %v5314_v63 = vmul.f32 %v5146_v29, %v5209_v35 }
 0x12b   : > { %v5318_v18 = vmul.f32 %v5149_v6, %v5213_v38  ;;  %v5322_v20 = vmul.f32 %v5152_v41, %v5209_v35  ;;  %v5326_v47 = vmul.f32 %v5155_v58, %v5213_v38  ;;  %v5330_v43 = vmul.f32 %v5158_v59, %v5209_v35 }
 0x12c   : > { %v1254_v30 = vsel %vm210_vm0, %v1224_v55, 0.0  ;;  %v5335_v29 = vmul.f32 %v5161_v7, %v5213_v38  ;;  %v1255_v6 = vsel %vm210_vm0, %v1225_v45, 0.0  ;;  %v1263_v61 = vsel %vm210_vm0, %v1226_v3, 0.0 }
 0x12d   : > { %v1272_v41 = vsel %vm210_vm0, %v1228_v34, 0.0  ;;  %v1256_v58 = vadd.f32 %v1255_v6, %v1254_v30  ;;  %v1264_v51 = vsel %vm210_vm0, %v1227_v0, 0.0  ;;  %v1273_v59 = vsel %vm210_vm0, %v1229_v21, 0.0 }
 0x12e   : > { %v1281_v32 = vsel %vm210_vm0, %v1230_v39, 0.0  ;;  %v1274_v55 = vadd.f32 %v1273_v59, %v1272_v41  ;;  %v1282_v33 = vsel %vm210_vm0, %v1231_v31, 0.0  ;;  %v1290_v7 = vsel %vm210_vm0, %v1232_v62, 0.0 }
 0x12f   : > { %v1291_v45 = vsel %vm210_vm0, %v1233_v9, 0.0  ;;  %v5350_v3 = vmul.f32 %v5164_v5, %v5209_v35  ;;  %v1257_v34 = vrot.slane %v1256_v58, 4  ;;  %v1283_v4 = vadd.f32 %v1282_v33, %v1281_v32 }
 0x130   : > { %v1292_v30 = vadd.f32 %v1291_v45, %v1290_v7  ;;  %v1265_v6 = vadd.f32 %v1264_v51, %v1263_v61  ;;  %v1275_v0 = vrot.slane %v1274_v55, 4  ;;  %v1299_v21 = vsel %vm210_vm0, %v1234_v50, 0.0 }
 0x131   : > { %v1300_v39 = vsel %vm210_vm0, %v1235_v28, 0.0  ;;  %v1258_v41 = vadd.f32 %v1257_v34, %v1256_v58  ;;  %v1284_v59 = vrot.slane %v1283_v4, 4  ;;  %v1308_v62 = vsel %vm210_vm0, %v1236_v49, 0.0 }
 0x132   : > { %v1293_v31 = vrot.slane %v1292_v30, 4  ;;  %v5357_v9 = vmul.f32 %v5169_v14, %v5213_v38  ;;  %v1276_v5 = vadd.f32 %v1275_v0, %v1274_v55  ;;  %v1301_v60 = vadd.f32 %v1300_v39, %v1299_v21 }
 0x133   : > { %v1309_v32 = vsel %vm210_vm0, %v1237_v1, 0.0  ;;  %v1259_v33 = vrot.slane %v1258_v41, 2  ;;  %v1285_v51 = vadd.f32 %v1284_v59, %v1283_v4  ;;  %v1317_v7 = vsel %vm210_vm0, %v1238_v27, 0.0 }
 0x134   : > { %v1294_v61 = vadd.f32 %v1293_v31, %v1292_v30  ;;  %v1277_v50 = vrot.slane %v1276_v5, 2  ;;  %v1302_v28 = vrot.slane %v1301_v60, 4  ;;  %v1310_v58 = vadd.f32 %v1309_v32, %v1308_v62 }
 0x135   : > { %v1318_v45 = vsel %vm210_vm0, %v1239_v13, 0.0  ;;  %v1260_v34 = vadd.f32 %v1259_v33, %v1258_v41  ;;  %v1266_v49 = vrot.slane %v1265_v6, 4  ;;  %v1286_v52 = vrot.slane %v1285_v51, 2 }
 0x136   : > { %v1295_v11 = vrot.slane %v1294_v61, 2  ;;  %v1278_v14 = vadd.f32 %v1277_v50, %v1276_v5  ;;  %v1303_v44 = vadd.f32 %v1302_v28, %v1301_v60  ;;  %v1311_v55 = vrot.slane %v1310_v58, 4 }
 0x137   : > { %v1319_v0 = vadd.f32 %v1318_v45, %v1317_v7  ;;  %v1252_v1 = vmul.f32 %v5172_v48, %v5209_v35  ;;  %v1261_v4 = vrot.slane %v1260_v34, 1  ;;  %v1287_v30 = vadd.f32 %v1286_v52, %v1285_v51 }
 0x138   : > { %v1296_v21 = vadd.f32 %v1295_v11, %v1294_v61  ;;  %v1279_v27 = vrot.slane %v1278_v14, 1  ;;  %v1304_v39 = vrot.slane %v1303_v44, 2  ;;  %v1312_v59 = vadd.f32 %v1311_v55, %v1310_v58 }
 0x139   : > { %v1320_v31 = vrot.slane %v1319_v0, 4  ;;  %v1253_v13 = vmul.f32 %v5175_v24, %v5213_v38  ;;  %v5366_v41 = vadd.f32 %v1261_v4, %v1260_v34  ;;  %v5368_v62 = vadd.f32 %v1266_v49, %v1265_v6 }
 0x13a   : > { %v1288_v60 = vrot.slane %v1287_v30, 1  ;;  %v1297_v5 = vrot.slane %v1296_v21, 1  ;;  %v1305_v32 = vadd.f32 %v1304_v39, %v1303_v44  ;;  %v1313_v33 = vrot.slane %v1312_v59, 2 }
 0x13b   : > { %v1321_v7 = vadd.f32 %v1320_v31, %v1319_v0  ;;  %v5370_v50 = vadd.f32 %v1279_v27, %v1278_v14  ;;  %v1326_v11 = vsel %vm210_vm0, %v5298_v2, 0.0  ;;  %v1327_v51 = vsel %vm210_vm0, %v5302_v26, 0.0 }
 0x13c   : > { %v5372_v52 = vadd.f32 %v1288_v60, %v1287_v30  ;;  %v1306_v61 = vrot.slane %v1305_v32, 1  ;;  %v1314_v28 = vadd.f32 %v1313_v33, %v1312_v59  ;;  %v1328_v6 = vadd.f32 %v1327_v51, %v1326_v11 }
 0x13d   : > { %v1322_v58 = vrot.slane %v1321_v7, 2  ;;  %v1335_v45 = vsel %vm210_vm0, %v5306_v19, 0.0  ;;  %v1336_v44 = vsel %vm210_vm0, %v5310_v57, 0.0  ;;  %v1344_v14 = vsel %vm210_vm0, %v5314_v63, 0.0 }
 0x13e   : > { %v1345_v34 = vsel %vm210_vm0, %v5318_v18, 0.0  ;;  %v5386_v2 = vadd.f32 %v1297_v5, %v1296_v21  ;;  %v1315_v49 = vrot.slane %v1314_v28, 1  ;;  %v1329_v55 = vrot.slane %v1328_v6, 4 }
 0x13f   : > { %v1323_v26 = vadd.f32 %v1322_v58, %v1321_v7  ;;  %v1337_v0 = vadd.f32 %v1336_v44, %v1335_v45  ;;  %v1346_v4 = vadd.f32 %v1345_v34, %v1344_v14  ;;  %v1353_v30 = vsel %vm210_vm0, %v5322_v20, 0.0 }
 0x140   : > { %v1354_v19 = vsel %vm210_vm0, %v5326_v47, 0.0  ;;  %v5392_v57 = vadd.f32 %v1306_v61, %v1305_v32  ;;  %v5394_v27 = vadd.f32 %v1315_v49, %v1314_v28  ;;  %v1330_v63 = vadd.f32 %v1329_v55, %v1328_v6 }
 0x141   : > { %v1355_v39 = vadd.f32 %v1354_v19, %v1353_v30  ;;  %v1338_v18 = vrot.slane %v1337_v0, 4  ;;  %v1347_v21 = vrot.slane %v1346_v4, 4  ;;  %v1362_v59 = vsel %vm210_vm0, %v5330_v43, 0.0 }
 0x142   : > { %v1363_v31 = vsel %vm210_vm0, %v5335_v29, 0.0  ;;  %v1324_v60 = vrot.slane %v1323_v26, 1  ;;  %v1331_v5 = vrot.slane %v1330_v63, 2  ;;  %v1371_v32 = vsel %vm210_vm0, %v5350_v3, 0.0 }
 0x143   : > { %v1356_v20 = vrot.slane %v1355_v39, 4  ;;  %v1364_v33 = vadd.f32 %v1363_v31, %v1362_v59  ;;  %v1339_v7 = vadd.f32 %v1338_v18, %v1337_v0  ;;  %v1348_v47 = vadd.f32 %v1347_v21, %v1346_v4 }
 0x144   : > { %v1372_v11 = vsel %vm210_vm0, %v5357_v9, 0.0  ;;  %v1332_v51 = vadd.f32 %v1331_v5, %v1330_v63  ;;  %v1380_v29 = vsel %vm210_vm0, %v1252_v1, 0.0  ;;  %v1381_v45 = vsel %vm210_vm0, %v1253_v13, 0.0 }
 0x145   : > { %v1357_v61 = vadd.f32 %v1356_v20, %v1355_v39  ;;  %v1365_v28 = vrot.slane %v1364_v33, 4  ;;  %v1373_v58 = vadd.f32 %v1372_v11, %v1371_v32  ;;  %v1340_v43 = vrot.slane %v1339_v7, 2 }
 0x146   : > { %v1349_v6 = vrot.slane %v1348_v47, 2  ;;  %v1333_v44 = vrot.slane %v1332_v51, 1  ;;  %v1325_v55 = vadd.f32 %v1324_v60, %v1323_v26  ;;  %v1382_v4 = vadd.f32 %v1381_v45, %v1380_v29 }
 0x147   : > { %v1358_v14 = vrot.slane %v1357_v61, 2  ;;  %v1366_v34 = vadd.f32 %v1365_v28, %v1364_v33  ;;  %v1374_v49 = vrot.slane %v1373_v58, 4  ;;  %v1341_v0 = vadd.f32 %v1340_v43, %v1339_v7 }
 0x148   : > { %v1350_v3 = vadd.f32 %v1349_v6, %v1348_v47  ;;  %v1389_v63 = vmul.f32 %v5223_v22, %v5223_v22  ;;  %v1334_v39 = vadd.f32 %v1333_v44, %v1332_v51  ;;  %v1383_v1 = vrot.slane %v1382_v4, 4 }
 0x149   : > { %v1359_v30 = vadd.f32 %v1358_v14, %v1357_v61  ;;  %v1367_v9 = vrot.slane %v1366_v34, 2  ;;  %v1375_v19 = vadd.f32 %v1374_v49, %v1373_v58  ;;  %v1342_v18 = vrot.slane %v1341_v0, 1 }
 0x14a   : > { %v1351_v21 = vrot.slane %v1350_v3, 1  ;;  %v1391_v5 = vmul.f32 %v5226_v15, %v5223_v22  ;;  %v1384_v20 = vadd.f32 %v1383_v1, %v1382_v4  ;;  %v1392_v33 = vmul.f32 %v5229_v8, %v5223_v22 }
 0x14b   : > { %v1360_v59 = vrot.slane %v1359_v30, 1  ;;  %v1368_v13 = vadd.f32 %v1367_v9, %v1366_v34  ;;  %v1376_v31 = vrot.slane %v1375_v19, 2  ;;  %v1343_v26 = vadd.f32 %v1342_v18, %v1341_v0 }
 0x14c   : > { %v1352_v60 = vadd.f32 %v1351_v21, %v1350_v3  ;;  %v1393_v11 = vmul.f32 %v5232_v17, %v5223_v22  ;;  %v1385_v51 = vrot.slane %v1384_v20, 2  ;;  %v1394_v61 = vmul.f32 %v5235_v42, %v5223_v22 }
 0x14d   : > { %v1361_v7 = vadd.f32 %v1360_v59, %v1359_v30  ;;  %v1369_v47 = vrot.slane %v1368_v13, 1  ;;  %v1377_v32 = vadd.f32 %v1376_v31, %v1375_v19  ;;  %v1395_v28 = vmul.f32 %v5238_v12, %v5223_v22  ;;  %v8372_v12 = vld [vmem:[#allocation27_spill] sm:$0xff] }
 0x14e   : > { %v1396_v58 = vmul.f32 %v5241_v53, %v5223_v22  ;;  %v1397_v29 = vmul.f32 %v5244_v46, %v5223_v22  ;;  %v1398_v45 = vmul.f32 %v5247_v56, %v5223_v22  ;;  %v1386_v44 = vadd.f32 %v1385_v51, %v1384_v20  ;;  %v8369_v56 = vld [vmem:[#allocation25_spill] sm:$0xff]  ;;  %v8370_v53 = vld [vmem:[#allocation26_spill] sm:$0xff] }
 0x14f   : > { %v1370_v43 = vadd.f32 %v1369_v47, %v1368_v13  ;;  %v1378_v6 = vrot.slane %v1377_v32, 1  ;;  %v1399_v14 = vmul.f32 %v5250_v54, %v5223_v22  ;;  %v1400_v34 = vmul.f32 %v5253_v16, %v5223_v22  ;;  %v8368_v16 = vld [vmem:[#allocation24_spill] sm:$0xff] }
 0x150   : > { %v1401_v49 = vmul.f32 %v5256_v23, %v5223_v22  ;;  %v1402_v3 = vmul.f32 %v5259_v37, %v5223_v22  ;;  %v1403_v4 = vmul.f32 %v5262_v10, %v5223_v22  ;;  %v1404_v30 = vadd.f32 %v1389_v63, %v5366_v41 }
 0x151   : > { %v1379_v0 = vadd.f32 %v1378_v6, %v1377_v32  ;;  %v1268_v9 = vrot.slane %v5368_v62, 2  ;;  %v1387_v19 = vrot.slane %v1386_v44, 1  ;;  %v1406_v18 = vadd.f32 %v1391_v5, %v5370_v50 }
 0x152   : > { %v1407_v21 = vadd.f32 %v1392_v33, %v5372_v52  ;;  %v1408_v1 = vadd.f32 %v1393_v11, %v5386_v2  ;;  %v1409_v59 = vadd.f32 %v1394_v61, %v5392_v57  ;;  %v1410_v13 = vadd.f32 %v1395_v28, %v5394_v27  ;;  %v8361_v27 = vld [vmem:[#allocation65_spill] sm:$0xff]  ;;  %v8362_v33 = vld [vmem:[#allocation58_spill] sm:$0xff]  ;;  %v8367_v61 = vld [vmem:[#allocation23_spill] sm:$0xff] }
 0x153   : > { %v1411_v31 = vadd.f32 %v1396_v58, %v1325_v55  ;;  %v1388_v20 = vadd.f32 %v1387_v19, %v1386_v44  ;;  %v1412_v47 = vadd.f32 %v1397_v29, %v1334_v39  ;;  %v1413_v32 = vadd.f32 %v1398_v45, %v1343_v26 }
 0x154   : > { %v1414_v51 = vadd.f32 %v1399_v14, %v1352_v60  ;;  %v1415_v6 = vadd.f32 %v1400_v34, %v1361_v7  ;;  %v1416_v41 = vadd.f32 %v1401_v49, %v1370_v43  ;;  %v1417_v63 = vadd.f32 %v1402_v3, %v1379_v0 }
 0x155   : > { %v1419_v10 = vmul.f32 %v4571_v40, %v1404_v30  ;;  %v1418_v37 = vadd.f32 %v1403_v4, %v1388_v20  ;;  %v8360_v50 = vsub.f32 1.0, %v4571_v40  ;;  %v1195_v2 = vmul.f32 %v5005_v36, %v4795_v25  ;;  %v8366_v25 = vld [vmem:[#allocation48_spill] sm:$0xff] }
 0x156   : > { %v1269_v57 = vadd.f32 %v1268_v9, %v5368_v62  ;;  %v1116_v7 = vmul.f32 0.6931472, %v8362_v33 }
 0x157   : > { %v1421_v52 = vadd.f32 %v8360_v50, %v1419_v10  ;;  %v5448_v55 = vsub.f32 %v8361_v27, %v1195_v2 }
 0x158   : > { %v1270_v39 = vrot.slane %v1269_v57, 1 }
 0x159   : > { %3853 = vlog2.f32 %v1421_v52  ;;  %v1390_v26 = vmul.f32 %v5448_v55, %v5223_v22 }
 0x15a   : > { %3855 = vrcp.f32 %v1421_v52  ;;  %v1271_v5 = vadd.f32 %v1270_v39, %v1269_v57 }
 0x15c   : > { %v1405_v60 = vadd.f32 %v1390_v26, %v1271_v5 }
 0x166   : > { %v3854_v40 = vpop.eup %3853 }
 0x167   : > { %v3856_v10 = vpop.eup %3855  ;;  %v1423_v11 = vmul.f32 0.6931472, %v3854_v40 }
 0x168   : > { %v5454_v36 = vmul.f32 %v3856_v10, %v1405_v60  ;;  %v5456_v62 = vmul.f32 %v3856_v10, %v1406_v18  ;;  %v5458_v28 = vmul.f32 %v3856_v10, %v1407_v21  ;;  %v5460_v58 = vmul.f32 %v3856_v10, %v1408_v1 }
 0x169   : > { %v5462_v43 = vadd.f32 %v1423_v11, %v1116_v7  ;;  %v5464_v29 = vmul.f32 %v3856_v10, %v1409_v59  ;;  %v5466_v45 = vmul.f32 %v3856_v10, %v1410_v13  ;;  %v5468_v44 = vmul.f32 %v3856_v10, %v1411_v31 }
 0x16a   : > { %v5470_v14 = vmul.f32 %v3856_v10, %v1412_v47  ;;  %v5472_v34 = vmul.f32 %v3856_v10, %v1413_v32  ;;  %v5474_v49 = vmul.f32 %v3856_v10, %v1414_v51  ;;  %v5476_v0 = vmul.f32 %v3856_v10, %v1415_v6 }
 0x16b   : > { %8364 = vst [vmem:[#allocation59_spill] sm:$0xff] %v5462_v43  ;;  %v5478_v3 = vmul.f32 %v3856_v10, %v1416_v41  ;;  %v5480_v4 = vmul.f32 %v3856_v10, %v1417_v63  ;;  %v5482_v30 = vmul.f32 %v3856_v10, %v1418_v37  ;;  %v1440_v9 = vmul.f32 %v5454_v36, %v5209_v35  ;;  %v8365_v10 = vld [vmem:[#allocation47_spill] sm:$0xff] }
 0x16c   : > { %v1441_v19 = vmul.f32 %v5454_v36, %v5213_v38  ;;  %v1442_v18 = vmul.f32 %v5456_v62, %v5209_v35  ;;  %v1443_v21 = vmul.f32 %v5456_v62, %v5213_v38  ;;  %v1444_v1 = vmul.f32 %v5458_v28, %v5209_v35 }
 0x16d   : > { %v1445_v59 = vmul.f32 %v5458_v28, %v5213_v38  ;;  %v1446_v37 = vmul.f32 %v5460_v58, %v5209_v35  ;;  %v1447_v13 = vmul.f32 %v5460_v58, %v5213_v38  ;;  %v1448_v31 = vmul.f32 %v5464_v29, %v5209_v35 }
 0x16e   : > { %v1449_v20 = vmul.f32 %v5464_v29, %v5213_v38  ;;  %v1450_v47 = vmul.f32 %v5466_v45, %v5209_v35  ;;  %v1451_v32 = vmul.f32 %v5466_v45, %v5213_v38  ;;  %v1452_v51 = vmul.f32 %v5468_v44, %v5209_v35 }
 0x16f   : > { %v1453_v6 = vmul.f32 %v5468_v44, %v5213_v38  ;;  %v1454_v41 = vmul.f32 %v5470_v14, %v5209_v35  ;;  %v1455_v63 = vmul.f32 %v5470_v14, %v5213_v38  ;;  %v1456_v50 = vmul.f32 %v5472_v34, %v5209_v35 }
 0x170   : > { %v1457_v52 = vmul.f32 %v5472_v34, %v5213_v38  ;;  %v1458_v2 = vmul.f32 %v5474_v49, %v5209_v35  ;;  %v1459_v57 = vmul.f32 %v5474_v49, %v5213_v38  ;;  %v1460_v27 = vmul.f32 %v5476_v0, %v5209_v35 }
 0x171   : > { %v1461_v39 = vmul.f32 %v5476_v0, %v5213_v38  ;;  %v1462_v5 = vmul.f32 %v5478_v3, %v5209_v35  ;;  %v1463_v26 = vmul.f32 %v5478_v3, %v5213_v38  ;;  %v1464_v60 = vmul.f32 %v5480_v4, %v5209_v35 }
 0x172   : > { %v1465_v33 = vmul.f32 %v5480_v4, %v5213_v38  ;;  %v1466_v7 = vmul.f32 %v5482_v30, %v5209_v35  ;;  %v1467_v40 = vmul.f32 %v5482_v30, %v5213_v38  ;;  %v5541_v11 = vsub.f32 %v8365_v10, %v1440_v9  ;;  %v8374_v9 = vld [vmem:[#allocation28_spill] sm:$0xff] }
 0x173   : > { %v5544_v43 = vsub.f32 %v8366_v25, %v1441_v19  ;;  %v5547_v23 = vsub.f32 %v8367_v61, %v1442_v18  ;;  %v5550_v54 = vsub.f32 %v8368_v16, %v1443_v21  ;;  %v5553_v46 = vsub.f32 %v8369_v56, %v1444_v1  ;;  %v8376_v25 = vld [vmem:[#allocation29_spill] sm:$0xff]  ;;  %v8378_v61 = vld [vmem:[#allocation30_spill] sm:$0xff]  ;;  %v8380_v16 = vld [vmem:[#allocation31_spill] sm:$0xff] }
 0x174   : > { %v5556_v35 = vsub.f32 %v8370_v53, %v1445_v59  ;;  %v5559_v38 = vsub.f32 %v8372_v12, %v1446_v37  ;;  %v5562_v10 = vsub.f32 %v8374_v9, %v1447_v13  ;;  %v5565_v19 = vsub.f32 %v8376_v25, %v1448_v31  ;;  %v8382_v56 = vld [vmem:[#allocation32_spill] sm:$0xff]  ;;  %v8384_v53 = vld [vmem:[#allocation33_spill] sm:$0xff]  ;;  %v8386_v12 = vld [vmem:[#allocation34_spill] sm:$0xff] }
 0x175   : > { %v5568_v18 = vsub.f32 %v8378_v61, %v1449_v20  ;;  %v5571_v21 = vsub.f32 %v8380_v16, %v1450_v47  ;;  %v5574_v1 = vsub.f32 %v8382_v56, %v1451_v32  ;;  %v5577_v59 = vsub.f32 %v8384_v53, %v1452_v51  ;;  %v8388_v13 = vld [vmem:[#allocation35_spill] sm:$0xff]  ;;  %v8390_v31 = vld [vmem:[#allocation36_spill] sm:$0xff]  ;;  %v8392_v20 = vld [vmem:[#allocation37_spill] sm:$0xff] }
 0x176   : > { %8371 = vst [vmem:[#allocation60_spill] sm:$0xff] %v5556_v35  ;;  %8373 = vst [vmem:[#allocation61_spill] sm:$0xff] %v5559_v38  ;;  %v5580_v37 = vsub.f32 %v8386_v12, %v1453_v6  ;;  %v5583_v9 = vsub.f32 %v8388_v13, %v1454_v41  ;;  %v5586_v25 = vsub.f32 %v8390_v31, %v1455_v63  ;;  %v8394_v47 = vld [vmem:[#allocation38_spill] sm:$0xff]  ;;  %v8396_v32 = vld [vmem:[#allocation39_spill] sm:$0xff] }
 0x177   : > { %8375 = vst [vmem:[#allocation62_spill] sm:$0xff] %v5562_v10  ;;  %8377 = vst [vmem:[#allocation63_spill] sm:$0xff] %v5565_v19  ;;  %v5589_v61 = vsub.f32 %v8392_v20, %v1456_v50  ;;  %v5592_v16 = vsub.f32 %v8394_v47, %v1457_v52  ;;  %v5595_v56 = vsub.f32 %v8396_v32, %v1458_v2  ;;  %v8398_v51 = vld [vmem:[#allocation40_spill] sm:$0xff]  ;;  %v8400_v6 = vld [vmem:[#allocation41_spill] sm:$0xff] }
 0x178   : > { %8379 = vst [vmem:[#allocation64_spill] sm:$0xff] %v5568_v18  ;;  %8381 = vst [vmem:[#allocation65_spill] sm:$0xff] %v5571_v21  ;;  %v5598_v53 = vsub.f32 %v8398_v51, %v1459_v57  ;;  %v5601_v12 = vsub.f32 %v8400_v6, %v1460_v27  ;;  %v8402_v41 = vld [vmem:[#allocation42_spill] sm:$0xff]  ;;  %v8404_v63 = vld [vmem:[#allocation43_spill] sm:$0xff]  ;;  %v5619_v57 = vsub.f32 %v5172_v48, %v1466_v7 }
 0x179   : > { %8383 = vst [vmem:[#allocation58_spill] sm:$0xff] %v5574_v1  ;;  %8385 = vst [vmem:[#allocation47_spill] sm:$0xff] %v5577_v59  ;;  %v5604_v13 = vsub.f32 %v8402_v41, %v1461_v39  ;;  %v5607_v31 = vsub.f32 %v8404_v63, %v1462_v5  ;;  %v8406_v50 = vld [vmem:[#allocation44_spill] sm:$0xff]  ;;  %v8408_v52 = vld [vmem:[#allocation45_spill] sm:$0xff]  ;;  %v5622_v27 = vsub.f32 %v5175_v24, %v1467_v40 }
 0x17a   : > { %8387 = vst [vmem:[#allocation48_spill] sm:$0xff] %v5580_v37  ;;  %8389 = vst [vmem:[#allocation23_spill] sm:$0xff] %v5583_v9  ;;  %v5610_v20 = vsub.f32 %v8406_v50, %v1463_v26  ;;  %v5613_v47 = vsub.f32 %v8408_v52, %v1464_v60  ;;  %v8410_v2 = vld [vmem:[#allocation46_spill] sm:$0xff]  ;;  %v1496_v39 = vmul.f32 %v5454_v36, %v5223_v22  ;;  %v8414_v7 = vld [vmem:[#allocation49_spill] sm:$0xff] }
 0x17b   : > { %8391 = vst [vmem:[#allocation24_spill] sm:$0xff] %v5586_v25  ;;  %8393 = vst [vmem:[#allocation25_spill] sm:$0xff] %v5589_v61  ;;  %v5616_v32 = vsub.f32 %v8410_v2, %v1465_v33  ;;  %v1497_v5 = vmul.f32 %v5456_v62, %v5223_v22  ;;  %v1498_v26 = vmul.f32 %v5458_v28, %v5223_v22  ;;  %v8415_v40 = vld [vmem:[#allocation50_spill] sm:$0xff]  ;;  %v8422_v50 = vld [vmem:[#allocation56_spill] sm:$0xff] }
 0x17c   : > { %8395 = vst [vmem:[#allocation26_spill] sm:$0xff] %v5592_v16  ;;  %8397 = vst [vmem:[#allocation27_spill] sm:$0xff] %v5595_v56  ;;  %v1499_v60 = vmul.f32 %v5460_v58, %v5223_v22  ;;  %v1500_v33 = vmul.f32 %v5464_v29, %v5223_v22  ;;  %v1501_v48 = vmul.f32 %v5466_v45, %v5223_v22  ;;  %v8424_v2 = vld [vmem:[#allocation57_spill] sm:$0xff] }
 0x17d   : > { %8399 = vst [vmem:[#allocation28_spill] sm:$0xff] %v5598_v53  ;;  %8401 = vst [vmem:[#allocation29_spill] sm:$0xff] %v5601_v12  ;;  %v1502_v24 = vmul.f32 %v5468_v44, %v5223_v22  ;;  %v1503_v36 = vmul.f32 %v5470_v14, %v5223_v22  ;;  %v1504_v62 = vmul.f32 %v5472_v34, %v5223_v22 }
 0x17e   : > { %8403 = vst [vmem:[#allocation30_spill] sm:$0xff] %v5604_v13  ;;  %8405 = vst [vmem:[#allocation31_spill] sm:$0xff] %v5607_v31  ;;  %v1505_v28 = vmul.f32 %v5474_v49, %v5223_v22  ;;  %v1506_v58 = vmul.f32 %v5476_v0, %v5223_v22  ;;  %v1507_v29 = vmul.f32 %v5478_v3, %v5223_v22 }
 0x17f   : > { %8407 = vst [vmem:[#allocation32_spill] sm:$0xff] %v5610_v20  ;;  %8409 = vst [vmem:[#allocation33_spill] sm:$0xff] %v5613_v47  ;;  %v1508_v45 = vmul.f32 %v5480_v4, %v5223_v22  ;;  %v1509_v44 = vmul.f32 %v5482_v30, %v5223_v22  ;;  %v5653_v14 = vsub.f32 %v5448_v55, %v1496_v39  ;;  %v8416_v55 = vld [vmem:[#allocation51_spill] sm:$0xff] }
 0x180   : > { %8411 = vst [vmem:[#allocation34_spill] sm:$0xff] %v5616_v32  ;;  %8412 = vst [vmem:[#allocation35_spill] sm:$0xff] %v5619_v57  ;;  %v5656_v34 = vsub.f32 %v5226_v15, %v1497_v5  ;;  %v5659_v49 = vsub.f32 %v5229_v8, %v1498_v26  ;;  %v5662_v0 = vsub.f32 %v5232_v17, %v1499_v60  ;;  %v8417_v15 = vld [vmem:[#allocation52_spill] sm:$0xff]  ;;  %v8418_v8 = vld [vmem:[#allocation53_spill] sm:$0xff] }
 0x181   : > { %8413 = vst [vmem:[#allocation36_spill] sm:$0xff] %v5622_v27  ;;  %v5665_v3 = vsub.f32 %v5235_v42, %v1500_v33  ;;  %v5668_v4 = vsub.f32 %v8414_v7, %v1501_v48  ;;  %v5671_v22 = vsub.f32 %v8415_v40, %v1502_v24  ;;  %v5674_v30 = vsub.f32 %v8416_v55, %v1503_v36  ;;  %v8419_v17 = vld [vmem:[#allocation54_spill] sm:$0xff]  ;;  %v8420_v42 = vld [vmem:[#allocation55_spill] sm:$0xff] }
 0x182   : > { %v5677_v51 = vsub.f32 %v8417_v15, %v1504_v62  ;;  %v5680_v6 = vsub.f32 %v8418_v8, %v1505_v28  ;;  %v5683_v41 = vsub.f32 %v8419_v17, %v1506_v58  ;;  %v5686_v63 = vsub.f32 %v8420_v42, %v1507_v29 }
 0x183   : > { %v5689_v52 = vsub.f32 %v8422_v50, %v1508_v45  ;;  %v5692_v39 = vsub.f32 %v8424_v2, %v1509_v44  ;;  %v1524_v5 = vmul.f32 %v5541_v11, %v5541_v11  ;;  %v1525_v26 = vmul.f32 %v5544_v43, %v5544_v43 }
 0x184   : > { %8421 = vst [vmem:[#allocation37_spill] sm:$0xff] %v5686_v63  ;;  %v1526_v60 = vmul.f32 %v5547_v23, %v5541_v11  ;;  %v1527_v33 = vmul.f32 %v5550_v54, %v5544_v43  ;;  %v1528_v48 = vmul.f32 %v5553_v46, %v5541_v11  ;;  %v1529_v24 = vmul.f32 %v5556_v35, %v5544_v43 }
 0x185   : > { %8423 = vst [vmem:[#allocation38_spill] sm:$0xff] %v5689_v52  ;;  %8425 = vst [vmem:[#allocation39_spill] sm:$0xff] %v5692_v39  ;;  %v1530_v36 = vmul.f32 %v5559_v38, %v5541_v11  ;;  %v1531_v62 = vmul.f32 %v5562_v10, %v5544_v43  ;;  %v1532_v28 = vmul.f32 %v5565_v19, %v5541_v11 }
 0x186   : > { %v1533_v58 = vmul.f32 %v5568_v18, %v5544_v43  ;;  %v1534_v29 = vmul.f32 %v5571_v21, %v5541_v11  ;;  %v1535_v45 = vmul.f32 %v5574_v1, %v5544_v43  ;;  %v1536_v44 = vmul.f32 %v5577_v59, %v5541_v11 }
 0x187   : > { %v1537_v7 = vmul.f32 %v5580_v37, %v5544_v43  ;;  %v1538_v40 = vmul.f32 %v5583_v9, %v5541_v11  ;;  %v1539_v55 = vmul.f32 %v5586_v25, %v5544_v43  ;;  %v5728_v15 = vmul.f32 %v5589_v61, %v5541_v11 }
 0x188   : > { %v5732_v8 = vmul.f32 %v5592_v16, %v5544_v43  ;;  %v5736_v17 = vmul.f32 %v5595_v56, %v5541_v11  ;;  %v5740_v42 = vmul.f32 %v5598_v53, %v5544_v43  ;;  %v5744_v50 = vmul.f32 %v5601_v12, %v5541_v11 }
 0x189   : > { %v5748_v2 = vmul.f32 %v5604_v13, %v5544_v43  ;;  %v5752_v16 = vmul.f32 %v5607_v31, %v5541_v11  ;;  %v5756_v56 = vmul.f32 %v5610_v20, %v5544_v43  ;;  %v5760_v53 = vmul.f32 %v5613_v47, %v5541_v11 }
 0x18a   : > { %v5764_v12 = vmul.f32 %v5616_v32, %v5544_v43  ;;  %v5768_v13 = vmul.f32 %v5619_v57, %v5541_v11  ;;  %v5772_v31 = vmul.f32 %v5622_v27, %v5544_v43  ;;  %v1552_v61 = vsel %vm210_vm0, %v1524_v5, 0.0 }
 0x18b   : > { %v1553_v20 = vsel %vm210_vm0, %v1525_v26, 0.0  ;;  %v1561_v25 = vsel %vm210_vm0, %v1526_v60, 0.0  ;;  %v1562_v47 = vsel %vm210_vm0, %v1527_v33, 0.0  ;;  %v1570_v9 = vsel %vm210_vm0, %v1528_v48, 0.0 }
 0x18c   : > { %v1554_v32 = vadd.f32 %v1553_v20, %v1552_v61  ;;  %v1563_v37 = vadd.f32 %v1562_v47, %v1561_v25  ;;  %v1571_v59 = vsel %vm210_vm0, %v1529_v24, 0.0  ;;  %v1579_v57 = vsel %vm210_vm0, %v1530_v36, 0.0 }
 0x18d   : > { %v1572_v1 = vadd.f32 %v1571_v59, %v1570_v9  ;;  %v1580_v27 = vsel %vm210_vm0, %v1531_v62, 0.0  ;;  %v1588_v21 = vsel %vm210_vm0, %v1532_v28, 0.0  ;;  %v1589_v5 = vsel %vm210_vm0, %v1533_v58, 0.0 }
 0x18e   : > { %v1555_v26 = vrot.slane %v1554_v32, 4  ;;  %v1564_v18 = vrot.slane %v1563_v37, 4  ;;  %v1581_v60 = vadd.f32 %v1580_v27, %v1579_v57  ;;  %v1590_v19 = vadd.f32 %v1589_v5, %v1588_v21 }
 0x18f   : > { %v1573_v33 = vrot.slane %v1572_v1, 4  ;;  %v1597_v48 = vsel %vm210_vm0, %v1534_v29, 0.0  ;;  %v1598_v25 = vsel %vm210_vm0, %v1535_v45, 0.0  ;;  %v1606_v61 = vsel %vm210_vm0, %v1536_v44, 0.0 }
 0x190   : > { %v1556_v20 = vadd.f32 %v1555_v26, %v1554_v32  ;;  %v1565_v47 = vadd.f32 %v1564_v18, %v1563_v37  ;;  %v1582_v59 = vrot.slane %v1581_v60, 4  ;;  %v1591_v9 = vrot.slane %v1590_v19, 4 }
 0x191   : > { %v1574_v24 = vadd.f32 %v1573_v33, %v1572_v1  ;;  %v1599_v36 = vadd.f32 %v1598_v25, %v1597_v48  ;;  %v1607_v62 = vsel %vm210_vm0, %v1537_v7, 0.0  ;;  %v1615_v28 = vsel %vm210_vm0, %v1538_v40, 0.0 }
 0x192   : > { %v1557_v58 = vrot.slane %v1556_v20, 2  ;;  %v1566_v57 = vrot.slane %v1565_v47, 2  ;;  %v1583_v21 = vadd.f32 %v1582_v59, %v1581_v60  ;;  %v1592_v27 = vadd.f32 %v1591_v9, %v1590_v19 }
 0x193   : > { %v1575_v5 = vrot.slane %v1574_v24, 2  ;;  %v1600_v29 = vrot.slane %v1599_v36, 4  ;;  %v1608_v10 = vadd.f32 %v1607_v62, %v1606_v61  ;;  %v1616_v45 = vsel %vm210_vm0, %v1539_v55, 0.0 }
 0x194   : > { %v1558_v44 = vadd.f32 %v1557_v58, %v1556_v20  ;;  %v1567_v32 = vadd.f32 %v1566_v57, %v1565_v47  ;;  %v1584_v18 = vrot.slane %v1583_v21, 2  ;;  %v1593_v37 = vrot.slane %v1592_v27, 2 }
 0x195   : > { %v1576_v26 = vadd.f32 %v1575_v5, %v1574_v24  ;;  %v1601_v1 = vadd.f32 %v1600_v29, %v1599_v36  ;;  %v1609_v33 = vrot.slane %v1608_v10, 4  ;;  %v1617_v48 = vadd.f32 %v1616_v45, %v1615_v28 }
 0x196   : > { %v1559_v7 = vrot.slane %v1558_v44, 1  ;;  %v1568_v25 = vrot.slane %v1567_v32, 1  ;;  %v1585_v40 = vadd.f32 %v1584_v18, %v1583_v21  ;;  %v1594_v38 = vadd.f32 %v1593_v37, %v1592_v27 }
 0x197   : > { %v1577_v35 = vrot.slane %v1576_v26, 1  ;;  %v1602_v60 = vrot.slane %v1601_v1, 2  ;;  %v1610_v19 = vadd.f32 %v1609_v33, %v1608_v10  ;;  %v1618_v59 = vrot.slane %v1617_v48, 4 }
 0x198   : > { %v5790_v9 = vadd.f32 %v1559_v7, %v1558_v44  ;;  %v5792_v61 = vadd.f32 %v1568_v25, %v1567_v32  ;;  %v1586_v55 = vrot.slane %v1585_v40, 1  ;;  %v1595_v20 = vrot.slane %v1594_v38, 1 }
 0x199   : > { %v5794_v47 = vadd.f32 %v1577_v35, %v1576_v26  ;;  %v1603_v24 = vadd.f32 %v1602_v60, %v1601_v1  ;;  %v1611_v36 = vrot.slane %v1610_v19, 2  ;;  %v1619_v62 = vadd.f32 %v1618_v59, %v1617_v48 }
 0x19a   : > { %v5796_v28 = vadd.f32 %v1586_v55, %v1585_v40  ;;  %v5798_v58 = vadd.f32 %v1595_v20, %v1594_v38  ;;  %v1624_v57 = vsel %vm210_vm0, %v5728_v15, 0.0  ;;  %v1625_v10 = vsel %vm210_vm0, %v5732_v8, 0.0 }
 0x19b   : > { %v1604_v21 = vrot.slane %v1603_v24, 1  ;;  %v1612_v27 = vadd.f32 %v1611_v36, %v1610_v19  ;;  %v1620_v5 = vrot.slane %v1619_v62, 2  ;;  %v1626_v29 = vadd.f32 %v1625_v10, %v1624_v57 }
 0x19c   : > { %v1633_v35 = vsel %vm210_vm0, %v5736_v17, 0.0  ;;  %v1634_v45 = vsel %vm210_vm0, %v5740_v42, 0.0  ;;  %v1642_v38 = vsel %vm210_vm0, %v5744_v50, 0.0  ;;  %v1643_v44 = vsel %vm210_vm0, %v5748_v2, 0.0 }
 0x19d   : > { %v5812_v15 = vadd.f32 %v1604_v21, %v1603_v24  ;;  %v1613_v32 = vrot.slane %v1612_v27, 1  ;;  %v1621_v8 = vadd.f32 %v1620_v5, %v1619_v62  ;;  %v1627_v18 = vrot.slane %v1626_v29, 4 }
 0x19e   : > { %v1635_v37 = vadd.f32 %v1634_v45, %v1633_v35  ;;  %v1644_v26 = vadd.f32 %v1643_v44, %v1642_v38  ;;  %v1651_v1 = vsel %vm210_vm0, %v5752_v16, 0.0  ;;  %v1652_v17 = vsel %vm210_vm0, %v5756_v56, 0.0 }
 0x19f   : > { %v5818_v42 = vadd.f32 %v1613_v32, %v1612_v27  ;;  %v1622_v33 = vrot.slane %v1621_v8, 1  ;;  %v1628_v50 = vadd.f32 %v1627_v18, %v1626_v29  ;;  %v1653_v48 = vadd.f32 %v1652_v17, %v1651_v1 }
 0x1a0   : > { %v1636_v7 = vrot.slane %v1635_v37, 4  ;;  %v1645_v2 = vrot.slane %v1644_v26, 4  ;;  %v1660_v25 = vsel %vm210_vm0, %v5760_v53, 0.0  ;;  %v1661_v40 = vsel %vm210_vm0, %v5764_v12, 0.0 }
 0x1a1   : > { %v1623_v60 = vadd.f32 %v1622_v33, %v1621_v8  ;;  %v1629_v19 = vrot.slane %v1628_v50, 2  ;;  %v1654_v59 = vrot.slane %v1653_v48, 4  ;;  %v1662_v16 = vadd.f32 %v1661_v40, %v1660_v25 }
 0x1a2   : > { %v1637_v55 = vadd.f32 %v1636_v7, %v1635_v37  ;;  %v1646_v20 = vadd.f32 %v1645_v2, %v1644_v26  ;;  %v1669_v56 = vsel %vm210_vm0, %v5768_v13, 0.0  ;;  %v1670_v24 = vsel %vm210_vm0, %v5772_v31, 0.0 }
 0x1a3   : > { %v1630_v36 = vadd.f32 %v1629_v19, %v1628_v50  ;;  %v1655_v62 = vadd.f32 %v1654_v59, %v1653_v48  ;;  %v1663_v57 = vrot.slane %v1662_v16, 4  ;;  %v1671_v10 = vadd.f32 %v1670_v24, %v1669_v56 }
 0x1a4   : > { %v1638_v53 = vrot.slane %v1637_v55, 2  ;;  %v1647_v21 = vrot.slane %v1646_v20, 2  ;;  %v1678_v12 = vmul.f32 %v5653_v14, %v5653_v14  ;;  %v1679_v27 = vmul.f32 %v5656_v34, %v5653_v14 }
 0x1a5   : > { %v1631_v5 = vrot.slane %v1630_v36, 1  ;;  %v1656_v29 = vrot.slane %v1655_v62, 2  ;;  %v1664_v35 = vadd.f32 %v1663_v57, %v1662_v16  ;;  %v1672_v45 = vrot.slane %v1671_v10, 4 }
 0x1a6   : > { %v1639_v13 = vadd.f32 %v1638_v53, %v1637_v55  ;;  %v1648_v38 = vadd.f32 %v1647_v21, %v1646_v20  ;;  %v1680_v31 = vmul.f32 %v5659_v49, %v5653_v14  ;;  %v1681_v44 = vmul.f32 %v5662_v0, %v5653_v14 }
 0x1a7   : > { %v1632_v32 = vadd.f32 %v1631_v5, %v1630_v36  ;;  %v1657_v8 = vadd.f32 %v1656_v29, %v1655_v62  ;;  %v1665_v18 = vrot.slane %v1664_v35, 2  ;;  %v1673_v37 = vadd.f32 %v1672_v45, %v1671_v10 }
 0x1a8   : > { %v1640_v26 = vrot.slane %v1639_v13, 1  ;;  %v1649_v1 = vrot.slane %v1648_v38, 1  ;;  %v1682_v17 = vmul.f32 %v5665_v3, %v5653_v14  ;;  %v1683_v33 = vmul.f32 %v5668_v4, %v5653_v14 }
 0x1a9   : > { %v1658_v50 = vrot.slane %v1657_v8, 1  ;;  %v1666_v48 = vadd.f32 %v1665_v18, %v1664_v35  ;;  %v1674_v7 = vrot.slane %v1673_v37, 2  ;;  %v1684_v2 = vmul.f32 %v5671_v22, %v5653_v14 }
 0x1aa   : > { %v1641_v25 = vadd.f32 %v1640_v26, %v1639_v13  ;;  %v1650_v40 = vadd.f32 %v1649_v1, %v1648_v38  ;;  %v1685_v19 = vmul.f32 %v5674_v30, %v5653_v14  ;;  %v1686_v59 = vmul.f32 %v5677_v51, %v5653_v14 }
 0x1ab   : > { %v1659_v16 = vadd.f32 %v1658_v50, %v1657_v8  ;;  %v1667_v55 = vrot.slane %v1666_v48, 1  ;;  %v1675_v20 = vadd.f32 %v1674_v7, %v1673_v37  ;;  %v1687_v56 = vmul.f32 %v5680_v6, %v5653_v14 }
 0x1ac   : > { %v1688_v24 = vmul.f32 %v5683_v41, %v5653_v14  ;;  %v1689_v36 = vmul.f32 %v5686_v63, %v5653_v14  ;;  %v1690_v62 = vmul.f32 %v5689_v52, %v5653_v14  ;;  %v1691_v57 = vmul.f32 %v5692_v39, %v5653_v14  ;;  %v8433_v52 = vld [vmem:[#allocation62_spill] sm:$0xff]  ;;  %v8434_v63 = vld [vmem:[#allocation63_spill] sm:$0xff] }
 0x1ad   : > { %v1668_v10 = vadd.f32 %v1667_v55, %v1666_v48  ;;  %v1676_v53 = vrot.slane %v1675_v20, 1  ;;  %v1692_v21 = vadd.f32 %v1678_v12, %v5790_v9  ;;  %v1693_v5 = vadd.f32 %v1679_v27, %v5792_v61  ;;  %v8426_v12 = vld [vmem:[#allocation19_spill] sm:$0xff] }
 0x1ae   : > { %v1694_v29 = vadd.f32 %v1680_v31, %v5794_v47  ;;  %v1695_v35 = vadd.f32 %v1681_v44, %v5796_v28  ;;  %v1696_v45 = vadd.f32 %v1682_v17, %v5798_v58  ;;  %v1697_v13 = vadd.f32 %v1683_v33, %v5812_v15  ;;  %v8429_v33 = vld [vmem:[#allocation59_spill] sm:$0xff]  ;;  %v8431_v44 = vld [vmem:[#allocation60_spill] sm:$0xff]  ;;  %v8432_v31 = vld [vmem:[#allocation61_spill] sm:$0xff] }
 0x1af   : > { %v1677_v38 = vadd.f32 %v1676_v53, %v1675_v20  ;;  %v1698_v8 = vadd.f32 %v1684_v2, %v5818_v42  ;;  %v1699_v18 = vadd.f32 %v1685_v19, %v1623_v60  ;;  %v1700_v37 = vadd.f32 %v1686_v59, %v1632_v32 }
 0x1b0   : > { %v1701_v26 = vadd.f32 %v1687_v56, %v1641_v25  ;;  %v1702_v1 = vadd.f32 %v1688_v24, %v1650_v40  ;;  %v1703_v50 = vadd.f32 %v1689_v36, %v1659_v16  ;;  %v1704_v48 = vadd.f32 %v1690_v62, %v1668_v10 }
 0x1b1   : > { %v1705_v9 = vadd.f32 %v1691_v57, %v1677_v38  ;;  %v1706_v61 = vmul.f32 %v8426_v12, %v1692_v21  ;;  %v8427_v47 = vsub.f32 1.0, %v8426_v12 }
 0x1b3   : > { %v1708_v27 = vadd.f32 %v8427_v47, %v1706_v61 }
 0x1b5   : > { %3857 = vlog2.f32 %v1708_v27 }
 0x1b6   : > { %3859 = vrcp.f32 %v1708_v27 }
 0x1c2   : > { %v3858_v28 = vpop.eup %3857 }
 0x1c3   : > { %v3860_v58 = vpop.eup %3859  ;;  %v1710_v15 = vmul.f32 0.6931472, %v3858_v28 }
 0x1c4   : > { %v5867_v42 = vmul.f32 %v3860_v58, %v1693_v5  ;;  %v5869_v60 = vmul.f32 %v3860_v58, %v1694_v29  ;;  %v5871_v32 = vmul.f32 %v3860_v58, %v1695_v35  ;;  %v5873_v17 = vmul.f32 %v3860_v58, %v1696_v45 }
 0x1c5   : > { %v5876_v7 = vadd.f32 %v1710_v15, %v8429_v33  ;;  %v5878_v2 = vmul.f32 %v3860_v58, %v1697_v13  ;;  %v5880_v25 = vmul.f32 %v3860_v58, %v1698_v8  ;;  %v5882_v40 = vmul.f32 %v3860_v58, %v1699_v18 }
 0x1c6   : > { %v5884_v19 = vmul.f32 %v3860_v58, %v1700_v37  ;;  %v5886_v59 = vmul.f32 %v3860_v58, %v1701_v26  ;;  %v5888_v16 = vmul.f32 %v3860_v58, %v1702_v1  ;;  %v5890_v55 = vmul.f32 %v3860_v58, %v1703_v50 }
 0x1c7   : > { %8430 = vst [vmem:[#allocation40_spill] sm:$0xff] %v5876_v7  ;;  %v5892_v20 = vmul.f32 %v3860_v58, %v1704_v48  ;;  %v5894_v56 = vmul.f32 %v3860_v58, %v1705_v9  ;;  %v1726_v24 = vmul.f32 %v5867_v42, %v5541_v11  ;;  %v1727_v36 = vmul.f32 %v5867_v42, %v5544_v43 }
 0x1c8   : > { %v1728_v62 = vmul.f32 %v5869_v60, %v5541_v11  ;;  %v1729_v57 = vmul.f32 %v5869_v60, %v5544_v43  ;;  %v1730_v10 = vmul.f32 %v5871_v32, %v5541_v11  ;;  %v1731_v53 = vmul.f32 %v5871_v32, %v5544_v43 }
 0x1c9   : > { %v1732_v21 = vmul.f32 %v5873_v17, %v5541_v11  ;;  %v1733_v5 = vmul.f32 %v5873_v17, %v5544_v43  ;;  %v1734_v29 = vmul.f32 %v5878_v2, %v5541_v11  ;;  %v1735_v35 = vmul.f32 %v5878_v2, %v5544_v43 }
 0x1ca   : > { %v1736_v45 = vmul.f32 %v5880_v25, %v5541_v11  ;;  %v1737_v13 = vmul.f32 %v5880_v25, %v5544_v43  ;;  %v1738_v38 = vmul.f32 %v5882_v40, %v5541_v11  ;;  %v1739_v8 = vmul.f32 %v5882_v40, %v5544_v43 }
 0x1cb   : > { %v1740_v18 = vmul.f32 %v5884_v19, %v5541_v11  ;;  %v1741_v37 = vmul.f32 %v5884_v19, %v5544_v43  ;;  %v1742_v26 = vmul.f32 %v5886_v59, %v5541_v11  ;;  %v1743_v1 = vmul.f32 %v5886_v59, %v5544_v43 }
 0x1cc   : > { %v1744_v50 = vmul.f32 %v5888_v16, %v5541_v11  ;;  %v1745_v48 = vmul.f32 %v5888_v16, %v5544_v43  ;;  %v1746_v9 = vmul.f32 %v5890_v55, %v5541_v11  ;;  %v1747_v12 = vmul.f32 %v5890_v55, %v5544_v43 }
 0x1cd   : > { %v1748_v61 = vmul.f32 %v5892_v20, %v5541_v11  ;;  %v1749_v47 = vmul.f32 %v5892_v20, %v5544_v43  ;;  %v1750_v27 = vmul.f32 %v5894_v56, %v5541_v11  ;;  %v1751_v28 = vmul.f32 %v5894_v56, %v5544_v43 }
 0x1ce   : > { %v5949_v58 = vsub.f32 %v5547_v23, %v1726_v24  ;;  %v5952_v15 = vsub.f32 %v5550_v54, %v1727_v36  ;;  %v5955_v33 = vsub.f32 %v5553_v46, %v1728_v62  ;;  %v5958_v7 = vsub.f32 %v8431_v44, %v1729_v57  ;;  %v8435_v23 = vld [vmem:[#allocation64_spill] sm:$0xff]  ;;  %v8436_v54 = vld [vmem:[#allocation65_spill] sm:$0xff]  ;;  %v8437_v46 = vld [vmem:[#allocation58_spill] sm:$0xff] }
 0x1cf   : > { %v5961_v39 = vsub.f32 %v8432_v31, %v1730_v10  ;;  %v5964_v11 = vsub.f32 %v8433_v52, %v1731_v53  ;;  %v5967_v43 = vsub.f32 %v8434_v63, %v1732_v21  ;;  %v5970_v24 = vsub.f32 %v8435_v23, %v1733_v5  ;;  %v8439_v44 = vld [vmem:[#allocation47_spill] sm:$0xff]  ;;  %v8441_v31 = vld [vmem:[#allocation48_spill] sm:$0xff]  ;;  %v8447_v5 = vld [vmem:[#allocation25_spill] sm:$0xff] }
 0x1d0   : > { %v5973_v36 = vsub.f32 %v8436_v54, %v1734_v29  ;;  %v5976_v62 = vsub.f32 %v8437_v46, %v1735_v35  ;;  %v5979_v57 = vsub.f32 %v8439_v44, %v1736_v45  ;;  %v5982_v10 = vsub.f32 %v8441_v31, %v1737_v13  ;;  %v8443_v52 = vld [vmem:[#allocation23_spill] sm:$0xff]  ;;  %v8445_v63 = vld [vmem:[#allocation24_spill] sm:$0xff]  ;;  %v8449_v29 = vld [vmem:[#allocation26_spill] sm:$0xff] }
 0x1d1   : > { %v5985_v53 = vsub.f32 %v8443_v52, %v1738_v38  ;;  %v5988_v21 = vsub.f32 %v8445_v63, %v1739_v8  ;;  %v5991_v23 = vsub.f32 %v8447_v5, %v1740_v18  ;;  %v5994_v54 = vsub.f32 %v8449_v29, %v1741_v37  ;;  %v8451_v35 = vld [vmem:[#allocation27_spill] sm:$0xff]  ;;  %v8453_v45 = vld [vmem:[#allocation28_spill] sm:$0xff]  ;;  %v8455_v13 = vld [vmem:[#allocation29_spill] sm:$0xff] }
 0x1d2   : > { %8438 = vst [vmem:[#allocation41_spill] sm:$0xff] %v5976_v62  ;;  %8440 = vst [vmem:[#allocation42_spill] sm:$0xff] %v5979_v57  ;;  %v5997_v46 = vsub.f32 %v8451_v35, %v1742_v26  ;;  %v6000_v44 = vsub.f32 %v8453_v45, %v1743_v1  ;;  %v6003_v31 = vsub.f32 %v8455_v13, %v1744_v50  ;;  %v8457_v38 = vld [vmem:[#allocation30_spill] sm:$0xff]  ;;  %v8459_v8 = vld [vmem:[#allocation31_spill] sm:$0xff] }
 0x1d3   : > { %8442 = vst [vmem:[#allocation43_spill] sm:$0xff] %v5982_v10  ;;  %8444 = vst [vmem:[#allocation44_spill] sm:$0xff] %v5985_v53  ;;  %v6006_v52 = vsub.f32 %v8457_v38, %v1745_v48  ;;  %v6009_v63 = vsub.f32 %v8459_v8, %v1746_v9  ;;  %v8461_v18 = vld [vmem:[#allocation32_spill] sm:$0xff]  ;;  %v8463_v37 = vld [vmem:[#allocation33_spill] sm:$0xff]  ;;  %v1778_v48 = vmul.f32 %v5867_v42, %v5653_v14 }
 0x1d4   : > { %8446 = vst [vmem:[#allocation45_spill] sm:$0xff] %v5988_v21  ;;  %8448 = vst [vmem:[#allocation46_spill] sm:$0xff] %v5991_v23  ;;  %v6012_v5 = vsub.f32 %v8461_v18, %v1747_v12  ;;  %v6015_v29 = vsub.f32 %v8463_v37, %v1748_v61  ;;  %v8465_v26 = vld [vmem:[#allocation34_spill] sm:$0xff]  ;;  %v8467_v1 = vld [vmem:[#allocation35_spill] sm:$0xff]  ;;  %v1779_v9 = vmul.f32 %v5869_v60, %v5653_v14 }
 0x1d5   : > { %8450 = vst [vmem:[#allocation49_spill] sm:$0xff] %v5994_v54  ;;  %8452 = vst [vmem:[#allocation50_spill] sm:$0xff] %v5997_v46  ;;  %v6018_v35 = vsub.f32 %v8465_v26, %v1749_v47  ;;  %v6021_v45 = vsub.f32 %v8467_v1, %v1750_v27  ;;  %v8469_v50 = vld [vmem:[#allocation36_spill] sm:$0xff]  ;;  %v1780_v12 = vmul.f32 %v5871_v32, %v5653_v14 }
 0x1d6   : > { %8454 = vst [vmem:[#allocation51_spill] sm:$0xff] %v6000_v44  ;;  %8456 = vst [vmem:[#allocation52_spill] sm:$0xff] %v6003_v31  ;;  %v6024_v13 = vsub.f32 %v8469_v50, %v1751_v28  ;;  %v1781_v61 = vmul.f32 %v5873_v17, %v5653_v14  ;;  %v1782_v47 = vmul.f32 %v5878_v2, %v5653_v14 }
 0x1d7   : > { %8458 = vst [vmem:[#allocation53_spill] sm:$0xff] %v6006_v52  ;;  %8460 = vst [vmem:[#allocation54_spill] sm:$0xff] %v6009_v63  ;;  %v1783_v27 = vmul.f32 %v5880_v25, %v5653_v14  ;;  %v1784_v28 = vmul.f32 %v5882_v40, %v5653_v14  ;;  %v1785_v42 = vmul.f32 %v5884_v19, %v5653_v14 }
 0x1d8   : > { %8462 = vst [vmem:[#allocation55_spill] sm:$0xff] %v6012_v5  ;;  %8464 = vst [vmem:[#allocation56_spill] sm:$0xff] %v6015_v29  ;;  %v1786_v60 = vmul.f32 %v5886_v59, %v5653_v14  ;;  %v1787_v32 = vmul.f32 %v5888_v16, %v5653_v14  ;;  %v1788_v17 = vmul.f32 %v5890_v55, %v5653_v14 }
 0x1d9   : > { %8466 = vst [vmem:[#allocation57_spill] sm:$0xff] %v6018_v35  ;;  %8468 = vst [vmem:[#allocation19_spill] sm:$0xff] %v6021_v45  ;;  %v1789_v2 = vmul.f32 %v5892_v20, %v5653_v14  ;;  %v1790_v25 = vmul.f32 %v5894_v56, %v5653_v14  ;;  %v6053_v40 = vsub.f32 %v5656_v34, %v1778_v48 }
 0x1da   : > { %8470 = vst [vmem:[#allocation59_spill] sm:$0xff] %v6024_v13  ;;  %v6056_v19 = vsub.f32 %v5659_v49, %v1779_v9  ;;  %v6059_v59 = vsub.f32 %v5662_v0, %v1780_v12  ;;  %v6062_v16 = vsub.f32 %v5665_v3, %v1781_v61  ;;  %v6065_v55 = vsub.f32 %v5668_v4, %v1782_v47  ;;  %v8471_v3 = vld [vmem:[#allocation37_spill] sm:$0xff]  ;;  %v8472_v4 = vld [vmem:[#allocation38_spill] sm:$0xff] }
 0x1db   : > { %v6068_v20 = vsub.f32 %v5671_v22, %v1783_v27  ;;  %v6071_v14 = vsub.f32 %v5674_v30, %v1784_v28  ;;  %v6074_v34 = vsub.f32 %v5677_v51, %v1785_v42  ;;  %v6077_v49 = vsub.f32 %v5680_v6, %v1786_v60  ;;  %v8473_v22 = vld [vmem:[#allocation39_spill] sm:$0xff] }
 0x1dc   : > { %v6080_v0 = vsub.f32 %v5683_v41, %v1787_v32  ;;  %v6083_v56 = vsub.f32 %v8471_v3, %v1788_v17  ;;  %v6086_v38 = vsub.f32 %v8472_v4, %v1789_v2  ;;  %v6089_v8 = vsub.f32 %v8473_v22, %v1790_v25 }
 0x1dd   : > { %v1804_v30 = vmul.f32 %v5949_v58, %v5949_v58  ;;  %v1805_v51 = vmul.f32 %v5952_v15, %v5952_v15  ;;  %v1806_v6 = vmul.f32 %v5955_v33, %v5949_v58  ;;  %v1807_v41 = vmul.f32 %v5958_v7, %v5952_v15 }
 0x1de   : > { %v1808_v18 = vmul.f32 %v5961_v39, %v5949_v58  ;;  %v1809_v37 = vmul.f32 %v5964_v11, %v5952_v15  ;;  %v1810_v26 = vmul.f32 %v5967_v43, %v5949_v58  ;;  %v1811_v1 = vmul.f32 %v5970_v24, %v5952_v15 }
 0x1df   : > { %v1812_v50 = vmul.f32 %v5973_v36, %v5949_v58  ;;  %v1813_v48 = vmul.f32 %v5976_v62, %v5952_v15  ;;  %v1814_v9 = vmul.f32 %v5979_v57, %v5949_v58  ;;  %v1815_v12 = vmul.f32 %v5982_v10, %v5952_v15 }
 0x1e0   : > { %v1816_v61 = vmul.f32 %v5985_v53, %v5949_v58  ;;  %v1817_v47 = vmul.f32 %v5988_v21, %v5952_v15  ;;  %v1818_v27 = vmul.f32 %v5991_v23, %v5949_v58  ;;  %v1819_v28 = vmul.f32 %v5994_v54, %v5952_v15 }
 0x1e1   : > { %v6125_v42 = vmul.f32 %v5997_v46, %v5949_v58  ;;  %v6129_v60 = vmul.f32 %v6000_v44, %v5952_v15  ;;  %v6133_v32 = vmul.f32 %v6003_v31, %v5949_v58  ;;  %v6137_v17 = vmul.f32 %v6006_v52, %v5952_v15 }
 0x1e2   : > { %v6141_v2 = vmul.f32 %v6009_v63, %v5949_v58  ;;  %v6145_v25 = vmul.f32 %v6012_v5, %v5952_v15  ;;  %v6149_v3 = vmul.f32 %v6015_v29, %v5949_v58  ;;  %v6153_v4 = vmul.f32 %v6018_v35, %v5952_v15 }
 0x1e3   : > { %v6157_v22 = vmul.f32 %v6021_v45, %v5949_v58  ;;  %v6161_v63 = vmul.f32 %v6024_v13, %v5952_v15  ;;  %v1830_v52 = vsel %vm210_vm0, %v1804_v30, 0.0  ;;  %v1831_v5 = vsel %vm210_vm0, %v1805_v51, 0.0 }
 0x1e4   : > { %v1832_v31 = vadd.f32 %v1831_v5, %v1830_v52  ;;  %v1839_v29 = vsel %vm210_vm0, %v1806_v6, 0.0  ;;  %v1840_v44 = vsel %vm210_vm0, %v1807_v41, 0.0  ;;  %v1848_v35 = vsel %vm210_vm0, %v1808_v18, 0.0 }
 0x1e5   : > { %v1841_v46 = vadd.f32 %v1840_v44, %v1839_v29  ;;  %v1849_v54 = vsel %vm210_vm0, %v1809_v37, 0.0  ;;  %v1857_v45 = vsel %vm210_vm0, %v1810_v26, 0.0  ;;  %v1858_v23 = vsel %vm210_vm0, %v1811_v1, 0.0 }
 0x1e6   : > { %v1833_v13 = vrot.slane %v1832_v31, 4  ;;  %v1850_v21 = vadd.f32 %v1849_v54, %v1848_v35  ;;  %v1859_v53 = vadd.f32 %v1858_v23, %v1857_v45  ;;  %v1866_v30 = vsel %vm210_vm0, %v1812_v50, 0.0 }
 0x1e7   : > { %v1842_v51 = vrot.slane %v1841_v46, 4  ;;  %v1867_v52 = vsel %vm210_vm0, %v1813_v48, 0.0  ;;  %v1875_v5 = vsel %vm210_vm0, %v1814_v9, 0.0  ;;  %v1876_v6 = vsel %vm210_vm0, %v1815_v12, 0.0 }
 0x1e8   : > { %v1834_v41 = vadd.f32 %v1833_v13, %v1832_v31  ;;  %v1851_v44 = vrot.slane %v1850_v21, 4  ;;  %v1860_v29 = vrot.slane %v1859_v53, 4  ;;  %v1868_v18 = vadd.f32 %v1867_v52, %v1866_v30 }
 0x1e9   : > { %v1843_v37 = vadd.f32 %v1842_v51, %v1841_v46  ;;  %v1877_v26 = vadd.f32 %v1876_v6, %v1875_v5  ;;  %v1884_v1 = vsel %vm210_vm0, %v1816_v61, 0.0  ;;  %v1885_v54 = vsel %vm210_vm0, %v1817_v47, 0.0 }
 0x1ea   : > { %v1835_v23 = vrot.slane %v1834_v41, 2  ;;  %v1852_v35 = vadd.f32 %v1851_v44, %v1850_v21  ;;  %v1861_v45 = vadd.f32 %v1860_v29, %v1859_v53  ;;  %v1869_v50 = vrot.slane %v1868_v18, 4 }
 0x1eb   : > { %v1844_v10 = vrot.slane %v1843_v37, 2  ;;  %v1878_v48 = vrot.slane %v1877_v26, 4  ;;  %v1886_v57 = vadd.f32 %v1885_v54, %v1884_v1  ;;  %v1893_v9 = vsel %vm210_vm0, %v1818_v27, 0.0 }
 0x1ec   : > { %v1836_v12 = vadd.f32 %v1835_v23, %v1834_v41  ;;  %v1853_v31 = vrot.slane %v1852_v35, 2  ;;  %v1862_v13 = vrot.slane %v1861_v45, 2  ;;  %v1870_v62 = vadd.f32 %v1869_v50, %v1868_v18 }
 0x1ed   : > { %v1845_v30 = vadd.f32 %v1844_v10, %v1843_v37  ;;  %v1879_v46 = vadd.f32 %v1878_v48, %v1877_v26  ;;  %v1887_v51 = vrot.slane %v1886_v57, 4  ;;  %v1894_v61 = vsel %vm210_vm0, %v1819_v28, 0.0 }
 0x1ee   : > { %v1837_v52 = vrot.slane %v1836_v12, 1  ;;  %v1854_v47 = vadd.f32 %v1853_v31, %v1852_v35  ;;  %v1863_v5 = vadd.f32 %v1862_v13, %v1861_v45  ;;  %v1871_v21 = vrot.slane %v1870_v62, 2 }
 0x1ef   : > { %v1846_v53 = vrot.slane %v1845_v30, 1  ;;  %v1880_v6 = vrot.slane %v1879_v46, 2  ;;  %v1888_v44 = vadd.f32 %v1887_v51, %v1886_v57  ;;  %v1895_v29 = vadd.f32 %v1894_v61, %v1893_v9 }
 0x1f0   : > { %v6179_v1 = vadd.f32 %v1837_v52, %v1836_v12  ;;  %v1855_v27 = vrot.slane %v1854_v47, 1  ;;  %v1864_v41 = vrot.slane %v1863_v5, 1  ;;  %v1872_v54 = vadd.f32 %v1871_v21, %v1870_v62 }
 0x1f1   : > { %v6181_v23 = vadd.f32 %v1846_v53, %v1845_v30  ;;  %v1881_v10 = vadd.f32 %v1880_v6, %v1879_v46  ;;  %v1889_v18 = vrot.slane %v1888_v44, 2  ;;  %v1896_v37 = vrot.slane %v1895_v29, 4 }
 0x1f2   : > { %v6183_v26 = vadd.f32 %v1855_v27, %v1854_v47  ;;  %v6185_v28 = vadd.f32 %v1864_v41, %v1863_v5  ;;  %v1873_v35 = vrot.slane %v1872_v54, 1  ;;  %v1902_v45 = vsel %vm210_vm0, %v6125_v42, 0.0 }
 0x1f3   : > { %v1882_v57 = vrot.slane %v1881_v10, 1  ;;  %v1890_v50 = vadd.f32 %v1889_v18, %v1888_v44  ;;  %v1897_v48 = vadd.f32 %v1896_v37, %v1895_v29  ;;  %v1903_v9 = vsel %vm210_vm0, %v6129_v60, 0.0 }
 0x1f4   : > { %v6191_v62 = vadd.f32 %v1873_v35, %v1872_v54  ;;  %v1904_v12 = vadd.f32 %v1903_v9, %v1902_v45  ;;  %v1911_v31 = vsel %vm210_vm0, %v6133_v32, 0.0  ;;  %v1912_v13 = vsel %vm210_vm0, %v6137_v17, 0.0 }
 0x1f5   : > { %v6197_v30 = vadd.f32 %v1882_v57, %v1881_v10  ;;  %v1891_v46 = vrot.slane %v1890_v50, 1  ;;  %v1898_v51 = vrot.slane %v1897_v48, 2  ;;  %v1913_v42 = vadd.f32 %v1912_v13, %v1911_v31 }
 0x1f6   : > { %v1905_v61 = vrot.slane %v1904_v12, 4  ;;  %v1920_v52 = vsel %vm210_vm0, %v6141_v2, 0.0  ;;  %v1921_v60 = vsel %vm210_vm0, %v6145_v25, 0.0  ;;  %v1929_v47 = vsel %vm210_vm0, %v6149_v3, 0.0 }
 0x1f7   : > { %v1892_v5 = vadd.f32 %v1891_v46, %v1890_v50  ;;  %v1899_v32 = vadd.f32 %v1898_v51, %v1897_v48  ;;  %v1914_v21 = vrot.slane %v1913_v42, 4  ;;  %v1922_v53 = vadd.f32 %v1921_v60, %v1920_v52 }
 0x1f8   : > { %v1906_v17 = vadd.f32 %v1905_v61, %v1904_v12  ;;  %v1930_v6 = vsel %vm210_vm0, %v6153_v4, 0.0  ;;  %v1938_v44 = vsel %vm210_vm0, %v6157_v22, 0.0  ;;  %v1939_v2 = vsel %vm210_vm0, %v6161_v63, 0.0 }
 0x1f9   : > { %v1900_v29 = vrot.slane %v1899_v32, 1  ;;  %v1915_v27 = vadd.f32 %v1914_v21, %v1913_v42  ;;  %v1923_v25 = vrot.slane %v1922_v53, 4  ;;  %v1931_v41 = vadd.f32 %v1930_v6, %v1929_v47 }
 0x1fa   : > { %v1907_v54 = vrot.slane %v1906_v17, 2  ;;  %v1940_v3 = vadd.f32 %v1939_v2, %v1938_v44  ;;  %v1947_v10 = vmul.f32 %v6053_v40, %v6053_v40  ;;  %v1948_v18 = vmul.f32 %v6056_v19, %v6053_v40 }
 0x1fb   : > { %v1901_v37 = vadd.f32 %v1900_v29, %v1899_v32  ;;  %v1916_v4 = vrot.slane %v1915_v27, 2  ;;  %v1924_v35 = vadd.f32 %v1923_v25, %v1922_v53  ;;  %v1932_v45 = vrot.slane %v1931_v41, 4 }
 0x1fc   : > { %v1908_v22 = vadd.f32 %v1907_v54, %v1906_v17  ;;  %v1941_v57 = vrot.slane %v1940_v3, 4  ;;  %v1949_v63 = vmul.f32 %v6059_v59, %v6053_v40  ;;  %v1950_v50 = vmul.f32 %v6062_v16, %v6053_v40 }
 0x1fd   : > { %v1917_v48 = vadd.f32 %v1916_v4, %v1915_v27  ;;  %v1925_v9 = vrot.slane %v1924_v35, 2  ;;  %v1933_v12 = vadd.f32 %v1932_v45, %v1931_v41  ;;  %v1951_v31 = vmul.f32 %v6065_v55, %v6053_v40 }
 0x1fe   : > { %v1909_v13 = vrot.slane %v1908_v22, 1  ;;  %v1942_v46 = vadd.f32 %v1941_v57, %v1940_v3  ;;  %v1952_v51 = vmul.f32 %v6068_v20, %v6053_v40  ;;  %v1953_v42 = vmul.f32 %v6071_v14, %v6053_v40 }
 0x1ff   : > { %v1918_v61 = vrot.slane %v1917_v48, 1  ;;  %v1926_v52 = vadd.f32 %v1925_v9, %v1924_v35  ;;  %v1934_v60 = vrot.slane %v1933_v12, 2  ;;  %v1954_v47 = vmul.f32 %v6074_v34, %v6053_v40 }
 0x200   : > { %v1910_v32 = vadd.f32 %v1909_v13, %v1908_v22  ;;  %v1943_v21 = vrot.slane %v1942_v46, 2  ;;  %v1955_v53 = vmul.f32 %v6077_v49, %v6053_v40  ;;  %v1956_v17 = vmul.f32 %v6080_v0, %v6053_v40 }
 0x201   : > { %v1919_v6 = vadd.f32 %v1918_v61, %v1917_v48  ;;  %v1927_v44 = vrot.slane %v1926_v52, 1  ;;  %v1935_v2 = vadd.f32 %v1934_v60, %v1933_v12  ;;  %v1957_v29 = vmul.f32 %v6083_v56, %v6053_v40 }
 0x202   : > { %v1944_v27 = vadd.f32 %v1943_v21, %v1942_v46  ;;  %v1958_v25 = vmul.f32 %v6086_v38, %v6053_v40  ;;  %v1959_v41 = vmul.f32 %v6089_v8, %v6053_v40  ;;  %v1960_v54 = vadd.f32 %v1947_v10, %v6179_v1  ;;  %v8474_v10 = vld [vmem:[#allocation8_spill] sm:$0xff] }
 0x203   : > { %v1928_v3 = vadd.f32 %v1927_v44, %v1926_v52  ;;  %v1936_v4 = vrot.slane %v1935_v2, 1  ;;  %v1961_v35 = vadd.f32 %v1948_v18, %v6181_v23  ;;  %v1962_v45 = vadd.f32 %v1949_v63, %v6183_v26 }
 0x204   : > { %v1945_v22 = vrot.slane %v1944_v27, 1  ;;  %v1963_v57 = vadd.f32 %v1950_v50, %v6185_v28  ;;  %v1964_v48 = vadd.f32 %v1951_v31, %v6191_v62  ;;  %v1965_v9 = vadd.f32 %v1952_v51, %v6197_v30 }
 0x205   : > { %v1937_v12 = vadd.f32 %v1936_v4, %v1935_v2  ;;  %v1966_v13 = vadd.f32 %v1953_v42, %v1892_v5  ;;  %v1967_v46 = vadd.f32 %v1954_v47, %v1901_v37  ;;  %v1968_v61 = vadd.f32 %v1955_v53, %v1910_v32  ;;  %v8477_v42 = vld [vmem:[#allocation40_spill] sm:$0xff] }
 0x206   : > { %v1946_v60 = vadd.f32 %v1945_v22, %v1944_v27  ;;  %v1969_v21 = vadd.f32 %v1956_v17, %v1919_v6  ;;  %v1970_v1 = vadd.f32 %v1957_v29, %v1928_v3  ;;  %v1973_v52 = vmul.f32 %v8474_v10, %v1960_v54 }
 0x207   : > { %v1971_v44 = vadd.f32 %v1958_v25, %v1937_v12  ;;  %v8475_v26 = vsub.f32 1.0, %v8474_v10 }
 0x208   : > { %v1972_v23 = vadd.f32 %v1959_v41, %v1946_v60 }
 0x209   : > { %v1975_v18 = vadd.f32 %v8475_v26, %v1973_v52 }
 0x20b   : > { %3861 = vlog2.f32 %v1975_v18 }
 0x20c   : > { %3863 = vrcp.f32 %v1975_v18 }
 0x218   : > { %v3862_v28 = vpop.eup %3861 }
 0x219   : > { %v3864_v62 = vpop.eup %3863  ;;  %v1977_v63 = vmul.f32 0.6931472, %v3862_v28 }
 0x21a   : > { %v1980_v5 = vmul.f32 %v3864_v62, %v1961_v35  ;;  %v1981_v37 = vmul.f32 %v3864_v62, %v1962_v45  ;;  %v1982_v31 = vmul.f32 %v3864_v62, %v1963_v57  ;;  %v1983_v51 = vmul.f32 %v3864_v62, %v1964_v48 }
 0x21b   : > { %v6248_v47 = vadd.f32 %v1977_v63, %v8477_v42  ;;  %v1984_v32 = vmul.f32 %v3864_v62, %v1965_v9  ;;  %v1985_v53 = vmul.f32 %v3864_v62, %v1966_v13  ;;  %v1986_v17 = vmul.f32 %v3864_v62, %v1967_v46 }
 0x21c   : > { %v1987_v6 = vmul.f32 %v3864_v62, %v1968_v61  ;;  %v1988_v2 = vmul.f32 %v3864_v62, %v1969_v21  ;;  %v1989_v29 = vmul.f32 %v3864_v62, %v1970_v1  ;;  %v1990_v27 = vmul.f32 %v3864_v62, %v1971_v44 }
 0x21d   : > { %8478 = vst [vmem:[#allocation60_spill] sm:$0xff] %v6248_v47  ;;  %v1991_v25 = vmul.f32 %v3864_v62, %v1972_v23  ;;  %v1992_v41 = vmul.f32 %v1980_v5, %v5949_v58  ;;  %v1993_v54 = vmul.f32 %v1980_v5, %v5952_v15  ;;  %v1994_v3 = vmul.f32 %v1981_v37, %v5949_v58 }
 0x21e   : > { %v1995_v4 = vmul.f32 %v1981_v37, %v5952_v15  ;;  %v1996_v35 = vmul.f32 %v1982_v31, %v5949_v58  ;;  %v1997_v45 = vmul.f32 %v1982_v31, %v5952_v15  ;;  %v1998_v22 = vmul.f32 %v1983_v51, %v5949_v58 }
 0x21f   : > { %v1999_v57 = vmul.f32 %v1983_v51, %v5952_v15  ;;  %v2000_v48 = vmul.f32 %v1984_v32, %v5949_v58  ;;  %v2001_v9 = vmul.f32 %v1984_v32, %v5952_v15  ;;  %v2002_v12 = vmul.f32 %v1985_v53, %v5949_v58 }
 0x220   : > { %v2003_v13 = vmul.f32 %v1985_v53, %v5952_v15  ;;  %v2004_v46 = vmul.f32 %v1986_v17, %v5949_v58  ;;  %v2005_v61 = vmul.f32 %v1986_v17, %v5952_v15  ;;  %v2006_v60 = vmul.f32 %v1987_v6, %v5949_v58 }
 0x221   : > { %v2007_v21 = vmul.f32 %v1987_v6, %v5952_v15  ;;  %v2008_v1 = vmul.f32 %v1988_v2, %v5949_v58  ;;  %v2009_v10 = vmul.f32 %v1988_v2, %v5952_v15  ;;  %v2010_v52 = vmul.f32 %v1989_v29, %v5949_v58 }
 0x222   : > { %v2011_v44 = vmul.f32 %v1989_v29, %v5952_v15  ;;  %v2012_v23 = vmul.f32 %v1990_v27, %v5949_v58  ;;  %v2013_v26 = vmul.f32 %v1990_v27, %v5952_v15  ;;  %v2014_v18 = vmul.f32 %v1991_v25, %v5949_v58 }
 0x223   : > { %v2015_v28 = vmul.f32 %v1991_v25, %v5952_v15  ;;  %v6275_v62 = vsub.f32 %v5955_v33, %v1992_v41  ;;  %v6278_v63 = vsub.f32 %v5958_v7, %v1993_v54  ;;  %v6281_v42 = vsub.f32 %v5961_v39, %v1994_v3  ;;  %v8479_v15 = vld [vmem:[#allocation41_spill] sm:$0xff]  ;;  %v8480_v7 = vld [vmem:[#allocation42_spill] sm:$0xff]  ;;  %v8481_v39 = vld [vmem:[#allocation43_spill] sm:$0xff] }
 0x224   : > { %v6284_v50 = vsub.f32 %v5964_v11, %v1995_v4  ;;  %v6287_v47 = vsub.f32 %v5967_v43, %v1996_v35  ;;  %v6290_v30 = vsub.f32 %v5970_v24, %v1997_v45  ;;  %v6293_v58 = vsub.f32 %v5973_v36, %v1998_v22  ;;  %v8482_v11 = vld [vmem:[#allocation44_spill] sm:$0xff]  ;;  %v8483_v43 = vld [vmem:[#allocation45_spill] sm:$0xff]  ;;  %v8485_v24 = vld [vmem:[#allocation46_spill] sm:$0xff] }
 0x225   : > { %v6296_v33 = vsub.f32 %v8479_v15, %v1999_v57  ;;  %v6299_v41 = vsub.f32 %v8480_v7, %v2000_v48  ;;  %v6302_v54 = vsub.f32 %v8481_v39, %v2001_v9  ;;  %v6305_v3 = vsub.f32 %v8482_v11, %v2002_v12  ;;  %v8487_v36 = vld [vmem:[#allocation49_spill] sm:$0xff]  ;;  %v8489_v22 = vld [vmem:[#allocation50_spill] sm:$0xff]  ;;  %v8491_v48 = vld [vmem:[#allocation51_spill] sm:$0xff] }
 0x226   : > { %v6308_v4 = vsub.f32 %v8483_v43, %v2003_v13  ;;  %v6311_v35 = vsub.f32 %v8485_v24, %v2004_v46  ;;  %v6314_v45 = vsub.f32 %v8487_v36, %v2005_v61  ;;  %v6317_v57 = vsub.f32 %v8489_v22, %v2006_v60  ;;  %v8493_v9 = vld [vmem:[#allocation52_spill] sm:$0xff]  ;;  %v8495_v12 = vld [vmem:[#allocation53_spill] sm:$0xff]  ;;  %v8497_v13 = vld [vmem:[#allocation54_spill] sm:$0xff] }
 0x227   : > { %v6320_v15 = vsub.f32 %v8491_v48, %v2007_v21  ;;  %v6323_v7 = vsub.f32 %v8493_v9, %v2008_v1  ;;  %v6326_v39 = vsub.f32 %v8495_v12, %v2009_v10  ;;  %v6329_v11 = vsub.f32 %v8497_v13, %v2010_v52  ;;  %v8499_v46 = vld [vmem:[#allocation55_spill] sm:$0xff]  ;;  %v8501_v61 = vld [vmem:[#allocation56_spill] sm:$0xff]  ;;  %v8503_v60 = vld [vmem:[#allocation57_spill] sm:$0xff] }
 0x228   : > { %8484 = vst [vmem:[#allocation61_spill] sm:$0xff] %v6308_v4  ;;  %8486 = vst [vmem:[#allocation62_spill] sm:$0xff] %v6311_v35  ;;  %v6332_v43 = vsub.f32 %v8499_v46, %v2011_v44  ;;  %v6335_v24 = vsub.f32 %v8501_v61, %v2012_v23  ;;  %v6338_v36 = vsub.f32 %v8503_v60, %v2013_v26  ;;  %v8505_v21 = vld [vmem:[#allocation19_spill] sm:$0xff] }
 0x229   : > { %8488 = vst [vmem:[#allocation63_spill] sm:$0xff] %v6314_v45  ;;  %8490 = vst [vmem:[#allocation64_spill] sm:$0xff] %v6317_v57  ;;  %v6341_v22 = vsub.f32 %v8505_v21, %v2014_v18  ;;  %v8507_v1 = vld [vmem:[#allocation59_spill] sm:$0xff]  ;;  %v2040_v10 = vmul.f32 %v1980_v5, %v6053_v40  ;;  %v2041_v52 = vmul.f32 %v1981_v37, %v6053_v40 }
 0x22a   : > { %8492 = vst [vmem:[#allocation65_spill] sm:$0xff] %v6320_v15  ;;  %8494 = vst [vmem:[#allocation58_spill] sm:$0xff] %v6323_v7  ;;  %v6344_v48 = vsub.f32 %v8507_v1, %v2015_v28  ;;  %v2042_v9 = vmul.f32 %v1982_v31, %v6053_v40  ;;  %v2043_v44 = vmul.f32 %v1983_v51, %v6053_v40 }
 0x22b   : > { %8496 = vst [vmem:[#allocation47_spill] sm:$0xff] %v6326_v39  ;;  %8498 = vst [vmem:[#allocation48_spill] sm:$0xff] %v6329_v11  ;;  %v2044_v23 = vmul.f32 %v1984_v32, %v6053_v40  ;;  %v2045_v12 = vmul.f32 %v1985_v53, %v6053_v40  ;;  %v2046_v26 = vmul.f32 %v1986_v17, %v6053_v40 }
 0x22c   : > { %8500 = vst [vmem:[#allocation23_spill] sm:$0xff] %v6332_v43  ;;  %8502 = vst [vmem:[#allocation24_spill] sm:$0xff] %v6335_v24  ;;  %v2047_v18 = vmul.f32 %v1987_v6, %v6053_v40  ;;  %v2048_v13 = vmul.f32 %v1988_v2, %v6053_v40  ;;  %v2049_v28 = vmul.f32 %v1989_v29, %v6053_v40 }
 0x22d   : > { %8504 = vst [vmem:[#allocation25_spill] sm:$0xff] %v6338_v36  ;;  %8506 = vst [vmem:[#allocation26_spill] sm:$0xff] %v6341_v22  ;;  %v2050_v5 = vmul.f32 %v1990_v27, %v6053_v40  ;;  %v2051_v37 = vmul.f32 %v1991_v25, %v6053_v40  ;;  %v6359_v31 = vsub.f32 %v6056_v19, %v2040_v10 }
 0x22e   : > { %8508 = vst [vmem:[#allocation27_spill] sm:$0xff] %v6344_v48  ;;  %v6362_v51 = vsub.f32 %v6059_v59, %v2041_v52  ;;  %v6365_v32 = vsub.f32 %v6062_v16, %v2042_v9  ;;  %v6368_v53 = vsub.f32 %v6065_v55, %v2043_v44  ;;  %v6371_v17 = vsub.f32 %v6068_v20, %v2044_v23 }
 0x22f   : > { %v6374_v6 = vsub.f32 %v6071_v14, %v2045_v12  ;;  %v6377_v40 = vsub.f32 %v6074_v34, %v2046_v26  ;;  %v6380_v19 = vsub.f32 %v6077_v49, %v2047_v18  ;;  %v6383_v59 = vsub.f32 %v6080_v0, %v2048_v13 }
 0x230   : > { %v6386_v16 = vsub.f32 %v6083_v56, %v2049_v28  ;;  %v6389_v55 = vsub.f32 %v6086_v38, %v2050_v5  ;;  %v6392_v20 = vsub.f32 %v6089_v8, %v2051_v37  ;;  %v2064_v14 = vmul.f32 %v6275_v62, %v6275_v62 }
 0x231   : > { %8509 = vst [vmem:[#allocation28_spill] sm:$0xff] %v6377_v40  ;;  %8510 = vst [vmem:[#allocation29_spill] sm:$0xff] %v6380_v19  ;;  %v2065_v34 = vmul.f32 %v6278_v63, %v6278_v63  ;;  %v2066_v49 = vmul.f32 %v6281_v42, %v6275_v62  ;;  %v2067_v0 = vmul.f32 %v6284_v50, %v6278_v63 }
 0x232   : > { %8511 = vst [vmem:[#allocation30_spill] sm:$0xff] %v6383_v59  ;;  %8512 = vst [vmem:[#allocation31_spill] sm:$0xff] %v6386_v16  ;;  %v2068_v56 = vmul.f32 %v6287_v47, %v6275_v62  ;;  %v2069_v38 = vmul.f32 %v6290_v30, %v6278_v63  ;;  %v2070_v8 = vmul.f32 %v6293_v58, %v6275_v62  ;;  %v2088_v13 = vsel %vm210_vm0, %v2064_v14, 0.0 }
 0x233   : > { %8513 = vst [vmem:[#allocation32_spill] sm:$0xff] %v6389_v55  ;;  %8514 = vst [vmem:[#allocation33_spill] sm:$0xff] %v6392_v20  ;;  %v2071_v2 = vmul.f32 %v6296_v33, %v6278_v63  ;;  %v2072_v29 = vmul.f32 %v6299_v41, %v6275_v62  ;;  %v2073_v27 = vmul.f32 %v6302_v54, %v6278_v63  ;;  %v2089_v28 = vsel %vm210_vm0, %v2065_v34, 0.0 }
 0x234   : > { %v2074_v25 = vmul.f32 %v6305_v3, %v6275_v62  ;;  %v2075_v46 = vmul.f32 %v6308_v4, %v6278_v63  ;;  %v2076_v61 = vmul.f32 %v6311_v35, %v6275_v62  ;;  %v2077_v60 = vmul.f32 %v6314_v45, %v6278_v63 }
 0x235   : > { %v2078_v21 = vmul.f32 %v6317_v57, %v6275_v62  ;;  %v2079_v1 = vmul.f32 %v6320_v15, %v6278_v63  ;;  %v6428_v10 = vmul.f32 %v6323_v7, %v6275_v62  ;;  %v6432_v52 = vmul.f32 %v6326_v39, %v6278_v63 }
 0x236   : > { %v6436_v9 = vmul.f32 %v6329_v11, %v6275_v62  ;;  %v6440_v44 = vmul.f32 %v6332_v43, %v6278_v63  ;;  %v6444_v23 = vmul.f32 %v6335_v24, %v6275_v62  ;;  %v6448_v12 = vmul.f32 %v6338_v36, %v6278_v63 }
 0x237   : > { %v6452_v26 = vmul.f32 %v6341_v22, %v6275_v62  ;;  %v6456_v18 = vmul.f32 %v6344_v48, %v6278_v63  ;;  %v2097_v5 = vsel %vm210_vm0, %v2066_v49, 0.0  ;;  %v2090_v37 = vadd.f32 %v2089_v28, %v2088_v13 }
 0x238   : > { %v2098_v24 = vsel %vm210_vm0, %v2067_v0, 0.0  ;;  %v2106_v36 = vsel %vm210_vm0, %v2068_v56, 0.0  ;;  %v2107_v43 = vsel %vm210_vm0, %v2069_v38, 0.0  ;;  %v2115_v39 = vsel %vm210_vm0, %v2070_v8, 0.0 }
 0x239   : > { %v2099_v11 = vadd.f32 %v2098_v24, %v2097_v5  ;;  %v2108_v22 = vadd.f32 %v2107_v43, %v2106_v36  ;;  %v2116_v48 = vsel %vm210_vm0, %v2071_v2, 0.0  ;;  %v2091_v7 = vrot.slane %v2090_v37, 4 }
 0x23a   : > { %v2117_v15 = vadd.f32 %v2116_v48, %v2115_v39  ;;  %v2124_v14 = vsel %vm210_vm0, %v2072_v29, 0.0  ;;  %v2125_v34 = vsel %vm210_vm0, %v2073_v27, 0.0  ;;  %v2133_v0 = vsel %vm210_vm0, %v2074_v25, 0.0 }
 0x23b   : > { %v2100_v49 = vrot.slane %v2099_v11, 4  ;;  %v2109_v13 = vrot.slane %v2108_v22, 4  ;;  %v2126_v28 = vadd.f32 %v2125_v34, %v2124_v14  ;;  %v2092_v56 = vadd.f32 %v2091_v7, %v2090_v37 }
 0x23c   : > { %v2118_v57 = vrot.slane %v2117_v15, 4  ;;  %v2134_v24 = vsel %vm210_vm0, %v2075_v46, 0.0  ;;  %v2142_v43 = vsel %vm210_vm0, %v2076_v61, 0.0  ;;  %v2143_v29 = vsel %vm210_vm0, %v2077_v60, 0.0 }
 0x23d   : > { %v2101_v36 = vadd.f32 %v2100_v49, %v2099_v11  ;;  %v2110_v38 = vadd.f32 %v2109_v13, %v2108_v22  ;;  %v2127_v8 = vrot.slane %v2126_v28, 4  ;;  %v2135_v2 = vadd.f32 %v2134_v24, %v2133_v0 }
 0x23e   : > { %v2093_v39 = vrot.slane %v2092_v56, 2  ;;  %v2119_v48 = vadd.f32 %v2118_v57, %v2117_v15  ;;  %v2151_v27 = vsel %vm210_vm0, %v2078_v21, 0.0  ;;  %v2144_v45 = vadd.f32 %v2143_v29, %v2142_v43 }
 0x23f   : > { %v2102_v5 = vrot.slane %v2101_v36, 2  ;;  %v2111_v14 = vrot.slane %v2110_v38, 2  ;;  %v2128_v34 = vadd.f32 %v2127_v8, %v2126_v28  ;;  %v2136_v25 = vrot.slane %v2135_v2, 4 }
 0x240   : > { %v2094_v7 = vadd.f32 %v2093_v39, %v2092_v56  ;;  %v2120_v37 = vrot.slane %v2119_v48, 2  ;;  %v2152_v46 = vsel %vm210_vm0, %v2079_v1, 0.0  ;;  %v2145_v57 = vrot.slane %v2144_v45, 4 }
 0x241   : > { %v2103_v61 = vadd.f32 %v2102_v5, %v2101_v36  ;;  %v2112_v11 = vadd.f32 %v2111_v14, %v2110_v38  ;;  %v2129_v22 = vrot.slane %v2128_v34, 2  ;;  %v2137_v49 = vadd.f32 %v2136_v25, %v2135_v2 }
 0x242   : > { %v2095_v13 = vrot.slane %v2094_v7, 1  ;;  %v2121_v0 = vadd.f32 %v2120_v37, %v2119_v48  ;;  %v2153_v15 = vadd.f32 %v2152_v46, %v2151_v27  ;;  %v2146_v8 = vadd.f32 %v2145_v57, %v2144_v45 }
 0x243   : > { %v2104_v60 = vrot.slane %v2103_v61, 1  ;;  %v2113_v24 = vrot.slane %v2112_v11, 1  ;;  %v2130_v21 = vadd.f32 %v2129_v22, %v2128_v34  ;;  %v2138_v35 = vrot.slane %v2137_v49, 2 }
 0x244   : > { %v2096_v4 = vadd.f32 %v2095_v13, %v2094_v7  ;;  %v2122_v28 = vrot.slane %v2121_v0, 1  ;;  %v2154_v56 = vrot.slane %v2153_v15, 4  ;;  %v2147_v38 = vrot.slane %v2146_v8, 2 }
 0x245   : > { %v2105_v39 = vadd.f32 %v2104_v60, %v2103_v61  ;;  %v2114_v43 = vadd.f32 %v2113_v24, %v2112_v11  ;;  %v2131_v29 = vrot.slane %v2130_v21, 1  ;;  %v2139_v1 = vadd.f32 %v2138_v35, %v2137_v49 }
 0x246   : > { %v2123_v36 = vadd.f32 %v2122_v28, %v2121_v0  ;;  %v2155_v5 = vadd.f32 %v2154_v56, %v2153_v15  ;;  %v2160_v2 = vsel %vm210_vm0, %v6428_v10, 0.0  ;;  %v2161_v14 = vsel %vm210_vm0, %v6432_v52, 0.0 }
 0x247   : > { %v2132_v48 = vadd.f32 %v2131_v29, %v2130_v21  ;;  %v2140_v27 = vrot.slane %v2139_v1, 1  ;;  %v2169_v34 = vsel %vm210_vm0, %v6436_v9, 0.0  ;;  %v2148_v45 = vadd.f32 %v2147_v38, %v2146_v8 }
 0x248   : > { %v2156_v25 = vrot.slane %v2155_v5, 2  ;;  %v2162_v7 = vadd.f32 %v2161_v14, %v2160_v2  ;;  %v2170_v35 = vsel %vm210_vm0, %v6440_v44, 0.0  ;;  %v2178_v61 = vsel %vm210_vm0, %v6444_v23, 0.0 }
 0x249   : > { %v2141_v37 = vadd.f32 %v2140_v27, %v2139_v1  ;;  %v2171_v46 = vadd.f32 %v2170_v35, %v2169_v34  ;;  %v2179_v10 = vsel %vm210_vm0, %v6448_v12, 0.0  ;;  %v2149_v11 = vrot.slane %v2148_v45, 1 }
 0x24a   : > { %v2157_v22 = vadd.f32 %v2156_v25, %v2155_v5  ;;  %v2163_v52 = vrot.slane %v2162_v7, 4  ;;  %v2180_v49 = vadd.f32 %v2179_v10, %v2178_v61  ;;  %v2187_v9 = vsel %vm210_vm0, %v6452_v26, 0.0 }
 0x24b   : > { %v2172_v13 = vrot.slane %v2171_v46, 4  ;;  %v2188_v0 = vsel %vm210_vm0, %v6456_v18, 0.0  ;;  %v2196_v44 = vmul.f32 %v6359_v31, %v6359_v31  ;;  %v2150_v57 = vadd.f32 %v2149_v11, %v2148_v45 }
 0x24c   : > { %v2158_v15 = vrot.slane %v2157_v22, 1  ;;  %v2164_v23 = vadd.f32 %v2163_v52, %v2162_v7  ;;  %v2181_v60 = vrot.slane %v2180_v49, 4  ;;  %v2189_v12 = vadd.f32 %v2188_v0, %v2187_v9 }
 0x24d   : > { %v2173_v24 = vadd.f32 %v2172_v13, %v2171_v46  ;;  %v2197_v21 = vmul.f32 %v6362_v51, %v6359_v31  ;;  %v2198_v28 = vmul.f32 %v6365_v32, %v6359_v31  ;;  %v2199_v18 = vmul.f32 %v6368_v53, %v6359_v31 }
 0x24e   : > { %v2159_v8 = vadd.f32 %v2158_v15, %v2157_v22  ;;  %v2165_v26 = vrot.slane %v2164_v23, 2  ;;  %v2182_v56 = vadd.f32 %v2181_v60, %v2180_v49  ;;  %v2190_v1 = vrot.slane %v2189_v12, 4 }
 0x24f   : > { %v2174_v29 = vrot.slane %v2173_v24, 2  ;;  %v2200_v38 = vmul.f32 %v6371_v17, %v6359_v31  ;;  %v2201_v5 = vmul.f32 %v6374_v6, %v6359_v31  ;;  %v2202_v14 = vmul.f32 %v6377_v40, %v6359_v31 }
 0x250   : > { %v2166_v2 = vadd.f32 %v2165_v26, %v2164_v23  ;;  %v2183_v27 = vrot.slane %v2182_v56, 2  ;;  %v2203_v34 = vmul.f32 %v6380_v19, %v6359_v31  ;;  %v2191_v25 = vadd.f32 %v2190_v1, %v2189_v12 }
 0x251   : > { %v2175_v45 = vadd.f32 %v2174_v29, %v2173_v24  ;;  %v2204_v7 = vmul.f32 %v6383_v59, %v6359_v31  ;;  %v2205_v35 = vmul.f32 %v6386_v16, %v6359_v31  ;;  %v2206_v10 = vmul.f32 %v6389_v55, %v6359_v31  ;;  %v8515_v59 = vld [vmem:[#allocation9_spill] sm:$0xff] }
 0x252   : > { %v2167_v46 = vrot.slane %v2166_v2, 1  ;;  %v2184_v61 = vadd.f32 %v2183_v27, %v2182_v56  ;;  %v2207_v11 = vmul.f32 %v6392_v20, %v6359_v31  ;;  %v2192_v52 = vrot.slane %v2191_v25, 2 }
 0x253   : > { %v2176_v22 = vrot.slane %v2175_v45, 1  ;;  %v2208_v49 = vadd.f32 %v2196_v44, %v2096_v4  ;;  %v2209_v13 = vadd.f32 %v2197_v21, %v2105_v39  ;;  %v2210_v15 = vadd.f32 %v2198_v28, %v2114_v43 }
 0x254   : > { %v2168_v9 = vadd.f32 %v2167_v46, %v2166_v2  ;;  %v2185_v0 = vrot.slane %v2184_v61, 1  ;;  %v2211_v23 = vadd.f32 %v2199_v18, %v2123_v36  ;;  %v2193_v24 = vadd.f32 %v2192_v52, %v2191_v25 }
 0x255   : > { %v2177_v60 = vadd.f32 %v2176_v22, %v2175_v45  ;;  %v2212_v12 = vadd.f32 %v2200_v38, %v2132_v48  ;;  %v2213_v26 = vadd.f32 %v2201_v5, %v2141_v37  ;;  %v2214_v56 = vadd.f32 %v2202_v14, %v2150_v57  ;;  %v8517_v37 = vld [vmem:[#allocation10_spill] sm:$0xff]  ;;  %v8518_v38 = vld [vmem:[#allocation60_spill] sm:$0xff] }
 0x256   : > { %v2186_v29 = vadd.f32 %v2185_v0, %v2184_v61  ;;  %v2215_v1 = vadd.f32 %v2203_v34, %v2159_v8  ;;  %v2216_v27 = vadd.f32 %v2204_v7, %v2168_v9  ;;  %v2194_v55 = vrot.slane %v2193_v24, 1 }
 0x257   : > { %v2217_v16 = vadd.f32 %v2205_v35, %v2177_v60  ;;  %v2220_v20 = vmul.f32 %v8515_v59, %v2208_v49  ;;  %v8516_v4 = vsub.f32 1.0, %v8515_v59 }
 0x258   : > { %v2218_v19 = vadd.f32 %v2206_v10, %v2186_v29  ;;  %v2195_v40 = vadd.f32 %v2194_v55, %v2193_v24 }
 0x259   : > { %v2222_v39 = vadd.f32 %v8516_v4, %v2220_v20 }
 0x25a   : > { %v2219_v44 = vadd.f32 %v2207_v11, %v2195_v40 }
 0x25b   : > { %3865 = vlog2.f32 %v2222_v39 }
 0x25c   : > { %3867 = vrcp.f32 %v2222_v39 }
 0x268   : > { %v3866_v43 = vpop.eup %3865 }
 0x269   : > { %v3868_v36 = vpop.eup %3867  ;;  %v2224_v48 = vmul.f32 0.6931472, %v3866_v43 }
 0x26a   : > { %v2227_v57 = vmul.f32 %v3868_v36, %v2209_v13  ;;  %v2228_v28 = vmul.f32 %v3868_v36, %v2210_v15  ;;  %v2229_v8 = vmul.f32 %v3868_v36, %v2211_v23  ;;  %v2230_v18 = vmul.f32 %v3868_v36, %v2212_v12 }
 0x26b   : > { %v6519_v5 = vadd.f32 %v2224_v48, %v8518_v38  ;;  %v2231_v2 = vmul.f32 %v3868_v36, %v2213_v26  ;;  %v2232_v55 = vmul.f32 %v3868_v36, %v2214_v56  ;;  %v2233_v14 = vmul.f32 %v3868_v36, %v2215_v1 }
 0x26c   : > { %v2234_v59 = vmul.f32 %v3868_v36, %v2216_v27  ;;  %v2235_v20 = vmul.f32 %v3868_v36, %v2217_v16  ;;  %v2236_v40 = vmul.f32 %v3868_v36, %v2218_v19  ;;  %v2237_v34 = vmul.f32 %v3868_v36, %v2219_v44 }
 0x26d   : > { %v2238_v45 = vmul.f32 %v2227_v57, %v6275_v62  ;;  %v2239_v25 = vmul.f32 %v2227_v57, %v6278_v63  ;;  %v2240_v7 = vmul.f32 %v2228_v28, %v6275_v62  ;;  %v2241_v35 = vmul.f32 %v2228_v28, %v6278_v63 }
 0x26e   : > { %v2242_v46 = vmul.f32 %v2229_v8, %v6275_v62  ;;  %v2243_v61 = vmul.f32 %v2229_v8, %v6278_v63  ;;  %v2244_v10 = vmul.f32 %v2230_v18, %v6275_v62  ;;  %v2245_v11 = vmul.f32 %v2230_v18, %v6278_v63 }
 0x26f   : > { %v2246_v16 = vmul.f32 %v2231_v2, %v6275_v62  ;;  %v2247_v19 = vmul.f32 %v2231_v2, %v6278_v63  ;;  %v2248_v22 = vmul.f32 %v2232_v55, %v6275_v62  ;;  %v2249_v52 = vmul.f32 %v2232_v55, %v6278_v63 }
 0x270   : > { %v2250_v49 = vmul.f32 %v2233_v14, %v6275_v62  ;;  %v2251_v13 = vmul.f32 %v2233_v14, %v6278_v63  ;;  %v2252_v9 = vmul.f32 %v2234_v59, %v6275_v62  ;;  %v2253_v0 = vmul.f32 %v2234_v59, %v6278_v63 }
 0x271   : > { %v2254_v15 = vmul.f32 %v2235_v20, %v6275_v62  ;;  %v2255_v23 = vmul.f32 %v2235_v20, %v6278_v63  ;;  %v2256_v60 = vmul.f32 %v2236_v40, %v6275_v62  ;;  %v2257_v24 = vmul.f32 %v2236_v40, %v6278_v63 }
 0x272   : > { %v2258_v12 = vmul.f32 %v2237_v34, %v6275_v62  ;;  %v2259_v26 = vmul.f32 %v2237_v34, %v6278_v63  ;;  %v6544_v29 = vsub.f32 %v6281_v42, %v2238_v45  ;;  %v6547_v56 = vsub.f32 %v6284_v50, %v2239_v25  ;;  %v8530_v25 = vld [vmem:[#allocation48_spill] sm:$0xff] }
 0x273   : > { %v6550_v1 = vsub.f32 %v6287_v47, %v2240_v7  ;;  %v6553_v27 = vsub.f32 %v6290_v30, %v2241_v35  ;;  %v6556_v4 = vsub.f32 %v6293_v58, %v2242_v46  ;;  %v6559_v39 = vsub.f32 %v6296_v33, %v2243_v61  ;;  %v8519_v47 = vld [vmem:[#allocation61_spill] sm:$0xff]  ;;  %v8520_v30 = vld [vmem:[#allocation62_spill] sm:$0xff]  ;;  %v8521_v58 = vld [vmem:[#allocation63_spill] sm:$0xff] }
 0x274   : > { %v6562_v62 = vsub.f32 %v6299_v41, %v2244_v10  ;;  %v6565_v63 = vsub.f32 %v6302_v54, %v2245_v11  ;;  %v6568_v50 = vsub.f32 %v6305_v3, %v2246_v16  ;;  %v6571_v42 = vsub.f32 %v8519_v47, %v2247_v19  ;;  %v8522_v33 = vld [vmem:[#allocation64_spill] sm:$0xff]  ;;  %v8524_v41 = vld [vmem:[#allocation65_spill] sm:$0xff]  ;;  %v8526_v54 = vld [vmem:[#allocation58_spill] sm:$0xff] }
 0x275   : > { %v6574_v44 = vsub.f32 %v8520_v30, %v2248_v22  ;;  %v6577_v43 = vsub.f32 %v8521_v58, %v2249_v52  ;;  %v6580_v36 = vsub.f32 %v8522_v33, %v2250_v49  ;;  %v6583_v48 = vsub.f32 %v8524_v41, %v2251_v13  ;;  %v8528_v3 = vld [vmem:[#allocation47_spill] sm:$0xff]  ;;  %v8534_v61 = vld [vmem:[#allocation24_spill] sm:$0xff]  ;;  %v8536_v11 = vld [vmem:[#allocation25_spill] sm:$0xff] }
 0x276   : > { %v6586_v38 = vsub.f32 %v8526_v54, %v2252_v9  ;;  %v6589_v45 = vsub.f32 %v8528_v3, %v2253_v0  ;;  %v6592_v7 = vsub.f32 %v8530_v25, %v2254_v15  ;;  %v8532_v35 = vld [vmem:[#allocation23_spill] sm:$0xff]  ;;  %v6598_v10 = vsub.f32 %v8534_v61, %v2256_v60  ;;  %v8538_v19 = vld [vmem:[#allocation26_spill] sm:$0xff] }
 0x277   : > { %8523 = vst [vmem:[#allocation34_spill] sm:$0xff] %v6580_v36  ;;  %8525 = vst [vmem:[#allocation35_spill] sm:$0xff] %v6583_v48  ;;  %v6595_v46 = vsub.f32 %v8532_v35, %v2255_v23  ;;  %v6601_v16 = vsub.f32 %v8536_v11, %v2257_v24  ;;  %v6604_v22 = vsub.f32 %v8538_v19, %v2258_v12  ;;  %v8540_v52 = vld [vmem:[#allocation27_spill] sm:$0xff] }
 0x278   : > { %8527 = vst [vmem:[#allocation36_spill] sm:$0xff] %v6586_v38  ;;  %8529 = vst [vmem:[#allocation37_spill] sm:$0xff] %v6589_v45  ;;  %v6607_v49 = vsub.f32 %v8540_v52, %v2259_v26  ;;  %v2282_v13 = vmul.f32 %v2227_v57, %v6359_v31  ;;  %v2283_v9 = vmul.f32 %v2228_v28, %v6359_v31 }
 0x279   : > { %8531 = vst [vmem:[#allocation38_spill] sm:$0xff] %v6592_v7  ;;  %8533 = vst [vmem:[#allocation39_spill] sm:$0xff] %v6595_v46  ;;  %v2284_v0 = vmul.f32 %v2229_v8, %v6359_v31  ;;  %v2285_v15 = vmul.f32 %v2230_v18, %v6359_v31  ;;  %v2286_v23 = vmul.f32 %v2231_v2, %v6359_v31 }
 0x27a   : > { %8535 = vst [vmem:[#allocation8_spill] sm:$0xff] %v6598_v10  ;;  %8537 = vst [vmem:[#allocation40_spill] sm:$0xff] %v6601_v16  ;;  %v2287_v60 = vmul.f32 %v2232_v55, %v6359_v31  ;;  %v2288_v24 = vmul.f32 %v2233_v14, %v6359_v31  ;;  %v2289_v12 = vmul.f32 %v2234_v59, %v6359_v31  ;;  %v8542_v14 = vld [vmem:[#allocation28_spill] sm:$0xff] }
 0x27b   : > { %8539 = vst [vmem:[#allocation41_spill] sm:$0xff] %v6604_v22  ;;  %8541 = vst [vmem:[#allocation42_spill] sm:$0xff] %v6607_v49  ;;  %v2290_v47 = vmul.f32 %v2235_v20, %v6359_v31  ;;  %v2291_v26 = vmul.f32 %v2236_v40, %v6359_v31  ;;  %v2292_v57 = vmul.f32 %v2237_v34, %v6359_v31  ;;  %v8543_v20 = vld [vmem:[#allocation29_spill] sm:$0xff] }
 0x27c   : > { %v6621_v28 = vsub.f32 %v6362_v51, %v2282_v13  ;;  %v6624_v8 = vsub.f32 %v6365_v32, %v2283_v9  ;;  %v6627_v18 = vsub.f32 %v6368_v53, %v2284_v0  ;;  %v6630_v2 = vsub.f32 %v6371_v17, %v2285_v15  ;;  %v8544_v51 = vld [vmem:[#allocation30_spill] sm:$0xff]  ;;  %v8546_v32 = vld [vmem:[#allocation31_spill] sm:$0xff]  ;;  %v8548_v53 = vld [vmem:[#allocation32_spill] sm:$0xff] }
 0x27d   : > { %v6633_v55 = vsub.f32 %v6374_v6, %v2286_v23  ;;  %v6636_v59 = vsub.f32 %v8542_v14, %v2287_v60  ;;  %v6639_v31 = vsub.f32 %v8543_v20, %v2288_v24  ;;  %v6642_v40 = vsub.f32 %v8544_v51, %v2289_v12  ;;  %v8550_v17 = vld [vmem:[#allocation33_spill] sm:$0xff] }
 0x27e   : > { %v6645_v34 = vsub.f32 %v8546_v32, %v2290_v47  ;;  %v6648_v30 = vsub.f32 %v8548_v53, %v2291_v26  ;;  %v6651_v58 = vsub.f32 %v8550_v17, %v2292_v57  ;;  %v2304_v6 = vmul.f32 %v6544_v29, %v6544_v29 }
 0x27f   : > { %8545 = vst [vmem:[#allocation43_spill] sm:$0xff] %v6642_v40  ;;  %v2305_v33 = vmul.f32 %v6547_v56, %v6547_v56  ;;  %v2306_v41 = vmul.f32 %v6550_v1, %v6544_v29  ;;  %v2307_v54 = vmul.f32 %v6553_v27, %v6547_v56  ;;  %v2308_v3 = vmul.f32 %v6556_v4, %v6544_v29 }
 0x280   : > { %8547 = vst [vmem:[#allocation44_spill] sm:$0xff] %v6645_v34  ;;  %8549 = vst [vmem:[#allocation45_spill] sm:$0xff] %v6648_v30  ;;  %v2309_v25 = vmul.f32 %v6559_v39, %v6547_v56  ;;  %v2310_v35 = vmul.f32 %v6562_v62, %v6544_v29  ;;  %v2311_v61 = vmul.f32 %v6565_v63, %v6547_v56  ;;  %v2326_v14 = vsel %vm210_vm0, %v2304_v6, 0.0 }
 0x281   : > { %v2312_v11 = vmul.f32 %v6568_v50, %v6544_v29  ;;  %v2313_v19 = vmul.f32 %v6571_v42, %v6547_v56  ;;  %v2314_v52 = vmul.f32 %v6574_v44, %v6544_v29  ;;  %v2315_v13 = vmul.f32 %v6577_v43, %v6547_v56 }
 0x282   : > { %v2316_v9 = vmul.f32 %v6580_v36, %v6544_v29  ;;  %v2317_v0 = vmul.f32 %v6583_v48, %v6547_v56  ;;  %v2318_v15 = vmul.f32 %v6586_v38, %v6544_v29  ;;  %v2319_v23 = vmul.f32 %v6589_v45, %v6547_v56 }
 0x283   : > { %v6687_v60 = vmul.f32 %v6592_v7, %v6544_v29  ;;  %v6691_v24 = vmul.f32 %v6595_v46, %v6547_v56  ;;  %v6695_v12 = vmul.f32 %v6598_v10, %v6544_v29  ;;  %v6699_v47 = vmul.f32 %v6601_v16, %v6547_v56 }
 0x284   : > { %v6703_v26 = vmul.f32 %v6604_v22, %v6544_v29  ;;  %v6707_v57 = vmul.f32 %v6607_v49, %v6547_v56  ;;  %v2327_v20 = vsel %vm210_vm0, %v2305_v33, 0.0  ;;  %v2335_v51 = vsel %vm210_vm0, %v2306_v41, 0.0 }
 0x285   : > { %v2336_v32 = vsel %vm210_vm0, %v2307_v54, 0.0  ;;  %v2328_v53 = vadd.f32 %v2327_v20, %v2326_v14  ;;  %v2344_v21 = vsel %vm210_vm0, %v2308_v3, 0.0  ;;  %v2345_v16 = vsel %vm210_vm0, %v2309_v25, 0.0 }
 0x286   : > { %v2337_v17 = vadd.f32 %v2336_v32, %v2335_v51  ;;  %v2346_v22 = vadd.f32 %v2345_v16, %v2344_v21  ;;  %v2353_v10 = vsel %vm210_vm0, %v2310_v35, 0.0  ;;  %v2354_v49 = vsel %vm210_vm0, %v2311_v61, 0.0 }
 0x287   : > { %v2362_v46 = vsel %vm210_vm0, %v2312_v11, 0.0  ;;  %v2329_v6 = vrot.slane %v2328_v53, 4  ;;  %v2355_v33 = vadd.f32 %v2354_v49, %v2353_v10  ;;  %v2363_v41 = vsel %vm210_vm0, %v2313_v19, 0.0 }
 0x288   : > { %v2338_v7 = vrot.slane %v2337_v17, 4  ;;  %v2347_v45 = vrot.slane %v2346_v22, 4  ;;  %v2364_v54 = vadd.f32 %v2363_v41, %v2362_v46  ;;  %v2371_v14 = vsel %vm210_vm0, %v2314_v52, 0.0 }
 0x289   : > { %v2372_v3 = vsel %vm210_vm0, %v2315_v13, 0.0  ;;  %v2330_v20 = vadd.f32 %v2329_v6, %v2328_v53  ;;  %v2356_v21 = vrot.slane %v2355_v33, 4  ;;  %v2380_v61 = vsel %vm210_vm0, %v2316_v9, 0.0 }
 0x28a   : > { %v2339_v25 = vadd.f32 %v2338_v7, %v2337_v17  ;;  %v2373_v16 = vadd.f32 %v2372_v3, %v2371_v14  ;;  %v2348_v35 = vadd.f32 %v2347_v45, %v2346_v22  ;;  %v2365_v51 = vrot.slane %v2364_v54, 4 }
 0x28b   : > { %v2381_v11 = vsel %vm210_vm0, %v2317_v0, 0.0  ;;  %v2331_v32 = vrot.slane %v2330_v20, 2  ;;  %v2357_v49 = vadd.f32 %v2356_v21, %v2355_v33  ;;  %v2389_v52 = vsel %vm210_vm0, %v2318_v15, 0.0 }
 0x28c   : > { %v2340_v10 = vrot.slane %v2339_v25, 2  ;;  %v2374_v19 = vrot.slane %v2373_v16, 4  ;;  %v2349_v38 = vrot.slane %v2348_v35, 2  ;;  %v2366_v46 = vadd.f32 %v2365_v51, %v2364_v54 }
 0x28d   : > { %v2382_v41 = vadd.f32 %v2381_v11, %v2380_v61  ;;  %v2332_v13 = vadd.f32 %v2331_v32, %v2330_v20  ;;  %v2358_v7 = vrot.slane %v2357_v49, 2  ;;  %v2390_v9 = vsel %vm210_vm0, %v2319_v23, 0.0 }
 0x28e   : > { %v2341_v53 = vadd.f32 %v2340_v10, %v2339_v25  ;;  %v2375_v17 = vadd.f32 %v2374_v19, %v2373_v16  ;;  %v2350_v6 = vadd.f32 %v2349_v38, %v2348_v35  ;;  %v2367_v45 = vrot.slane %v2366_v46, 2 }
 0x28f   : > { %v2383_v22 = vrot.slane %v2382_v41, 4  ;;  %v2333_v14 = vrot.slane %v2332_v13, 1  ;;  %v2359_v3 = vadd.f32 %v2358_v7, %v2357_v49  ;;  %v2391_v54 = vadd.f32 %v2390_v9, %v2389_v52 }
 0x290   : > { %v2342_v0 = vrot.slane %v2341_v53, 1  ;;  %v2376_v48 = vrot.slane %v2375_v17, 2  ;;  %v2351_v33 = vrot.slane %v2350_v6, 1  ;;  %v2368_v21 = vadd.f32 %v2367_v45, %v2366_v46 }
 0x291   : > { %v2384_v36 = vadd.f32 %v2383_v22, %v2382_v41  ;;  %v2334_v51 = vadd.f32 %v2333_v14, %v2332_v13  ;;  %v2360_v15 = vrot.slane %v2359_v3, 1  ;;  %v2392_v38 = vrot.slane %v2391_v54, 4 }
 0x292   : > { %v2343_v61 = vadd.f32 %v2342_v0, %v2341_v53  ;;  %v2377_v20 = vadd.f32 %v2376_v48, %v2375_v17  ;;  %v2352_v25 = vadd.f32 %v2351_v33, %v2350_v6  ;;  %v2369_v11 = vrot.slane %v2368_v21, 1 }
 0x293   : > { %v2385_v16 = vrot.slane %v2384_v36, 2  ;;  %v2361_v35 = vadd.f32 %v2360_v15, %v2359_v3  ;;  %v2398_v23 = vsel %vm210_vm0, %v6687_v60, 0.0  ;;  %v2399_v10 = vsel %vm210_vm0, %v6691_v24, 0.0 }
 0x294   : > { %v2378_v32 = vrot.slane %v2377_v20, 1  ;;  %v2370_v49 = vadd.f32 %v2369_v11, %v2368_v21  ;;  %v2393_v46 = vadd.f32 %v2392_v38, %v2391_v54  ;;  %v2400_v41 = vadd.f32 %v2399_v10, %v2398_v23 }
 0x295   : > { %v2386_v19 = vadd.f32 %v2385_v16, %v2384_v36  ;;  %v2407_v48 = vsel %vm210_vm0, %v6695_v12, 0.0  ;;  %v2408_v13 = vsel %vm210_vm0, %v6699_v47, 0.0  ;;  %v2416_v53 = vsel %vm210_vm0, %v6703_v26, 0.0 }
 0x296   : > { %v2379_v52 = vadd.f32 %v2378_v32, %v2377_v20  ;;  %v2394_v17 = vrot.slane %v2393_v46, 2  ;;  %v2401_v60 = vrot.slane %v2400_v41, 4  ;;  %v2409_v6 = vadd.f32 %v2408_v13, %v2407_v48 }
 0x297   : > { %v2387_v7 = vrot.slane %v2386_v19, 1  ;;  %v2417_v24 = vsel %vm210_vm0, %v6707_v57, 0.0  ;;  %v2425_v36 = vmul.f32 %v6621_v28, %v6621_v28  ;;  %v2426_v45 = vmul.f32 %v6624_v8, %v6621_v28 }
 0x298   : > { %v2427_v12 = vmul.f32 %v6627_v18, %v6621_v28  ;;  %v2395_v22 = vadd.f32 %v2394_v17, %v2393_v46  ;;  %v2402_v9 = vadd.f32 %v2401_v60, %v2400_v41  ;;  %v2410_v26 = vrot.slane %v2409_v6, 4 }
 0x299   : > { %v2388_v47 = vadd.f32 %v2387_v7, %v2386_v19  ;;  %v2418_v14 = vadd.f32 %v2417_v24, %v2416_v53  ;;  %v2428_v0 = vmul.f32 %v6630_v2, %v6621_v28  ;;  %v2429_v57 = vmul.f32 %v6633_v55, %v6621_v28 }
 0x29a   : > { %v2430_v3 = vmul.f32 %v6636_v59, %v6621_v28  ;;  %v2396_v33 = vrot.slane %v2395_v22, 1  ;;  %v2403_v21 = vrot.slane %v2402_v9, 2  ;;  %v2411_v54 = vadd.f32 %v2410_v26, %v2409_v6 }
 0x29b   : > { %v2431_v15 = vmul.f32 %v6639_v31, %v6621_v28  ;;  %v2419_v20 = vrot.slane %v2418_v14, 4  ;;  %v2432_v11 = vmul.f32 %v6642_v40, %v6621_v28  ;;  %v2433_v16 = vmul.f32 %v6645_v34, %v6621_v28 }
 0x29c   : > { %v2434_v38 = vmul.f32 %v6648_v30, %v6621_v28  ;;  %v2397_v32 = vadd.f32 %v2396_v33, %v2395_v22  ;;  %v2404_v23 = vadd.f32 %v2403_v21, %v2402_v9  ;;  %v2412_v10 = vrot.slane %v2411_v54, 2 }
 0x29d   : > { %v2435_v19 = vmul.f32 %v6651_v58, %v6621_v28  ;;  %v2420_v46 = vadd.f32 %v2419_v20, %v2418_v14  ;;  %v2436_v41 = vadd.f32 %v2425_v36, %v2334_v51  ;;  %v2437_v48 = vadd.f32 %v2426_v45, %v2343_v61 }
 0x29e   : > { %v2438_v13 = vadd.f32 %v2427_v12, %v2352_v25  ;;  %v2405_v53 = vrot.slane %v2404_v23, 1  ;;  %v2413_v7 = vadd.f32 %v2412_v10, %v2411_v54  ;;  %v2439_v17 = vadd.f32 %v2428_v0, %v2361_v35  ;;  %v8552_v12 = vld [vmem:[#allocation11_spill] sm:$0xff] }
 0x29f   : > { %v2440_v60 = vadd.f32 %v2429_v57, %v2370_v49  ;;  %v2421_v6 = vrot.slane %v2420_v46, 2  ;;  %v2441_v24 = vadd.f32 %v2430_v3, %v2379_v52  ;;  %v2442_v26 = vadd.f32 %v2431_v15, %v2388_v47 }
 0x2a0   : > { %v2443_v34 = vadd.f32 %v2432_v11, %v2397_v32  ;;  %v2406_v40 = vadd.f32 %v2405_v53, %v2404_v23  ;;  %v2414_v30 = vrot.slane %v2413_v7, 1  ;;  %v2447_v22 = vmul.f32 %v8517_v37, %v2436_v41 }
 0x2a1   : > { %v2422_v9 = vadd.f32 %v2421_v6, %v2420_v46  ;;  %v8551_v14 = vsub.f32 1.0, %v8517_v37 }
 0x2a2   : > { %v2415_v33 = vadd.f32 %v2414_v30, %v2413_v7  ;;  %v2444_v21 = vadd.f32 %v2433_v16, %v2406_v40 }
 0x2a3   : > { %v2449_v51 = vadd.f32 %v8551_v14, %v2447_v22  ;;  %v2423_v61 = vrot.slane %v2422_v9, 1 }
 0x2a4   : > { %v2445_v25 = vadd.f32 %v2434_v38, %v2415_v33 }
 0x2a5   : > { %3869 = vlog2.f32 %v2449_v51  ;;  %v2424_v36 = vadd.f32 %v2423_v61, %v2422_v9 }
 0x2a6   : > { %3871 = vrcp.f32 %v2449_v51 }
 0x2a7   : > { %v2446_v35 = vadd.f32 %v2435_v19, %v2424_v36 }
 0x2b2   : > { %v3870_v49 = vpop.eup %3869 }
 0x2b3   : > { %v3872_v52 = vpop.eup %3871  ;;  %v2451_v45 = vmul.f32 0.6931472, %v3870_v49 }
 0x2b4   : > { %v2454_v0 = vmul.f32 %v3872_v52, %v2437_v48  ;;  %v2455_v57 = vmul.f32 %v3872_v52, %v2438_v13  ;;  %v2456_v3 = vmul.f32 %v3872_v52, %v2439_v17  ;;  %v2457_v54 = vmul.f32 %v3872_v52, %v2440_v60 }
 0x2b5   : > { %v6764_v40 = vadd.f32 %v2451_v45, %v6519_v5  ;;  %v2458_v37 = vmul.f32 %v3872_v52, %v2441_v24  ;;  %v2459_v30 = vmul.f32 %v3872_v52, %v2442_v26  ;;  %v2460_v15 = vmul.f32 %v3872_v52, %v2443_v34 }
 0x2b6   : > { %v2461_v20 = vmul.f32 %v3872_v52, %v2444_v21  ;;  %v2462_v11 = vmul.f32 %v3872_v52, %v2445_v25  ;;  %v2463_v16 = vmul.f32 %v3872_v52, %v2446_v35  ;;  %v2464_v38 = vmul.f32 %v2454_v0, %v6544_v29 }
 0x2b7   : > { %v2465_v32 = vmul.f32 %v2454_v0, %v6547_v56  ;;  %v2466_v23 = vmul.f32 %v2455_v57, %v6544_v29  ;;  %v2467_v10 = vmul.f32 %v2455_v57, %v6547_v56  ;;  %v2468_v19 = vmul.f32 %v2456_v3, %v6544_v29 }
 0x2b8   : > { %v2469_v46 = vmul.f32 %v2456_v3, %v6547_v56  ;;  %v2470_v5 = vmul.f32 %v2457_v54, %v6544_v29  ;;  %v2471_v41 = vmul.f32 %v2457_v54, %v6547_v56  ;;  %v2472_v34 = vmul.f32 %v2458_v37, %v6544_v29 }
 0x2b9   : > { %v2473_v48 = vmul.f32 %v2458_v37, %v6547_v56  ;;  %v2474_v13 = vmul.f32 %v2459_v30, %v6544_v29  ;;  %v2475_v53 = vmul.f32 %v2459_v30, %v6547_v56  ;;  %v2476_v7 = vmul.f32 %v2460_v15, %v6544_v29 }
 0x2ba   : > { %v2477_v17 = vmul.f32 %v2460_v15, %v6547_v56  ;;  %v2478_v60 = vmul.f32 %v2461_v20, %v6544_v29  ;;  %v2479_v6 = vmul.f32 %v2461_v20, %v6547_v56  ;;  %v2480_v24 = vmul.f32 %v2462_v11, %v6544_v29 }
 0x2bb   : > { %v2481_v26 = vmul.f32 %v2462_v11, %v6547_v56  ;;  %v2482_v22 = vmul.f32 %v2463_v16, %v6544_v29  ;;  %v2483_v9 = vmul.f32 %v2463_v16, %v6547_v56  ;;  %v6787_v33 = vsub.f32 %v6550_v1, %v2464_v38 }
 0x2bc   : > { %v6790_v21 = vsub.f32 %v6553_v27, %v2465_v32  ;;  %v6793_v14 = vsub.f32 %v6556_v4, %v2466_v23  ;;  %v6796_v51 = vsub.f32 %v6559_v39, %v2467_v10  ;;  %v6799_v61 = vsub.f32 %v6562_v62, %v2468_v19  ;;  %v8553_v4 = vld [vmem:[#allocation34_spill] sm:$0xff]  ;;  %v8554_v62 = vld [vmem:[#allocation35_spill] sm:$0xff]  ;;  %v8562_v32 = vld [vmem:[#allocation40_spill] sm:$0xff] }
 0x2bd   : > { %v6802_v25 = vsub.f32 %v6565_v63, %v2469_v46  ;;  %v6805_v29 = vsub.f32 %v6568_v50, %v2470_v5  ;;  %v6808_v56 = vsub.f32 %v6571_v42, %v2471_v41  ;;  %v6811_v1 = vsub.f32 %v6574_v44, %v2472_v34  ;;  %v8555_v63 = vld [vmem:[#allocation36_spill] sm:$0xff]  ;;  %v8556_v50 = vld [vmem:[#allocation37_spill] sm:$0xff]  ;;  %v8557_v42 = vld [vmem:[#allocation38_spill] sm:$0xff] }
 0x2be   : > { %v6814_v27 = vsub.f32 %v6577_v43, %v2473_v48  ;;  %v6817_v39 = vsub.f32 %v8553_v4, %v2474_v13  ;;  %v6820_v36 = vsub.f32 %v8554_v62, %v2475_v53  ;;  %v6823_v35 = vsub.f32 %v8555_v63, %v2476_v7  ;;  %v8558_v44 = vld [vmem:[#allocation39_spill] sm:$0xff]  ;;  %v8560_v43 = vld [vmem:[#allocation8_spill] sm:$0xff]  ;;  %v8564_v10 = vld [vmem:[#allocation41_spill] sm:$0xff] }
 0x2bf   : > { %v6826_v49 = vsub.f32 %v8556_v50, %v2477_v17  ;;  %v6829_v52 = vsub.f32 %v8557_v42, %v2478_v60  ;;  %v6832_v45 = vsub.f32 %v8558_v44, %v2479_v6  ;;  %v6835_v38 = vsub.f32 %v8560_v43, %v2480_v24  ;;  %v8566_v46 = vld [vmem:[#allocation42_spill] sm:$0xff] }
 0x2c0   : > { %v6838_v23 = vsub.f32 %v8562_v32, %v2481_v26  ;;  %v6841_v19 = vsub.f32 %v8564_v10, %v2482_v22  ;;  %v6844_v5 = vsub.f32 %v8566_v46, %v2483_v9  ;;  %v2504_v41 = vmul.f32 %v2454_v0, %v6621_v28 }
 0x2c1   : > { %8559 = vst [vmem:[#allocation46_spill] sm:$0xff] %v6832_v45  ;;  %8561 = vst [vmem:[#allocation49_spill] sm:$0xff] %v6835_v38  ;;  %v2505_v34 = vmul.f32 %v2455_v57, %v6621_v28  ;;  %v2506_v48 = vmul.f32 %v2456_v3, %v6621_v28  ;;  %v2507_v13 = vmul.f32 %v2457_v54, %v6621_v28 }
 0x2c2   : > { %8563 = vst [vmem:[#allocation50_spill] sm:$0xff] %v6838_v23  ;;  %8565 = vst [vmem:[#allocation51_spill] sm:$0xff] %v6841_v19  ;;  %v2508_v53 = vmul.f32 %v2458_v37, %v6621_v28  ;;  %v2509_v7 = vmul.f32 %v2459_v30, %v6621_v28  ;;  %v2510_v17 = vmul.f32 %v2460_v15, %v6621_v28  ;;  %v8568_v15 = vld [vmem:[#allocation43_spill] sm:$0xff] }
 0x2c3   : > { %8567 = vst [vmem:[#allocation52_spill] sm:$0xff] %v6844_v5  ;;  %v2511_v60 = vmul.f32 %v2461_v20, %v6621_v28  ;;  %v2512_v6 = vmul.f32 %v2462_v11, %v6621_v28  ;;  %v2513_v24 = vmul.f32 %v2463_v16, %v6621_v28  ;;  %v6857_v0 = vsub.f32 %v6624_v8, %v2504_v41  ;;  %v8569_v8 = vld [vmem:[#allocation44_spill] sm:$0xff] }
 0x2c4   : > { %v6860_v57 = vsub.f32 %v6627_v18, %v2505_v34  ;;  %v6863_v3 = vsub.f32 %v6630_v2, %v2506_v48  ;;  %v6866_v54 = vsub.f32 %v6633_v55, %v2507_v13  ;;  %v6869_v37 = vsub.f32 %v6636_v59, %v2508_v53  ;;  %v8571_v18 = vld [vmem:[#allocation45_spill] sm:$0xff] }
 0x2c5   : > { %v6872_v30 = vsub.f32 %v6639_v31, %v2509_v7  ;;  %v6875_v28 = vsub.f32 %v8568_v15, %v2510_v17  ;;  %v6878_v20 = vsub.f32 %v8569_v8, %v2511_v60  ;;  %v6881_v11 = vsub.f32 %v8571_v18, %v2512_v6 }
 0x2c6   : > { %v6884_v2 = vsub.f32 %v6651_v58, %v2513_v24  ;;  %v2524_v55 = vmul.f32 %v6787_v33, %v6787_v33  ;;  %v2525_v59 = vmul.f32 %v6790_v21, %v6790_v21  ;;  %v2526_v31 = vmul.f32 %v6793_v14, %v6787_v33 }
 0x2c7   : > { %8570 = vst [vmem:[#allocation53_spill] sm:$0xff] %v6878_v20  ;;  %8572 = vst [vmem:[#allocation54_spill] sm:$0xff] %v6881_v11  ;;  %v2527_v16 = vmul.f32 %v6796_v51, %v6790_v21  ;;  %v2528_v26 = vmul.f32 %v6799_v61, %v6787_v33  ;;  %v2529_v22 = vmul.f32 %v6802_v25, %v6790_v21 }
 0x2c8   : > { %8573 = vst [vmem:[#allocation55_spill] sm:$0xff] %v6884_v2  ;;  %v2530_v58 = vmul.f32 %v6805_v29, %v6787_v33  ;;  %v2531_v9 = vmul.f32 %v6808_v56, %v6790_v21  ;;  %v2532_v4 = vmul.f32 %v6811_v1, %v6787_v33  ;;  %v2533_v62 = vmul.f32 %v6814_v27, %v6790_v21 }
 0x2c9   : > { %v2534_v63 = vmul.f32 %v6817_v39, %v6787_v33  ;;  %v2535_v50 = vmul.f32 %v6820_v36, %v6790_v21  ;;  %v2536_v42 = vmul.f32 %v6823_v35, %v6787_v33  ;;  %v2537_v44 = vmul.f32 %v6826_v49, %v6790_v21 }
 0x2ca   : > { %v2538_v43 = vmul.f32 %v6829_v52, %v6787_v33  ;;  %v2539_v32 = vmul.f32 %v6832_v45, %v6790_v21  ;;  %v6920_v10 = vmul.f32 %v6835_v38, %v6787_v33  ;;  %v6924_v46 = vmul.f32 %v6838_v23, %v6790_v21 }
 0x2cb   : > { %v6928_v41 = vmul.f32 %v6841_v19, %v6787_v33  ;;  %v6932_v34 = vmul.f32 %v6844_v5, %v6790_v21  ;;  %v2544_v48 = vsel %vm210_vm0, %v2524_v55, 0.0  ;;  %v2545_v13 = vsel %vm210_vm0, %v2525_v59, 0.0 }
 0x2cc   : > { %v2553_v53 = vsel %vm210_vm0, %v2526_v31, 0.0  ;;  %v2554_v7 = vsel %vm210_vm0, %v2527_v16, 0.0  ;;  %v2562_v17 = vsel %vm210_vm0, %v2528_v26, 0.0  ;;  %v2546_v60 = vadd.f32 %v2545_v13, %v2544_v48 }
 0x2cd   : > { %v2555_v6 = vadd.f32 %v2554_v7, %v2553_v53  ;;  %v2563_v24 = vsel %vm210_vm0, %v2529_v22, 0.0  ;;  %v2571_v15 = vsel %vm210_vm0, %v2530_v58, 0.0  ;;  %v2572_v18 = vsel %vm210_vm0, %v2531_v9, 0.0 }
 0x2ce   : > { %v2564_v8 = vadd.f32 %v2563_v24, %v2562_v17  ;;  %v2580_v47 = vsel %vm210_vm0, %v2532_v4, 0.0  ;;  %v2581_v55 = vsel %vm210_vm0, %v2533_v62, 0.0  ;;  %v2547_v59 = vrot.slane %v2546_v60, 4 }
 0x2cf   : > { %v2556_v5 = vrot.slane %v2555_v6, 4  ;;  %v2573_v31 = vadd.f32 %v2572_v18, %v2571_v15  ;;  %v2582_v19 = vadd.f32 %v2581_v55, %v2580_v47  ;;  %v2589_v26 = vsel %vm210_vm0, %v2534_v63, 0.0 }
 0x2d0   : > { %v2565_v16 = vrot.slane %v2564_v8, 4  ;;  %v2590_v48 = vsel %vm210_vm0, %v2535_v50, 0.0  ;;  %v2598_v22 = vsel %vm210_vm0, %v2536_v42, 0.0  ;;  %v2548_v13 = vadd.f32 %v2547_v59, %v2546_v60 }
 0x2d1   : > { %v2557_v58 = vadd.f32 %v2556_v5, %v2555_v6  ;;  %v2574_v53 = vrot.slane %v2573_v31, 4  ;;  %v2583_v7 = vrot.slane %v2582_v19, 4  ;;  %v2591_v17 = vadd.f32 %v2590_v48, %v2589_v26 }
 0x2d2   : > { %v2566_v9 = vadd.f32 %v2565_v16, %v2564_v8  ;;  %v2599_v4 = vsel %vm210_vm0, %v2537_v44, 0.0  ;;  %v2607_v62 = vsel %vm210_vm0, %v2538_v43, 0.0  ;;  %v2549_v24 = vrot.slane %v2548_v13, 2 }
 0x2d3   : > { %v2558_v15 = vrot.slane %v2557_v58, 2  ;;  %v2575_v47 = vadd.f32 %v2574_v53, %v2573_v31  ;;  %v2584_v18 = vadd.f32 %v2583_v7, %v2582_v19  ;;  %v2592_v63 = vrot.slane %v2591_v17, 4 }
 0x2d4   : > { %v2567_v55 = vrot.slane %v2566_v9, 2  ;;  %v2600_v23 = vadd.f32 %v2599_v4, %v2598_v22  ;;  %v2608_v50 = vsel %vm210_vm0, %v2539_v32, 0.0  ;;  %v2550_v42 = vadd.f32 %v2549_v24, %v2548_v13 }
 0x2d5   : > { %v2559_v60 = vadd.f32 %v2558_v15, %v2557_v58  ;;  %v2576_v5 = vrot.slane %v2575_v47, 2  ;;  %v2585_v6 = vrot.slane %v2584_v18, 2  ;;  %v2593_v8 = vadd.f32 %v2592_v63, %v2591_v17 }
 0x2d6   : > { %v2568_v59 = vadd.f32 %v2567_v55, %v2566_v9  ;;  %v2601_v16 = vrot.slane %v2600_v23, 4  ;;  %v2609_v26 = vadd.f32 %v2608_v50, %v2607_v62  ;;  %v2551_v44 = vrot.slane %v2550_v42, 1 }
 0x2d7   : > { %v2560_v48 = vrot.slane %v2559_v60, 1  ;;  %v2577_v43 = vadd.f32 %v2576_v5, %v2575_v47  ;;  %v2586_v38 = vadd.f32 %v2585_v6, %v2584_v18  ;;  %v2594_v31 = vrot.slane %v2593_v8, 2 }
 0x2d8   : > { %v2569_v45 = vrot.slane %v2568_v59, 1  ;;  %v2602_v19 = vadd.f32 %v2601_v16, %v2600_v23  ;;  %v2610_v53 = vrot.slane %v2609_v26, 4  ;;  %v2552_v7 = vadd.f32 %v2551_v44, %v2550_v42 }
 0x2d9   : > { %v2561_v22 = vadd.f32 %v2560_v48, %v2559_v60  ;;  %v2578_v4 = vrot.slane %v2577_v43, 1  ;;  %v2587_v32 = vrot.slane %v2586_v38, 1  ;;  %v2595_v58 = vadd.f32 %v2594_v31, %v2593_v8 }
 0x2da   : > { %v2570_v13 = vadd.f32 %v2569_v45, %v2568_v59  ;;  %v2603_v24 = vrot.slane %v2602_v19, 2  ;;  %v2611_v15 = vadd.f32 %v2610_v53, %v2609_v26  ;;  %v2616_v62 = vsel %vm210_vm0, %v6920_v10, 0.0 }
 0x2db   : > { %v2579_v9 = vadd.f32 %v2578_v4, %v2577_v43  ;;  %v2588_v17 = vadd.f32 %v2587_v32, %v2586_v38  ;;  %v2617_v47 = vsel %vm210_vm0, %v6924_v46, 0.0  ;;  %v2596_v18 = vrot.slane %v2595_v58, 1 }
 0x2dc   : > { %v2604_v55 = vadd.f32 %v2603_v24, %v2602_v19  ;;  %v2612_v23 = vrot.slane %v2611_v15, 2  ;;  %v2618_v63 = vadd.f32 %v2617_v47, %v2616_v62  ;;  %v2625_v50 = vsel %vm210_vm0, %v6928_v41, 0.0 }
 0x2dd   : > { %v2626_v45 = vsel %vm210_vm0, %v6932_v34, 0.0  ;;  %v2634_v42 = vmul.f32 %v6857_v0, %v6857_v0  ;;  %v2635_v38 = vmul.f32 %v6860_v57, %v6857_v0  ;;  %v2597_v10 = vadd.f32 %v2596_v18, %v2595_v58 }
 0x2de   : > { %v2605_v60 = vrot.slane %v2604_v55, 1  ;;  %v2613_v5 = vadd.f32 %v2612_v23, %v2611_v15  ;;  %v2619_v46 = vrot.slane %v2618_v63, 4  ;;  %v2627_v6 = vadd.f32 %v2626_v45, %v2625_v50 }
 0x2df   : > { %v2636_v59 = vmul.f32 %v6863_v3, %v6857_v0  ;;  %v2637_v41 = vmul.f32 %v6866_v54, %v6857_v0  ;;  %v2638_v34 = vmul.f32 %v6869_v37, %v6857_v0  ;;  %v2639_v44 = vmul.f32 %v6872_v30, %v6857_v0 }
 0x2e0   : > { %v2606_v8 = vadd.f32 %v2605_v60, %v2604_v55  ;;  %v2614_v16 = vrot.slane %v2613_v5, 1  ;;  %v2620_v26 = vadd.f32 %v2619_v46, %v2618_v63  ;;  %v2628_v48 = vrot.slane %v2627_v6, 4 }
 0x2e1   : > { %v2640_v43 = vmul.f32 %v6875_v28, %v6857_v0  ;;  %v2641_v31 = vmul.f32 %v6878_v20, %v6857_v0  ;;  %v2642_v19 = vmul.f32 %v6881_v11, %v6857_v0  ;;  %v2643_v32 = vmul.f32 %v6884_v2, %v6857_v0 }
 0x2e2   : > { %v2615_v53 = vadd.f32 %v2614_v16, %v2613_v5  ;;  %v2621_v4 = vrot.slane %v2620_v26, 2  ;;  %v2644_v58 = vadd.f32 %v2634_v42, %v2552_v7  ;;  %v2629_v24 = vadd.f32 %v2628_v48, %v2627_v6 }
 0x2e3   : > { %v2645_v15 = vadd.f32 %v2635_v38, %v2561_v22  ;;  %v2646_v62 = vadd.f32 %v2636_v59, %v2570_v13  ;;  %v2647_v47 = vadd.f32 %v2637_v41, %v2579_v9  ;;  %v2648_v55 = vadd.f32 %v2638_v34, %v2588_v17  ;;  %v8575_v38 = vld [vmem:[#allocation12_spill] sm:$0xff] }
 0x2e4   : > { %v2622_v18 = vadd.f32 %v2621_v4, %v2620_v26  ;;  %v2649_v23 = vadd.f32 %v2639_v44, %v2597_v10  ;;  %v2650_v63 = vadd.f32 %v2640_v43, %v2606_v8  ;;  %v2630_v50 = vrot.slane %v2629_v24, 2 }
 0x2e5   : > { %v2651_v45 = vadd.f32 %v2641_v31, %v2615_v53  ;;  %v2654_v60 = vmul.f32 %v8552_v12, %v2644_v58  ;;  %v8574_v5 = vsub.f32 1.0, %v8552_v12 }
 0x2e6   : > { %v2623_v46 = vrot.slane %v2622_v18, 1  ;;  %v2631_v11 = vadd.f32 %v2630_v50, %v2629_v24 }
 0x2e7   : > { %v2656_v16 = vadd.f32 %v8574_v5, %v2654_v60 }
 0x2e8   : > { %v2624_v20 = vadd.f32 %v2623_v46, %v2622_v18  ;;  %v2632_v2 = vrot.slane %v2631_v11, 1 }
 0x2e9   : > { %3873 = vlog2.f32 %v2656_v16 }
 0x2ea   : > { %v2652_v7 = vadd.f32 %v2642_v19, %v2624_v20  ;;  %3875 = vrcp.f32 %v2656_v16  ;;  %v2633_v22 = vadd.f32 %v2632_v2, %v2631_v11 }
 0x2ec   : > { %v2653_v13 = vadd.f32 %v2643_v32, %v2633_v22 }
 0x2f6   : > { %v3874_v9 = vpop.eup %3873 }
 0x2f7   : > { %v3876_v17 = vpop.eup %3875  ;;  %v2658_v42 = vmul.f32 0.6931472, %v3874_v9 }
 0x2f8   : > { %v2661_v6 = vmul.f32 %v3876_v17, %v2645_v15  ;;  %v2662_v59 = vmul.f32 %v3876_v17, %v2646_v62  ;;  %v2663_v41 = vmul.f32 %v3876_v17, %v2647_v47  ;;  %v2664_v34 = vmul.f32 %v3876_v17, %v2648_v55 }
 0x2f9   : > { %v6983_v8 = vadd.f32 %v2658_v42, %v6764_v40  ;;  %v2665_v12 = vmul.f32 %v3876_v17, %v2649_v23  ;;  %v2666_v26 = vmul.f32 %v3876_v17, %v2650_v63  ;;  %v2667_v44 = vmul.f32 %v3876_v17, %v2651_v45 }
 0x2fa   : > { %v2668_v48 = vmul.f32 %v3876_v17, %v2652_v7  ;;  %v2669_v20 = vmul.f32 %v3876_v17, %v2653_v13  ;;  %v2670_v11 = vmul.f32 %v2661_v6, %v6787_v33  ;;  %v2671_v2 = vmul.f32 %v2661_v6, %v6790_v21 }
 0x2fb   : > { %v2672_v43 = vmul.f32 %v2662_v59, %v6787_v33  ;;  %v2673_v31 = vmul.f32 %v2662_v59, %v6790_v21  ;;  %v2674_v19 = vmul.f32 %v2663_v41, %v6787_v33  ;;  %v2675_v53 = vmul.f32 %v2663_v41, %v6790_v21 }
 0x2fc   : > { %v2676_v40 = vmul.f32 %v2664_v34, %v6787_v33  ;;  %v2677_v4 = vmul.f32 %v2664_v34, %v6790_v21  ;;  %v2678_v32 = vmul.f32 %v2665_v12, %v6787_v33  ;;  %v2679_v58 = vmul.f32 %v2665_v12, %v6790_v21 }
 0x2fd   : > { %v2680_v24 = vmul.f32 %v2666_v26, %v6787_v33  ;;  %v2681_v15 = vmul.f32 %v2666_v26, %v6790_v21  ;;  %v2682_v62 = vmul.f32 %v2667_v44, %v6787_v33  ;;  %v2683_v47 = vmul.f32 %v2667_v44, %v6790_v21 }
 0x2fe   : > { %v2684_v18 = vmul.f32 %v2668_v48, %v6787_v33  ;;  %v2685_v55 = vmul.f32 %v2668_v48, %v6790_v21  ;;  %v2686_v23 = vmul.f32 %v2669_v20, %v6787_v33  ;;  %v2687_v63 = vmul.f32 %v2669_v20, %v6790_v21 }
 0x2ff   : > { %v7004_v50 = vsub.f32 %v6793_v14, %v2670_v11  ;;  %v7007_v45 = vsub.f32 %v6796_v51, %v2671_v2  ;;  %v7010_v60 = vsub.f32 %v6799_v61, %v2672_v43  ;;  %v7013_v46 = vsub.f32 %v6802_v25, %v2673_v31 }
 0x300   : > { %v7016_v5 = vsub.f32 %v6805_v29, %v2674_v19  ;;  %v7019_v16 = vsub.f32 %v6808_v56, %v2675_v53  ;;  %v7022_v33 = vsub.f32 %v6811_v1, %v2676_v40  ;;  %v7025_v21 = vsub.f32 %v6814_v27, %v2677_v4  ;;  %v8576_v56 = vld [vmem:[#allocation46_spill] sm:$0xff]  ;;  %v8577_v27 = vld [vmem:[#allocation49_spill] sm:$0xff] }
 0x301   : > { %v7028_v14 = vsub.f32 %v6817_v39, %v2678_v32  ;;  %v7031_v51 = vsub.f32 %v6820_v36, %v2679_v58  ;;  %v7034_v61 = vsub.f32 %v6823_v35, %v2680_v24  ;;  %v7037_v25 = vsub.f32 %v6826_v49, %v2681_v15  ;;  %v8578_v39 = vld [vmem:[#allocation50_spill] sm:$0xff]  ;;  %v8579_v36 = vld [vmem:[#allocation51_spill] sm:$0xff]  ;;  %v8580_v35 = vld [vmem:[#allocation52_spill] sm:$0xff] }
 0x302   : > { %v7040_v29 = vsub.f32 %v6829_v52, %v2682_v62  ;;  %v7043_v1 = vsub.f32 %v8576_v56, %v2683_v47  ;;  %v7046_v7 = vsub.f32 %v8577_v27, %v2684_v18  ;;  %v7049_v22 = vsub.f32 %v8578_v39, %v2685_v55 }
 0x303   : > { %v7052_v13 = vsub.f32 %v8579_v36, %v2686_v23  ;;  %v7055_v9 = vsub.f32 %v8580_v35, %v2687_v63  ;;  %v2706_v49 = vmul.f32 %v2661_v6, %v6857_v0  ;;  %v2707_v52 = vmul.f32 %v2662_v59, %v6857_v0 }
 0x304   : > { %v2708_v17 = vmul.f32 %v2663_v41, %v6857_v0  ;;  %v2709_v42 = vmul.f32 %v2664_v34, %v6857_v0  ;;  %v2710_v11 = vmul.f32 %v2665_v12, %v6857_v0  ;;  %v2711_v2 = vmul.f32 %v2666_v26, %v6857_v0  ;;  %v8581_v26 = vld [vmem:[#allocation53_spill] sm:$0xff] }
 0x305   : > { %v2712_v43 = vmul.f32 %v2667_v44, %v6857_v0  ;;  %v2713_v31 = vmul.f32 %v2668_v48, %v6857_v0  ;;  %v2714_v19 = vmul.f32 %v2669_v20, %v6857_v0  ;;  %v7067_v53 = vsub.f32 %v6860_v57, %v2706_v49  ;;  %v8582_v57 = vld [vmem:[#allocation54_spill] sm:$0xff] }
 0x306   : > { %v7070_v6 = vsub.f32 %v6863_v3, %v2707_v52  ;;  %v7073_v59 = vsub.f32 %v6866_v54, %v2708_v17  ;;  %v7076_v41 = vsub.f32 %v6869_v37, %v2709_v42  ;;  %v7079_v34 = vsub.f32 %v6872_v30, %v2710_v11  ;;  %v8583_v3 = vld [vmem:[#allocation55_spill] sm:$0xff] }
 0x307   : > { %v7082_v12 = vsub.f32 %v6875_v28, %v2711_v2  ;;  %v7085_v0 = vsub.f32 %v8581_v26, %v2712_v43  ;;  %v7088_v44 = vsub.f32 %v8582_v57, %v2713_v31  ;;  %v7091_v48 = vsub.f32 %v8583_v3, %v2714_v19 }
 0x308   : > { %v2724_v54 = vmul.f32 %v7004_v50, %v7004_v50  ;;  %v2725_v37 = vmul.f32 %v7007_v45, %v7007_v45  ;;  %v2726_v30 = vmul.f32 %v7010_v60, %v7004_v50  ;;  %v2727_v28 = vmul.f32 %v7013_v46, %v7007_v45 }
 0x309   : > { %v2728_v20 = vmul.f32 %v7016_v5, %v7004_v50  ;;  %v2729_v40 = vmul.f32 %v7019_v16, %v7007_v45  ;;  %v2730_v4 = vmul.f32 %v7022_v33, %v7004_v50  ;;  %v2731_v32 = vmul.f32 %v7025_v21, %v7007_v45 }
 0x30a   : > { %v2732_v58 = vmul.f32 %v7028_v14, %v7004_v50  ;;  %v2733_v24 = vmul.f32 %v7031_v51, %v7007_v45  ;;  %v2734_v15 = vmul.f32 %v7034_v61, %v7004_v50  ;;  %v2735_v62 = vmul.f32 %v7037_v25, %v7007_v45 }
 0x30b   : > { %v2736_v47 = vmul.f32 %v7040_v29, %v7004_v50  ;;  %v2737_v18 = vmul.f32 %v7043_v1, %v7007_v45  ;;  %v2738_v55 = vmul.f32 %v7046_v7, %v7004_v50  ;;  %v2739_v23 = vmul.f32 %v7049_v22, %v7007_v45 }
 0x30c   : > { %v7127_v63 = vmul.f32 %v7052_v13, %v7004_v50  ;;  %v7131_v56 = vmul.f32 %v7055_v9, %v7007_v45  ;;  %v2742_v27 = vsel %vm210_vm0, %v2724_v54, 0.0  ;;  %v2743_v39 = vsel %vm210_vm0, %v2725_v37, 0.0 }
 0x30d   : > { %v2744_v36 = vadd.f32 %v2743_v39, %v2742_v27  ;;  %v2751_v35 = vsel %vm210_vm0, %v2726_v30, 0.0  ;;  %v2752_v49 = vsel %vm210_vm0, %v2727_v28, 0.0  ;;  %v2760_v52 = vsel %vm210_vm0, %v2728_v20, 0.0 }
 0x30e   : > { %v2753_v17 = vadd.f32 %v2752_v49, %v2751_v35  ;;  %v2761_v42 = vsel %vm210_vm0, %v2729_v40, 0.0  ;;  %v2769_v11 = vsel %vm210_vm0, %v2730_v4, 0.0  ;;  %v2770_v2 = vsel %vm210_vm0, %v2731_v32, 0.0 }
 0x30f   : > { %v2745_v43 = vrot.slane %v2744_v36, 4  ;;  %v2762_v31 = vadd.f32 %v2761_v42, %v2760_v52  ;;  %v2771_v19 = vadd.f32 %v2770_v2, %v2769_v11  ;;  %v2778_v26 = vsel %vm210_vm0, %v2732_v58, 0.0 }
 0x310   : > { %v2754_v57 = vrot.slane %v2753_v17, 4  ;;  %v2779_v3 = vsel %vm210_vm0, %v2733_v24, 0.0  ;;  %v2787_v54 = vsel %vm210_vm0, %v2734_v15, 0.0  ;;  %v2788_v37 = vsel %vm210_vm0, %v2735_v62, 0.0 }
 0x311   : > { %v2746_v30 = vadd.f32 %v2745_v43, %v2744_v36  ;;  %v2763_v28 = vrot.slane %v2762_v31, 4  ;;  %v2772_v20 = vrot.slane %v2771_v19, 4  ;;  %v2780_v40 = vadd.f32 %v2779_v3, %v2778_v26 }
 0x312   : > { %v2755_v27 = vadd.f32 %v2754_v57, %v2753_v17  ;;  %v2789_v4 = vadd.f32 %v2788_v37, %v2787_v54  ;;  %v2796_v32 = vsel %vm210_vm0, %v2736_v47, 0.0  ;;  %v2797_v39 = vsel %vm210_vm0, %v2737_v18, 0.0 }
 0x313   : > { %v2747_v35 = vrot.slane %v2746_v30, 2  ;;  %v2764_v49 = vadd.f32 %v2763_v28, %v2762_v31  ;;  %v2773_v58 = vadd.f32 %v2772_v20, %v2771_v19  ;;  %v2781_v52 = vrot.slane %v2780_v40, 4 }
 0x314   : > { %v2756_v42 = vrot.slane %v2755_v27, 2  ;;  %v2790_v24 = vrot.slane %v2789_v4, 4  ;;  %v2798_v11 = vadd.f32 %v2797_v39, %v2796_v32  ;;  %v2805_v15 = vsel %vm210_vm0, %v2738_v55, 0.0 }
 0x315   : > { %v2748_v62 = vadd.f32 %v2747_v35, %v2746_v30  ;;  %v2765_v36 = vrot.slane %v2764_v49, 2  ;;  %v2774_v2 = vrot.slane %v2773_v58, 2  ;;  %v2782_v43 = vadd.f32 %v2781_v52, %v2780_v40 }
 0x316   : > { %v2757_v26 = vadd.f32 %v2756_v42, %v2755_v27  ;;  %v2791_v17 = vadd.f32 %v2790_v24, %v2789_v4  ;;  %v2799_v57 = vrot.slane %v2798_v11, 4  ;;  %v2806_v47 = vsel %vm210_vm0, %v2739_v23, 0.0 }
 0x317   : > { %v2749_v3 = vrot.slane %v2748_v62, 1  ;;  %v2766_v18 = vadd.f32 %v2765_v36, %v2764_v49  ;;  %v2775_v54 = vadd.f32 %v2774_v2, %v2773_v58  ;;  %v2783_v31 = vrot.slane %v2782_v43, 2 }
 0x318   : > { %v2758_v19 = vrot.slane %v2757_v26, 1  ;;  %v2792_v37 = vrot.slane %v2791_v17, 2  ;;  %v2800_v28 = vadd.f32 %v2799_v57, %v2798_v11  ;;  %v2807_v20 = vadd.f32 %v2806_v47, %v2805_v15 }
 0x319   : > { %v2750_v32 = vadd.f32 %v2749_v3, %v2748_v62  ;;  %v2767_v39 = vrot.slane %v2766_v18, 1  ;;  %v2776_v55 = vrot.slane %v2775_v54, 1  ;;  %v2784_v30 = vadd.f32 %v2783_v31, %v2782_v43 }
 0x31a   : > { %v2759_v35 = vadd.f32 %v2758_v19, %v2757_v26  ;;  %v2793_v10 = vadd.f32 %v2792_v37, %v2791_v17  ;;  %v2801_v40 = vrot.slane %v2800_v28, 2  ;;  %v2808_v27 = vrot.slane %v2807_v20, 4 }
 0x31b   : > { %v2768_v4 = vadd.f32 %v2767_v39, %v2766_v18  ;;  %v2777_v52 = vadd.f32 %v2776_v55, %v2775_v54  ;;  %v2785_v42 = vrot.slane %v2784_v30, 1  ;;  %v2814_v23 = vsel %vm210_vm0, %v7127_v63, 0.0 }
 0x31c   : > { %v2794_v49 = vrot.slane %v2793_v10, 1  ;;  %v2802_v58 = vadd.f32 %v2801_v40, %v2800_v28  ;;  %v2809_v24 = vadd.f32 %v2808_v27, %v2807_v20  ;;  %v2815_v11 = vsel %vm210_vm0, %v7131_v56, 0.0 }
 0x31d   : > { %v2786_v15 = vadd.f32 %v2785_v42, %v2784_v30  ;;  %v2816_v62 = vadd.f32 %v2815_v11, %v2814_v23  ;;  %v2823_v36 = vmul.f32 %v7067_v53, %v7067_v53  ;;  %v2824_v2 = vmul.f32 %v7070_v6, %v7067_v53 }
 0x31e   : > { %v2795_v43 = vadd.f32 %v2794_v49, %v2793_v10  ;;  %v2803_v26 = vrot.slane %v2802_v58, 1  ;;  %v2810_v17 = vrot.slane %v2809_v24, 2  ;;  %v2825_v63 = vmul.f32 %v7073_v59, %v7067_v53 }
 0x31f   : > { %v2817_v57 = vrot.slane %v2816_v62, 4  ;;  %v2826_v47 = vmul.f32 %v7076_v41, %v7067_v53  ;;  %v2827_v56 = vmul.f32 %v7079_v34, %v7067_v53  ;;  %v2828_v3 = vmul.f32 %v7082_v12, %v7067_v53 }
 0x320   : > { %v2804_v18 = vadd.f32 %v2803_v26, %v2802_v58  ;;  %v2811_v54 = vadd.f32 %v2810_v17, %v2809_v24  ;;  %v2829_v10 = vmul.f32 %v7085_v0, %v7067_v53  ;;  %v2830_v31 = vmul.f32 %v7088_v44, %v7067_v53 }
 0x321   : > { %v2818_v19 = vadd.f32 %v2817_v57, %v2816_v62  ;;  %v2831_v37 = vmul.f32 %v7091_v48, %v7067_v53  ;;  %v2832_v28 = vadd.f32 %v2823_v36, %v2750_v32  ;;  %v2833_v20 = vadd.f32 %v2824_v2, %v2759_v35 }
 0x322   : > { %v2812_v39 = vrot.slane %v2811_v54, 1  ;;  %v2834_v55 = vadd.f32 %v2825_v63, %v2768_v4  ;;  %v2835_v30 = vadd.f32 %v2826_v47, %v2777_v52  ;;  %v2836_v40 = vadd.f32 %v2827_v56, %v2786_v15  ;;  %v8585_v15 = vld [vmem:[#allocation13_spill] sm:$0xff] }
 0x323   : > { %v2819_v27 = vrot.slane %v2818_v19, 2  ;;  %v2837_v42 = vadd.f32 %v2828_v3, %v2795_v43  ;;  %v2838_v23 = vadd.f32 %v2829_v10, %v2804_v18  ;;  %v2841_v49 = vmul.f32 %v8575_v38, %v2832_v28 }
 0x324   : > { %v2813_v58 = vadd.f32 %v2812_v39, %v2811_v54  ;;  %v8584_v11 = vsub.f32 1.0, %v8575_v38  ;;  %v3009_v2 = vsub.f32 1.0, %v8585_v15 }
 0x325   : > { %v2820_v24 = vadd.f32 %v2819_v27, %v2818_v19 }
 0x326   : > { %v2843_v26 = vadd.f32 %v8584_v11, %v2841_v49  ;;  %v2839_v62 = vadd.f32 %v2830_v31, %v2813_v58 }
 0x327   : > { %v2821_v17 = vrot.slane %v2820_v24, 1 }
 0x328   : > { %3877 = vlog2.f32 %v2843_v26 }
 0x329   : > { %3879 = vrcp.f32 %v2843_v26  ;;  %v2822_v32 = vadd.f32 %v2821_v17, %v2820_v24 }
 0x32b   : > { %v2840_v35 = vadd.f32 %v2831_v37, %v2822_v32 }
 0x335   : > { %v3878_v36 = vpop.eup %3877 }
 0x336   : > { %v3880_v4 = vpop.eup %3879  ;;  %v2845_v52 = vmul.f32 0.6931472, %v3878_v36 }
 0x337   : > { %v2848_v43 = vmul.f32 %v3880_v4, %v2833_v20  ;;  %v2849_v63 = vmul.f32 %v3880_v4, %v2834_v55  ;;  %v2850_v57 = vmul.f32 %v3880_v4, %v2835_v30  ;;  %v2851_v47 = vmul.f32 %v3880_v4, %v2836_v40 }
 0x338   : > { %v7176_v56 = vadd.f32 %v2845_v52, %v6983_v8  ;;  %v2852_v38 = vmul.f32 %v3880_v4, %v2837_v42  ;;  %v2853_v3 = vmul.f32 %v3880_v4, %v2838_v23  ;;  %v2854_v18 = vmul.f32 %v3880_v4, %v2839_v62 }
 0x339   : > { %v2855_v54 = vmul.f32 %v3880_v4, %v2840_v35  ;;  %v2856_v10 = vmul.f32 %v2848_v43, %v7004_v50  ;;  %v2857_v31 = vmul.f32 %v2848_v43, %v7007_v45  ;;  %v2858_v19 = vmul.f32 %v2849_v63, %v7004_v50 }
 0x33a   : > { %v2859_v37 = vmul.f32 %v2849_v63, %v7007_v45  ;;  %v2860_v28 = vmul.f32 %v2850_v57, %v7004_v50  ;;  %v2861_v20 = vmul.f32 %v2850_v57, %v7007_v45  ;;  %v2862_v39 = vmul.f32 %v2851_v47, %v7004_v50 }
 0x33b   : > { %v2863_v8 = vmul.f32 %v2851_v47, %v7007_v45  ;;  %v2864_v55 = vmul.f32 %v2852_v38, %v7004_v50  ;;  %v2865_v30 = vmul.f32 %v2852_v38, %v7007_v45  ;;  %v2866_v40 = vmul.f32 %v2853_v3, %v7004_v50 }
 0x33c   : > { %v2867_v27 = vmul.f32 %v2853_v3, %v7007_v45  ;;  %v2868_v42 = vmul.f32 %v2854_v18, %v7004_v50  ;;  %v2869_v23 = vmul.f32 %v2854_v18, %v7007_v45  ;;  %v2870_v49 = vmul.f32 %v2855_v54, %v7004_v50 }
 0x33d   : > { %v2871_v58 = vmul.f32 %v2855_v54, %v7007_v45  ;;  %v7195_v24 = vsub.f32 %v7010_v60, %v2856_v10  ;;  %v7198_v11 = vsub.f32 %v7013_v46, %v2857_v31  ;;  %v7201_v26 = vsub.f32 %v7016_v5, %v2858_v19 }
 0x33e   : > { %v7204_v62 = vsub.f32 %v7019_v16, %v2859_v37  ;;  %v7207_v17 = vsub.f32 %v7022_v33, %v2860_v28  ;;  %v7210_v32 = vsub.f32 %v7025_v21, %v2861_v20  ;;  %v7213_v50 = vsub.f32 %v7028_v14, %v2862_v39 }
 0x33f   : > { %v7216_v45 = vsub.f32 %v7031_v51, %v2863_v8  ;;  %v7219_v60 = vsub.f32 %v7034_v61, %v2864_v55  ;;  %v7222_v46 = vsub.f32 %v7037_v25, %v2865_v30  ;;  %v7225_v5 = vsub.f32 %v7040_v29, %v2866_v40 }
 0x340   : > { %v7228_v16 = vsub.f32 %v7043_v1, %v2867_v27  ;;  %v7231_v33 = vsub.f32 %v7046_v7, %v2868_v42  ;;  %v7234_v21 = vsub.f32 %v7049_v22, %v2869_v23  ;;  %v7237_v14 = vsub.f32 %v7052_v13, %v2870_v49 }
 0x341   : > { %v7240_v51 = vsub.f32 %v7055_v9, %v2871_v58  ;;  %v2888_v61 = vmul.f32 %v2848_v43, %v7067_v53  ;;  %v2889_v25 = vmul.f32 %v2849_v63, %v7067_v53  ;;  %v2890_v29 = vmul.f32 %v2850_v57, %v7067_v53 }
 0x342   : > { %v2891_v1 = vmul.f32 %v2851_v47, %v7067_v53  ;;  %v2892_v7 = vmul.f32 %v2852_v38, %v7067_v53  ;;  %v2893_v35 = vmul.f32 %v2853_v3, %v7067_v53  ;;  %v2894_v22 = vmul.f32 %v2854_v18, %v7067_v53 }
 0x343   : > { %v2895_v13 = vmul.f32 %v2855_v54, %v7067_v53  ;;  %v7251_v36 = vsub.f32 %v7070_v6, %v2888_v61  ;;  %v7254_v9 = vsub.f32 %v7073_v59, %v2889_v25  ;;  %v7257_v4 = vsub.f32 %v7076_v41, %v2890_v29 }
 0x344   : > { %v7260_v52 = vsub.f32 %v7079_v34, %v2891_v1  ;;  %v7263_v43 = vsub.f32 %v7082_v12, %v2892_v7  ;;  %v7266_v63 = vsub.f32 %v7085_v0, %v2893_v35  ;;  %v7269_v53 = vsub.f32 %v7088_v44, %v2894_v22 }
 0x345   : > { %v7272_v6 = vsub.f32 %v7091_v48, %v2895_v13  ;;  %v2904_v59 = vmul.f32 %v7195_v24, %v7195_v24  ;;  %v2905_v41 = vmul.f32 %v7198_v11, %v7198_v11  ;;  %v2906_v34 = vmul.f32 %v7201_v26, %v7195_v24 }
 0x346   : > { %v2907_v12 = vmul.f32 %v7204_v62, %v7198_v11  ;;  %v2908_v0 = vmul.f32 %v7207_v17, %v7195_v24  ;;  %v2909_v44 = vmul.f32 %v7210_v32, %v7198_v11  ;;  %v2910_v48 = vmul.f32 %v7213_v50, %v7195_v24 }
 0x347   : > { %v2911_v57 = vmul.f32 %v7216_v45, %v7198_v11  ;;  %v2912_v47 = vmul.f32 %v7219_v60, %v7195_v24  ;;  %v2913_v38 = vmul.f32 %v7222_v46, %v7198_v11  ;;  %v2914_v3 = vmul.f32 %v7225_v5, %v7195_v24 }
 0x348   : > { %v2915_v18 = vmul.f32 %v7228_v16, %v7198_v11  ;;  %v2916_v54 = vmul.f32 %v7231_v33, %v7195_v24  ;;  %v2917_v10 = vmul.f32 %v7234_v21, %v7198_v11  ;;  %v2918_v31 = vmul.f32 %v7237_v14, %v7195_v24 }
 0x349   : > { %v2919_v19 = vmul.f32 %v7240_v51, %v7198_v11  ;;  %v2920_v37 = vsel %vm210_vm0, %v2904_v59, 0.0  ;;  %v2921_v28 = vsel %vm210_vm0, %v2905_v41, 0.0  ;;  %v2929_v20 = vsel %vm210_vm0, %v2906_v34, 0.0 }
 0x34a   : > { %v2922_v39 = vadd.f32 %v2921_v28, %v2920_v37  ;;  %v2930_v8 = vsel %vm210_vm0, %v2907_v12, 0.0  ;;  %v2938_v55 = vsel %vm210_vm0, %v2908_v0, 0.0  ;;  %v2939_v30 = vsel %vm210_vm0, %v2909_v44, 0.0 }
 0x34b   : > { %v2931_v40 = vadd.f32 %v2930_v8, %v2929_v20  ;;  %v2940_v27 = vadd.f32 %v2939_v30, %v2938_v55  ;;  %v2947_v42 = vsel %vm210_vm0, %v2910_v48, 0.0  ;;  %v2948_v23 = vsel %vm210_vm0, %v2911_v57, 0.0 }
 0x34c   : > { %v2923_v49 = vrot.slane %v2922_v39, 4  ;;  %v2949_v58 = vadd.f32 %v2948_v23, %v2947_v42  ;;  %v2956_v61 = vsel %vm210_vm0, %v2912_v47, 0.0  ;;  %v2957_v25 = vsel %vm210_vm0, %v2913_v38, 0.0 }
 0x34d   : > { %v2932_v29 = vrot.slane %v2931_v40, 4  ;;  %v2941_v1 = vrot.slane %v2940_v27, 4  ;;  %v2958_v7 = vadd.f32 %v2957_v25, %v2956_v61  ;;  %v2965_v35 = vsel %vm210_vm0, %v2914_v3, 0.0 }
 0x34e   : > { %v2924_v22 = vadd.f32 %v2923_v49, %v2922_v39  ;;  %v2950_v13 = vrot.slane %v2949_v58, 4  ;;  %v2966_v59 = vsel %vm210_vm0, %v2915_v18, 0.0  ;;  %v2974_v41 = vsel %vm210_vm0, %v2916_v54, 0.0 }
 0x34f   : > { %v2933_v34 = vadd.f32 %v2932_v29, %v2931_v40  ;;  %v2942_v12 = vadd.f32 %v2941_v1, %v2940_v27  ;;  %v2959_v0 = vrot.slane %v2958_v7, 4  ;;  %v2967_v44 = vadd.f32 %v2966_v59, %v2965_v35 }
 0x350   : > { %v2925_v48 = vrot.slane %v2924_v22, 2  ;;  %v2951_v57 = vadd.f32 %v2950_v13, %v2949_v58  ;;  %v2975_v47 = vsel %vm210_vm0, %v2917_v10, 0.0  ;;  %v2983_v38 = vsel %vm210_vm0, %v2918_v31, 0.0 }
 0x351   : > { %v2934_v37 = vrot.slane %v2933_v34, 2  ;;  %v2943_v28 = vrot.slane %v2942_v12, 2  ;;  %v2960_v20 = vadd.f32 %v2959_v0, %v2958_v7  ;;  %v2968_v3 = vrot.slane %v2967_v44, 4 }
 0x352   : > { %v2926_v39 = vadd.f32 %v2925_v48, %v2924_v22  ;;  %v2952_v8 = vrot.slane %v2951_v57, 2  ;;  %v2976_v55 = vadd.f32 %v2975_v47, %v2974_v41  ;;  %v2984_v18 = vsel %vm210_vm0, %v2919_v19, 0.0 }
 0x353   : > { %v2935_v54 = vadd.f32 %v2934_v37, %v2933_v34  ;;  %v2944_v30 = vadd.f32 %v2943_v28, %v2942_v12  ;;  %v2961_v40 = vrot.slane %v2960_v20, 2  ;;  %v2969_v27 = vadd.f32 %v2968_v3, %v2967_v44 }
 0x354   : > { %v2927_v42 = vrot.slane %v2926_v39, 1  ;;  %v2953_v23 = vadd.f32 %v2952_v8, %v2951_v57  ;;  %v2977_v49 = vrot.slane %v2976_v55, 4  ;;  %v2985_v58 = vadd.f32 %v2984_v18, %v2983_v38 }
 0x355   : > { %v2936_v10 = vrot.slane %v2935_v54, 1  ;;  %v2945_v61 = vrot.slane %v2944_v30, 1  ;;  %v2962_v31 = vadd.f32 %v2961_v40, %v2960_v20  ;;  %v2970_v25 = vrot.slane %v2969_v27, 2 }
 0x356   : > { %v2928_v29 = vadd.f32 %v2927_v42, %v2926_v39  ;;  %v2954_v1 = vrot.slane %v2953_v23, 1  ;;  %v2978_v7 = vadd.f32 %v2977_v49, %v2976_v55  ;;  %v2986_v35 = vrot.slane %v2985_v58, 4 }
 0x357   : > { %v2937_v22 = vadd.f32 %v2936_v10, %v2935_v54  ;;  %v2946_v13 = vadd.f32 %v2945_v61, %v2944_v30  ;;  %v2963_v59 = vrot.slane %v2962_v31, 1  ;;  %v2971_v19 = vadd.f32 %v2970_v25, %v2969_v27 }
 0x358   : > { %v2955_v41 = vadd.f32 %v2954_v1, %v2953_v23  ;;  %v2979_v34 = vrot.slane %v2978_v7, 2  ;;  %v2987_v12 = vadd.f32 %v2986_v35, %v2985_v58  ;;  %v2992_v0 = vmul.f32 %v7251_v36, %v7251_v36 }
 0x359   : > { %v2964_v44 = vadd.f32 %v2963_v59, %v2962_v31  ;;  %v2972_v48 = vrot.slane %v2971_v19, 1  ;;  %v2993_v57 = vmul.f32 %v7254_v9, %v7251_v36  ;;  %v2994_v47 = vmul.f32 %v7257_v4, %v7251_v36 }
 0x35a   : > { %v2980_v38 = vadd.f32 %v2979_v34, %v2978_v7  ;;  %v2988_v37 = vrot.slane %v2987_v12, 2  ;;  %v2995_v28 = vmul.f32 %v7260_v52, %v7251_v36  ;;  %v2996_v20 = vmul.f32 %v7263_v43, %v7251_v36 }
 0x35b   : > { %v2973_v3 = vadd.f32 %v2972_v48, %v2971_v19  ;;  %v2997_v39 = vmul.f32 %v7266_v63, %v7251_v36  ;;  %v2998_v8 = vmul.f32 %v7269_v53, %v7251_v36  ;;  %v2999_v55 = vmul.f32 %v7272_v6, %v7251_v36 }
 0x35c   : > { %v2981_v18 = vrot.slane %v2980_v38, 1  ;;  %v2989_v54 = vadd.f32 %v2988_v37, %v2987_v12  ;;  %v3000_v30 = vadd.f32 %v2992_v0, %v2928_v29  ;;  %v3001_v40 = vadd.f32 %v2993_v57, %v2937_v22  ;;  %v8586_v22 = vld [vmem:[#allocation14_spill] sm:$0xff] }
 0x35d   : > { %v3002_v27 = vadd.f32 %v2994_v47, %v2946_v13  ;;  %v3003_v42 = vadd.f32 %v2995_v28, %v2955_v41  ;;  %v3004_v23 = vadd.f32 %v2996_v20, %v2964_v44  ;;  %v3005_v49 = vadd.f32 %v2997_v39, %v2973_v3 }
 0x35e   : > { %v2982_v58 = vadd.f32 %v2981_v18, %v2980_v38  ;;  %v2990_v10 = vrot.slane %v2989_v54, 1  ;;  %v3008_v61 = vmul.f32 %v8585_v15, %v3000_v30  ;;  %v3156_v13 = vsub.f32 1.0, %v8586_v22 }
 0x360   : > { %v2991_v31 = vadd.f32 %v2990_v10, %v2989_v54  ;;  %v3006_v25 = vadd.f32 %v2998_v8, %v2982_v58  ;;  %v3010_v1 = vadd.f32 %v3009_v2, %v3008_v61 }
 0x362   : > { %v3007_v7 = vadd.f32 %v2999_v55, %v2991_v31  ;;  %3881 = vlog2.f32 %v3010_v1 }
 0x363   : > { %3883 = vrcp.f32 %v3010_v1 }
 0x36f   : > { %v3882_v35 = vpop.eup %3881 }
 0x370   : > { %v3884_v59 = vpop.eup %3883  ;;  %v3012_v29 = vmul.f32 0.6931472, %v3882_v35 }
 0x371   : > { %v3015_v19 = vmul.f32 %v3884_v59, %v3001_v40  ;;  %v3016_v41 = vmul.f32 %v3884_v59, %v3002_v27  ;;  %v3017_v34 = vmul.f32 %v3884_v59, %v3003_v42  ;;  %v3018_v12 = vmul.f32 %v3884_v59, %v3004_v23 }
 0x372   : > { %v7343_v0 = vadd.f32 %v3012_v29, %v7176_v56  ;;  %v3019_v44 = vmul.f32 %v3884_v59, %v3005_v49  ;;  %v3020_v48 = vmul.f32 %v3884_v59, %v3006_v25  ;;  %v3021_v57 = vmul.f32 %v3884_v59, %v3007_v7 }
 0x373   : > { %v3022_v15 = vmul.f32 %v3015_v19, %v7195_v24  ;;  %v3023_v2 = vmul.f32 %v3015_v19, %v7198_v11  ;;  %v3024_v47 = vmul.f32 %v3016_v41, %v7195_v24  ;;  %v3025_v38 = vmul.f32 %v3016_v41, %v7198_v11 }
 0x374   : > { %v3026_v37 = vmul.f32 %v3017_v34, %v7195_v24  ;;  %v3027_v28 = vmul.f32 %v3017_v34, %v7198_v11  ;;  %v3028_v20 = vmul.f32 %v3018_v12, %v7195_v24  ;;  %v3029_v56 = vmul.f32 %v3018_v12, %v7198_v11 }
 0x375   : > { %v3030_v3 = vmul.f32 %v3019_v44, %v7195_v24  ;;  %v3031_v39 = vmul.f32 %v3019_v44, %v7198_v11  ;;  %v3032_v8 = vmul.f32 %v3020_v48, %v7195_v24  ;;  %v3033_v55 = vmul.f32 %v3020_v48, %v7198_v11 }
 0x376   : > { %v3034_v18 = vmul.f32 %v3021_v57, %v7195_v24  ;;  %v3035_v54 = vmul.f32 %v3021_v57, %v7198_v11  ;;  %v7360_v30 = vsub.f32 %v7201_v26, %v3022_v15  ;;  %v7363_v40 = vsub.f32 %v7204_v62, %v3023_v2 }
 0x377   : > { %v7366_v27 = vsub.f32 %v7207_v17, %v3024_v47  ;;  %v7369_v42 = vsub.f32 %v7210_v32, %v3025_v38  ;;  %v7372_v23 = vsub.f32 %v7213_v50, %v3026_v37  ;;  %v7375_v49 = vsub.f32 %v7216_v45, %v3027_v28 }
 0x378   : > { %v7378_v24 = vsub.f32 %v7219_v60, %v3028_v20  ;;  %v7381_v11 = vsub.f32 %v7222_v46, %v3029_v56  ;;  %v7384_v26 = vsub.f32 %v7225_v5, %v3030_v3  ;;  %v7387_v62 = vsub.f32 %v7228_v16, %v3031_v39 }
 0x379   : > { %v7390_v17 = vsub.f32 %v7231_v33, %v3032_v8  ;;  %v7393_v32 = vsub.f32 %v7234_v21, %v3033_v55  ;;  %v7396_v50 = vsub.f32 %v7237_v14, %v3034_v18  ;;  %v7399_v45 = vsub.f32 %v7240_v51, %v3035_v54 }
 0x37a   : > { %v3050_v60 = vmul.f32 %v3015_v19, %v7251_v36  ;;  %v3051_v46 = vmul.f32 %v3016_v41, %v7251_v36  ;;  %v3052_v5 = vmul.f32 %v3017_v34, %v7251_v36  ;;  %v3053_v16 = vmul.f32 %v3018_v12, %v7251_v36 }
 0x37b   : > { %v3054_v33 = vmul.f32 %v3019_v44, %v7251_v36  ;;  %v3055_v58 = vmul.f32 %v3020_v48, %v7251_v36  ;;  %v3056_v21 = vmul.f32 %v3021_v57, %v7251_v36  ;;  %v3064_v14 = vmul.f32 %v7360_v30, %v7360_v30 }
 0x37c   : > { %v7411_v51 = vsub.f32 %v7254_v9, %v3050_v60  ;;  %v7414_v10 = vsub.f32 %v7257_v4, %v3051_v46  ;;  %v7417_v61 = vsub.f32 %v7260_v52, %v3052_v5  ;;  %v7420_v31 = vsub.f32 %v7263_v43, %v3053_v16 }
 0x37d   : > { %v7423_v25 = vsub.f32 %v7266_v63, %v3054_v33  ;;  %v7426_v36 = vsub.f32 %v7269_v53, %v3055_v58  ;;  %v7429_v1 = vsub.f32 %v7272_v6, %v3056_v21  ;;  %v3065_v9 = vmul.f32 %v7363_v40, %v7363_v40 }
 0x37e   : > { %v3066_v4 = vmul.f32 %v7366_v27, %v7360_v30  ;;  %v3067_v52 = vmul.f32 %v7369_v42, %v7363_v40  ;;  %v3068_v43 = vmul.f32 %v7372_v23, %v7360_v30  ;;  %v3069_v63 = vmul.f32 %v7375_v49, %v7363_v40 }
 0x37f   : > { %v3070_v53 = vmul.f32 %v7378_v24, %v7360_v30  ;;  %v3071_v6 = vmul.f32 %v7381_v11, %v7363_v40  ;;  %v3072_v7 = vmul.f32 %v7384_v26, %v7360_v30  ;;  %v3073_v35 = vmul.f32 %v7387_v62, %v7363_v40 }
 0x380   : > { %v3074_v59 = vmul.f32 %v7390_v17, %v7360_v30  ;;  %v3075_v29 = vmul.f32 %v7393_v32, %v7363_v40  ;;  %v3076_v19 = vmul.f32 %v7396_v50, %v7360_v30  ;;  %v3077_v41 = vmul.f32 %v7399_v45, %v7363_v40 }
 0x381   : > { %v3078_v34 = vsel %vm210_vm0, %v3064_v14, 0.0  ;;  %v3079_v12 = vsel %vm210_vm0, %v3065_v9, 0.0  ;;  %v3087_v44 = vsel %vm210_vm0, %v3066_v4, 0.0  ;;  %v3088_v48 = vsel %vm210_vm0, %v3067_v52, 0.0 }
 0x382   : > { %v3080_v57 = vadd.f32 %v3079_v12, %v3078_v34  ;;  %v3089_v15 = vadd.f32 %v3088_v48, %v3087_v44  ;;  %v3096_v2 = vsel %vm210_vm0, %v3068_v43, 0.0  ;;  %v3097_v47 = vsel %vm210_vm0, %v3069_v63, 0.0 }
 0x383   : > { %v3098_v38 = vadd.f32 %v3097_v47, %v3096_v2  ;;  %v3105_v37 = vsel %vm210_vm0, %v3070_v53, 0.0  ;;  %v3106_v28 = vsel %vm210_vm0, %v3071_v6, 0.0  ;;  %v3114_v20 = vsel %vm210_vm0, %v3072_v7, 0.0 }
 0x384   : > { %v3081_v56 = vrot.slane %v3080_v57, 4  ;;  %v3090_v3 = vrot.slane %v3089_v15, 4  ;;  %v3107_v39 = vadd.f32 %v3106_v28, %v3105_v37  ;;  %v3115_v8 = vsel %vm210_vm0, %v3073_v35, 0.0 }
 0x385   : > { %v3099_v55 = vrot.slane %v3098_v38, 4  ;;  %v3116_v18 = vadd.f32 %v3115_v8, %v3114_v20  ;;  %v3123_v54 = vsel %vm210_vm0, %v3074_v59, 0.0  ;;  %v3124_v60 = vsel %vm210_vm0, %v3075_v29, 0.0 }
 0x386   : > { %v3082_v46 = vadd.f32 %v3081_v56, %v3080_v57  ;;  %v3091_v5 = vadd.f32 %v3090_v3, %v3089_v15  ;;  %v3108_v16 = vrot.slane %v3107_v39, 4  ;;  %v3125_v33 = vadd.f32 %v3124_v60, %v3123_v54 }
 0x387   : > { %v3100_v58 = vadd.f32 %v3099_v55, %v3098_v38  ;;  %v3117_v21 = vrot.slane %v3116_v18, 4  ;;  %v3132_v14 = vsel %vm210_vm0, %v3076_v19, 0.0  ;;  %v3133_v9 = vsel %vm210_vm0, %v3077_v41, 0.0 }
 0x388   : > { %v3083_v4 = vrot.slane %v3082_v46, 2  ;;  %v3092_v52 = vrot.slane %v3091_v5, 2  ;;  %v3109_v43 = vadd.f32 %v3108_v16, %v3107_v39  ;;  %v3126_v63 = vrot.slane %v3125_v33, 4 }
 0x389   : > { %v3101_v53 = vrot.slane %v3100_v58, 2  ;;  %v3118_v6 = vadd.f32 %v3117_v21, %v3116_v18  ;;  %v3134_v7 = vadd.f32 %v3133_v9, %v3132_v14  ;;  %v3141_v35 = vmul.f32 %v7411_v51, %v7411_v51 }
 0x38a   : > { %v3084_v59 = vadd.f32 %v3083_v4, %v3082_v46  ;;  %v3093_v29 = vadd.f32 %v3092_v52, %v3091_v5  ;;  %v3110_v34 = vrot.slane %v3109_v43, 2  ;;  %v3127_v12 = vadd.f32 %v3126_v63, %v3125_v33 }
 0x38b   : > { %v3102_v44 = vadd.f32 %v3101_v53, %v3100_v58  ;;  %v3119_v48 = vrot.slane %v3118_v6, 2  ;;  %v3135_v57 = vrot.slane %v3134_v7, 4  ;;  %v3142_v19 = vmul.f32 %v7414_v10, %v7411_v51 }
 0x38c   : > { %v3085_v41 = vrot.slane %v3084_v59, 1  ;;  %v3094_v15 = vrot.slane %v3093_v29, 1  ;;  %v3111_v2 = vadd.f32 %v3110_v34, %v3109_v43  ;;  %v3128_v47 = vrot.slane %v3127_v12, 2 }
 0x38d   : > { %v3103_v38 = vrot.slane %v3102_v44, 1  ;;  %v3120_v37 = vadd.f32 %v3119_v48, %v3118_v6  ;;  %v3136_v28 = vadd.f32 %v3135_v57, %v3134_v7  ;;  %v3143_v20 = vmul.f32 %v7417_v61, %v7411_v51 }
 0x38e   : > { %v3086_v56 = vadd.f32 %v3085_v41, %v3084_v59  ;;  %v3095_v3 = vadd.f32 %v3094_v15, %v3093_v29  ;;  %v3112_v39 = vrot.slane %v3111_v2, 1  ;;  %v3129_v8 = vadd.f32 %v3128_v47, %v3127_v12 }
 0x38f   : > { %v3104_v55 = vadd.f32 %v3103_v38, %v3102_v44  ;;  %v3121_v18 = vrot.slane %v3120_v37, 1  ;;  %v3137_v54 = vrot.slane %v3136_v28, 2  ;;  %v3144_v60 = vmul.f32 %v7420_v31, %v7411_v51 }
 0x390   : > { %v3113_v46 = vadd.f32 %v3112_v39, %v3111_v2  ;;  %v3130_v5 = vrot.slane %v3129_v8, 1  ;;  %v3145_v16 = vmul.f32 %v7423_v25, %v7411_v51  ;;  %v3146_v33 = vmul.f32 %v7426_v36, %v7411_v51 }
 0x391   : > { %v3122_v58 = vadd.f32 %v3121_v18, %v3120_v37  ;;  %v3138_v21 = vadd.f32 %v3137_v54, %v3136_v28  ;;  %v3147_v14 = vmul.f32 %v7429_v1, %v7411_v51  ;;  %v3148_v9 = vadd.f32 %v3141_v35, %v3086_v56 }
 0x392   : > { %v3131_v4 = vadd.f32 %v3130_v5, %v3129_v8  ;;  %v3149_v52 = vadd.f32 %v3142_v19, %v3095_v3  ;;  %v3150_v43 = vadd.f32 %v3143_v20, %v3104_v55  ;;  %v3151_v63 = vadd.f32 %v3144_v60, %v3113_v46 }
 0x393   : > { %v3139_v53 = vrot.slane %v3138_v21, 1  ;;  %v3152_v6 = vadd.f32 %v3145_v16, %v3122_v58  ;;  %v3155_v7 = vmul.f32 %v8586_v22, %v3148_v9 }
 0x394   : > { %v3153_v59 = vadd.f32 %v3146_v33, %v3131_v4 }
 0x395   : > { %v3140_v29 = vadd.f32 %v3139_v53, %v3138_v21  ;;  %v3157_v34 = vadd.f32 %v3156_v13, %v3155_v7 }
 0x397   : > { %v3154_v12 = vadd.f32 %v3147_v14, %v3140_v29  ;;  %3885 = vlog2.f32 %v3157_v34 }
 0x398   : > { %3887 = vrcp.f32 %v3157_v34 }
 0x3a4   : > { %v3886_v44 = vpop.eup %3885 }
 0x3a5   : > { %v3888_v48 = vpop.eup %3887  ;;  %v3159_v57 = vmul.f32 0.6931472, %v3886_v44 }
 0x3a6   : > { %v3162_v35 = vmul.f32 %v3888_v48, %v3149_v52  ;;  %v3163_v41 = vmul.f32 %v3888_v48, %v3150_v43  ;;  %v3164_v19 = vmul.f32 %v3888_v48, %v3151_v63  ;;  %v3165_v15 = vmul.f32 %v3888_v48, %v3152_v6 }
 0x3a7   : > { %v7489_v2 = vadd.f32 %v3159_v57, %v7343_v0  ;;  %v3166_v47 = vmul.f32 %v3888_v48, %v3153_v59  ;;  %v3167_v38 = vmul.f32 %v3888_v48, %v3154_v12 }
 0x3a8   : > { %v3168_v37 = vmul.f32 %v3162_v35, %v7360_v30  ;;  %v3169_v22 = vmul.f32 %v3162_v35, %v7363_v40  ;;  %v3170_v13 = vmul.f32 %v3163_v41, %v7360_v30  ;;  %v3171_v28 = vmul.f32 %v3163_v41, %v7363_v40 }
 0x3a9   : > { %v3172_v20 = vmul.f32 %v3164_v19, %v7360_v30  ;;  %v3173_v56 = vmul.f32 %v3164_v19, %v7363_v40  ;;  %v3174_v3 = vmul.f32 %v3165_v15, %v7360_v30  ;;  %v3175_v39 = vmul.f32 %v3165_v15, %v7363_v40 }
 0x3aa   : > { %v3176_v0 = vmul.f32 %v3166_v47, %v7360_v30  ;;  %v3177_v8 = vmul.f32 %v3166_v47, %v7363_v40  ;;  %v3178_v55 = vmul.f32 %v3167_v38, %v7360_v30  ;;  %v3179_v18 = vmul.f32 %v3167_v38, %v7363_v40 }
 0x3ab   : > { %v7504_v54 = vsub.f32 %v7366_v27, %v3168_v37  ;;  %v7507_v60 = vsub.f32 %v7369_v42, %v3169_v22  ;;  %v7510_v46 = vsub.f32 %v7372_v23, %v3170_v13  ;;  %v7513_v5 = vsub.f32 %v7375_v49, %v3171_v28 }
 0x3ac   : > { %v7516_v16 = vsub.f32 %v7378_v24, %v3172_v20  ;;  %v7519_v33 = vsub.f32 %v7381_v11, %v3173_v56  ;;  %v7522_v30 = vsub.f32 %v7384_v26, %v3174_v3  ;;  %v7525_v40 = vsub.f32 %v7387_v62, %v3175_v39 }
 0x3ad   : > { %v7528_v27 = vsub.f32 %v7390_v17, %v3176_v0  ;;  %v7531_v42 = vsub.f32 %v7393_v32, %v3177_v8  ;;  %v7534_v23 = vsub.f32 %v7396_v50, %v3178_v55  ;;  %v7537_v49 = vsub.f32 %v7399_v45, %v3179_v18 }
 0x3ae   : > { %v3192_v24 = vmul.f32 %v3162_v35, %v7411_v51  ;;  %v3193_v11 = vmul.f32 %v3163_v41, %v7411_v51  ;;  %v3194_v26 = vmul.f32 %v3164_v19, %v7411_v51  ;;  %v3195_v62 = vmul.f32 %v3165_v15, %v7411_v51 }
 0x3af   : > { %v3196_v17 = vmul.f32 %v3166_v47, %v7411_v51  ;;  %v3197_v58 = vmul.f32 %v3167_v38, %v7411_v51  ;;  %v3204_v32 = vmul.f32 %v7504_v54, %v7504_v54  ;;  %v3205_v50 = vmul.f32 %v7507_v60, %v7507_v60 }
 0x3b0   : > { %v7550_v45 = vsub.f32 %v7414_v10, %v3192_v24  ;;  %v7553_v21 = vsub.f32 %v7417_v61, %v3193_v11  ;;  %v7556_v14 = vsub.f32 %v7420_v31, %v3194_v26  ;;  %v7559_v9 = vsub.f32 %v7423_v25, %v3195_v62 }
 0x3b1   : > { %v7562_v51 = vsub.f32 %v7426_v36, %v3196_v17  ;;  %v7565_v4 = vsub.f32 %v7429_v1, %v3197_v58  ;;  %v3206_v52 = vmul.f32 %v7510_v46, %v7504_v54  ;;  %v3207_v10 = vmul.f32 %v7513_v5, %v7507_v60 }
 0x3b2   : > { %v3208_v61 = vmul.f32 %v7516_v16, %v7504_v54  ;;  %v3209_v31 = vmul.f32 %v7519_v33, %v7507_v60  ;;  %v3210_v25 = vmul.f32 %v7522_v30, %v7504_v54  ;;  %v3211_v36 = vmul.f32 %v7525_v40, %v7507_v60 }
 0x3b3   : > { %v3212_v1 = vmul.f32 %v7528_v27, %v7504_v54  ;;  %v3213_v43 = vmul.f32 %v7531_v42, %v7507_v60  ;;  %v3214_v63 = vmul.f32 %v7534_v23, %v7504_v54  ;;  %v3215_v53 = vmul.f32 %v7537_v49, %v7507_v60 }
 0x3b4   : > { %v3216_v6 = vsel %vm210_vm0, %v3204_v32, 0.0  ;;  %v3217_v7 = vsel %vm210_vm0, %v3205_v50, 0.0  ;;  %v3225_v59 = vsel %vm210_vm0, %v3206_v52, 0.0  ;;  %v3226_v29 = vsel %vm210_vm0, %v3207_v10, 0.0 }
 0x3b5   : > { %v3218_v34 = vadd.f32 %v3217_v7, %v3216_v6  ;;  %v3227_v12 = vadd.f32 %v3226_v29, %v3225_v59  ;;  %v3234_v44 = vsel %vm210_vm0, %v3208_v61, 0.0  ;;  %v3235_v48 = vsel %vm210_vm0, %v3209_v31, 0.0 }
 0x3b6   : > { %v3236_v57 = vadd.f32 %v3235_v48, %v3234_v44  ;;  %v3243_v35 = vsel %vm210_vm0, %v3210_v25, 0.0  ;;  %v3244_v41 = vsel %vm210_vm0, %v3211_v36, 0.0  ;;  %v3252_v19 = vsel %vm210_vm0, %v3212_v1, 0.0 }
 0x3b7   : > { %v3219_v15 = vrot.slane %v3218_v34, 4  ;;  %v3228_v47 = vrot.slane %v3227_v12, 4  ;;  %v3245_v38 = vadd.f32 %v3244_v41, %v3243_v35  ;;  %v3253_v37 = vsel %vm210_vm0, %v3213_v43, 0.0 }
 0x3b8   : > { %v3237_v22 = vrot.slane %v3236_v57, 4  ;;  %v3254_v13 = vadd.f32 %v3253_v37, %v3252_v19  ;;  %v3261_v28 = vsel %vm210_vm0, %v3214_v63, 0.0  ;;  %v3262_v20 = vsel %vm210_vm0, %v3215_v53, 0.0  ;;  %v8587_v19 = vld [vmem:[#allocation15_spill] sm:$0xff] }
 0x3b9   : > { %v3220_v56 = vadd.f32 %v3219_v15, %v3218_v34  ;;  %v3229_v3 = vadd.f32 %v3228_v47, %v3227_v12  ;;  %v3246_v39 = vrot.slane %v3245_v38, 4  ;;  %v3263_v0 = vadd.f32 %v3262_v20, %v3261_v28 }
 0x3ba   : > { %v3238_v8 = vadd.f32 %v3237_v22, %v3236_v57  ;;  %v3255_v55 = vrot.slane %v3254_v13, 4  ;;  %v3270_v18 = vmul.f32 %v7550_v45, %v7550_v45  ;;  %v3271_v24 = vmul.f32 %v7553_v21, %v7550_v45 }
 0x3bb   : > { %v3221_v11 = vrot.slane %v3220_v56, 2  ;;  %v3230_v26 = vrot.slane %v3229_v3, 2  ;;  %v3247_v62 = vadd.f32 %v3246_v39, %v3245_v38  ;;  %v3264_v17 = vrot.slane %v3263_v0, 4 }
 0x3bc   : > { %v3239_v58 = vrot.slane %v3238_v8, 2  ;;  %v3256_v32 = vadd.f32 %v3255_v55, %v3254_v13  ;;  %v3272_v50 = vmul.f32 %v7556_v14, %v7550_v45  ;;  %v3273_v52 = vmul.f32 %v7559_v9, %v7550_v45 }
 0x3bd   : > { %v3222_v10 = vadd.f32 %v3221_v11, %v3220_v56  ;;  %v3231_v61 = vadd.f32 %v3230_v26, %v3229_v3  ;;  %v3248_v31 = vrot.slane %v3247_v62, 2  ;;  %v3265_v25 = vadd.f32 %v3264_v17, %v3263_v0 }
 0x3be   : > { %v3240_v36 = vadd.f32 %v3239_v58, %v3238_v8  ;;  %v3257_v1 = vrot.slane %v3256_v32, 2  ;;  %v3274_v43 = vmul.f32 %v7562_v51, %v7550_v45  ;;  %v3275_v63 = vmul.f32 %v7565_v4, %v7550_v45 }
 0x3bf   : > { %v3223_v53 = vrot.slane %v3222_v10, 1  ;;  %v3232_v6 = vrot.slane %v3231_v61, 1  ;;  %v3249_v7 = vadd.f32 %v3248_v31, %v3247_v62  ;;  %v3266_v59 = vrot.slane %v3265_v25, 2 }
 0x3c0   : > { %v3241_v29 = vrot.slane %v3240_v36, 1  ;;  %v3258_v34 = vadd.f32 %v3257_v1, %v3256_v32  ;;  %v3283_v15 = vsub.f32 1.0, %v8587_v19 }
 0x3c1   : > { %v3224_v12 = vadd.f32 %v3223_v53, %v3222_v10  ;;  %v3233_v44 = vadd.f32 %v3232_v6, %v3231_v61  ;;  %v3250_v48 = vrot.slane %v3249_v7, 1  ;;  %v3267_v57 = vadd.f32 %v3266_v59, %v3265_v25 }
 0x3c2   : > { %v3242_v35 = vadd.f32 %v3241_v29, %v3240_v36  ;;  %v3259_v41 = vrot.slane %v3258_v34, 1 }
 0x3c3   : > { %v3251_v47 = vadd.f32 %v3250_v48, %v3249_v7  ;;  %v3268_v38 = vrot.slane %v3267_v57, 1  ;;  %v3276_v37 = vadd.f32 %v3270_v18, %v3224_v12  ;;  %v3277_v22 = vadd.f32 %v3271_v24, %v3233_v44 }
 0x3c4   : > { %v3260_v13 = vadd.f32 %v3259_v41, %v3258_v34  ;;  %v3278_v28 = vadd.f32 %v3272_v50, %v3242_v35 }
 0x3c5   : > { %v3269_v20 = vadd.f32 %v3268_v38, %v3267_v57  ;;  %v3279_v56 = vadd.f32 %v3273_v52, %v3251_v47  ;;  %v3282_v3 = vmul.f32 %v8587_v19, %v3276_v37 }
 0x3c6   : > { %v3280_v39 = vadd.f32 %v3274_v43, %v3260_v13 }
 0x3c7   : > { %v3281_v0 = vadd.f32 %v3275_v63, %v3269_v20  ;;  %v3284_v8 = vadd.f32 %v3283_v15, %v3282_v3 }
 0x3c9   : > { %3889 = vlog2.f32 %v3284_v8 }
 0x3ca   : > { %3891 = vrcp.f32 %v3284_v8 }
 0x3d6   : > { %v3890_v55 = vpop.eup %3889 }
 0x3d7   : > { %v3892_v11 = vpop.eup %3891  ;;  %v3286_v26 = vmul.f32 0.6931472, %v3890_v55 }
 0x3d8   : > { %v3289_v62 = vmul.f32 %v3892_v11, %v3277_v22  ;;  %v3290_v17 = vmul.f32 %v3892_v11, %v3278_v28  ;;  %v3291_v58 = vmul.f32 %v3892_v11, %v3279_v56  ;;  %v3292_v32 = vmul.f32 %v3892_v11, %v3280_v39 }
 0x3d9   : > { %v7614_v18 = vadd.f32 %v3286_v26, %v7489_v2  ;;  %v3293_v24 = vmul.f32 %v3892_v11, %v3281_v0 }
 0x3da   : > { %v3294_v50 = vmul.f32 %v3289_v62, %v7504_v54  ;;  %v3295_v52 = vmul.f32 %v3289_v62, %v7507_v60  ;;  %v3296_v10 = vmul.f32 %v3290_v17, %v7504_v54  ;;  %v3297_v61 = vmul.f32 %v3290_v17, %v7507_v60 }
 0x3db   : > { %v3298_v31 = vmul.f32 %v3291_v58, %v7504_v54  ;;  %v3299_v25 = vmul.f32 %v3291_v58, %v7507_v60  ;;  %v3300_v36 = vmul.f32 %v3292_v32, %v7504_v54  ;;  %v3301_v1 = vmul.f32 %v3292_v32, %v7507_v60 }
 0x3dc   : > { %v3302_v2 = vmul.f32 %v3293_v24, %v7504_v54  ;;  %v3303_v43 = vmul.f32 %v3293_v24, %v7507_v60  ;;  %v7627_v63 = vsub.f32 %v7510_v46, %v3294_v50  ;;  %v7630_v53 = vsub.f32 %v7513_v5, %v3295_v52 }
 0x3dd   : > { %v7633_v6 = vsub.f32 %v7516_v16, %v3296_v10  ;;  %v7636_v7 = vsub.f32 %v7519_v33, %v3297_v61  ;;  %v7639_v59 = vsub.f32 %v7522_v30, %v3298_v31  ;;  %v7642_v29 = vsub.f32 %v7525_v40, %v3299_v25 }
 0x3de   : > { %v7645_v54 = vsub.f32 %v7528_v27, %v3300_v36  ;;  %v7648_v60 = vsub.f32 %v7531_v42, %v3301_v1  ;;  %v7651_v46 = vsub.f32 %v7534_v23, %v3302_v2  ;;  %v7654_v5 = vsub.f32 %v7537_v49, %v3303_v43 }
 0x3df   : > { %v3314_v16 = vmul.f32 %v3289_v62, %v7550_v45  ;;  %v3315_v33 = vmul.f32 %v3290_v17, %v7550_v45  ;;  %v3316_v30 = vmul.f32 %v3291_v58, %v7550_v45  ;;  %v3317_v40 = vmul.f32 %v3292_v32, %v7550_v45 }
 0x3e0   : > { %v3318_v27 = vmul.f32 %v3293_v24, %v7550_v45  ;;  %v3324_v42 = vmul.f32 %v7627_v63, %v7627_v63  ;;  %v3325_v23 = vmul.f32 %v7630_v53, %v7630_v53  ;;  %v3326_v49 = vmul.f32 %v7633_v6, %v7627_v63 }
 0x3e1   : > { %v7668_v34 = vsub.f32 %v7553_v21, %v3314_v16  ;;  %v7671_v12 = vsub.f32 %v7556_v14, %v3315_v33  ;;  %v7674_v44 = vsub.f32 %v7559_v9, %v3316_v30  ;;  %v7677_v45 = vsub.f32 %v7562_v51, %v3317_v40 }
 0x3e2   : > { %v7680_v48 = vsub.f32 %v7565_v4, %v3318_v27  ;;  %v3327_v57 = vmul.f32 %v7636_v7, %v7630_v53  ;;  %v3328_v35 = vmul.f32 %v7639_v59, %v7627_v63  ;;  %v3329_v21 = vmul.f32 %v7642_v29, %v7630_v53 }
 0x3e3   : > { %v3330_v14 = vmul.f32 %v7645_v54, %v7627_v63  ;;  %v3331_v9 = vmul.f32 %v7648_v60, %v7630_v53  ;;  %v3332_v51 = vmul.f32 %v7651_v46, %v7627_v63  ;;  %v3333_v4 = vmul.f32 %v7654_v5, %v7630_v53 }
 0x3e4   : > { %v3334_v41 = vsel %vm210_vm0, %v3324_v42, 0.0  ;;  %v3335_v19 = vsel %vm210_vm0, %v3325_v23, 0.0  ;;  %v3343_v15 = vsel %vm210_vm0, %v3326_v49, 0.0  ;;  %v3344_v47 = vsel %vm210_vm0, %v3327_v57, 0.0 }
 0x3e5   : > { %v3336_v38 = vadd.f32 %v3335_v19, %v3334_v41  ;;  %v3345_v37 = vadd.f32 %v3344_v47, %v3343_v15  ;;  %v3352_v22 = vsel %vm210_vm0, %v3328_v35, 0.0  ;;  %v3353_v13 = vsel %vm210_vm0, %v3329_v21, 0.0  ;;  %v8588_v47 = vld [vmem:[#allocation16_spill] sm:$0xff] }
 0x3e6   : > { %v3354_v28 = vadd.f32 %v3353_v13, %v3352_v22  ;;  %v3361_v20 = vsel %vm210_vm0, %v3330_v14, 0.0  ;;  %v3362_v56 = vsel %vm210_vm0, %v3331_v9, 0.0  ;;  %v3370_v3 = vsel %vm210_vm0, %v3332_v51, 0.0 }
 0x3e7   : > { %v3337_v39 = vrot.slane %v3336_v38, 4  ;;  %v3346_v0 = vrot.slane %v3345_v37, 4  ;;  %v3363_v8 = vadd.f32 %v3362_v56, %v3361_v20  ;;  %v3371_v55 = vsel %vm210_vm0, %v3333_v4, 0.0 }
 0x3e8   : > { %v3355_v11 = vrot.slane %v3354_v28, 4  ;;  %v3372_v26 = vadd.f32 %v3371_v55, %v3370_v3  ;;  %v3380_v62 = vmul.f32 %v7671_v12, %v7668_v34  ;;  %v3381_v24 = vmul.f32 %v7674_v44, %v7668_v34 }
 0x3e9   : > { %v3338_v17 = vadd.f32 %v3337_v39, %v3336_v38  ;;  %v3347_v58 = vadd.f32 %v3346_v0, %v3345_v37  ;;  %v3364_v32 = vrot.slane %v3363_v8, 4  ;;  %v3382_v10 = vmul.f32 %v7677_v45, %v7668_v34 }
 0x3ea   : > { %v3356_v50 = vadd.f32 %v3355_v11, %v3354_v28  ;;  %v3373_v52 = vrot.slane %v3372_v26, 4  ;;  %v3383_v61 = vmul.f32 %v7680_v48, %v7668_v34  ;;  %v3379_v49 = vmul.f32 %v7668_v34, %v7668_v34 }
 0x3eb   : > { %v3339_v31 = vrot.slane %v3338_v17, 2  ;;  %v3348_v25 = vrot.slane %v3347_v58, 2  ;;  %v3365_v36 = vadd.f32 %v3364_v32, %v3363_v8  ;;  %v3390_v38 = vsub.f32 1.0, %v8588_v47 }
 0x3ec   : > { %v3357_v1 = vrot.slane %v3356_v50, 2  ;;  %v3374_v2 = vadd.f32 %v3373_v52, %v3372_v26 }
 0x3ed   : > { %v3340_v43 = vadd.f32 %v3339_v31, %v3338_v17  ;;  %v3349_v16 = vadd.f32 %v3348_v25, %v3347_v58  ;;  %v3366_v33 = vrot.slane %v3365_v36, 2 }
 0x3ee   : > { %v3358_v30 = vadd.f32 %v3357_v1, %v3356_v50  ;;  %v3375_v40 = vrot.slane %v3374_v2, 2 }
 0x3ef   : > { %v3341_v27 = vrot.slane %v3340_v43, 1  ;;  %v3350_v42 = vrot.slane %v3349_v16, 1  ;;  %v3367_v23 = vadd.f32 %v3366_v33, %v3365_v36 }
 0x3f0   : > { %v3359_v57 = vrot.slane %v3358_v30, 1  ;;  %v3376_v35 = vadd.f32 %v3375_v40, %v3374_v2 }
 0x3f1   : > { %v3342_v21 = vadd.f32 %v3341_v27, %v3340_v43  ;;  %v3351_v14 = vadd.f32 %v3350_v42, %v3349_v16  ;;  %v3368_v9 = vrot.slane %v3367_v23, 1 }
 0x3f2   : > { %v3360_v51 = vadd.f32 %v3359_v57, %v3358_v30  ;;  %v3377_v4 = vrot.slane %v3376_v35, 1 }
 0x3f3   : > { %v3369_v41 = vadd.f32 %v3368_v9, %v3367_v23  ;;  %v3384_v19 = vadd.f32 %v3379_v49, %v3342_v21  ;;  %v3385_v15 = vadd.f32 %v3380_v62, %v3351_v14 }
 0x3f4   : > { %v3378_v37 = vadd.f32 %v3377_v4, %v3376_v35  ;;  %v3386_v22 = vadd.f32 %v3381_v24, %v3360_v51 }
 0x3f5   : > { %v3387_v13 = vadd.f32 %v3382_v10, %v3369_v41  ;;  %v3389_v28 = vmul.f32 %v8588_v47, %v3384_v19 }
 0x3f6   : > { %v3388_v20 = vadd.f32 %v3383_v61, %v3378_v37 }
 0x3f7   : > { %v3391_v56 = vadd.f32 %v3390_v38, %v3389_v28 }
 0x3f9   : > { %3893 = vlog2.f32 %v3391_v56 }
 0x3fa   : > { %3895 = vrcp.f32 %v3391_v56 }
 0x406   : > { %v3894_v3 = vpop.eup %3893 }
 0x407   : > { %v3896_v39 = vpop.eup %3895  ;;  %v3393_v0 = vmul.f32 0.6931472, %v3894_v3 }
 0x408   : > { %v3396_v8 = vmul.f32 %v3896_v39, %v3385_v15  ;;  %v3397_v55 = vmul.f32 %v3896_v39, %v3386_v22  ;;  %v3398_v11 = vmul.f32 %v3896_v39, %v3387_v13  ;;  %v3399_v26 = vmul.f32 %v3896_v39, %v3388_v20 }
 0x409   : > { %v7719_v62 = vadd.f32 %v3393_v0, %v7614_v18 }
 0x40a   : > { %v3400_v17 = vmul.f32 %v3396_v8, %v7627_v63  ;;  %v3401_v58 = vmul.f32 %v3396_v8, %v7630_v53  ;;  %v3402_v32 = vmul.f32 %v3397_v55, %v7627_v63  ;;  %v3403_v24 = vmul.f32 %v3397_v55, %v7630_v53 }
 0x40b   : > { %v3404_v50 = vmul.f32 %v3398_v11, %v7627_v63  ;;  %v3405_v52 = vmul.f32 %v3398_v11, %v7630_v53  ;;  %v3406_v10 = vmul.f32 %v3399_v26, %v7627_v63  ;;  %v3407_v61 = vmul.f32 %v3399_v26, %v7630_v53 }
 0x40c   : > { %v7730_v31 = vsub.f32 %v7633_v6, %v3400_v17  ;;  %v7733_v18 = vsub.f32 %v7636_v7, %v3401_v58  ;;  %v7736_v25 = vsub.f32 %v7639_v59, %v3402_v32  ;;  %v7739_v36 = vsub.f32 %v7642_v29, %v3403_v24 }
 0x40d   : > { %v7742_v1 = vsub.f32 %v7645_v54, %v3404_v50  ;;  %v7745_v2 = vsub.f32 %v7648_v60, %v3405_v52  ;;  %v7748_v63 = vsub.f32 %v7651_v46, %v3406_v10  ;;  %v7751_v53 = vsub.f32 %v7654_v5, %v3407_v61 }
 0x40e   : > { %v3416_v6 = vmul.f32 %v3396_v8, %v7668_v34  ;;  %v3417_v7 = vmul.f32 %v3397_v55, %v7668_v34  ;;  %v3418_v59 = vmul.f32 %v3398_v11, %v7668_v34  ;;  %v3419_v29 = vmul.f32 %v3399_v26, %v7668_v34 }
 0x40f   : > { %v3424_v54 = vmul.f32 %v7730_v31, %v7730_v31  ;;  %v3425_v60 = vmul.f32 %v7733_v18, %v7733_v18  ;;  %v3426_v46 = vmul.f32 %v7736_v25, %v7730_v31  ;;  %v3427_v5 = vmul.f32 %v7739_v36, %v7733_v18 }
 0x410   : > { %v7766_v43 = vsub.f32 %v7671_v12, %v3416_v6  ;;  %v7769_v16 = vsub.f32 %v7674_v44, %v3417_v7  ;;  %v7772_v34 = vsub.f32 %v7677_v45, %v3418_v59  ;;  %v7775_v33 = vsub.f32 %v7680_v48, %v3419_v29  ;;  %v8589_v29 = vld [vmem:[#allocation17_spill] sm:$0xff] }
 0x411   : > { %v3428_v30 = vmul.f32 %v7742_v1, %v7730_v31  ;;  %v3429_v40 = vmul.f32 %v7745_v2, %v7733_v18  ;;  %v3430_v27 = vmul.f32 %v7748_v63, %v7730_v31  ;;  %v3431_v12 = vmul.f32 %v7751_v53, %v7733_v18 }
 0x412   : > { %v3432_v44 = vsel %vm210_vm0, %v3424_v54, 0.0  ;;  %v3433_v45 = vsel %vm210_vm0, %v3425_v60, 0.0  ;;  %v3441_v42 = vsel %vm210_vm0, %v3426_v46, 0.0  ;;  %v3442_v48 = vsel %vm210_vm0, %v3427_v5, 0.0 }
 0x413   : > { %v3434_v23 = vadd.f32 %v3433_v45, %v3432_v44  ;;  %v3443_v49 = vadd.f32 %v3442_v48, %v3441_v42  ;;  %v3450_v57 = vsel %vm210_vm0, %v3428_v30, 0.0  ;;  %v3451_v35 = vsel %vm210_vm0, %v3429_v40, 0.0 }
 0x414   : > { %v3452_v21 = vadd.f32 %v3451_v35, %v3450_v57  ;;  %v3459_v14 = vsel %vm210_vm0, %v3430_v27, 0.0  ;;  %v3460_v9 = vsel %vm210_vm0, %v3431_v12, 0.0  ;;  %v3469_v19 = vmul.f32 %v7769_v16, %v7766_v43 }
 0x415   : > { %v3435_v51 = vrot.slane %v3434_v23, 4  ;;  %v3444_v4 = vrot.slane %v3443_v49, 4  ;;  %v3461_v41 = vadd.f32 %v3460_v9, %v3459_v14  ;;  %v3470_v47 = vmul.f32 %v7772_v34, %v7766_v43 }
 0x416   : > { %v3453_v15 = vrot.slane %v3452_v21, 4  ;;  %v3471_v38 = vmul.f32 %v7775_v33, %v7766_v43  ;;  %v3468_v32 = vmul.f32 %v7766_v43, %v7766_v43  ;;  %v3477_v54 = vsub.f32 1.0, %v8589_v29 }
 0x417   : > { %v3436_v37 = vadd.f32 %v3435_v51, %v3434_v23  ;;  %v3445_v22 = vadd.f32 %v3444_v4, %v3443_v49  ;;  %v3462_v13 = vrot.slane %v3461_v41, 4 }
 0x418   : > { %v3454_v28 = vadd.f32 %v3453_v15, %v3452_v21 }
 0x419   : > { %v3437_v20 = vrot.slane %v3436_v37, 2  ;;  %v3446_v56 = vrot.slane %v3445_v22, 2  ;;  %v3463_v3 = vadd.f32 %v3462_v13, %v3461_v41 }
 0x41a   : > { %v3455_v39 = vrot.slane %v3454_v28, 2 }
 0x41b   : > { %v3438_v0 = vadd.f32 %v3437_v20, %v3436_v37  ;;  %v3447_v8 = vadd.f32 %v3446_v56, %v3445_v22  ;;  %v3464_v55 = vrot.slane %v3463_v3, 2 }
 0x41c   : > { %v3456_v11 = vadd.f32 %v3455_v39, %v3454_v28 }
 0x41d   : > { %v3439_v26 = vrot.slane %v3438_v0, 1  ;;  %v3448_v17 = vrot.slane %v3447_v8, 1  ;;  %v3465_v58 = vadd.f32 %v3464_v55, %v3463_v3 }
 0x41e   : > { %v3457_v24 = vrot.slane %v3456_v11, 1 }
 0x41f   : > { %v3440_v50 = vadd.f32 %v3439_v26, %v3438_v0  ;;  %v3449_v52 = vadd.f32 %v3448_v17, %v3447_v8  ;;  %v3466_v10 = vrot.slane %v3465_v58, 1 }
 0x420   : > { %v3458_v61 = vadd.f32 %v3457_v24, %v3456_v11  ;;  %v8590_v11 = vld [vmem:[#allocation18_spill] sm:$0xff] }
 0x421   : > { %v3467_v6 = vadd.f32 %v3466_v10, %v3465_v58  ;;  %v3472_v7 = vadd.f32 %v3468_v32, %v3440_v50  ;;  %v3473_v59 = vadd.f32 %v3469_v19, %v3449_v52  ;;  %3625 = vst.msk [vmem:[%s169_s30] sm:$0x1] %vm3623_vm4, %v8590_v11 }
 0x422   : > { %v3474_v60 = vadd.f32 %v3470_v47, %v3458_v61 }
 0x423   : > { %v3475_v46 = vadd.f32 %v3471_v38, %v3467_v6  ;;  %v3476_v5 = vmul.f32 %v8589_v29, %v3472_v7 }
 0x425   : > { %v3478_v30 = vadd.f32 %v3477_v54, %v3476_v5 }
 0x427   : > { %3897 = vlog2.f32 %v3478_v30 }
 0x428   : > { %3899 = vrcp.f32 %v3478_v30 }
 0x434   : > { %v3898_v40 = vpop.eup %3897 }
 0x435   : > { %v3900_v27 = vpop.eup %3899  ;;  %v3480_v12 = vmul.f32 0.6931472, %v3898_v40 }
 0x436   : > { %v3483_v44 = vmul.f32 %v3900_v27, %v3473_v59  ;;  %v3484_v45 = vmul.f32 %v3900_v27, %v3474_v60  ;;  %v3485_v42 = vmul.f32 %v3900_v27, %v3475_v46 }
 0x437   : > { %v7804_v48 = vadd.f32 %v3480_v12, %v7719_v62 }
 0x438   : > { %v3486_v23 = vmul.f32 %v3483_v44, %v7730_v31  ;;  %v3487_v49 = vmul.f32 %v3483_v44, %v7733_v18  ;;  %v3488_v57 = vmul.f32 %v3484_v45, %v7730_v31  ;;  %v3489_v35 = vmul.f32 %v3484_v45, %v7733_v18 }
 0x439   : > { %v3490_v21 = vmul.f32 %v3485_v42, %v7730_v31  ;;  %v3491_v14 = vmul.f32 %v3485_v42, %v7733_v18  ;;  %v3498_v9 = vmul.f32 %v3483_v44, %v7766_v43  ;;  %v3499_v51 = vmul.f32 %v3484_v45, %v7766_v43 }
 0x43a   : > { %v7818_v62 = vsub.f32 %v7736_v25, %v3486_v23  ;;  %v7821_v4 = vsub.f32 %v7739_v36, %v3487_v49  ;;  %v7824_v41 = vsub.f32 %v7742_v1, %v3488_v57  ;;  %v7827_v19 = vsub.f32 %v7745_v2, %v3489_v35 }
 0x43b   : > { %v7830_v31 = vsub.f32 %v7748_v63, %v3490_v21  ;;  %v7833_v18 = vsub.f32 %v7751_v53, %v3491_v14  ;;  %v3500_v15 = vmul.f32 %v3485_v42, %v7766_v43  ;;  %v7837_v25 = vsub.f32 %v7769_v16, %v3498_v9 }
 0x43c   : > { %v7840_v36 = vsub.f32 %v7772_v34, %v3499_v51  ;;  %v3504_v1 = vmul.f32 %v7818_v62, %v7818_v62  ;;  %v3505_v2 = vmul.f32 %v7821_v4, %v7821_v4  ;;  %v3506_v63 = vmul.f32 %v7824_v41, %v7818_v62 }
 0x43d   : > { %v7849_v53 = vsub.f32 %v7775_v33, %v3500_v15  ;;  %v3507_v43 = vmul.f32 %v7827_v19, %v7821_v4  ;;  %v3508_v16 = vmul.f32 %v7830_v31, %v7818_v62  ;;  %v3509_v34 = vmul.f32 %v7833_v18, %v7821_v4 }
 0x43e   : > { %v3510_v47 = vsel %vm210_vm0, %v3504_v1, 0.0  ;;  %v3511_v38 = vsel %vm210_vm0, %v3505_v2, 0.0  ;;  %v3519_v37 = vsel %vm210_vm0, %v3506_v63, 0.0  ;;  %v3538_v3 = vmul.f32 %v7840_v36, %v7837_v25 }
 0x43f   : > { %v3512_v22 = vadd.f32 %v3511_v38, %v3510_v47  ;;  %v3520_v33 = vsel %vm210_vm0, %v3507_v43, 0.0  ;;  %v3528_v13 = vsel %vm210_vm0, %v3508_v16, 0.0  ;;  %v3529_v28 = vsel %vm210_vm0, %v3509_v34, 0.0 }
 0x440   : > { %v3521_v20 = vadd.f32 %v3520_v33, %v3519_v37  ;;  %v3530_v56 = vadd.f32 %v3529_v28, %v3528_v13  ;;  %v3539_v39 = vmul.f32 %v7849_v53, %v7837_v25 }
 0x441   : > { %v3513_v0 = vrot.slane %v3512_v22, 4 }
 0x442   : > { %v3522_v8 = vrot.slane %v3521_v20, 4  ;;  %v3531_v55 = vrot.slane %v3530_v56, 4 }
 0x443   : > { %v3514_v26 = vadd.f32 %v3513_v0, %v3512_v22 }
 0x444   : > { %3949 = shalt.err (!%p3946_p5)
}
 0x445   : > { %s3950_s20 = scalar_lea.hbm %s7874_s6, 16  ;;  %s3954_s25 = scalar_lea.hbm %s7972_s2, 32 }
 0x446   : > { %p3951_p6 = scmp.ne.s32.totalorder %s7874_s6, %s3950_s20  ;;  %p3955_p10 = scmp.lt.s32.totalorder %s7874_s6, %s7972_s2 }
 0x447   : > { %p3956_p11 = scmp.lt.s32.totalorder %s3954_s25, %s3950_s20 }
 0x448   : > { %p3952_p7 = pnand %p3951_p6, %p4102_p4 }
 0x449   : > { %p3957_p12 = por %p3956_p11, %p3955_p10 }
 0x44a   : > { %p3953_p9 = pneg %p3952_p7 }
 0x44c   : > { %p3958_p13 = pnand %p3957_p12, %p3953_p9 }
 0x44e   : > { %3961 = shalt.err (!%p3958_p13)
}
 0x44f   : > { %3787 = dma.vmem_to_hbm [thread:$0]  (%p4102_p4), %s7876_s3, 16, %s7874_s6, %s3631_s7   ;;  %v3523_v17 = vadd.f32 %v3522_v8, %v3521_v20  ;;  %v3532_v58 = vadd.f32 %v3531_v55, %v3530_v56  ;;  %v3515_v32 = vrot.slane %v3514_v26, 2  ;;  %v3537_v7 = vmul.f32 %v7837_v25, %v7837_v25  ;;  %v8591_v30 = vld [vmem:[#allocation20_spill] sm:$0xff] }
 0x450   : > { %v3544_v40 = vsub.f32 1.0, %v8591_v30  ;;  %s163_s30 = scalar_lea.vmem [#allocation2], %s7811_s28  ;;  %s3642_s6 = scalar_lea.hbm %s7971_s1, %s3781_s29 }
 0x451   : > { %v3524_v24 = vrot.slane %v3523_v17, 2  ;;  %v3533_v50 = vrot.slane %v3532_v58, 2  ;;  %v3516_v52 = vadd.f32 %v3515_v32, %v3514_v26  ;;  %v8592_v32 = vld [vmem:[#allocation21_spill] sm:$0xff]  ;;  %s3644_s3 = sshll.u32 %s163_s30, 4  ;;  %s3627_s7 = scalar_lea.sflag [#allocation3], %s7811_s28  ;;  %s3645_s3 = int_to_ptr.vmem [resolvable:$true] %s3644_s3 }
 0x452   : > { %s3962_s8 = scalar_lea.vmem %s3645_s3, 16  ;;  %s4046_s15 = smov [#allocation2]  }
 0x453   : > { %v3525_v10 = vadd.f32 %v3524_v24, %v3523_v17  ;;  %v3534_v61 = vadd.f32 %v3533_v50, %v3532_v58  ;;  %v3517_v6 = vrot.slane %v3516_v52, 1  ;;  %v3591_v24 = vsub.f32 1.0, %v8592_v32  ;;  %p3963_p0 = scmp.ne.s32.totalorder %s3645_s3, %s3962_s8  ;;  %s3966_s16 = sshll.u32 %s4046_s15, 4  ;;  %s3967_s16 = int_to_ptr.vmem [resolvable:$false] %s3966_s16 }
 0x454   : > { %s3968_s18 = scalar_lea.vmem %s3967_s16, 32  ;;  %p3969_p3 = scmp.lt.s32.totalorder %s3645_s3, %s3967_s16 }
 0x455   : > { %v3526_v59 = vrot.slane %v3525_v10, 1  ;;  %v3535_v29 = vrot.slane %v3534_v61, 1  ;;  %v3518_v54 = vadd.f32 %v3517_v6, %v3516_v52  ;;  %p3964_p1 = pnand %p3963_p0, %p4102_p4  ;;  %p3970_p5 = scmp.lt.s32.totalorder %s3968_s18, %s3962_s8 }
 0x457   : > { %v3527_v60 = vadd.f32 %v3526_v59, %v3525_v10  ;;  %v3536_v46 = vadd.f32 %v3535_v29, %v3534_v61  ;;  %v3540_v5 = vadd.f32 %v3537_v7, %v3518_v54  ;;  %p3965_p2 = pneg %p3964_p1  ;;  %p3971_p6 = por %p3970_p5, %p3969_p3 }
 0x459   : > { %v3541_v27 = vadd.f32 %v3538_v3, %v3527_v60  ;;  %v3542_v12 = vadd.f32 %v3539_v39, %v3536_v46  ;;  %v3543_v44 = vmul.f32 %v8591_v30, %v3540_v5  ;;  %p3972_p7 = pnand %p3971_p6, %p3965_p2 }
 0x45b   : > { %v3545_v45 = vadd.f32 %v3544_v40, %v3543_v44 }
 0x45d   : > { %3901 = vlog2.f32 %v3545_v45 }
 0x45e   : > { %3903 = vrcp.f32 %v3545_v45 }
 0x46a   : > { %v3902_v42 = vpop.eup %3901 }
 0x46b   : > { %v3904_v23 = vpop.eup %3903  ;;  %v3547_v49 = vmul.f32 0.6931472, %v3902_v42 }
 0x46c   : > { %v3550_v57 = vmul.f32 %v3904_v23, %v3541_v27  ;;  %v3551_v35 = vmul.f32 %v3904_v23, %v3542_v12 }
 0x46d   : > { %v3548_v21 = vadd.f32 %v3547_v49, %v7804_v48 }
 0x46e   : > { %v3552_v14 = vmul.f32 %v3550_v57, %v7818_v62  ;;  %v3553_v9 = vmul.f32 %v3550_v57, %v7821_v4  ;;  %v3554_v51 = vmul.f32 %v3551_v35, %v7818_v62  ;;  %v3555_v15 = vmul.f32 %v3551_v35, %v7821_v4 }
 0x46f   : > { %v3560_v1 = vmul.f32 %v3550_v57, %v7837_v25  ;;  %v3561_v2 = vmul.f32 %v3551_v35, %v7837_v25 }
 0x470   : > { %v3556_v63 = vsub.f32 %v7824_v41, %v3552_v14  ;;  %v3557_v43 = vsub.f32 %v7827_v19, %v3553_v9  ;;  %v3558_v16 = vsub.f32 %v7830_v31, %v3554_v51  ;;  %v3559_v48 = vsub.f32 %v7833_v18, %v3555_v15  ;;  %v8593_v51 = vld [vmem:[#allocation22_spill] sm:$0xff] }
 0x471   : > { %v3562_v34 = vsub.f32 %v7840_v36, %v3560_v1  ;;  %v3563_v47 = vsub.f32 %v7849_v53, %v3561_v2  ;;  %v3618_v15 = vsub.f32 1.0, %v8593_v51 }
 0x472   : > { %v3564_v38 = vmul.f32 %v3556_v63, %v3556_v63  ;;  %v3565_v62 = vmul.f32 %v3557_v43, %v3557_v43  ;;  %v3566_v37 = vmul.f32 %v3558_v16, %v3556_v63  ;;  %v3567_v4 = vmul.f32 %v3559_v48, %v3557_v43 }
 0x473   : > { %v3587_v22 = vmul.f32 %v3563_v47, %v3562_v34  ;;  %v3586_v55 = vmul.f32 %v3562_v34, %v3562_v34 }
 0x474   : > { %v3568_v33 = vsel %vm210_vm0, %v3564_v38, 0.0  ;;  %v3569_v25 = vsel %vm210_vm0, %v3565_v62, 0.0  ;;  %v3577_v41 = vsel %vm210_vm0, %v3566_v37, 0.0  ;;  %v3578_v19 = vsel %vm210_vm0, %v3567_v4, 0.0 }
 0x475   : > { %v3570_v31 = vadd.f32 %v3569_v25, %v3568_v33  ;;  %v3579_v13 = vadd.f32 %v3578_v19, %v3577_v41 }
 0x477   : > { %v3571_v18 = vrot.slane %v3570_v31, 4  ;;  %v3580_v28 = vrot.slane %v3579_v13, 4 }
 0x479   : > { %v3572_v36 = vadd.f32 %v3571_v18, %v3570_v31  ;;  %v3581_v20 = vadd.f32 %v3580_v28, %v3579_v13 }
 0x47b   : > { %v3573_v53 = vrot.slane %v3572_v36, 2  ;;  %v3582_v56 = vrot.slane %v3581_v20, 2 }
 0x47d   : > { %v3574_v3 = vadd.f32 %v3573_v53, %v3572_v36  ;;  %v3583_v39 = vadd.f32 %v3582_v56, %v3581_v20 }
 0x47f   : > { %v3575_v0 = vrot.slane %v3574_v3, 1  ;;  %v3584_v8 = vrot.slane %v3583_v39, 1 }
 0x481   : > { %v3576_v11 = vadd.f32 %v3575_v0, %v3574_v3  ;;  %v3585_v26 = vadd.f32 %v3584_v8, %v3583_v39 }
 0x483   : > { %v3588_v17 = vadd.f32 %v3586_v55, %v3576_v11  ;;  %v3589_v58 = vadd.f32 %v3587_v22, %v3585_v26 }
 0x485   : > { %v3590_v50 = vmul.f32 %v8592_v32, %v3588_v17 }
 0x487   : > { %v3592_v52 = vadd.f32 %v3591_v24, %v3590_v50 }
 0x489   : > { %3905 = vlog2.f32 %v3592_v52 }
 0x48a   : > { %3907 = vrcp.f32 %v3592_v52 }
 0x496   : > { %v3906_v10 = vpop.eup %3905 }
 0x497   : > { %v3908_v61 = vpop.eup %3907  ;;  %v3594_v6 = vmul.f32 0.6931472, %v3906_v10 }
 0x498   : > { %v3597_v7 = vmul.f32 %v3908_v61, %v3589_v58 }
 0x499   : > { %v3595_v59 = vadd.f32 %v3594_v6, %v3548_v21 }
 0x49a   : > { %v3598_v29 = vmul.f32 %v3597_v7, %v3556_v63  ;;  %v3599_v54 = vmul.f32 %v3597_v7, %v3557_v43  ;;  %v3602_v60 = vmul.f32 %v3597_v7, %v3562_v34 }
 0x49c   : > { %v3600_v46 = vsub.f32 %v3558_v16, %v3598_v29  ;;  %v3601_v5 = vsub.f32 %v3559_v48, %v3599_v54  ;;  %v3603_v30 = vsub.f32 %v3563_v47, %v3602_v60 }
 0x49e   : > { %v3604_v40 = vmul.f32 %v3600_v46, %v3600_v46  ;;  %v3605_v27 = vmul.f32 %v3601_v5, %v3601_v5  ;;  %v3615_v21 = vmul.f32 %v3603_v30, %v3603_v30 }
 0x4a0   : > { %v3606_v12 = vsel %vm210_vm0, %v3604_v40, 0.0  ;;  %v3607_v44 = vsel %vm210_vm0, %v3605_v27, 0.0 }
 0x4a1   : > { %v3608_v45 = vadd.f32 %v3607_v44, %v3606_v12 }
 0x4a3   : > { %v3609_v42 = vrot.slane %v3608_v45, 4 }
 0x4a5   : > { %v3610_v23 = vadd.f32 %v3609_v42, %v3608_v45 }
 0x4a7   : > { %v3611_v49 = vrot.slane %v3610_v23, 2 }
 0x4a9   : > { %v3612_v57 = vadd.f32 %v3611_v49, %v3610_v23 }
 0x4ab   : > { %v3613_v35 = vrot.slane %v3612_v57, 1 }
 0x4ad   : > { %v3614_v14 = vadd.f32 %v3613_v35, %v3612_v57 }
 0x4af   : > { %v3616_v9 = vadd.f32 %v3615_v21, %v3614_v14 }
 0x4b1   : > { %v3617_v1 = vmul.f32 %v8593_v51, %v3616_v9 }
 0x4b3   : > { %v3619_v2 = vadd.f32 %v3618_v15, %v3617_v1 }
 0x4b5   : > { %3909 = vlog2.f32 %v3619_v2 }
 0x4c2   : > { %v3910_v63 = vpop.eup %3909 }
 0x4c3   : > { %v3621_v43 = vmul.f32 0.6931472, %v3910_v63 }
 0x4c5   : > { %v3622_v16 = vadd.f32 %v3621_v43, %v3595_v59 }
 0x4c7   : > { %3624 = vst.msk [vmem:[%s163_s30] sm:$0x1] %vm3623_vm4, %v3622_v16 }
 0x4c8   : > { %3975 = shalt.err (!%p3972_p7)
}
 0x4c9   : > { %s3976_s12 = scalar_lea.hbm %s3642_s6, 16  ;;  %s3980_s20 = scalar_lea.hbm %s7971_s1, 32 }
 0x4ca   : > { %p3977_p9 = scmp.ne.s32.totalorder %s3642_s6, %s3976_s12  ;;  %p3981_p12 = scmp.lt.s32.totalorder %s3642_s6, %s7971_s1 }
 0x4cb   : > { %p3982_p13 = scmp.lt.s32.totalorder %s3980_s20, %s3976_s12 }
 0x4cc   : > { %p3978_p10 = pnand %p3977_p9, %p4102_p4 }
 0x4cd   : > { %p3983_p0 = por %p3982_p13, %p3981_p12 }
 0x4ce   : > { %p3979_p11 = pneg %p3978_p10 }
 0x4d0   : > { %p3984_p1 = pnand %p3983_p0, %p3979_p11 }
 0x4d2   : > { %3987 = shalt.err (!%p3984_p1)
}
 0x4d3   : > { %3786 = dma.vmem_to_hbm [thread:$0]  (%p4102_p4), %s3645_s3, 16, %s3642_s6, %s3627_s7  }
 0x4d4 PF: > { %p3797_p2 = scmp.ge.s32.totalorder %s4042_s14, 2  ;;  %s3670_s25 = sand.u32 1, %s4022_s9  }
 0x4d5   : > { %s3671_s26 = scalar_lea.sflag [#allocation3], %s3670_s25 }
 0x4d6   : > { %p3791_p3 = pnand %p3797_p2, %p4109_p8 }
 0x4d8   : > { %p3792_p5 = pneg %p3791_p3 }
 0x4da   : > { %4013 = dma.done.wait (%p3792_p5), %s3671_s26, 16  }
 0x4db   : > { %4015 = vsyncadd (%p3792_p5), %s3671_s26, 4294967280  ;;  %s3679_s27 = scalar_lea.sflag [#allocation5], %s3670_s25 }
 0x4dc   : > { %4017 = dma.done.wait (%p3792_p5), %s3679_s27, 16  }
 0x4dd   : > { %4019 = vsyncadd (%p3792_p5), %s3679_s27, 4294967280  ;;  %s19_s14 = sadd.s32 1, %s4042_s14   ;;  %s8594_s9 = smov %s4026_s10 }
 0x4de   : > { %p16_p6 = scmp.ge.s32.totalorder %s19_s14, 4   ;;  %s8595_s10 = smov %s4030_s11 }
 0x4df   : > { %s8596_s11 = smov %s4115_s22  ;;  %s8597_s12 = smov %s4038_s13 }
 0x4e0   : > { %s8598_s13 = smov %s8600_s17  ;;  %18 = sbr.rel (!%p16_p6) target bundleno = 6 (0x6), region = 76 }
 0x4e5   :  { %3683 = vsyncpa [#allocation3], 1 }
 0x4e6   :  { %3685 = vsyncpa [#allocation3 + $0x1], 1 }
 0x4e7   :  { %3686 = vsyncpa [#allocation5], 1 }
 0x4e8   :  { %3688 = vsyncpa [#allocation5 + $0x1], 1 }

</bundles_post_ra>
